<compile_context>
chip_gen: v5e
topology: v5e:2x2
jax: 0.10.0
libtpu: 0.0.40
codegen_flags: <defaults>
</compile_context>

<pallas_src>
import functools
import numpy as np
import jax
import jax.numpy as jnp
from jax import lax
from jax.experimental import pallas as pl
from jax.experimental.pallas import tpu as pltpu


N_OUT = 5
N_OUT_PAD = 128   # lane-dense head output; real logits live in [:, :N_OUT]


# ----------------------------------------------------------------------------
# Fused kernel: LSTM recurrence + online-softmax attention + MLP head, all in VMEM
# ----------------------------------------------------------------------------
def fused_kernel(x_ref, wih_ref, whh_ref, b_ref, wa_ref, ba_ref,
                 w1_ref, b1_ref, w2_ref, b2_ref, out_ref, gx_ref):
    T, Bp, H4 = gx_ref.shape
    H = H4 // 4

    # Hoisted input projection: one bf16 MXU matmul for all timesteps (f32 acc),
    # so only h @ W_hh remains on the per-step serial critical path.
    gx = (jnp.dot(x_ref[...].astype(jnp.bfloat16), wih_ref[...],
                  preferred_element_type=jnp.float32)
          + b_ref[...])                                                # (T*Bp, 4H) f32
    gx_ref[...] = gx.reshape(T, Bp, H4)

    wa = wa_ref[...]                                                   # (1, H)  one vreg
    ba = ba_ref[...]                                                   # (1, 1)

    def sig(z):
        # sigmoid via tanh identity: a single EUP push instead of exp + reciprocal.
        return 0.5 * jnp.tanh(0.5 * z) + 0.5

    def step(t, carry):
        h, c, m, l, acc = carry
        # NOTE: keep W_hh as a Ref (256 KiB f32 / 128 KiB bf16 as a value would blow
        # the 64-vreg file); Mosaic streams the MXU RHS from VMEM.
        gates = gx_ref[t] + jnp.dot(h.astype(jnp.bfloat16), whh_ref[...],
                                    preferred_element_type=jnp.float32)  # (Bp, 4H) f32
        i = sig(gates[:, 0 * H:1 * H])
        f = sig(gates[:, 1 * H:2 * H])
        g = jnp.tanh(gates[:, 2 * H:3 * H])
        o = sig(gates[:, 3 * H:4 * H])
        c = f * c + i * g
        h = o * jnp.tanh(c)

        # Online-softmax additive attention over time, fused into the recurrence.
        # The lane-reduce is XLU filler; the two exps are off the h/c dependency chain.
        score = jnp.sum(h * wa, axis=-1, keepdims=True) + ba            # (Bp, 1)
        m_new = jnp.maximum(m, score)
        alpha = jnp.exp(m - m_new)
        p = jnp.exp(score - m_new)
        l = alpha * l + p
        acc = alpha * acc + p * h
        return h, c, m_new, l, acc

    h0 = jnp.zeros((Bp, H), jnp.float32)
    c0 = jnp.zeros((Bp, H), jnp.float32)
    m0 = jnp.full((Bp, 1), -jnp.inf, jnp.float32)
    l0 = jnp.zeros((Bp, 1), jnp.float32)
    a0 = jnp.zeros((Bp, H), jnp.float32)
    # TODO(synk): sweep unroll (True vs 4/8) against the bundle dump for spill vld/vst;
    # per-step live state is now ~5 vregs so full unroll should be spill-free.
    _, _, _, l, acc = lax.fori_loop(0, T, step, (h0, c0, m0, l0, a0), unroll=True)

    context = acc * pl.reciprocal(l, approx=True)                       # (Bp, H)

    # MLP head:  Linear(H,64) -> ReLU -> (Dropout=identity) -> Linear(64, 5 padded to 128)
    h1 = jnp.dot(context, w1_ref[...], preferred_element_type=jnp.float32) + b1_ref[...]
    h1 = jnp.maximum(h1, 0.0)
    logits = jnp.dot(h1, w2_ref[...], preferred_element_type=jnp.float32) + b2_ref[...]
    out_ref[...] = logits.astype(out_ref.dtype)                          # (Bp, 128) lane-dense


# ----------------------------------------------------------------------------
# Wrapper: batch-first -> time-major, pad batch to sublane granularity, one call
# ----------------------------------------------------------------------------
def lightning_lstm_attn_forward(x, params, *, hours_lookback, input_dim):
    wih_t, whh_t, b_row, wa_row, ba, w1, b1, w2, b2 = params
    B = x.shape[0]
    T = hours_lookback * 12
    D = input_dim
    H = whh_t.shape[0]
    n_out = w2.shape[1]

    x = x.reshape(B, T, D)                       # x.view(B, T, D)
    x_tm = jnp.transpose(x, (1, 0, 2))           # time-major (T, B, D)

    Bp = max(((B + 7) // 8) * 8, 8)              # pad batch to f32 sublane multiple
    x_tm = jnp.pad(x_tm, ((0, 0), (0, Bp - B), (0, 0)))
    x_flat = x_tm.reshape(T * Bp, D)             # flat layout for the hoisted projection

    # bf16 MXU operands (accumulation stays f32 inside the kernel).
    wih_bf = wih_t.astype(jnp.bfloat16)
    whh_bf = whh_t.astype(jnp.bfloat16)

    # Lane-dense head: pad the 5 output columns to 128 (sliced off below).
    w2p = jnp.pad(w2, ((0, 0), (0, N_OUT_PAD - n_out)))
    b2p = jnp.pad(b2, ((0, 0), (0, N_OUT_PAD - n_out)))

    vmem = pl.BlockSpec(memory_space=pltpu.MemorySpace.VMEM)
    out = pl.pallas_call(
        fused_kernel,
        out_shape=jax.ShapeDtypeStruct((Bp, N_OUT_PAD), jnp.float32),
        in_specs=[vmem] * 10,
        out_specs=vmem,
        scratch_shapes=[
            # Precomputed x-gates (T*Bp*4H*4 B = ~0.4 MiB here).
            # TODO(synk): chunk over time + set vmem_limit_bytes before this slab
            # approaches v7x's 64 MiB physical / 32 MiB scoped VMEM.
            pltpu.VMEM((T, Bp, 4 * H), jnp.float32),
        ],
    )(x_flat, wih_bf, whh_bf, b_row, wa_row, ba, w1, b1, w2p, b2p)
    # TODO(synk): grid=(2,) core-parallel batch split for v7x once Bp >= 16-32 rows.
    return out[:B, :n_out]


# ----------------------------------------------------------------------------
# Deterministic parameter init (PyTorch-style shapes, transposed for the kernel)
# ----------------------------------------------------------------------------
def init_params(key, input_dim, hidden_dim):
    H, D = hidden_dim, input_dim
    ks = jax.random.split(key, 10)
    u = lambda kk, shape, bound: jax.random.uniform(kk, shape, jnp.float32, -bound, bound)

    k_lstm = 1.0 / np.sqrt(H)
    w_ih = u(ks[0], (4 * H, D), k_lstm)              # torch: weight_ih_l0
    w_hh = u(ks[1], (4 * H, H), k_lstm)              # torch: weight_hh_l0
    b_ih = u(ks[2], (4 * H,), k_lstm)
    b_hh = u(ks[3], (4 * H,), k_lstm)

    k_attn = 1.0 / np.sqrt(H)
    w_attn = u(ks[4], (1, H), k_attn)                # Linear(H, 1).weight
    b_attn = u(ks[5], (1,), k_attn)

    k1 = 1.0 / np.sqrt(H)
    w_fc1 = u(ks[6], (64, H), k1)                    # Linear(H, 64)
    b_fc1 = u(ks[7], (64,), k1)
    k2 = 1.0 / np.sqrt(64)
    w_fc2 = u(ks[8], (N_OUT, 64), k2)                # Linear(64, 5)
    b_fc2 = u(ks[9], (N_OUT,), k2)

    return (
        w_ih.T,                                      # (D, 4H)
        w_hh.T,                                      # (H, 4H)
        (b_ih + b_hh).reshape(1, 4 * H),             # (1, 4H)  combined LSTM bias
        w_attn,                                      # (1, H)   attention row vector
        b_attn.reshape(1, 1),                        # (1, 1)
        w_fc1.T,                                     # (H, 64)
        b_fc1.reshape(1, 64),
        w_fc2.T,                                     # (64, 5)
        b_fc2.reshape(1, N_OUT),
    )


# ----------------------------------------------------------------------------
# Pure-JAX reference (for correctness check). bf16_matmul=True emulates the
# kernel's bf16 MXU operands (f32 accumulation) to allow a tight comparison.
# ----------------------------------------------------------------------------
def reference_forward(x, params, *, hours_lookback, input_dim, bf16_matmul=False):
    wih_t, whh_t, b_row, wa_row, ba, w1, b1, w2, b2 = params
    B = x.shape[0]
    T = hours_lookback * 12
    H = whh_t.shape[0]
    x_tm = jnp.transpose(x.reshape(B, T, input_dim), (1, 0, 2))

    if bf16_matmul:
        dot = lambda a, b: jnp.dot(a.astype(jnp.bfloat16), b.astype(jnp.bfloat16),
                                   preferred_element_type=jnp.float32)
    else:
        dot = lambda a, b: jnp.dot(a, b, preferred_element_type=jnp.float32)

    def step(carry, x_t):
        h, c = carry
        gates = dot(x_t, wih_t) + dot(h, whh_t) + b_row[0]
        i, f, g, o = jnp.split(gates, 4, axis=-1)
        c = jax.nn.sigmoid(f) * c + jax.nn.sigmoid(i) * jnp.tanh(g)
        h = jax.nn.sigmoid(o) * jnp.tanh(c)
        return (h, c), h

    init = (jnp.zeros((B, H), jnp.float32), jnp.zeros((B, H), jnp.float32))
    _, hs = lax.scan(step, init, x_tm)               # (T, B, H)

    scores = jnp.einsum('tbh,h->tb', hs, wa_row[0]) + ba[0, 0]
    w = jax.nn.softmax(scores, axis=0)
    ctx = jnp.einsum('tb,tbh->bh', w, hs)
    h1 = jnp.maximum(ctx @ w1 + b1[0], 0.0)
    return h1 @ w2 + b2[0]


if __name__ == "__main__":
    hours_lookback = 2       # small but consistent with the module (T = 12 * lookback)
    input_dim = 16
    hidden_dim = 128
    batch = 2
    T = hours_lookback * 12

    key = jax.random.PRNGKey(0)
    k_param, k_x = jax.random.split(key)
    params = init_params(k_param, input_dim, hidden_dim)

    # input as the flattened form the module would `.view()` into (B, T, D)
    x = jax.random.normal(k_x, (batch, T * input_dim), dtype=jnp.float32)

    fwd = jax.jit(functools.partial(
        lightning_lstm_attn_forward, hours_lookback=hours_lookback, input_dim=input_dim))
    logits = fwd(x, params)
    logits = jax.block_until_ready(logits)

    ref_bf16 = reference_forward(x, params, hours_lookback=hours_lookback,
                                 input_dim=input_dim, bf16_matmul=True)
    ref_f32 = reference_forward(x, params, hours_lookback=hours_lookback,
                                input_dim=input_dim, bf16_matmul=False)

    assert logits.shape == (batch, N_OUT), logits.shape
    assert bool(jnp.all(jnp.isfinite(logits)))
    # structural correctness vs a precision-matched (bf16-MXU-operand) reference
    err_b = float(jnp.max(jnp.abs(logits - ref_bf16)))
    assert bool(jnp.allclose(logits, ref_bf16, rtol=5e-3, atol=5e-3)), f"bf16-ref err {err_b}"
    # sanity vs the full-f32 module semantics (bf16 MXU operands introduce ~1e-3 drift)
    err_f = float(jnp.max(jnp.abs(logits - ref_f32)))
    assert bool(jnp.allclose(logits, ref_f32, rtol=2e-2, atol=2e-2)), f"f32-ref err {err_f}"
    print("KERNEL_OK")
</pallas_src>

<mosaic_0001>
module attributes {stable_mosaic.version = 11 : i64} {
  func.func @fused_kernel(%arg0: memref<192x16xf32, #tpu.memory_space<vmem>>, %arg1: memref<16x512xbf16, #tpu.memory_space<vmem>>, %arg2: memref<128x512xbf16, #tpu.memory_space<vmem>>, %arg3: memref<1x512xf32, #tpu.memory_space<vmem>>, %arg4: memref<1x128xf32, #tpu.memory_space<vmem>>, %arg5: memref<1x1xf32, #tpu.memory_space<vmem>>, %arg6: memref<128x64xf32, #tpu.memory_space<vmem>>, %arg7: memref<1x64xf32, #tpu.memory_space<vmem>>, %arg8: memref<64x128xf32, #tpu.memory_space<vmem>>, %arg9: memref<1x128xf32, #tpu.memory_space<vmem>>, %arg10: memref<8x128xf32, #tpu.memory_space<vmem>>, %arg11: memref<24x8x512xf32, #tpu.memory_space<vmem>>) attributes {dimension_semantics = [], scalar_prefetch = 0 : i64, scratch_operands = 1 : i64, tpu.core_type = #tpu.core_type<tc>} {
    %c0 = arith.constant 0 : index
    %c0_0 = arith.constant 0 : index
    %0 = vector.load %arg0[%c0, %c0_0] : memref<192x16xf32, #tpu.memory_space<vmem>>, vector<192x16xf32>
    %1 = arith.truncf %0 : vector<192x16xf32> to vector<192x16xbf16>
    %c0_1 = arith.constant 0 : index
    %c0_2 = arith.constant 0 : index
    %2 = vector.load %arg1[%c0_1, %c0_2] : memref<16x512xbf16, #tpu.memory_space<vmem>>, vector<16x512xbf16>
    %cst = arith.constant dense<0.000000e+00> : vector<192x512xf32>
    %3 = tpu.matmul %1, %2, %cst {dimension_numbers = #tpu.dot_dimension_numbers<[1], [0], [0], [1], [0, 0, 1, 1], [], []>} : vector<192x16xbf16>, vector<16x512xbf16>, vector<192x512xf32> -> vector<192x512xf32>
    %c0_3 = arith.constant 0 : index
    %c0_4 = arith.constant 0 : index
    %4 = vector.load %arg3[%c0_3, %c0_4] : memref<1x512xf32, #tpu.memory_space<vmem>>, vector<1x512xf32>
    %5 = vector.broadcast %4 : vector<1x512xf32> to vector<192x512xf32>
    %6 = arith.addf %3, %5 : vector<192x512xf32>
    %7 = vector.shape_cast %6 : vector<192x512xf32> to vector<24x8x512xf32>
    %c0_5 = arith.constant 0 : index
    %c0_6 = arith.constant 0 : index
    %c0_7 = arith.constant 0 : index
    %8 = vector.load %arg11[%c0_5, %c0_6, %c0_7] : memref<24x8x512xf32, #tpu.memory_space<vmem>>, vector<24x8x512xf32>
    tpu.vector_store %arg11[%c0_5, %c0_6, %c0_7], %7 {strides = array<i32>} : memref<24x8x512xf32, #tpu.memory_space<vmem>>, vector<24x8x512xf32>,
    %c0_8 = arith.constant 0 : index
    %c0_9 = arith.constant 0 : index
    %9 = vector.load %arg4[%c0_8, %c0_9] : memref<1x128xf32, #tpu.memory_space<vmem>>, vector<1x128xf32>
    %c0_10 = arith.constant 0 : index
    %c0_11 = arith.constant 0 : index
    %10 = vector.load %arg5[%c0_10, %c0_11] : memref<1x1xf32, #tpu.memory_space<vmem>>, vector<1x1xf32>
    %cst_12 = arith.constant 0.000000e+00 : f32
    %11 = vector.broadcast %cst_12 : f32 to vector<8x128xf32>
    %cst_13 = arith.constant 0.000000e+00 : f32
    %12 = vector.broadcast %cst_13 : f32 to vector<8x128xf32>
    %cst_14 = arith.constant 0xFF800000 : f32
    %13 = vector.broadcast %cst_14 : f32 to vector<8x1xf32>
    %cst_15 = arith.constant 0.000000e+00 : f32
    %14 = vector.broadcast %cst_15 : f32 to vector<8x1xf32>
    %cst_16 = arith.constant 0.000000e+00 : f32
    %15 = vector.broadcast %cst_16 : f32 to vector<8x128xf32>
    %c0_i32 = arith.constant 0 : i32
    %16 = arith.index_cast %c0_i32 : i32 to index
    %c0_17 = arith.constant 0 : index
    %c0_18 = arith.constant 0 : index
    %17 = vector.load %arg11[%16, %c0_17, %c0_18] : memref<24x8x512xf32, #tpu.memory_space<vmem>>, vector<1x8x512xf32>
    %18 = vector.shape_cast %17 : vector<1x8x512xf32> to vector<8x512xf32>
    %19 = arith.truncf %11 : vector<8x128xf32> to vector<8x128xbf16>
    %c0_19 = arith.constant 0 : index
    %c0_20 = arith.constant 0 : index
    %20 = vector.load %arg2[%c0_19, %c0_20] : memref<128x512xbf16, #tpu.memory_space<vmem>>, vector<128x512xbf16>
    %cst_21 = arith.constant dense<0.000000e+00> : vector<8x512xf32>
    %21 = tpu.matmul %19, %20, %cst_21 {dimension_numbers = #tpu.dot_dimension_numbers<[1], [0], [0], [1], [0, 0, 1, 1], [], []>} : vector<8x128xbf16>, vector<128x512xbf16>, vector<8x512xf32> -> vector<8x512xf32>
    %22 = arith.addf %18, %21 : vector<8x512xf32>
    %23 = vector.extract_strided_slice %22 {offsets = [0, 0], sizes = [8, 128], strides = [1, 1]} : vector<8x512xf32> to vector<8x128xf32>
    %cst_22 = arith.constant 5.000000e-01 : f32
    %24 = vector.broadcast %cst_22 : f32 to vector<8x128xf32>
    %25 = arith.mulf %24, %23 : vector<8x128xf32>
    %26 = math.tanh %25 : vector<8x128xf32>
    %cst_23 = arith.constant 5.000000e-01 : f32
    %27 = vector.broadcast %cst_23 : f32 to vector<8x128xf32>
    %28 = arith.mulf %27, %26 : vector<8x128xf32>
    %cst_24 = arith.constant 5.000000e-01 : f32
    %29 = vector.broadcast %cst_24 : f32 to vector<8x128xf32>
    %30 = arith.addf %28, %29 : vector<8x128xf32>
    %31 = vector.extract_strided_slice %22 {offsets = [0, 128], sizes = [8, 128], strides = [1, 1]} : vector<8x512xf32> to vector<8x128xf32>
    %cst_25 = arith.constant 5.000000e-01 : f32
    %32 = vector.broadcast %cst_25 : f32 to vector<8x128xf32>
    %33 = arith.mulf %32, %31 : vector<8x128xf32>
    %34 = math.tanh %33 : vector<8x128xf32>
    %cst_26 = arith.constant 5.000000e-01 : f32
    %35 = vector.broadcast %cst_26 : f32 to vector<8x128xf32>
    %36 = arith.mulf %35, %34 : vector<8x128xf32>
    %cst_27 = arith.constant 5.000000e-01 : f32
    %37 = vector.broadcast %cst_27 : f32 to vector<8x128xf32>
    %38 = arith.addf %36, %37 : vector<8x128xf32>
    %39 = vector.extract_strided_slice %22 {offsets = [0, 256], sizes = [8, 128], strides = [1, 1]} : vector<8x512xf32> to vector<8x128xf32>
    %40 = math.tanh %39 : vector<8x128xf32>
    %41 = vector.extract_strided_slice %22 {offsets = [0, 384], sizes = [8, 128], strides = [1, 1]} : vector<8x512xf32> to vector<8x128xf32>
    %cst_28 = arith.constant 5.000000e-01 : f32
    %42 = vector.broadcast %cst_28 : f32 to vector<8x128xf32>
    %43 = arith.mulf %42, %41 : vector<8x128xf32>
    %44 = math.tanh %43 : vector<8x128xf32>
    %cst_29 = arith.constant 5.000000e-01 : f32
    %45 = vector.broadcast %cst_29 : f32 to vector<8x128xf32>
    %46 = arith.mulf %45, %44 : vector<8x128xf32>
    %cst_30 = arith.constant 5.000000e-01 : f32
    %47 = vector.broadcast %cst_30 : f32 to vector<8x128xf32>
    %48 = arith.addf %46, %47 : vector<8x128xf32>
    %49 = arith.mulf %38, %12 : vector<8x128xf32>
    %50 = arith.mulf %30, %40 : vector<8x128xf32>
    %51 = arith.addf %49, %50 : vector<8x128xf32>
    %52 = math.tanh %51 : vector<8x128xf32>
    %53 = arith.mulf %48, %52 : vector<8x128xf32>
    %54 = vector.broadcast %9 : vector<1x128xf32> to vector<8x128xf32>
    %55 = arith.mulf %53, %54 : vector<8x128xf32>
    %cst_31 = arith.constant dense<0.000000e+00> : vector<8xf32>
    %56 = vector.multi_reduction <add>, %55, %cst_31 [1] : vector<8x128xf32> to vector<8xf32>
    %57 = vector.shape_cast %56 : vector<8xf32> to vector<8x1xf32>
    %58 = vector.broadcast %10 : vector<1x1xf32> to vector<8x1xf32>
    %59 = arith.addf %57, %58 : vector<8x1xf32>
    %60 = arith.maximumf %13, %59 : vector<8x1xf32>
    %61 = arith.subf %13, %60 : vector<8x1xf32>
    %62 = math.exp %61 : vector<8x1xf32>
    %63 = arith.subf %59, %60 : vector<8x1xf32>
    %64 = math.exp %63 : vector<8x1xf32>
    %65 = arith.mulf %62, %14 : vector<8x1xf32>
    %66 = arith.addf %65, %64 : vector<8x1xf32>
    %67 = vector.broadcast %62 : vector<8x1xf32> to vector<8x128xf32>
    %68 = arith.mulf %67, %15 : vector<8x128xf32>
    %69 = vector.broadcast %64 : vector<8x1xf32> to vector<8x128xf32>
    %70 = arith.mulf %69, %53 : vector<8x128xf32>
    %71 = arith.addf %68, %70 : vector<8x128xf32>
    %c1_i32 = arith.constant 1 : i32
    %72 = arith.index_cast %c1_i32 : i32 to index
    %c0_32 = arith.constant 0 : index
    %c0_33 = arith.constant 0 : index
    %73 = vector.load %arg11[%72, %c0_32, %c0_33] : memref<24x8x512xf32, #tpu.memory_space<vmem>>, vector<1x8x512xf32>
    %74 = vector.shape_cast %73 : vector<1x8x512xf32> to vector<8x512xf32>
    %75 = arith.truncf %53 : vector<8x128xf32> to vector<8x128xbf16>
    %c0_34 = arith.constant 0 : index
    %c0_35 = arith.constant 0 : index
    %76 = vector.load %arg2[%c0_34, %c0_35] : memref<128x512xbf16, #tpu.memory_space<vmem>>, vector<128x512xbf16>
    %cst_36 = arith.constant dense<0.000000e+00> : vector<8x512xf32>
    %77 = tpu.matmul %75, %76, %cst_36 {dimension_numbers = #tpu.dot_dimension_numbers<[1], [0], [0], [1], [0, 0, 1, 1], [], []>} : vector<8x128xbf16>, vector<128x512xbf16>, vector<8x512xf32> -> vector<8x512xf32>
    %78 = arith.addf %74, %77 : vector<8x512xf32>
    %79 = vector.extract_strided_slice %78 {offsets = [0, 0], sizes = [8, 128], strides = [1, 1]} : vector<8x512xf32> to vector<8x128xf32>
    %cst_37 = arith.constant 5.000000e-01 : f32
    %80 = vector.broadcast %cst_37 : f32 to vector<8x128xf32>
    %81 = arith.mulf %80, %79 : vector<8x128xf32>
    %82 = math.tanh %81 : vector<8x128xf32>
    %cst_38 = arith.constant 5.000000e-01 : f32
    %83 = vector.broadcast %cst_38 : f32 to vector<8x128xf32>
    %84 = arith.mulf %83, %82 : vector<8x128xf32>
    %cst_39 = arith.constant 5.000000e-01 : f32
    %85 = vector.broadcast %cst_39 : f32 to vector<8x128xf32>
    %86 = arith.addf %84, %85 : vector<8x128xf32>
    %87 = vector.extract_strided_slice %78 {offsets = [0, 128], sizes = [8, 128], strides = [1, 1]} : vector<8x512xf32> to vector<8x128xf32>
    %cst_40 = arith.constant 5.000000e-01 : f32
    %88 = vector.broadcast %cst_40 : f32 to vector<8x128xf32>
    %89 = arith.mulf %88, %87 : vector<8x128xf32>
    %90 = math.tanh %89 : vector<8x128xf32>
    %cst_41 = arith.constant 5.000000e-01 : f32
    %91 = vector.broadcast %cst_41 : f32 to vector<8x128xf32>
    %92 = arith.mulf %91, %90 : vector<8x128xf32>
    %cst_42 = arith.constant 5.000000e-01 : f32
    %93 = vector.broadcast %cst_42 : f32 to vector<8x128xf32>
    %94 = arith.addf %92, %93 : vector<8x128xf32>
    %95 = vector.extract_strided_slice %78 {offsets = [0, 256], sizes = [8, 128], strides = [1, 1]} : vector<8x512xf32> to vector<8x128xf32>
    %96 = math.tanh %95 : vector<8x128xf32>
    %97 = vector.extract_strided_slice %78 {offsets = [0, 384], sizes = [8, 128], strides = [1, 1]} : vector<8x512xf32> to vector<8x128xf32>
    %cst_43 = arith.constant 5.000000e-01 : f32
    %98 = vector.broadcast %cst_43 : f32 to vector<8x128xf32>
    %99 = arith.mulf %98, %97 : vector<8x128xf32>
    %100 = math.tanh %99 : vector<8x128xf32>
    %cst_44 = arith.constant 5.000000e-01 : f32
    %101 = vector.broadcast %cst_44 : f32 to vector<8x128xf32>
    %102 = arith.mulf %101, %100 : vector<8x128xf32>
    %cst_45 = arith.constant 5.000000e-01 : f32
    %103 = vector.broadcast %cst_45 : f32 to vector<8x128xf32>
    %104 = arith.addf %102, %103 : vector<8x128xf32>
    %105 = arith.mulf %94, %51 : vector<8x128xf32>
    %106 = arith.mulf %86, %96 : vector<8x128xf32>
    %107 = arith.addf %105, %106 : vector<8x128xf32>
    %108 = math.tanh %107 : vector<8x128xf32>
    %109 = arith.mulf %104, %108 : vector<8x128xf32>
    %110 = vector.broadcast %9 : vector<1x128xf32> to vector<8x128xf32>
    %111 = arith.mulf %109, %110 : vector<8x128xf32>
    %cst_46 = arith.constant dense<0.000000e+00> : vector<8xf32>
    %112 = vector.multi_reduction <add>, %111, %cst_46 [1] : vector<8x128xf32> to vector<8xf32>
    %113 = vector.shape_cast %112 : vector<8xf32> to vector<8x1xf32>
    %114 = vector.broadcast %10 : vector<1x1xf32> to vector<8x1xf32>
    %115 = arith.addf %113, %114 : vector<8x1xf32>
    %116 = arith.maximumf %60, %115 : vector<8x1xf32>
    %117 = arith.subf %60, %116 : vector<8x1xf32>
    %118 = math.exp %117 : vector<8x1xf32>
    %119 = arith.subf %115, %116 : vector<8x1xf32>
    %120 = math.exp %119 : vector<8x1xf32>
    %121 = arith.mulf %118, %66 : vector<8x1xf32>
    %122 = arith.addf %121, %120 : vector<8x1xf32>
    %123 = vector.broadcast %118 : vector<8x1xf32> to vector<8x128xf32>
    %124 = arith.mulf %123, %71 : vector<8x128xf32>
    %125 = vector.broadcast %120 : vector<8x1xf32> to vector<8x128xf32>
    %126 = arith.mulf %125, %109 : vector<8x128xf32>
    %127 = arith.addf %124, %126 : vector<8x128xf32>
    %c2_i32 = arith.constant 2 : i32
    %128 = arith.index_cast %c2_i32 : i32 to index
    %c0_47 = arith.constant 0 : index
    %c0_48 = arith.constant 0 : index
    %129 = vector.load %arg11[%128, %c0_47, %c0_48] : memref<24x8x512xf32, #tpu.memory_space<vmem>>, vector<1x8x512xf32>
    %130 = vector.shape_cast %129 : vector<1x8x512xf32> to vector<8x512xf32>
    %131 = arith.truncf %109 : vector<8x128xf32> to vector<8x128xbf16>
    %c0_49 = arith.constant 0 : index
    %c0_50 = arith.constant 0 : index
    %132 = vector.load %arg2[%c0_49, %c0_50] : memref<128x512xbf16, #tpu.memory_space<vmem>>, vector<128x512xbf16>
    %cst_51 = arith.constant dense<0.000000e+00> : vector<8x512xf32>
    %133 = tpu.matmul %131, %132, %cst_51 {dimension_numbers = #tpu.dot_dimension_numbers<[1], [0], [0], [1], [0, 0, 1, 1], [], []>} : vector<8x128xbf16>, vector<128x512xbf16>, vector<8x512xf32> -> vector<8x512xf32>
    %134 = arith.addf %130, %133 : vector<8x512xf32>
    %135 = vector.extract_strided_slice %134 {offsets = [0, 0], sizes = [8, 128], strides = [1, 1]} : vector<8x512xf32> to vector<8x128xf32>
    %cst_52 = arith.constant 5.000000e-01 : f32
    %136 = vector.broadcast %cst_52 : f32 to vector<8x128xf32>
    %137 = arith.mulf %136, %135 : vector<8x128xf32>
    %138 = math.tanh %137 : vector<8x128xf32>
    %cst_53 = arith.constant 5.000000e-01 : f32
    %139 = vector.broadcast %cst_53 : f32 to vector<8x128xf32>
    %140 = arith.mulf %139, %138 : vector<8x128xf32>
    %cst_54 = arith.constant 5.000000e-01 : f32
    %141 = vector.broadcast %cst_54 : f32 to vector<8x128xf32>
    %142 = arith.addf %140, %141 : vector<8x128xf32>
    %143 = vector.extract_strided_slice %134 {offsets = [0, 128], sizes = [8, 128], strides = [1, 1]} : vector<8x512xf32> to vector<8x128xf32>
    %cst_55 = arith.constant 5.000000e-01 : f32
    %144 = vector.broadcast %cst_55 : f32 to vector<8x128xf32>
    %145 = arith.mulf %144, %143 : vector<8x128xf32>
    %146 = math.tanh %145 : vector<8x128xf32>
    %cst_56 = arith.constant 5.000000e-01 : f32
    %147 = vector.broadcast %cst_56 : f32 to vector<8x128xf32>
    %148 = arith.mulf %147, %146 : vector<8x128xf32>
    %cst_57 = arith.constant 5.000000e-01 : f32
    %149 = vector.broadcast %cst_57 : f32 to vector<8x128xf32>
    %150 = arith.addf %148, %149 : vector<8x128xf32>
    %151 = vector.extract_strided_slice %134 {offsets = [0, 256], sizes = [8, 128], strides = [1, 1]} : vector<8x512xf32> to vector<8x128xf32>
    %152 = math.tanh %151 : vector<8x128xf32>
    %153 = vector.extract_strided_slice %134 {offsets = [0, 384], sizes = [8, 128], strides = [1, 1]} : vector<8x512xf32> to vector<8x128xf32>
    %cst_58 = arith.constant 5.000000e-01 : f32
    %154 = vector.broadcast %cst_58 : f32 to vector<8x128xf32>
    %155 = arith.mulf %154, %153 : vector<8x128xf32>
    %156 = math.tanh %155 : vector<8x128xf32>
    %cst_59 = arith.constant 5.000000e-01 : f32
    %157 = vector.broadcast %cst_59 : f32 to vector<8x128xf32>
    %158 = arith.mulf %157, %156 : vector<8x128xf32>
    %cst_60 = arith.constant 5.000000e-01 : f32
    %159 = vector.broadcast %cst_60 : f32 to vector<8x128xf32>
    %160 = arith.addf %158, %159 : vector<8x128xf32>
    %161 = arith.mulf %150, %107 : vector<8x128xf32>
    %162 = arith.mulf %142, %152 : vector<8x128xf32>
    %163 = arith.addf %161, %162 : vector<8x128xf32>
    %164 = math.tanh %163 : vector<8x128xf32>
    %165 = arith.mulf %160, %164 : vector<8x128xf32>
    %166 = vector.broadcast %9 : vector<1x128xf32> to vector<8x128xf32>
    %167 = arith.mulf %165, %166 : vector<8x128xf32>
    %cst_61 = arith.constant dense<0.000000e+00> : vector<8xf32>
    %168 = vector.multi_reduction <add>, %167, %cst_61 [1] : vector<8x128xf32> to vector<8xf32>
    %169 = vector.shape_cast %168 : vector<8xf32> to vector<8x1xf32>
    %170 = vector.broadcast %10 : vector<1x1xf32> to vector<8x1xf32>
    %171 = arith.addf %169, %170 : vector<8x1xf32>
    %172 = arith.maximumf %116, %171 : vector<8x1xf32>
    %173 = arith.subf %116, %172 : vector<8x1xf32>
    %174 = math.exp %173 : vector<8x1xf32>
    %175 = arith.subf %171, %172 : vector<8x1xf32>
    %176 = math.exp %175 : vector<8x1xf32>
    %177 = arith.mulf %174, %122 : vector<8x1xf32>
    %178 = arith.addf %177, %176 : vector<8x1xf32>
    %179 = vector.broadcast %174 : vector<8x1xf32> to vector<8x128xf32>
    %180 = arith.mulf %179, %127 : vector<8x128xf32>
    %181 = vector.broadcast %176 : vector<8x1xf32> to vector<8x128xf32>
    %182 = arith.mulf %181, %165 : vector<8x128xf32>
    %183 = arith.addf %180, %182 : vector<8x128xf32>
    %c3_i32 = arith.constant 3 : i32
    %184 = arith.index_cast %c3_i32 : i32 to index
    %c0_62 = arith.constant 0 : index
    %c0_63 = arith.constant 0 : index
    %185 = vector.load %arg11[%184, %c0_62, %c0_63] : memref<24x8x512xf32, #tpu.memory_space<vmem>>, vector<1x8x512xf32>
    %186 = vector.shape_cast %185 : vector<1x8x512xf32> to vector<8x512xf32>
    %187 = arith.truncf %165 : vector<8x128xf32> to vector<8x128xbf16>
    %c0_64 = arith.constant 0 : index
    %c0_65 = arith.constant 0 : index
    %188 = vector.load %arg2[%c0_64, %c0_65] : memref<128x512xbf16, #tpu.memory_space<vmem>>, vector<128x512xbf16>
    %cst_66 = arith.constant dense<0.000000e+00> : vector<8x512xf32>
    %189 = tpu.matmul %187, %188, %cst_66 {dimension_numbers = #tpu.dot_dimension_numbers<[1], [0], [0], [1], [0, 0, 1, 1], [], []>} : vector<8x128xbf16>, vector<128x512xbf16>, vector<8x512xf32> -> vector<8x512xf32>
    %190 = arith.addf %186, %189 : vector<8x512xf32>
    %191 = vector.extract_strided_slice %190 {offsets = [0, 0], sizes = [8, 128], strides = [1, 1]} : vector<8x512xf32> to vector<8x128xf32>
    %cst_67 = arith.constant 5.000000e-01 : f32
    %192 = vector.broadcast %cst_67 : f32 to vector<8x128xf32>
    %193 = arith.mulf %192, %191 : vector<8x128xf32>
    %194 = math.tanh %193 : vector<8x128xf32>
    %cst_68 = arith.constant 5.000000e-01 : f32
    %195 = vector.broadcast %cst_68 : f32 to vector<8x128xf32>
    %196 = arith.mulf %195, %194 : vector<8x128xf32>
    %cst_69 = arith.constant 5.000000e-01 : f32
    %197 = vector.broadcast %cst_69 : f32 to vector<8x128xf32>
    %198 = arith.addf %196, %197 : vector<8x128xf32>
    %199 = vector.extract_strided_slice %190 {offsets = [0, 128], sizes = [8, 128], strides = [1, 1]} : vector<8x512xf32> to vector<8x128xf32>
    %cst_70 = arith.constant 5.000000e-01 : f32
    %200 = vector.broadcast %cst_70 : f32 to vector<8x128xf32>
    %201 = arith.mulf %200, %199 : vector<8x128xf32>
    %202 = math.tanh %201 : vector<8x128xf32>
    %cst_71 = arith.constant 5.000000e-01 : f32
    %203 = vector.broadcast %cst_71 : f32 to vector<8x128xf32>
    %204 = arith.mulf %203, %202 : vector<8x128xf32>
    %cst_72 = arith.constant 5.000000e-01 : f32
    %205 = vector.broadcast %cst_72 : f32 to vector<8x128xf32>
    %206 = arith.addf %204, %205 : vector<8x128xf32>
    %207 = vector.extract_strided_slice %190 {offsets = [0, 256], sizes = [8, 128], strides = [1, 1]} : vector<8x512xf32> to vector<8x128xf32>
    %208 = math.tanh %207 : vector<8x128xf32>
    %209 = vector.extract_strided_slice %190 {offsets = [0, 384], sizes = [8, 128], strides = [1, 1]} : vector<8x512xf32> to vector<8x128xf32>
    %cst_73 = arith.constant 5.000000e-01 : f32
    %210 = vector.broadcast %cst_73 : f32 to vector<8x128xf32>
    %211 = arith.mulf %210, %209 : vector<8x128xf32>
    %212 = math.tanh %211 : vector<8x128xf32>
    %cst_74 = arith.constant 5.000000e-01 : f32
    %213 = vector.broadcast %cst_74 : f32 to vector<8x128xf32>
    %214 = arith.mulf %213, %212 : vector<8x128xf32>
    %cst_75 = arith.constant 5.000000e-01 : f32
    %215 = vector.broadcast %cst_75 : f32 to vector<8x128xf32>
    %216 = arith.addf %214, %215 : vector<8x128xf32>
    %217 = arith.mulf %206, %163 : vector<8x128xf32>
    %218 = arith.mulf %198, %208 : vector<8x128xf32>
    %219 = arith.addf %217, %218 : vector<8x128xf32>
    %220 = math.tanh %219 : vector<8x128xf32>
    %221 = arith.mulf %216, %220 : vector<8x128xf32>
    %222 = vector.broadcast %9 : vector<1x128xf32> to vector<8x128xf32>
    %223 = arith.mulf %221, %222 : vector<8x128xf32>
    %cst_76 = arith.constant dense<0.000000e+00> : vector<8xf32>
    %224 = vector.multi_reduction <add>, %223, %cst_76 [1] : vector<8x128xf32> to vector<8xf32>
    %225 = vector.shape_cast %224 : vector<8xf32> to vector<8x1xf32>
    %226 = vector.broadcast %10 : vector<1x1xf32> to vector<8x1xf32>
    %227 = arith.addf %225, %226 : vector<8x1xf32>
    %228 = arith.maximumf %172, %227 : vector<8x1xf32>
    %229 = arith.subf %172, %228 : vector<8x1xf32>
    %230 = math.exp %229 : vector<8x1xf32>
    %231 = arith.subf %227, %228 : vector<8x1xf32>
    %232 = math.exp %231 : vector<8x1xf32>
    %233 = arith.mulf %230, %178 : vector<8x1xf32>
    %234 = arith.addf %233, %232 : vector<8x1xf32>
    %235 = vector.broadcast %230 : vector<8x1xf32> to vector<8x128xf32>
    %236 = arith.mulf %235, %183 : vector<8x128xf32>
    %237 = vector.broadcast %232 : vector<8x1xf32> to vector<8x128xf32>
    %238 = arith.mulf %237, %221 : vector<8x128xf32>
    %239 = arith.addf %236, %238 : vector<8x128xf32>
    %c4_i32 = arith.constant 4 : i32
    %240 = arith.index_cast %c4_i32 : i32 to index
    %c0_77 = arith.constant 0 : index
    %c0_78 = arith.constant 0 : index
    %241 = vector.load %arg11[%240, %c0_77, %c0_78] : memref<24x8x512xf32, #tpu.memory_space<vmem>>, vector<1x8x512xf32>
    %242 = vector.shape_cast %241 : vector<1x8x512xf32> to vector<8x512xf32>
    %243 = arith.truncf %221 : vector<8x128xf32> to vector<8x128xbf16>
    %c0_79 = arith.constant 0 : index
    %c0_80 = arith.constant 0 : index
    %244 = vector.load %arg2[%c0_79, %c0_80] : memref<128x512xbf16, #tpu.memory_space<vmem>>, vector<128x512xbf16>
    %cst_81 = arith.constant dense<0.000000e+00> : vector<8x512xf32>
    %245 = tpu.matmul %243, %244, %cst_81 {dimension_numbers = #tpu.dot_dimension_numbers<[1], [0], [0], [1], [0, 0, 1, 1], [], []>} : vector<8x128xbf16>, vector<128x512xbf16>, vector<8x512xf32> -> vector<8x512xf32>
    %246 = arith.addf %242, %245 : vector<8x512xf32>
    %247 = vector.extract_strided_slice %246 {offsets = [0, 0], sizes = [8, 128], strides = [1, 1]} : vector<8x512xf32> to vector<8x128xf32>
    %cst_82 = arith.constant 5.000000e-01 : f32
    %248 = vector.broadcast %cst_82 : f32 to vector<8x128xf32>
    %249 = arith.mulf %248, %247 : vector<8x128xf32>
    %250 = math.tanh %249 : vector<8x128xf32>
    %cst_83 = arith.constant 5.000000e-01 : f32
    %251 = vector.broadcast %cst_83 : f32 to vector<8x128xf32>
    %252 = arith.mulf %251, %250 : vector<8x128xf32>
    %cst_84 = arith.constant 5.000000e-01 : f32
    %253 = vector.broadcast %cst_84 : f32 to vector<8x128xf32>
    %254 = arith.addf %252, %253 : vector<8x128xf32>
    %255 = vector.extract_strided_slice %246 {offsets = [0, 128], sizes = [8, 128], strides = [1, 1]} : vector<8x512xf32> to vector<8x128xf32>
    %cst_85 = arith.constant 5.000000e-01 : f32
    %256 = vector.broadcast %cst_85 : f32 to vector<8x128xf32>
    %257 = arith.mulf %256, %255 : vector<8x128xf32>
    %258 = math.tanh %257 : vector<8x128xf32>
    %cst_86 = arith.constant 5.000000e-01 : f32
    %259 = vector.broadcast %cst_86 : f32 to vector<8x128xf32>
    %260 = arith.mulf %259, %258 : vector<8x128xf32>
    %cst_87 = arith.constant 5.000000e-01 : f32
    %261 = vector.broadcast %cst_87 : f32 to vector<8x128xf32>
    %262 = arith.addf %260, %261 : vector<8x128xf32>
    %263 = vector.extract_strided_slice %246 {offsets = [0, 256], sizes = [8, 128], strides = [1, 1]} : vector<8x512xf32> to vector<8x128xf32>
    %264 = math.tanh %263 : vector<8x128xf32>
    %265 = vector.extract_strided_slice %246 {offsets = [0, 384], sizes = [8, 128], strides = [1, 1]} : vector<8x512xf32> to vector<8x128xf32>
    %cst_88 = arith.constant 5.000000e-01 : f32
    %266 = vector.broadcast %cst_88 : f32 to vector<8x128xf32>
    %267 = arith.mulf %266, %265 : vector<8x128xf32>
    %268 = math.tanh %267 : vector<8x128xf32>
    %cst_89 = arith.constant 5.000000e-01 : f32
    %269 = vector.broadcast %cst_89 : f32 to vector<8x128xf32>
    %270 = arith.mulf %269, %268 : vector<8x128xf32>
    %cst_90 = arith.constant 5.000000e-01 : f32
    %271 = vector.broadcast %cst_90 : f32 to vector<8x128xf32>
    %272 = arith.addf %270, %271 : vector<8x128xf32>
    %273 = arith.mulf %262, %219 : vector<8x128xf32>
    %274 = arith.mulf %254, %264 : vector<8x128xf32>
    %275 = arith.addf %273, %274 : vector<8x128xf32>
    %276 = math.tanh %275 : vector<8x128xf32>
    %277 = arith.mulf %272, %276 : vector<8x128xf32>
    %278 = vector.broadcast %9 : vector<1x128xf32> to vector<8x128xf32>
    %279 = arith.mulf %277, %278 : vector<8x128xf32>
    %cst_91 = arith.constant dense<0.000000e+00> : vector<8xf32>
    %280 = vector.multi_reduction <add>, %279, %cst_91 [1] : vector<8x128xf32> to vector<8xf32>
    %281 = vector.shape_cast %280 : vector<8xf32> to vector<8x1xf32>
    %282 = vector.broadcast %10 : vector<1x1xf32> to vector<8x1xf32>
    %283 = arith.addf %281, %282 : vector<8x1xf32>
    %284 = arith.maximumf %228, %283 : vector<8x1xf32>
    %285 = arith.subf %228, %284 : vector<8x1xf32>
    %286 = math.exp %285 : vector<8x1xf32>
    %287 = arith.subf %283, %284 : vector<8x1xf32>
    %288 = math.exp %287 : vector<8x1xf32>
    %289 = arith.mulf %286, %234 : vector<8x1xf32>
    %290 = arith.addf %289, %288 : vector<8x1xf32>
    %291 = vector.broadcast %286 : vector<8x1xf32> to vector<8x128xf32>
    %292 = arith.mulf %291, %239 : vector<8x128xf32>
    %293 = vector.broadcast %288 : vector<8x1xf32> to vector<8x128xf32>
    %294 = arith.mulf %293, %277 : vector<8x128xf32>
    %295 = arith.addf %292, %294 : vector<8x128xf32>
    %c5_i32 = arith.constant 5 : i32
    %296 = arith.index_cast %c5_i32 : i32 to index
    %c0_92 = arith.constant 0 : index
    %c0_93 = arith.constant 0 : index
    %297 = vector.load %arg11[%296, %c0_92, %c0_93] : memref<24x8x512xf32, #tpu.memory_space<vmem>>, vector<1x8x512xf32>
    %298 = vector.shape_cast %297 : vector<1x8x512xf32> to vector<8x512xf32>
    %299 = arith.truncf %277 : vector<8x128xf32> to vector<8x128xbf16>
    %c0_94 = arith.constant 0 : index
    %c0_95 = arith.constant 0 : index
    %300 = vector.load %arg2[%c0_94, %c0_95] : memref<128x512xbf16, #tpu.memory_space<vmem>>, vector<128x512xbf16>
    %cst_96 = arith.constant dense<0.000000e+00> : vector<8x512xf32>
    %301 = tpu.matmul %299, %300, %cst_96 {dimension_numbers = #tpu.dot_dimension_numbers<[1], [0], [0], [1], [0, 0, 1, 1], [], []>} : vector<8x128xbf16>, vector<128x512xbf16>, vector<8x512xf32> -> vector<8x512xf32>
    %302 = arith.addf %298, %301 : vector<8x512xf32>
    %303 = vector.extract_strided_slice %302 {offsets = [0, 0], sizes = [8, 128], strides = [1, 1]} : vector<8x512xf32> to vector<8x128xf32>
    %cst_97 = arith.constant 5.000000e-01 : f32
    %304 = vector.broadcast %cst_97 : f32 to vector<8x128xf32>
    %305 = arith.mulf %304, %303 : vector<8x128xf32>
    %306 = math.tanh %305 : vector<8x128xf32>
    %cst_98 = arith.constant 5.000000e-01 : f32
    %307 = vector.broadcast %cst_98 : f32 to vector<8x128xf32>
    %308 = arith.mulf %307, %306 : vector<8x128xf32>
    %cst_99 = arith.constant 5.000000e-01 : f32
    %309 = vector.broadcast %cst_99 : f32 to vector<8x128xf32>
    %310 = arith.addf %308, %309 : vector<8x128xf32>
    %311 = vector.extract_strided_slice %302 {offsets = [0, 128], sizes = [8, 128], strides = [1, 1]} : vector<8x512xf32> to vector<8x128xf32>
    %cst_100 = arith.constant 5.000000e-01 : f32
    %312 = vector.broadcast %cst_100 : f32 to vector<8x128xf32>
    %313 = arith.mulf %312, %311 : vector<8x128xf32>
    %314 = math.tanh %313 : vector<8x128xf32>
    %cst_101 = arith.constant 5.000000e-01 : f32
    %315 = vector.broadcast %cst_101 : f32 to vector<8x128xf32>
    %316 = arith.mulf %315, %314 : vector<8x128xf32>
    %cst_102 = arith.constant 5.000000e-01 : f32
    %317 = vector.broadcast %cst_102 : f32 to vector<8x128xf32>
    %318 = arith.addf %316, %317 : vector<8x128xf32>
    %319 = vector.extract_strided_slice %302 {offsets = [0, 256], sizes = [8, 128], strides = [1, 1]} : vector<8x512xf32> to vector<8x128xf32>
    %320 = math.tanh %319 : vector<8x128xf32>
    %321 = vector.extract_strided_slice %302 {offsets = [0, 384], sizes = [8, 128], strides = [1, 1]} : vector<8x512xf32> to vector<8x128xf32>
    %cst_103 = arith.constant 5.000000e-01 : f32
    %322 = vector.broadcast %cst_103 : f32 to vector<8x128xf32>
    %323 = arith.mulf %322, %321 : vector<8x128xf32>
    %324 = math.tanh %323 : vector<8x128xf32>
    %cst_104 = arith.constant 5.000000e-01 : f32
    %325 = vector.broadcast %cst_104 : f32 to vector<8x128xf32>
    %326 = arith.mulf %325, %324 : vector<8x128xf32>
    %cst_105 = arith.constant 5.000000e-01 : f32
    %327 = vector.broadcast %cst_105 : f32 to vector<8x128xf32>
    %328 = arith.addf %326, %327 : vector<8x128xf32>
    %329 = arith.mulf %318, %275 : vector<8x128xf32>
    %330 = arith.mulf %310, %320 : vector<8x128xf32>
    %331 = arith.addf %329, %330 : vector<8x128xf32>
    %332 = math.tanh %331 : vector<8x128xf32>
    %333 = arith.mulf %328, %332 : vector<8x128xf32>
    %334 = vector.broadcast %9 : vector<1x128xf32> to vector<8x128xf32>
    %335 = arith.mulf %333, %334 : vector<8x128xf32>
    %cst_106 = arith.constant dense<0.000000e+00> : vector<8xf32>
    %336 = vector.multi_reduction <add>, %335, %cst_106 [1] : vector<8x128xf32> to vector<8xf32>
    %337 = vector.shape_cast %336 : vector<8xf32> to vector<8x1xf32>
    %338 = vector.broadcast %10 : vector<1x1xf32> to vector<8x1xf32>
    %339 = arith.addf %337, %338 : vector<8x1xf32>
    %340 = arith.maximumf %284, %339 : vector<8x1xf32>
    %341 = arith.subf %284, %340 : vector<8x1xf32>
    %342 = math.exp %341 : vector<8x1xf32>
    %343 = arith.subf %339, %340 : vector<8x1xf32>
    %344 = math.exp %343 : vector<8x1xf32>
    %345 = arith.mulf %342, %290 : vector<8x1xf32>
    %346 = arith.addf %345, %344 : vector<8x1xf32>
    %347 = vector.broadcast %342 : vector<8x1xf32> to vector<8x128xf32>
    %348 = arith.mulf %347, %295 : vector<8x128xf32>
    %349 = vector.broadcast %344 : vector<8x1xf32> to vector<8x128xf32>
    %350 = arith.mulf %349, %333 : vector<8x128xf32>
    %351 = arith.addf %348, %350 : vector<8x128xf32>
    %c6_i32 = arith.constant 6 : i32
    %352 = arith.index_cast %c6_i32 : i32 to index
    %c0_107 = arith.constant 0 : index
    %c0_108 = arith.constant 0 : index
    %353 = vector.load %arg11[%352, %c0_107, %c0_108] : memref<24x8x512xf32, #tpu.memory_space<vmem>>, vector<1x8x512xf32>
    %354 = vector.shape_cast %353 : vector<1x8x512xf32> to vector<8x512xf32>
    %355 = arith.truncf %333 : vector<8x128xf32> to vector<8x128xbf16>
    %c0_109 = arith.constant 0 : index
    %c0_110 = arith.constant 0 : index
    %356 = vector.load %arg2[%c0_109, %c0_110] : memref<128x512xbf16, #tpu.memory_space<vmem>>, vector<128x512xbf16>
    %cst_111 = arith.constant dense<0.000000e+00> : vector<8x512xf32>
    %357 = tpu.matmul %355, %356, %cst_111 {dimension_numbers = #tpu.dot_dimension_numbers<[1], [0], [0], [1], [0, 0, 1, 1], [], []>} : vector<8x128xbf16>, vector<128x512xbf16>, vector<8x512xf32> -> vector<8x512xf32>
    %358 = arith.addf %354, %357 : vector<8x512xf32>
    %359 = vector.extract_strided_slice %358 {offsets = [0, 0], sizes = [8, 128], strides = [1, 1]} : vector<8x512xf32> to vector<8x128xf32>
    %cst_112 = arith.constant 5.000000e-01 : f32
    %360 = vector.broadcast %cst_112 : f32 to vector<8x128xf32>
    %361 = arith.mulf %360, %359 : vector<8x128xf32>
    %362 = math.tanh %361 : vector<8x128xf32>
    %cst_113 = arith.constant 5.000000e-01 : f32
    %363 = vector.broadcast %cst_113 : f32 to vector<8x128xf32>
    %364 = arith.mulf %363, %362 : vector<8x128xf32>
    %cst_114 = arith.constant 5.000000e-01 : f32
    %365 = vector.broadcast %cst_114 : f32 to vector<8x128xf32>
    %366 = arith.addf %364, %365 : vector<8x128xf32>
    %367 = vector.extract_strided_slice %358 {offsets = [0, 128], sizes = [8, 128], strides = [1, 1]} : vector<8x512xf32> to vector<8x128xf32>
    %cst_115 = arith.constant 5.000000e-01 : f32
    %368 = vector.broadcast %cst_115 : f32 to vector<8x128xf32>
    %369 = arith.mulf %368, %367 : vector<8x128xf32>
    %370 = math.tanh %369 : vector<8x128xf32>
    %cst_116 = arith.constant 5.000000e-01 : f32
    %371 = vector.broadcast %cst_116 : f32 to vector<8x128xf32>
    %372 = arith.mulf %371, %370 : vector<8x128xf32>
    %cst_117 = arith.constant 5.000000e-01 : f32
    %373 = vector.broadcast %cst_117 : f32 to vector<8x128xf32>
    %374 = arith.addf %372, %373 : vector<8x128xf32>
    %375 = vector.extract_strided_slice %358 {offsets = [0, 256], sizes = [8, 128], strides = [1, 1]} : vector<8x512xf32> to vector<8x128xf32>
    %376 = math.tanh %375 : vector<8x128xf32>
    %377 = vector.extract_strided_slice %358 {offsets = [0, 384], sizes = [8, 128], strides = [1, 1]} : vector<8x512xf32> to vector<8x128xf32>
    %cst_118 = arith.constant 5.000000e-01 : f32
    %378 = vector.broadcast %cst_118 : f32 to vector<8x128xf32>
    %379 = arith.mulf %378, %377 : vector<8x128xf32>
    %380 = math.tanh %379 : vector<8x128xf32>
    %cst_119 = arith.constant 5.000000e-01 : f32
    %381 = vector.broadcast %cst_119 : f32 to vector<8x128xf32>
    %382 = arith.mulf %381, %380 : vector<8x128xf32>
    %cst_120 = arith.constant 5.000000e-01 : f32
    %383 = vector.broadcast %cst_120 : f32 to vector<8x128xf32>
    %384 = arith.addf %382, %383 : vector<8x128xf32>
    %385 = arith.mulf %374, %331 : vector<8x128xf32>
    %386 = arith.mulf %366, %376 : vector<8x128xf32>
    %387 = arith.addf %385, %386 : vector<8x128xf32>
    %388 = math.tanh %387 : vector<8x128xf32>
    %389 = arith.mulf %384, %388 : vector<8x128xf32>
    %390 = vector.broadcast %9 : vector<1x128xf32> to vector<8x128xf32>
    %391 = arith.mulf %389, %390 : vector<8x128xf32>
    %cst_121 = arith.constant dense<0.000000e+00> : vector<8xf32>
    %392 = vector.multi_reduction <add>, %391, %cst_121 [1] : vector<8x128xf32> to vector<8xf32>
    %393 = vector.shape_cast %392 : vector<8xf32> to vector<8x1xf32>
    %394 = vector.broadcast %10 : vector<1x1xf32> to vector<8x1xf32>
    %395 = arith.addf %393, %394 : vector<8x1xf32>
    %396 = arith.maximumf %340, %395 : vector<8x1xf32>
    %397 = arith.subf %340, %396 : vector<8x1xf32>
    %398 = math.exp %397 : vector<8x1xf32>
    %399 = arith.subf %395, %396 : vector<8x1xf32>
    %400 = math.exp %399 : vector<8x1xf32>
    %401 = arith.mulf %398, %346 : vector<8x1xf32>
    %402 = arith.addf %401, %400 : vector<8x1xf32>
    %403 = vector.broadcast %398 : vector<8x1xf32> to vector<8x128xf32>
    %404 = arith.mulf %403, %351 : vector<8x128xf32>
    %405 = vector.broadcast %400 : vector<8x1xf32> to vector<8x128xf32>
    %406 = arith.mulf %405, %389 : vector<8x128xf32>
    %407 = arith.addf %404, %406 : vector<8x128xf32>
    %c7_i32 = arith.constant 7 : i32
    %408 = arith.index_cast %c7_i32 : i32 to index
    %c0_122 = arith.constant 0 : index
    %c0_123 = arith.constant 0 : index
    %409 = vector.load %arg11[%408, %c0_122, %c0_123] : memref<24x8x512xf32, #tpu.memory_space<vmem>>, vector<1x8x512xf32>
    %410 = vector.shape_cast %409 : vector<1x8x512xf32> to vector<8x512xf32>
    %411 = arith.truncf %389 : vector<8x128xf32> to vector<8x128xbf16>
    %c0_124 = arith.constant 0 : index
    %c0_125 = arith.constant 0 : index
    %412 = vector.load %arg2[%c0_124, %c0_125] : memref<128x512xbf16, #tpu.memory_space<vmem>>, vector<128x512xbf16>
    %cst_126 = arith.constant dense<0.000000e+00> : vector<8x512xf32>
    %413 = tpu.matmul %411, %412, %cst_126 {dimension_numbers = #tpu.dot_dimension_numbers<[1], [0], [0], [1], [0, 0, 1, 1], [], []>} : vector<8x128xbf16>, vector<128x512xbf16>, vector<8x512xf32> -> vector<8x512xf32>
    %414 = arith.addf %410, %413 : vector<8x512xf32>
    %415 = vector.extract_strided_slice %414 {offsets = [0, 0], sizes = [8, 128], strides = [1, 1]} : vector<8x512xf32> to vector<8x128xf32>
    %cst_127 = arith.constant 5.000000e-01 : f32
    %416 = vector.broadcast %cst_127 : f32 to vector<8x128xf32>
    %417 = arith.mulf %416, %415 : vector<8x128xf32>
    %418 = math.tanh %417 : vector<8x128xf32>
    %cst_128 = arith.constant 5.000000e-01 : f32
    %419 = vector.broadcast %cst_128 : f32 to vector<8x128xf32>
    %420 = arith.mulf %419, %418 : vector<8x128xf32>
    %cst_129 = arith.constant 5.000000e-01 : f32
    %421 = vector.broadcast %cst_129 : f32 to vector<8x128xf32>
    %422 = arith.addf %420, %421 : vector<8x128xf32>
    %423 = vector.extract_strided_slice %414 {offsets = [0, 128], sizes = [8, 128], strides = [1, 1]} : vector<8x512xf32> to vector<8x128xf32>
    %cst_130 = arith.constant 5.000000e-01 : f32
    %424 = vector.broadcast %cst_130 : f32 to vector<8x128xf32>
    %425 = arith.mulf %424, %423 : vector<8x128xf32>
    %426 = math.tanh %425 : vector<8x128xf32>
    %cst_131 = arith.constant 5.000000e-01 : f32
    %427 = vector.broadcast %cst_131 : f32 to vector<8x128xf32>
    %428 = arith.mulf %427, %426 : vector<8x128xf32>
    %cst_132 = arith.constant 5.000000e-01 : f32
    %429 = vector.broadcast %cst_132 : f32 to vector<8x128xf32>
    %430 = arith.addf %428, %429 : vector<8x128xf32>
    %431 = vector.extract_strided_slice %414 {offsets = [0, 256], sizes = [8, 128], strides = [1, 1]} : vector<8x512xf32> to vector<8x128xf32>
    %432 = math.tanh %431 : vector<8x128xf32>
    %433 = vector.extract_strided_slice %414 {offsets = [0, 384], sizes = [8, 128], strides = [1, 1]} : vector<8x512xf32> to vector<8x128xf32>
    %cst_133 = arith.constant 5.000000e-01 : f32
    %434 = vector.broadcast %cst_133 : f32 to vector<8x128xf32>
    %435 = arith.mulf %434, %433 : vector<8x128xf32>
    %436 = math.tanh %435 : vector<8x128xf32>
    %cst_134 = arith.constant 5.000000e-01 : f32
    %437 = vector.broadcast %cst_134 : f32 to vector<8x128xf32>
    %438 = arith.mulf %437, %436 : vector<8x128xf32>
    %cst_135 = arith.constant 5.000000e-01 : f32
    %439 = vector.broadcast %cst_135 : f32 to vector<8x128xf32>
    %440 = arith.addf %438, %439 : vector<8x128xf32>
    %441 = arith.mulf %430, %387 : vector<8x128xf32>
    %442 = arith.mulf %422, %432 : vector<8x128xf32>
    %443 = arith.addf %441, %442 : vector<8x128xf32>
    %444 = math.tanh %443 : vector<8x128xf32>
    %445 = arith.mulf %440, %444 : vector<8x128xf32>
    %446 = vector.broadcast %9 : vector<1x128xf32> to vector<8x128xf32>
    %447 = arith.mulf %445, %446 : vector<8x128xf32>
    %cst_136 = arith.constant dense<0.000000e+00> : vector<8xf32>
    %448 = vector.multi_reduction <add>, %447, %cst_136 [1] : vector<8x128xf32> to vector<8xf32>
    %449 = vector.shape_cast %448 : vector<8xf32> to vector<8x1xf32>
    %450 = vector.broadcast %10 : vector<1x1xf32> to vector<8x1xf32>
    %451 = arith.addf %449, %450 : vector<8x1xf32>
    %452 = arith.maximumf %396, %451 : vector<8x1xf32>
    %453 = arith.subf %396, %452 : vector<8x1xf32>
    %454 = math.exp %453 : vector<8x1xf32>
    %455 = arith.subf %451, %452 : vector<8x1xf32>
    %456 = math.exp %455 : vector<8x1xf32>
    %457 = arith.mulf %454, %402 : vector<8x1xf32>
    %458 = arith.addf %457, %456 : vector<8x1xf32>
    %459 = vector.broadcast %454 : vector<8x1xf32> to vector<8x128xf32>
    %460 = arith.mulf %459, %407 : vector<8x128xf32>
    %461 = vector.broadcast %456 : vector<8x1xf32> to vector<8x128xf32>
    %462 = arith.mulf %461, %445 : vector<8x128xf32>
    %463 = arith.addf %460, %462 : vector<8x128xf32>
    %c8_i32 = arith.constant 8 : i32
    %464 = arith.index_cast %c8_i32 : i32 to index
    %c0_137 = arith.constant 0 : index
    %c0_138 = arith.constant 0 : index
    %465 = vector.load %arg11[%464, %c0_137, %c0_138] : memref<24x8x512xf32, #tpu.memory_space<vmem>>, vector<1x8x512xf32>
    %466 = vector.shape_cast %465 : vector<1x8x512xf32> to vector<8x512xf32>
    %467 = arith.truncf %445 : vector<8x128xf32> to vector<8x128xbf16>
    %c0_139 = arith.constant 0 : index
    %c0_140 = arith.constant 0 : index
    %468 = vector.load %arg2[%c0_139, %c0_140] : memref<128x512xbf16, #tpu.memory_space<vmem>>, vector<128x512xbf16>
    %cst_141 = arith.constant dense<0.000000e+00> : vector<8x512xf32>
    %469 = tpu.matmul %467, %468, %cst_141 {dimension_numbers = #tpu.dot_dimension_numbers<[1], [0], [0], [1], [0, 0, 1, 1], [], []>} : vector<8x128xbf16>, vector<128x512xbf16>, vector<8x512xf32> -> vector<8x512xf32>
    %470 = arith.addf %466, %469 : vector<8x512xf32>
    %471 = vector.extract_strided_slice %470 {offsets = [0, 0], sizes = [8, 128], strides = [1, 1]} : vector<8x512xf32> to vector<8x128xf32>
    %cst_142 = arith.constant 5.000000e-01 : f32
    %472 = vector.broadcast %cst_142 : f32 to vector<8x128xf32>
    %473 = arith.mulf %472, %471 : vector<8x128xf32>
    %474 = math.tanh %473 : vector<8x128xf32>
    %cst_143 = arith.constant 5.000000e-01 : f32
    %475 = vector.broadcast %cst_143 : f32 to vector<8x128xf32>
    %476 = arith.mulf %475, %474 : vector<8x128xf32>
    %cst_144 = arith.constant 5.000000e-01 : f32
    %477 = vector.broadcast %cst_144 : f32 to vector<8x128xf32>
    %478 = arith.addf %476, %477 : vector<8x128xf32>
    %479 = vector.extract_strided_slice %470 {offsets = [0, 128], sizes = [8, 128], strides = [1, 1]} : vector<8x512xf32> to vector<8x128xf32>
    %cst_145 = arith.constant 5.000000e-01 : f32
    %480 = vector.broadcast %cst_145 : f32 to vector<8x128xf32>
    %481 = arith.mulf %480, %479 : vector<8x128xf32>
    %482 = math.tanh %481 : vector<8x128xf32>
    %cst_146 = arith.constant 5.000000e-01 : f32
    %483 = vector.broadcast %cst_146 : f32 to vector<8x128xf32>
    %484 = arith.mulf %483, %482 : vector<8x128xf32>
    %cst_147 = arith.constant 5.000000e-01 : f32
    %485 = vector.broadcast %cst_147 : f32 to vector<8x128xf32>
    %486 = arith.addf %484, %485 : vector<8x128xf32>
    %487 = vector.extract_strided_slice %470 {offsets = [0, 256], sizes = [8, 128], strides = [1, 1]} : vector<8x512xf32> to vector<8x128xf32>
    %488 = math.tanh %487 : vector<8x128xf32>
    %489 = vector.extract_strided_slice %470 {offsets = [0, 384], sizes = [8, 128], strides = [1, 1]} : vector<8x512xf32> to vector<8x128xf32>
    %cst_148 = arith.constant 5.000000e-01 : f32
    %490 = vector.broadcast %cst_148 : f32 to vector<8x128xf32>
    %491 = arith.mulf %490, %489 : vector<8x128xf32>
    %492 = math.tanh %491 : vector<8x128xf32>
    %cst_149 = arith.constant 5.000000e-01 : f32
    %493 = vector.broadcast %cst_149 : f32 to vector<8x128xf32>
    %494 = arith.mulf %493, %492 : vector<8x128xf32>
    %cst_150 = arith.constant 5.000000e-01 : f32
    %495 = vector.broadcast %cst_150 : f32 to vector<8x128xf32>
    %496 = arith.addf %494, %495 : vector<8x128xf32>
    %497 = arith.mulf %486, %443 : vector<8x128xf32>
    %498 = arith.mulf %478, %488 : vector<8x128xf32>
    %499 = arith.addf %497, %498 : vector<8x128xf32>
    %500 = math.tanh %499 : vector<8x128xf32>
    %501 = arith.mulf %496, %500 : vector<8x128xf32>
    %502 = vector.broadcast %9 : vector<1x128xf32> to vector<8x128xf32>
    %503 = arith.mulf %501, %502 : vector<8x128xf32>
    %cst_151 = arith.constant dense<0.000000e+00> : vector<8xf32>
    %504 = vector.multi_reduction <add>, %503, %cst_151 [1] : vector<8x128xf32> to vector<8xf32>
    %505 = vector.shape_cast %504 : vector<8xf32> to vector<8x1xf32>
    %506 = vector.broadcast %10 : vector<1x1xf32> to vector<8x1xf32>
    %507 = arith.addf %505, %506 : vector<8x1xf32>
    %508 = arith.maximumf %452, %507 : vector<8x1xf32>
    %509 = arith.subf %452, %508 : vector<8x1xf32>
    %510 = math.exp %509 : vector<8x1xf32>
    %511 = arith.subf %507, %508 : vector<8x1xf32>
    %512 = math.exp %511 : vector<8x1xf32>
    %513 = arith.mulf %510, %458 : vector<8x1xf32>
    %514 = arith.addf %513, %512 : vector<8x1xf32>
    %515 = vector.broadcast %510 : vector<8x1xf32> to vector<8x128xf32>
    %516 = arith.mulf %515, %463 : vector<8x128xf32>
    %517 = vector.broadcast %512 : vector<8x1xf32> to vector<8x128xf32>
    %518 = arith.mulf %517, %501 : vector<8x128xf32>
    %519 = arith.addf %516, %518 : vector<8x128xf32>
    %c9_i32 = arith.constant 9 : i32
    %520 = arith.index_cast %c9_i32 : i32 to index
    %c0_152 = arith.constant 0 : index
    %c0_153 = arith.constant 0 : index
    %521 = vector.load %arg11[%520, %c0_152, %c0_153] : memref<24x8x512xf32, #tpu.memory_space<vmem>>, vector<1x8x512xf32>
    %522 = vector.shape_cast %521 : vector<1x8x512xf32> to vector<8x512xf32>
    %523 = arith.truncf %501 : vector<8x128xf32> to vector<8x128xbf16>
    %c0_154 = arith.constant 0 : index
    %c0_155 = arith.constant 0 : index
    %524 = vector.load %arg2[%c0_154, %c0_155] : memref<128x512xbf16, #tpu.memory_space<vmem>>, vector<128x512xbf16>
    %cst_156 = arith.constant dense<0.000000e+00> : vector<8x512xf32>
    %525 = tpu.matmul %523, %524, %cst_156 {dimension_numbers = #tpu.dot_dimension_numbers<[1], [0], [0], [1], [0, 0, 1, 1], [], []>} : vector<8x128xbf16>, vector<128x512xbf16>, vector<8x512xf32> -> vector<8x512xf32>
    %526 = arith.addf %522, %525 : vector<8x512xf32>
    %527 = vector.extract_strided_slice %526 {offsets = [0, 0], sizes = [8, 128], strides = [1, 1]} : vector<8x512xf32> to vector<8x128xf32>
    %cst_157 = arith.constant 5.000000e-01 : f32
    %528 = vector.broadcast %cst_157 : f32 to vector<8x128xf32>
    %529 = arith.mulf %528, %527 : vector<8x128xf32>
    %530 = math.tanh %529 : vector<8x128xf32>
    %cst_158 = arith.constant 5.000000e-01 : f32
    %531 = vector.broadcast %cst_158 : f32 to vector<8x128xf32>
    %532 = arith.mulf %531, %530 : vector<8x128xf32>
    %cst_159 = arith.constant 5.000000e-01 : f32
    %533 = vector.broadcast %cst_159 : f32 to vector<8x128xf32>
    %534 = arith.addf %532, %533 : vector<8x128xf32>
    %535 = vector.extract_strided_slice %526 {offsets = [0, 128], sizes = [8, 128], strides = [1, 1]} : vector<8x512xf32> to vector<8x128xf32>
    %cst_160 = arith.constant 5.000000e-01 : f32
    %536 = vector.broadcast %cst_160 : f32 to vector<8x128xf32>
    %537 = arith.mulf %536, %535 : vector<8x128xf32>
    %538 = math.tanh %537 : vector<8x128xf32>
    %cst_161 = arith.constant 5.000000e-01 : f32
    %539 = vector.broadcast %cst_161 : f32 to vector<8x128xf32>
    %540 = arith.mulf %539, %538 : vector<8x128xf32>
    %cst_162 = arith.constant 5.000000e-01 : f32
    %541 = vector.broadcast %cst_162 : f32 to vector<8x128xf32>
    %542 = arith.addf %540, %541 : vector<8x128xf32>
    %543 = vector.extract_strided_slice %526 {offsets = [0, 256], sizes = [8, 128], strides = [1, 1]} : vector<8x512xf32> to vector<8x128xf32>
    %544 = math.tanh %543 : vector<8x128xf32>
    %545 = vector.extract_strided_slice %526 {offsets = [0, 384], sizes = [8, 128], strides = [1, 1]} : vector<8x512xf32> to vector<8x128xf32>
    %cst_163 = arith.constant 5.000000e-01 : f32
    %546 = vector.broadcast %cst_163 : f32 to vector<8x128xf32>
    %547 = arith.mulf %546, %545 : vector<8x128xf32>
    %548 = math.tanh %547 : vector<8x128xf32>
    %cst_164 = arith.constant 5.000000e-01 : f32
    %549 = vector.broadcast %cst_164 : f32 to vector<8x128xf32>
    %550 = arith.mulf %549, %548 : vector<8x128xf32>
    %cst_165 = arith.constant 5.000000e-01 : f32
    %551 = vector.broadcast %cst_165 : f32 to vector<8x128xf32>
    %552 = arith.addf %550, %551 : vector<8x128xf32>
    %553 = arith.mulf %542, %499 : vector<8x128xf32>
    %554 = arith.mulf %534, %544 : vector<8x128xf32>
    %555 = arith.addf %553, %554 : vector<8x128xf32>
    %556 = math.tanh %555 : vector<8x128xf32>
    %557 = arith.mulf %552, %556 : vector<8x128xf32>
    %558 = vector.broadcast %9 : vector<1x128xf32> to vector<8x128xf32>
    %559 = arith.mulf %557, %558 : vector<8x128xf32>
    %cst_166 = arith.constant dense<0.000000e+00> : vector<8xf32>
    %560 = vector.multi_reduction <add>, %559, %cst_166 [1] : vector<8x128xf32> to vector<8xf32>
    %561 = vector.shape_cast %560 : vector<8xf32> to vector<8x1xf32>
    %562 = vector.broadcast %10 : vector<1x1xf32> to vector<8x1xf32>
    %563 = arith.addf %561, %562 : vector<8x1xf32>
    %564 = arith.maximumf %508, %563 : vector<8x1xf32>
    %565 = arith.subf %508, %564 : vector<8x1xf32>
    %566 = math.exp %565 : vector<8x1xf32>
    %567 = arith.subf %563, %564 : vector<8x1xf32>
    %568 = math.exp %567 : vector<8x1xf32>
    %569 = arith.mulf %566, %514 : vector<8x1xf32>
    %570 = arith.addf %569, %568 : vector<8x1xf32>
    %571 = vector.broadcast %566 : vector<8x1xf32> to vector<8x128xf32>
    %572 = arith.mulf %571, %519 : vector<8x128xf32>
    %573 = vector.broadcast %568 : vector<8x1xf32> to vector<8x128xf32>
    %574 = arith.mulf %573, %557 : vector<8x128xf32>
    %575 = arith.addf %572, %574 : vector<8x128xf32>
    %c10_i32 = arith.constant 10 : i32
    %576 = arith.index_cast %c10_i32 : i32 to index
    %c0_167 = arith.constant 0 : index
    %c0_168 = arith.constant 0 : index
    %577 = vector.load %arg11[%576, %c0_167, %c0_168] : memref<24x8x512xf32, #tpu.memory_space<vmem>>, vector<1x8x512xf32>
    %578 = vector.shape_cast %577 : vector<1x8x512xf32> to vector<8x512xf32>
    %579 = arith.truncf %557 : vector<8x128xf32> to vector<8x128xbf16>
    %c0_169 = arith.constant 0 : index
    %c0_170 = arith.constant 0 : index
    %580 = vector.load %arg2[%c0_169, %c0_170] : memref<128x512xbf16, #tpu.memory_space<vmem>>, vector<128x512xbf16>
    %cst_171 = arith.constant dense<0.000000e+00> : vector<8x512xf32>
    %581 = tpu.matmul %579, %580, %cst_171 {dimension_numbers = #tpu.dot_dimension_numbers<[1], [0], [0], [1], [0, 0, 1, 1], [], []>} : vector<8x128xbf16>, vector<128x512xbf16>, vector<8x512xf32> -> vector<8x512xf32>
    %582 = arith.addf %578, %581 : vector<8x512xf32>
    %583 = vector.extract_strided_slice %582 {offsets = [0, 0], sizes = [8, 128], strides = [1, 1]} : vector<8x512xf32> to vector<8x128xf32>
    %cst_172 = arith.constant 5.000000e-01 : f32
    %584 = vector.broadcast %cst_172 : f32 to vector<8x128xf32>
    %585 = arith.mulf %584, %583 : vector<8x128xf32>
    %586 = math.tanh %585 : vector<8x128xf32>
    %cst_173 = arith.constant 5.000000e-01 : f32
    %587 = vector.broadcast %cst_173 : f32 to vector<8x128xf32>
    %588 = arith.mulf %587, %586 : vector<8x128xf32>
    %cst_174 = arith.constant 5.000000e-01 : f32
    %589 = vector.broadcast %cst_174 : f32 to vector<8x128xf32>
    %590 = arith.addf %588, %589 : vector<8x128xf32>
    %591 = vector.extract_strided_slice %582 {offsets = [0, 128], sizes = [8, 128], strides = [1, 1]} : vector<8x512xf32> to vector<8x128xf32>
    %cst_175 = arith.constant 5.000000e-01 : f32
    %592 = vector.broadcast %cst_175 : f32 to vector<8x128xf32>
    %593 = arith.mulf %592, %591 : vector<8x128xf32>
    %594 = math.tanh %593 : vector<8x128xf32>
    %cst_176 = arith.constant 5.000000e-01 : f32
    %595 = vector.broadcast %cst_176 : f32 to vector<8x128xf32>
    %596 = arith.mulf %595, %594 : vector<8x128xf32>
    %cst_177 = arith.constant 5.000000e-01 : f32
    %597 = vector.broadcast %cst_177 : f32 to vector<8x128xf32>
    %598 = arith.addf %596, %597 : vector<8x128xf32>
    %599 = vector.extract_strided_slice %582 {offsets = [0, 256], sizes = [8, 128], strides = [1, 1]} : vector<8x512xf32> to vector<8x128xf32>
    %600 = math.tanh %599 : vector<8x128xf32>
    %601 = vector.extract_strided_slice %582 {offsets = [0, 384], sizes = [8, 128], strides = [1, 1]} : vector<8x512xf32> to vector<8x128xf32>
    %cst_178 = arith.constant 5.000000e-01 : f32
    %602 = vector.broadcast %cst_178 : f32 to vector<8x128xf32>
    %603 = arith.mulf %602, %601 : vector<8x128xf32>
    %604 = math.tanh %603 : vector<8x128xf32>
    %cst_179 = arith.constant 5.000000e-01 : f32
    %605 = vector.broadcast %cst_179 : f32 to vector<8x128xf32>
    %606 = arith.mulf %605, %604 : vector<8x128xf32>
    %cst_180 = arith.constant 5.000000e-01 : f32
    %607 = vector.broadcast %cst_180 : f32 to vector<8x128xf32>
    %608 = arith.addf %606, %607 : vector<8x128xf32>
    %609 = arith.mulf %598, %555 : vector<8x128xf32>
    %610 = arith.mulf %590, %600 : vector<8x128xf32>
    %611 = arith.addf %609, %610 : vector<8x128xf32>
    %612 = math.tanh %611 : vector<8x128xf32>
    %613 = arith.mulf %608, %612 : vector<8x128xf32>
    %614 = vector.broadcast %9 : vector<1x128xf32> to vector<8x128xf32>
    %615 = arith.mulf %613, %614 : vector<8x128xf32>
    %cst_181 = arith.constant dense<0.000000e+00> : vector<8xf32>
    %616 = vector.multi_reduction <add>, %615, %cst_181 [1] : vector<8x128xf32> to vector<8xf32>
    %617 = vector.shape_cast %616 : vector<8xf32> to vector<8x1xf32>
    %618 = vector.broadcast %10 : vector<1x1xf32> to vector<8x1xf32>
    %619 = arith.addf %617, %618 : vector<8x1xf32>
    %620 = arith.maximumf %564, %619 : vector<8x1xf32>
    %621 = arith.subf %564, %620 : vector<8x1xf32>
    %622 = math.exp %621 : vector<8x1xf32>
    %623 = arith.subf %619, %620 : vector<8x1xf32>
    %624 = math.exp %623 : vector<8x1xf32>
    %625 = arith.mulf %622, %570 : vector<8x1xf32>
    %626 = arith.addf %625, %624 : vector<8x1xf32>
    %627 = vector.broadcast %622 : vector<8x1xf32> to vector<8x128xf32>
    %628 = arith.mulf %627, %575 : vector<8x128xf32>
    %629 = vector.broadcast %624 : vector<8x1xf32> to vector<8x128xf32>
    %630 = arith.mulf %629, %613 : vector<8x128xf32>
    %631 = arith.addf %628, %630 : vector<8x128xf32>
    %c11_i32 = arith.constant 11 : i32
    %632 = arith.index_cast %c11_i32 : i32 to index
    %c0_182 = arith.constant 0 : index
    %c0_183 = arith.constant 0 : index
    %633 = vector.load %arg11[%632, %c0_182, %c0_183] : memref<24x8x512xf32, #tpu.memory_space<vmem>>, vector<1x8x512xf32>
    %634 = vector.shape_cast %633 : vector<1x8x512xf32> to vector<8x512xf32>
    %635 = arith.truncf %613 : vector<8x128xf32> to vector<8x128xbf16>
    %c0_184 = arith.constant 0 : index
    %c0_185 = arith.constant 0 : index
    %636 = vector.load %arg2[%c0_184, %c0_185] : memref<128x512xbf16, #tpu.memory_space<vmem>>, vector<128x512xbf16>
    %cst_186 = arith.constant dense<0.000000e+00> : vector<8x512xf32>
    %637 = tpu.matmul %635, %636, %cst_186 {dimension_numbers = #tpu.dot_dimension_numbers<[1], [0], [0], [1], [0, 0, 1, 1], [], []>} : vector<8x128xbf16>, vector<128x512xbf16>, vector<8x512xf32> -> vector<8x512xf32>
    %638 = arith.addf %634, %637 : vector<8x512xf32>
    %639 = vector.extract_strided_slice %638 {offsets = [0, 0], sizes = [8, 128], strides = [1, 1]} : vector<8x512xf32> to vector<8x128xf32>
    %cst_187 = arith.constant 5.000000e-01 : f32
    %640 = vector.broadcast %cst_187 : f32 to vector<8x128xf32>
    %641 = arith.mulf %640, %639 : vector<8x128xf32>
    %642 = math.tanh %641 : vector<8x128xf32>
    %cst_188 = arith.constant 5.000000e-01 : f32
    %643 = vector.broadcast %cst_188 : f32 to vector<8x128xf32>
    %644 = arith.mulf %643, %642 : vector<8x128xf32>
    %cst_189 = arith.constant 5.000000e-01 : f32
    %645 = vector.broadcast %cst_189 : f32 to vector<8x128xf32>
    %646 = arith.addf %644, %645 : vector<8x128xf32>
    %647 = vector.extract_strided_slice %638 {offsets = [0, 128], sizes = [8, 128], strides = [1, 1]} : vector<8x512xf32> to vector<8x128xf32>
    %cst_190 = arith.constant 5.000000e-01 : f32
    %648 = vector.broadcast %cst_190 : f32 to vector<8x128xf32>
    %649 = arith.mulf %648, %647 : vector<8x128xf32>
    %650 = math.tanh %649 : vector<8x128xf32>
    %cst_191 = arith.constant 5.000000e-01 : f32
    %651 = vector.broadcast %cst_191 : f32 to vector<8x128xf32>
    %652 = arith.mulf %651, %650 : vector<8x128xf32>
    %cst_192 = arith.constant 5.000000e-01 : f32
    %653 = vector.broadcast %cst_192 : f32 to vector<8x128xf32>
    %654 = arith.addf %652, %653 : vector<8x128xf32>
    %655 = vector.extract_strided_slice %638 {offsets = [0, 256], sizes = [8, 128], strides = [1, 1]} : vector<8x512xf32> to vector<8x128xf32>
    %656 = math.tanh %655 : vector<8x128xf32>
    %657 = vector.extract_strided_slice %638 {offsets = [0, 384], sizes = [8, 128], strides = [1, 1]} : vector<8x512xf32> to vector<8x128xf32>
    %cst_193 = arith.constant 5.000000e-01 : f32
    %658 = vector.broadcast %cst_193 : f32 to vector<8x128xf32>
    %659 = arith.mulf %658, %657 : vector<8x128xf32>
    %660 = math.tanh %659 : vector<8x128xf32>
    %cst_194 = arith.constant 5.000000e-01 : f32
    %661 = vector.broadcast %cst_194 : f32 to vector<8x128xf32>
    %662 = arith.mulf %661, %660 : vector<8x128xf32>
    %cst_195 = arith.constant 5.000000e-01 : f32
    %663 = vector.broadcast %cst_195 : f32 to vector<8x128xf32>
    %664 = arith.addf %662, %663 : vector<8x128xf32>
    %665 = arith.mulf %654, %611 : vector<8x128xf32>
    %666 = arith.mulf %646, %656 : vector<8x128xf32>
    %667 = arith.addf %665, %666 : vector<8x128xf32>
    %668 = math.tanh %667 : vector<8x128xf32>
    %669 = arith.mulf %664, %668 : vector<8x128xf32>
    %670 = vector.broadcast %9 : vector<1x128xf32> to vector<8x128xf32>
    %671 = arith.mulf %669, %670 : vector<8x128xf32>
    %cst_196 = arith.constant dense<0.000000e+00> : vector<8xf32>
    %672 = vector.multi_reduction <add>, %671, %cst_196 [1] : vector<8x128xf32> to vector<8xf32>
    %673 = vector.shape_cast %672 : vector<8xf32> to vector<8x1xf32>
    %674 = vector.broadcast %10 : vector<1x1xf32> to vector<8x1xf32>
    %675 = arith.addf %673, %674 : vector<8x1xf32>
    %676 = arith.maximumf %620, %675 : vector<8x1xf32>
    %677 = arith.subf %620, %676 : vector<8x1xf32>
    %678 = math.exp %677 : vector<8x1xf32>
    %679 = arith.subf %675, %676 : vector<8x1xf32>
    %680 = math.exp %679 : vector<8x1xf32>
    %681 = arith.mulf %678, %626 : vector<8x1xf32>
    %682 = arith.addf %681, %680 : vector<8x1xf32>
    %683 = vector.broadcast %678 : vector<8x1xf32> to vector<8x128xf32>
    %684 = arith.mulf %683, %631 : vector<8x128xf32>
    %685 = vector.broadcast %680 : vector<8x1xf32> to vector<8x128xf32>
    %686 = arith.mulf %685, %669 : vector<8x128xf32>
    %687 = arith.addf %684, %686 : vector<8x128xf32>
    %c12_i32 = arith.constant 12 : i32
    %688 = arith.index_cast %c12_i32 : i32 to index
    %c0_197 = arith.constant 0 : index
    %c0_198 = arith.constant 0 : index
    %689 = vector.load %arg11[%688, %c0_197, %c0_198] : memref<24x8x512xf32, #tpu.memory_space<vmem>>, vector<1x8x512xf32>
    %690 = vector.shape_cast %689 : vector<1x8x512xf32> to vector<8x512xf32>
    %691 = arith.truncf %669 : vector<8x128xf32> to vector<8x128xbf16>
    %c0_199 = arith.constant 0 : index
    %c0_200 = arith.constant 0 : index
    %692 = vector.load %arg2[%c0_199, %c0_200] : memref<128x512xbf16, #tpu.memory_space<vmem>>, vector<128x512xbf16>
    %cst_201 = arith.constant dense<0.000000e+00> : vector<8x512xf32>
    %693 = tpu.matmul %691, %692, %cst_201 {dimension_numbers = #tpu.dot_dimension_numbers<[1], [0], [0], [1], [0, 0, 1, 1], [], []>} : vector<8x128xbf16>, vector<128x512xbf16>, vector<8x512xf32> -> vector<8x512xf32>
    %694 = arith.addf %690, %693 : vector<8x512xf32>
    %695 = vector.extract_strided_slice %694 {offsets = [0, 0], sizes = [8, 128], strides = [1, 1]} : vector<8x512xf32> to vector<8x128xf32>
    %cst_202 = arith.constant 5.000000e-01 : f32
    %696 = vector.broadcast %cst_202 : f32 to vector<8x128xf32>
    %697 = arith.mulf %696, %695 : vector<8x128xf32>
    %698 = math.tanh %697 : vector<8x128xf32>
    %cst_203 = arith.constant 5.000000e-01 : f32
    %699 = vector.broadcast %cst_203 : f32 to vector<8x128xf32>
    %700 = arith.mulf %699, %698 : vector<8x128xf32>
    %cst_204 = arith.constant 5.000000e-01 : f32
    %701 = vector.broadcast %cst_204 : f32 to vector<8x128xf32>
    %702 = arith.addf %700, %701 : vector<8x128xf32>
    %703 = vector.extract_strided_slice %694 {offsets = [0, 128], sizes = [8, 128], strides = [1, 1]} : vector<8x512xf32> to vector<8x128xf32>
    %cst_205 = arith.constant 5.000000e-01 : f32
    %704 = vector.broadcast %cst_205 : f32 to vector<8x128xf32>
    %705 = arith.mulf %704, %703 : vector<8x128xf32>
    %706 = math.tanh %705 : vector<8x128xf32>
    %cst_206 = arith.constant 5.000000e-01 : f32
    %707 = vector.broadcast %cst_206 : f32 to vector<8x128xf32>
    %708 = arith.mulf %707, %706 : vector<8x128xf32>
    %cst_207 = arith.constant 5.000000e-01 : f32
    %709 = vector.broadcast %cst_207 : f32 to vector<8x128xf32>
    %710 = arith.addf %708, %709 : vector<8x128xf32>
    %711 = vector.extract_strided_slice %694 {offsets = [0, 256], sizes = [8, 128], strides = [1, 1]} : vector<8x512xf32> to vector<8x128xf32>
    %712 = math.tanh %711 : vector<8x128xf32>
    %713 = vector.extract_strided_slice %694 {offsets = [0, 384], sizes = [8, 128], strides = [1, 1]} : vector<8x512xf32> to vector<8x128xf32>
    %cst_208 = arith.constant 5.000000e-01 : f32
    %714 = vector.broadcast %cst_208 : f32 to vector<8x128xf32>
    %715 = arith.mulf %714, %713 : vector<8x128xf32>
    %716 = math.tanh %715 : vector<8x128xf32>
    %cst_209 = arith.constant 5.000000e-01 : f32
    %717 = vector.broadcast %cst_209 : f32 to vector<8x128xf32>
    %718 = arith.mulf %717, %716 : vector<8x128xf32>
    %cst_210 = arith.constant 5.000000e-01 : f32
    %719 = vector.broadcast %cst_210 : f32 to vector<8x128xf32>
    %720 = arith.addf %718, %719 : vector<8x128xf32>
    %721 = arith.mulf %710, %667 : vector<8x128xf32>
    %722 = arith.mulf %702, %712 : vector<8x128xf32>
    %723 = arith.addf %721, %722 : vector<8x128xf32>
    %724 = math.tanh %723 : vector<8x128xf32>
    %725 = arith.mulf %720, %724 : vector<8x128xf32>
    %726 = vector.broadcast %9 : vector<1x128xf32> to vector<8x128xf32>
    %727 = arith.mulf %725, %726 : vector<8x128xf32>
    %cst_211 = arith.constant dense<0.000000e+00> : vector<8xf32>
    %728 = vector.multi_reduction <add>, %727, %cst_211 [1] : vector<8x128xf32> to vector<8xf32>
    %729 = vector.shape_cast %728 : vector<8xf32> to vector<8x1xf32>
    %730 = vector.broadcast %10 : vector<1x1xf32> to vector<8x1xf32>
    %731 = arith.addf %729, %730 : vector<8x1xf32>
    %732 = arith.maximumf %676, %731 : vector<8x1xf32>
    %733 = arith.subf %676, %732 : vector<8x1xf32>
    %734 = math.exp %733 : vector<8x1xf32>
    %735 = arith.subf %731, %732 : vector<8x1xf32>
    %736 = math.exp %735 : vector<8x1xf32>
    %737 = arith.mulf %734, %682 : vector<8x1xf32>
    %738 = arith.addf %737, %736 : vector<8x1xf32>
    %739 = vector.broadcast %734 : vector<8x1xf32> to vector<8x128xf32>
    %740 = arith.mulf %739, %687 : vector<8x128xf32>
    %741 = vector.broadcast %736 : vector<8x1xf32> to vector<8x128xf32>
    %742 = arith.mulf %741, %725 : vector<8x128xf32>
    %743 = arith.addf %740, %742 : vector<8x128xf32>
    %c13_i32 = arith.constant 13 : i32
    %744 = arith.index_cast %c13_i32 : i32 to index
    %c0_212 = arith.constant 0 : index
    %c0_213 = arith.constant 0 : index
    %745 = vector.load %arg11[%744, %c0_212, %c0_213] : memref<24x8x512xf32, #tpu.memory_space<vmem>>, vector<1x8x512xf32>
    %746 = vector.shape_cast %745 : vector<1x8x512xf32> to vector<8x512xf32>
    %747 = arith.truncf %725 : vector<8x128xf32> to vector<8x128xbf16>
    %c0_214 = arith.constant 0 : index
    %c0_215 = arith.constant 0 : index
    %748 = vector.load %arg2[%c0_214, %c0_215] : memref<128x512xbf16, #tpu.memory_space<vmem>>, vector<128x512xbf16>
    %cst_216 = arith.constant dense<0.000000e+00> : vector<8x512xf32>
    %749 = tpu.matmul %747, %748, %cst_216 {dimension_numbers = #tpu.dot_dimension_numbers<[1], [0], [0], [1], [0, 0, 1, 1], [], []>} : vector<8x128xbf16>, vector<128x512xbf16>, vector<8x512xf32> -> vector<8x512xf32>
    %750 = arith.addf %746, %749 : vector<8x512xf32>
    %751 = vector.extract_strided_slice %750 {offsets = [0, 0], sizes = [8, 128], strides = [1, 1]} : vector<8x512xf32> to vector<8x128xf32>
    %cst_217 = arith.constant 5.000000e-01 : f32
    %752 = vector.broadcast %cst_217 : f32 to vector<8x128xf32>
    %753 = arith.mulf %752, %751 : vector<8x128xf32>
    %754 = math.tanh %753 : vector<8x128xf32>
    %cst_218 = arith.constant 5.000000e-01 : f32
    %755 = vector.broadcast %cst_218 : f32 to vector<8x128xf32>
    %756 = arith.mulf %755, %754 : vector<8x128xf32>
    %cst_219 = arith.constant 5.000000e-01 : f32
    %757 = vector.broadcast %cst_219 : f32 to vector<8x128xf32>
    %758 = arith.addf %756, %757 : vector<8x128xf32>
    %759 = vector.extract_strided_slice %750 {offsets = [0, 128], sizes = [8, 128], strides = [1, 1]} : vector<8x512xf32> to vector<8x128xf32>
    %cst_220 = arith.constant 5.000000e-01 : f32
    %760 = vector.broadcast %cst_220 : f32 to vector<8x128xf32>
    %761 = arith.mulf %760, %759 : vector<8x128xf32>
    %762 = math.tanh %761 : vector<8x128xf32>
    %cst_221 = arith.constant 5.000000e-01 : f32
    %763 = vector.broadcast %cst_221 : f32 to vector<8x128xf32>
    %764 = arith.mulf %763, %762 : vector<8x128xf32>
    %cst_222 = arith.constant 5.000000e-01 : f32
    %765 = vector.broadcast %cst_222 : f32 to vector<8x128xf32>
    %766 = arith.addf %764, %765 : vector<8x128xf32>
    %767 = vector.extract_strided_slice %750 {offsets = [0, 256], sizes = [8, 128], strides = [1, 1]} : vector<8x512xf32> to vector<8x128xf32>
    %768 = math.tanh %767 : vector<8x128xf32>
    %769 = vector.extract_strided_slice %750 {offsets = [0, 384], sizes = [8, 128], strides = [1, 1]} : vector<8x512xf32> to vector<8x128xf32>
    %cst_223 = arith.constant 5.000000e-01 : f32
    %770 = vector.broadcast %cst_223 : f32 to vector<8x128xf32>
    %771 = arith.mulf %770, %769 : vector<8x128xf32>
    %772 = math.tanh %771 : vector<8x128xf32>
    %cst_224 = arith.constant 5.000000e-01 : f32
    %773 = vector.broadcast %cst_224 : f32 to vector<8x128xf32>
    %774 = arith.mulf %773, %772 : vector<8x128xf32>
    %cst_225 = arith.constant 5.000000e-01 : f32
    %775 = vector.broadcast %cst_225 : f32 to vector<8x128xf32>
    %776 = arith.addf %774, %775 : vector<8x128xf32>
    %777 = arith.mulf %766, %723 : vector<8x128xf32>
    %778 = arith.mulf %758, %768 : vector<8x128xf32>
    %779 = arith.addf %777, %778 : vector<8x128xf32>
    %780 = math.tanh %779 : vector<8x128xf32>
    %781 = arith.mulf %776, %780 : vector<8x128xf32>
    %782 = vector.broadcast %9 : vector<1x128xf32> to vector<8x128xf32>
    %783 = arith.mulf %781, %782 : vector<8x128xf32>
    %cst_226 = arith.constant dense<0.000000e+00> : vector<8xf32>
    %784 = vector.multi_reduction <add>, %783, %cst_226 [1] : vector<8x128xf32> to vector<8xf32>
    %785 = vector.shape_cast %784 : vector<8xf32> to vector<8x1xf32>
    %786 = vector.broadcast %10 : vector<1x1xf32> to vector<8x1xf32>
    %787 = arith.addf %785, %786 : vector<8x1xf32>
    %788 = arith.maximumf %732, %787 : vector<8x1xf32>
    %789 = arith.subf %732, %788 : vector<8x1xf32>
    %790 = math.exp %789 : vector<8x1xf32>
    %791 = arith.subf %787, %788 : vector<8x1xf32>
    %792 = math.exp %791 : vector<8x1xf32>
    %793 = arith.mulf %790, %738 : vector<8x1xf32>
    %794 = arith.addf %793, %792 : vector<8x1xf32>
    %795 = vector.broadcast %790 : vector<8x1xf32> to vector<8x128xf32>
    %796 = arith.mulf %795, %743 : vector<8x128xf32>
    %797 = vector.broadcast %792 : vector<8x1xf32> to vector<8x128xf32>
    %798 = arith.mulf %797, %781 : vector<8x128xf32>
    %799 = arith.addf %796, %798 : vector<8x128xf32>
    %c14_i32 = arith.constant 14 : i32
    %800 = arith.index_cast %c14_i32 : i32 to index
    %c0_227 = arith.constant 0 : index
    %c0_228 = arith.constant 0 : index
    %801 = vector.load %arg11[%800, %c0_227, %c0_228] : memref<24x8x512xf32, #tpu.memory_space<vmem>>, vector<1x8x512xf32>
    %802 = vector.shape_cast %801 : vector<1x8x512xf32> to vector<8x512xf32>
    %803 = arith.truncf %781 : vector<8x128xf32> to vector<8x128xbf16>
    %c0_229 = arith.constant 0 : index
    %c0_230 = arith.constant 0 : index
    %804 = vector.load %arg2[%c0_229, %c0_230] : memref<128x512xbf16, #tpu.memory_space<vmem>>, vector<128x512xbf16>
    %cst_231 = arith.constant dense<0.000000e+00> : vector<8x512xf32>
    %805 = tpu.matmul %803, %804, %cst_231 {dimension_numbers = #tpu.dot_dimension_numbers<[1], [0], [0], [1], [0, 0, 1, 1], [], []>} : vector<8x128xbf16>, vector<128x512xbf16>, vector<8x512xf32> -> vector<8x512xf32>
    %806 = arith.addf %802, %805 : vector<8x512xf32>
    %807 = vector.extract_strided_slice %806 {offsets = [0, 0], sizes = [8, 128], strides = [1, 1]} : vector<8x512xf32> to vector<8x128xf32>
    %cst_232 = arith.constant 5.000000e-01 : f32
    %808 = vector.broadcast %cst_232 : f32 to vector<8x128xf32>
    %809 = arith.mulf %808, %807 : vector<8x128xf32>
    %810 = math.tanh %809 : vector<8x128xf32>
    %cst_233 = arith.constant 5.000000e-01 : f32
    %811 = vector.broadcast %cst_233 : f32 to vector<8x128xf32>
    %812 = arith.mulf %811, %810 : vector<8x128xf32>
    %cst_234 = arith.constant 5.000000e-01 : f32
    %813 = vector.broadcast %cst_234 : f32 to vector<8x128xf32>
    %814 = arith.addf %812, %813 : vector<8x128xf32>
    %815 = vector.extract_strided_slice %806 {offsets = [0, 128], sizes = [8, 128], strides = [1, 1]} : vector<8x512xf32> to vector<8x128xf32>
    %cst_235 = arith.constant 5.000000e-01 : f32
    %816 = vector.broadcast %cst_235 : f32 to vector<8x128xf32>
    %817 = arith.mulf %816, %815 : vector<8x128xf32>
    %818 = math.tanh %817 : vector<8x128xf32>
    %cst_236 = arith.constant 5.000000e-01 : f32
    %819 = vector.broadcast %cst_236 : f32 to vector<8x128xf32>
    %820 = arith.mulf %819, %818 : vector<8x128xf32>
    %cst_237 = arith.constant 5.000000e-01 : f32
    %821 = vector.broadcast %cst_237 : f32 to vector<8x128xf32>
    %822 = arith.addf %820, %821 : vector<8x128xf32>
    %823 = vector.extract_strided_slice %806 {offsets = [0, 256], sizes = [8, 128], strides = [1, 1]} : vector<8x512xf32> to vector<8x128xf32>
    %824 = math.tanh %823 : vector<8x128xf32>
    %825 = vector.extract_strided_slice %806 {offsets = [0, 384], sizes = [8, 128], strides = [1, 1]} : vector<8x512xf32> to vector<8x128xf32>
    %cst_238 = arith.constant 5.000000e-01 : f32
    %826 = vector.broadcast %cst_238 : f32 to vector<8x128xf32>
    %827 = arith.mulf %826, %825 : vector<8x128xf32>
    %828 = math.tanh %827 : vector<8x128xf32>
    %cst_239 = arith.constant 5.000000e-01 : f32
    %829 = vector.broadcast %cst_239 : f32 to vector<8x128xf32>
    %830 = arith.mulf %829, %828 : vector<8x128xf32>
    %cst_240 = arith.constant 5.000000e-01 : f32
    %831 = vector.broadcast %cst_240 : f32 to vector<8x128xf32>
    %832 = arith.addf %830, %831 : vector<8x128xf32>
    %833 = arith.mulf %822, %779 : vector<8x128xf32>
    %834 = arith.mulf %814, %824 : vector<8x128xf32>
    %835 = arith.addf %833, %834 : vector<8x128xf32>
    %836 = math.tanh %835 : vector<8x128xf32>
    %837 = arith.mulf %832, %836 : vector<8x128xf32>
    %838 = vector.broadcast %9 : vector<1x128xf32> to vector<8x128xf32>
    %839 = arith.mulf %837, %838 : vector<8x128xf32>
    %cst_241 = arith.constant dense<0.000000e+00> : vector<8xf32>
    %840 = vector.multi_reduction <add>, %839, %cst_241 [1] : vector<8x128xf32> to vector<8xf32>
    %841 = vector.shape_cast %840 : vector<8xf32> to vector<8x1xf32>
    %842 = vector.broadcast %10 : vector<1x1xf32> to vector<8x1xf32>
    %843 = arith.addf %841, %842 : vector<8x1xf32>
    %844 = arith.maximumf %788, %843 : vector<8x1xf32>
    %845 = arith.subf %788, %844 : vector<8x1xf32>
    %846 = math.exp %845 : vector<8x1xf32>
    %847 = arith.subf %843, %844 : vector<8x1xf32>
    %848 = math.exp %847 : vector<8x1xf32>
    %849 = arith.mulf %846, %794 : vector<8x1xf32>
    %850 = arith.addf %849, %848 : vector<8x1xf32>
    %851 = vector.broadcast %846 : vector<8x1xf32> to vector<8x128xf32>
    %852 = arith.mulf %851, %799 : vector<8x128xf32>
    %853 = vector.broadcast %848 : vector<8x1xf32> to vector<8x128xf32>
    %854 = arith.mulf %853, %837 : vector<8x128xf32>
    %855 = arith.addf %852, %854 : vector<8x128xf32>
    %c15_i32 = arith.constant 15 : i32
    %856 = arith.index_cast %c15_i32 : i32 to index
    %c0_242 = arith.constant 0 : index
    %c0_243 = arith.constant 0 : index
    %857 = vector.load %arg11[%856, %c0_242, %c0_243] : memref<24x8x512xf32, #tpu.memory_space<vmem>>, vector<1x8x512xf32>
    %858 = vector.shape_cast %857 : vector<1x8x512xf32> to vector<8x512xf32>
    %859 = arith.truncf %837 : vector<8x128xf32> to vector<8x128xbf16>
    %c0_244 = arith.constant 0 : index
    %c0_245 = arith.constant 0 : index
    %860 = vector.load %arg2[%c0_244, %c0_245] : memref<128x512xbf16, #tpu.memory_space<vmem>>, vector<128x512xbf16>
    %cst_246 = arith.constant dense<0.000000e+00> : vector<8x512xf32>
    %861 = tpu.matmul %859, %860, %cst_246 {dimension_numbers = #tpu.dot_dimension_numbers<[1], [0], [0], [1], [0, 0, 1, 1], [], []>} : vector<8x128xbf16>, vector<128x512xbf16>, vector<8x512xf32> -> vector<8x512xf32>
    %862 = arith.addf %858, %861 : vector<8x512xf32>
    %863 = vector.extract_strided_slice %862 {offsets = [0, 0], sizes = [8, 128], strides = [1, 1]} : vector<8x512xf32> to vector<8x128xf32>
    %cst_247 = arith.constant 5.000000e-01 : f32
    %864 = vector.broadcast %cst_247 : f32 to vector<8x128xf32>
    %865 = arith.mulf %864, %863 : vector<8x128xf32>
    %866 = math.tanh %865 : vector<8x128xf32>
    %cst_248 = arith.constant 5.000000e-01 : f32
    %867 = vector.broadcast %cst_248 : f32 to vector<8x128xf32>
    %868 = arith.mulf %867, %866 : vector<8x128xf32>
    %cst_249 = arith.constant 5.000000e-01 : f32
    %869 = vector.broadcast %cst_249 : f32 to vector<8x128xf32>
    %870 = arith.addf %868, %869 : vector<8x128xf32>
    %871 = vector.extract_strided_slice %862 {offsets = [0, 128], sizes = [8, 128], strides = [1, 1]} : vector<8x512xf32> to vector<8x128xf32>
    %cst_250 = arith.constant 5.000000e-01 : f32
    %872 = vector.broadcast %cst_250 : f32 to vector<8x128xf32>
    %873 = arith.mulf %872, %871 : vector<8x128xf32>
    %874 = math.tanh %873 : vector<8x128xf32>
    %cst_251 = arith.constant 5.000000e-01 : f32
    %875 = vector.broadcast %cst_251 : f32 to vector<8x128xf32>
    %876 = arith.mulf %875, %874 : vector<8x128xf32>
    %cst_252 = arith.constant 5.000000e-01 : f32
    %877 = vector.broadcast %cst_252 : f32 to vector<8x128xf32>
    %878 = arith.addf %876, %877 : vector<8x128xf32>
    %879 = vector.extract_strided_slice %862 {offsets = [0, 256], sizes = [8, 128], strides = [1, 1]} : vector<8x512xf32> to vector<8x128xf32>
    %880 = math.tanh %879 : vector<8x128xf32>
    %881 = vector.extract_strided_slice %862 {offsets = [0, 384], sizes = [8, 128], strides = [1, 1]} : vector<8x512xf32> to vector<8x128xf32>
    %cst_253 = arith.constant 5.000000e-01 : f32
    %882 = vector.broadcast %cst_253 : f32 to vector<8x128xf32>
    %883 = arith.mulf %882, %881 : vector<8x128xf32>
    %884 = math.tanh %883 : vector<8x128xf32>
    %cst_254 = arith.constant 5.000000e-01 : f32
    %885 = vector.broadcast %cst_254 : f32 to vector<8x128xf32>
    %886 = arith.mulf %885, %884 : vector<8x128xf32>
    %cst_255 = arith.constant 5.000000e-01 : f32
    %887 = vector.broadcast %cst_255 : f32 to vector<8x128xf32>
    %888 = arith.addf %886, %887 : vector<8x128xf32>
    %889 = arith.mulf %878, %835 : vector<8x128xf32>
    %890 = arith.mulf %870, %880 : vector<8x128xf32>
    %891 = arith.addf %889, %890 : vector<8x128xf32>
    %892 = math.tanh %891 : vector<8x128xf32>
    %893 = arith.mulf %888, %892 : vector<8x128xf32>
    %894 = vector.broadcast %9 : vector<1x128xf32> to vector<8x128xf32>
    %895 = arith.mulf %893, %894 : vector<8x128xf32>
    %cst_256 = arith.constant dense<0.000000e+00> : vector<8xf32>
    %896 = vector.multi_reduction <add>, %895, %cst_256 [1] : vector<8x128xf32> to vector<8xf32>
    %897 = vector.shape_cast %896 : vector<8xf32> to vector<8x1xf32>
    %898 = vector.broadcast %10 : vector<1x1xf32> to vector<8x1xf32>
    %899 = arith.addf %897, %898 : vector<8x1xf32>
    %900 = arith.maximumf %844, %899 : vector<8x1xf32>
    %901 = arith.subf %844, %900 : vector<8x1xf32>
    %902 = math.exp %901 : vector<8x1xf32>
    %903 = arith.subf %899, %900 : vector<8x1xf32>
    %904 = math.exp %903 : vector<8x1xf32>
    %905 = arith.mulf %902, %850 : vector<8x1xf32>
    %906 = arith.addf %905, %904 : vector<8x1xf32>
    %907 = vector.broadcast %902 : vector<8x1xf32> to vector<8x128xf32>
    %908 = arith.mulf %907, %855 : vector<8x128xf32>
    %909 = vector.broadcast %904 : vector<8x1xf32> to vector<8x128xf32>
    %910 = arith.mulf %909, %893 : vector<8x128xf32>
    %911 = arith.addf %908, %910 : vector<8x128xf32>
    %c16_i32 = arith.constant 16 : i32
    %912 = arith.index_cast %c16_i32 : i32 to index
    %c0_257 = arith.constant 0 : index
    %c0_258 = arith.constant 0 : index
    %913 = vector.load %arg11[%912, %c0_257, %c0_258] : memref<24x8x512xf32, #tpu.memory_space<vmem>>, vector<1x8x512xf32>
    %914 = vector.shape_cast %913 : vector<1x8x512xf32> to vector<8x512xf32>
    %915 = arith.truncf %893 : vector<8x128xf32> to vector<8x128xbf16>
    %c0_259 = arith.constant 0 : index
    %c0_260 = arith.constant 0 : index
    %916 = vector.load %arg2[%c0_259, %c0_260] : memref<128x512xbf16, #tpu.memory_space<vmem>>, vector<128x512xbf16>
    %cst_261 = arith.constant dense<0.000000e+00> : vector<8x512xf32>
    %917 = tpu.matmul %915, %916, %cst_261 {dimension_numbers = #tpu.dot_dimension_numbers<[1], [0], [0], [1], [0, 0, 1, 1], [], []>} : vector<8x128xbf16>, vector<128x512xbf16>, vector<8x512xf32> -> vector<8x512xf32>
    %918 = arith.addf %914, %917 : vector<8x512xf32>
    %919 = vector.extract_strided_slice %918 {offsets = [0, 0], sizes = [8, 128], strides = [1, 1]} : vector<8x512xf32> to vector<8x128xf32>
    %cst_262 = arith.constant 5.000000e-01 : f32
    %920 = vector.broadcast %cst_262 : f32 to vector<8x128xf32>
    %921 = arith.mulf %920, %919 : vector<8x128xf32>
    %922 = math.tanh %921 : vector<8x128xf32>
    %cst_263 = arith.constant 5.000000e-01 : f32
    %923 = vector.broadcast %cst_263 : f32 to vector<8x128xf32>
    %924 = arith.mulf %923, %922 : vector<8x128xf32>
    %cst_264 = arith.constant 5.000000e-01 : f32
    %925 = vector.broadcast %cst_264 : f32 to vector<8x128xf32>
    %926 = arith.addf %924, %925 : vector<8x128xf32>
    %927 = vector.extract_strided_slice %918 {offsets = [0, 128], sizes = [8, 128], strides = [1, 1]} : vector<8x512xf32> to vector<8x128xf32>
    %cst_265 = arith.constant 5.000000e-01 : f32
    %928 = vector.broadcast %cst_265 : f32 to vector<8x128xf32>
    %929 = arith.mulf %928, %927 : vector<8x128xf32>
    %930 = math.tanh %929 : vector<8x128xf32>
    %cst_266 = arith.constant 5.000000e-01 : f32
    %931 = vector.broadcast %cst_266 : f32 to vector<8x128xf32>
    %932 = arith.mulf %931, %930 : vector<8x128xf32>
    %cst_267 = arith.constant 5.000000e-01 : f32
    %933 = vector.broadcast %cst_267 : f32 to vector<8x128xf32>
    %934 = arith.addf %932, %933 : vector<8x128xf32>
    %935 = vector.extract_strided_slice %918 {offsets = [0, 256], sizes = [8, 128], strides = [1, 1]} : vector<8x512xf32> to vector<8x128xf32>
    %936 = math.tanh %935 : vector<8x128xf32>
    %937 = vector.extract_strided_slice %918 {offsets = [0, 384], sizes = [8, 128], strides = [1, 1]} : vector<8x512xf32> to vector<8x128xf32>
    %cst_268 = arith.constant 5.000000e-01 : f32
    %938 = vector.broadcast %cst_268 : f32 to vector<8x128xf32>
    %939 = arith.mulf %938, %937 : vector<8x128xf32>
    %940 = math.tanh %939 : vector<8x128xf32>
    %cst_269 = arith.constant 5.000000e-01 : f32
    %941 = vector.broadcast %cst_269 : f32 to vector<8x128xf32>
    %942 = arith.mulf %941, %940 : vector<8x128xf32>
    %cst_270 = arith.constant 5.000000e-01 : f32
    %943 = vector.broadcast %cst_270 : f32 to vector<8x128xf32>
    %944 = arith.addf %942, %943 : vector<8x128xf32>
    %945 = arith.mulf %934, %891 : vector<8x128xf32>
    %946 = arith.mulf %926, %936 : vector<8x128xf32>
    %947 = arith.addf %945, %946 : vector<8x128xf32>
    %948 = math.tanh %947 : vector<8x128xf32>
    %949 = arith.mulf %944, %948 : vector<8x128xf32>
    %950 = vector.broadcast %9 : vector<1x128xf32> to vector<8x128xf32>
    %951 = arith.mulf %949, %950 : vector<8x128xf32>
    %cst_271 = arith.constant dense<0.000000e+00> : vector<8xf32>
    %952 = vector.multi_reduction <add>, %951, %cst_271 [1] : vector<8x128xf32> to vector<8xf32>
    %953 = vector.shape_cast %952 : vector<8xf32> to vector<8x1xf32>
    %954 = vector.broadcast %10 : vector<1x1xf32> to vector<8x1xf32>
    %955 = arith.addf %953, %954 : vector<8x1xf32>
    %956 = arith.maximumf %900, %955 : vector<8x1xf32>
    %957 = arith.subf %900, %956 : vector<8x1xf32>
    %958 = math.exp %957 : vector<8x1xf32>
    %959 = arith.subf %955, %956 : vector<8x1xf32>
    %960 = math.exp %959 : vector<8x1xf32>
    %961 = arith.mulf %958, %906 : vector<8x1xf32>
    %962 = arith.addf %961, %960 : vector<8x1xf32>
    %963 = vector.broadcast %958 : vector<8x1xf32> to vector<8x128xf32>
    %964 = arith.mulf %963, %911 : vector<8x128xf32>
    %965 = vector.broadcast %960 : vector<8x1xf32> to vector<8x128xf32>
    %966 = arith.mulf %965, %949 : vector<8x128xf32>
    %967 = arith.addf %964, %966 : vector<8x128xf32>
    %c17_i32 = arith.constant 17 : i32
    %968 = arith.index_cast %c17_i32 : i32 to index
    %c0_272 = arith.constant 0 : index
    %c0_273 = arith.constant 0 : index
    %969 = vector.load %arg11[%968, %c0_272, %c0_273] : memref<24x8x512xf32, #tpu.memory_space<vmem>>, vector<1x8x512xf32>
    %970 = vector.shape_cast %969 : vector<1x8x512xf32> to vector<8x512xf32>
    %971 = arith.truncf %949 : vector<8x128xf32> to vector<8x128xbf16>
    %c0_274 = arith.constant 0 : index
    %c0_275 = arith.constant 0 : index
    %972 = vector.load %arg2[%c0_274, %c0_275] : memref<128x512xbf16, #tpu.memory_space<vmem>>, vector<128x512xbf16>
    %cst_276 = arith.constant dense<0.000000e+00> : vector<8x512xf32>
    %973 = tpu.matmul %971, %972, %cst_276 {dimension_numbers = #tpu.dot_dimension_numbers<[1], [0], [0], [1], [0, 0, 1, 1], [], []>} : vector<8x128xbf16>, vector<128x512xbf16>, vector<8x512xf32> -> vector<8x512xf32>
    %974 = arith.addf %970, %973 : vector<8x512xf32>
    %975 = vector.extract_strided_slice %974 {offsets = [0, 0], sizes = [8, 128], strides = [1, 1]} : vector<8x512xf32> to vector<8x128xf32>
    %cst_277 = arith.constant 5.000000e-01 : f32
    %976 = vector.broadcast %cst_277 : f32 to vector<8x128xf32>
    %977 = arith.mulf %976, %975 : vector<8x128xf32>
    %978 = math.tanh %977 : vector<8x128xf32>
    %cst_278 = arith.constant 5.000000e-01 : f32
    %979 = vector.broadcast %cst_278 : f32 to vector<8x128xf32>
    %980 = arith.mulf %979, %978 : vector<8x128xf32>
    %cst_279 = arith.constant 5.000000e-01 : f32
    %981 = vector.broadcast %cst_279 : f32 to vector<8x128xf32>
    %982 = arith.addf %980, %981 : vector<8x128xf32>
    %983 = vector.extract_strided_slice %974 {offsets = [0, 128], sizes = [8, 128], strides = [1, 1]} : vector<8x512xf32> to vector<8x128xf32>
    %cst_280 = arith.constant 5.000000e-01 : f32
    %984 = vector.broadcast %cst_280 : f32 to vector<8x128xf32>
    %985 = arith.mulf %984, %983 : vector<8x128xf32>
    %986 = math.tanh %985 : vector<8x128xf32>
    %cst_281 = arith.constant 5.000000e-01 : f32
    %987 = vector.broadcast %cst_281 : f32 to vector<8x128xf32>
    %988 = arith.mulf %987, %986 : vector<8x128xf32>
    %cst_282 = arith.constant 5.000000e-01 : f32
    %989 = vector.broadcast %cst_282 : f32 to vector<8x128xf32>
    %990 = arith.addf %988, %989 : vector<8x128xf32>
    %991 = vector.extract_strided_slice %974 {offsets = [0, 256], sizes = [8, 128], strides = [1, 1]} : vector<8x512xf32> to vector<8x128xf32>
    %992 = math.tanh %991 : vector<8x128xf32>
    %993 = vector.extract_strided_slice %974 {offsets = [0, 384], sizes = [8, 128], strides = [1, 1]} : vector<8x512xf32> to vector<8x128xf32>
    %cst_283 = arith.constant 5.000000e-01 : f32
    %994 = vector.broadcast %cst_283 : f32 to vector<8x128xf32>
    %995 = arith.mulf %994, %993 : vector<8x128xf32>
    %996 = math.tanh %995 : vector<8x128xf32>
    %cst_284 = arith.constant 5.000000e-01 : f32
    %997 = vector.broadcast %cst_284 : f32 to vector<8x128xf32>
    %998 = arith.mulf %997, %996 : vector<8x128xf32>
    %cst_285 = arith.constant 5.000000e-01 : f32
    %999 = vector.broadcast %cst_285 : f32 to vector<8x128xf32>
    %1000 = arith.addf %998, %999 : vector<8x128xf32>
    %1001 = arith.mulf %990, %947 : vector<8x128xf32>
    %1002 = arith.mulf %982, %992 : vector<8x128xf32>
    %1003 = arith.addf %1001, %1002 : vector<8x128xf32>
    %1004 = math.tanh %1003 : vector<8x128xf32>
    %1005 = arith.mulf %1000, %1004 : vector<8x128xf32>
    %1006 = vector.broadcast %9 : vector<1x128xf32> to vector<8x128xf32>
    %1007 = arith.mulf %1005, %1006 : vector<8x128xf32>
    %cst_286 = arith.constant dense<0.000000e+00> : vector<8xf32>
    %1008 = vector.multi_reduction <add>, %1007, %cst_286 [1] : vector<8x128xf32> to vector<8xf32>
    %1009 = vector.shape_cast %1008 : vector<8xf32> to vector<8x1xf32>
    %1010 = vector.broadcast %10 : vector<1x1xf32> to vector<8x1xf32>
    %1011 = arith.addf %1009, %1010 : vector<8x1xf32>
    %1012 = arith.maximumf %956, %1011 : vector<8x1xf32>
    %1013 = arith.subf %956, %1012 : vector<8x1xf32>
    %1014 = math.exp %1013 : vector<8x1xf32>
    %1015 = arith.subf %1011, %1012 : vector<8x1xf32>
    %1016 = math.exp %1015 : vector<8x1xf32>
    %1017 = arith.mulf %1014, %962 : vector<8x1xf32>
    %1018 = arith.addf %1017, %1016 : vector<8x1xf32>
    %1019 = vector.broadcast %1014 : vector<8x1xf32> to vector<8x128xf32>
    %1020 = arith.mulf %1019, %967 : vector<8x128xf32>
    %1021 = vector.broadcast %1016 : vector<8x1xf32> to vector<8x128xf32>
    %1022 = arith.mulf %1021, %1005 : vector<8x128xf32>
    %1023 = arith.addf %1020, %1022 : vector<8x128xf32>
    %c18_i32 = arith.constant 18 : i32
    %1024 = arith.index_cast %c18_i32 : i32 to index
    %c0_287 = arith.constant 0 : index
    %c0_288 = arith.constant 0 : index
    %1025 = vector.load %arg11[%1024, %c0_287, %c0_288] : memref<24x8x512xf32, #tpu.memory_space<vmem>>, vector<1x8x512xf32>
    %1026 = vector.shape_cast %1025 : vector<1x8x512xf32> to vector<8x512xf32>
    %1027 = arith.truncf %1005 : vector<8x128xf32> to vector<8x128xbf16>
    %c0_289 = arith.constant 0 : index
    %c0_290 = arith.constant 0 : index
    %1028 = vector.load %arg2[%c0_289, %c0_290] : memref<128x512xbf16, #tpu.memory_space<vmem>>, vector<128x512xbf16>
    %cst_291 = arith.constant dense<0.000000e+00> : vector<8x512xf32>
    %1029 = tpu.matmul %1027, %1028, %cst_291 {dimension_numbers = #tpu.dot_dimension_numbers<[1], [0], [0], [1], [0, 0, 1, 1], [], []>} : vector<8x128xbf16>, vector<128x512xbf16>, vector<8x512xf32> -> vector<8x512xf32>
    %1030 = arith.addf %1026, %1029 : vector<8x512xf32>
    %1031 = vector.extract_strided_slice %1030 {offsets = [0, 0], sizes = [8, 128], strides = [1, 1]} : vector<8x512xf32> to vector<8x128xf32>
    %cst_292 = arith.constant 5.000000e-01 : f32
    %1032 = vector.broadcast %cst_292 : f32 to vector<8x128xf32>
    %1033 = arith.mulf %1032, %1031 : vector<8x128xf32>
    %1034 = math.tanh %1033 : vector<8x128xf32>
    %cst_293 = arith.constant 5.000000e-01 : f32
    %1035 = vector.broadcast %cst_293 : f32 to vector<8x128xf32>
    %1036 = arith.mulf %1035, %1034 : vector<8x128xf32>
    %cst_294 = arith.constant 5.000000e-01 : f32
    %1037 = vector.broadcast %cst_294 : f32 to vector<8x128xf32>
    %1038 = arith.addf %1036, %1037 : vector<8x128xf32>
    %1039 = vector.extract_strided_slice %1030 {offsets = [0, 128], sizes = [8, 128], strides = [1, 1]} : vector<8x512xf32> to vector<8x128xf32>
    %cst_295 = arith.constant 5.000000e-01 : f32
    %1040 = vector.broadcast %cst_295 : f32 to vector<8x128xf32>
    %1041 = arith.mulf %1040, %1039 : vector<8x128xf32>
    %1042 = math.tanh %1041 : vector<8x128xf32>
    %cst_296 = arith.constant 5.000000e-01 : f32
    %1043 = vector.broadcast %cst_296 : f32 to vector<8x128xf32>
    %1044 = arith.mulf %1043, %1042 : vector<8x128xf32>
    %cst_297 = arith.constant 5.000000e-01 : f32
    %1045 = vector.broadcast %cst_297 : f32 to vector<8x128xf32>
    %1046 = arith.addf %1044, %1045 : vector<8x128xf32>
    %1047 = vector.extract_strided_slice %1030 {offsets = [0, 256], sizes = [8, 128], strides = [1, 1]} : vector<8x512xf32> to vector<8x128xf32>
    %1048 = math.tanh %1047 : vector<8x128xf32>
    %1049 = vector.extract_strided_slice %1030 {offsets = [0, 384], sizes = [8, 128], strides = [1, 1]} : vector<8x512xf32> to vector<8x128xf32>
    %cst_298 = arith.constant 5.000000e-01 : f32
    %1050 = vector.broadcast %cst_298 : f32 to vector<8x128xf32>
    %1051 = arith.mulf %1050, %1049 : vector<8x128xf32>
    %1052 = math.tanh %1051 : vector<8x128xf32>
    %cst_299 = arith.constant 5.000000e-01 : f32
    %1053 = vector.broadcast %cst_299 : f32 to vector<8x128xf32>
    %1054 = arith.mulf %1053, %1052 : vector<8x128xf32>
    %cst_300 = arith.constant 5.000000e-01 : f32
    %1055 = vector.broadcast %cst_300 : f32 to vector<8x128xf32>
    %1056 = arith.addf %1054, %1055 : vector<8x128xf32>
    %1057 = arith.mulf %1046, %1003 : vector<8x128xf32>
    %1058 = arith.mulf %1038, %1048 : vector<8x128xf32>
    %1059 = arith.addf %1057, %1058 : vector<8x128xf32>
    %1060 = math.tanh %1059 : vector<8x128xf32>
    %1061 = arith.mulf %1056, %1060 : vector<8x128xf32>
    %1062 = vector.broadcast %9 : vector<1x128xf32> to vector<8x128xf32>
    %1063 = arith.mulf %1061, %1062 : vector<8x128xf32>
    %cst_301 = arith.constant dense<0.000000e+00> : vector<8xf32>
    %1064 = vector.multi_reduction <add>, %1063, %cst_301 [1] : vector<8x128xf32> to vector<8xf32>
    %1065 = vector.shape_cast %1064 : vector<8xf32> to vector<8x1xf32>
    %1066 = vector.broadcast %10 : vector<1x1xf32> to vector<8x1xf32>
    %1067 = arith.addf %1065, %1066 : vector<8x1xf32>
    %1068 = arith.maximumf %1012, %1067 : vector<8x1xf32>
    %1069 = arith.subf %1012, %1068 : vector<8x1xf32>
    %1070 = math.exp %1069 : vector<8x1xf32>
    %1071 = arith.subf %1067, %1068 : vector<8x1xf32>
    %1072 = math.exp %1071 : vector<8x1xf32>
    %1073 = arith.mulf %1070, %1018 : vector<8x1xf32>
    %1074 = arith.addf %1073, %1072 : vector<8x1xf32>
    %1075 = vector.broadcast %1070 : vector<8x1xf32> to vector<8x128xf32>
    %1076 = arith.mulf %1075, %1023 : vector<8x128xf32>
    %1077 = vector.broadcast %1072 : vector<8x1xf32> to vector<8x128xf32>
    %1078 = arith.mulf %1077, %1061 : vector<8x128xf32>
    %1079 = arith.addf %1076, %1078 : vector<8x128xf32>
    %c19_i32 = arith.constant 19 : i32
    %1080 = arith.index_cast %c19_i32 : i32 to index
    %c0_302 = arith.constant 0 : index
    %c0_303 = arith.constant 0 : index
    %1081 = vector.load %arg11[%1080, %c0_302, %c0_303] : memref<24x8x512xf32, #tpu.memory_space<vmem>>, vector<1x8x512xf32>
    %1082 = vector.shape_cast %1081 : vector<1x8x512xf32> to vector<8x512xf32>
    %1083 = arith.truncf %1061 : vector<8x128xf32> to vector<8x128xbf16>
    %c0_304 = arith.constant 0 : index
    %c0_305 = arith.constant 0 : index
    %1084 = vector.load %arg2[%c0_304, %c0_305] : memref<128x512xbf16, #tpu.memory_space<vmem>>, vector<128x512xbf16>
    %cst_306 = arith.constant dense<0.000000e+00> : vector<8x512xf32>
    %1085 = tpu.matmul %1083, %1084, %cst_306 {dimension_numbers = #tpu.dot_dimension_numbers<[1], [0], [0], [1], [0, 0, 1, 1], [], []>} : vector<8x128xbf16>, vector<128x512xbf16>, vector<8x512xf32> -> vector<8x512xf32>
    %1086 = arith.addf %1082, %1085 : vector<8x512xf32>
    %1087 = vector.extract_strided_slice %1086 {offsets = [0, 0], sizes = [8, 128], strides = [1, 1]} : vector<8x512xf32> to vector<8x128xf32>
    %cst_307 = arith.constant 5.000000e-01 : f32
    %1088 = vector.broadcast %cst_307 : f32 to vector<8x128xf32>
    %1089 = arith.mulf %1088, %1087 : vector<8x128xf32>
    %1090 = math.tanh %1089 : vector<8x128xf32>
    %cst_308 = arith.constant 5.000000e-01 : f32
    %1091 = vector.broadcast %cst_308 : f32 to vector<8x128xf32>
    %1092 = arith.mulf %1091, %1090 : vector<8x128xf32>
    %cst_309 = arith.constant 5.000000e-01 : f32
    %1093 = vector.broadcast %cst_309 : f32 to vector<8x128xf32>
    %1094 = arith.addf %1092, %1093 : vector<8x128xf32>
    %1095 = vector.extract_strided_slice %1086 {offsets = [0, 128], sizes = [8, 128], strides = [1, 1]} : vector<8x512xf32> to vector<8x128xf32>
    %cst_310 = arith.constant 5.000000e-01 : f32
    %1096 = vector.broadcast %cst_310 : f32 to vector<8x128xf32>
    %1097 = arith.mulf %1096, %1095 : vector<8x128xf32>
    %1098 = math.tanh %1097 : vector<8x128xf32>
    %cst_311 = arith.constant 5.000000e-01 : f32
    %1099 = vector.broadcast %cst_311 : f32 to vector<8x128xf32>
    %1100 = arith.mulf %1099, %1098 : vector<8x128xf32>
    %cst_312 = arith.constant 5.000000e-01 : f32
    %1101 = vector.broadcast %cst_312 : f32 to vector<8x128xf32>
    %1102 = arith.addf %1100, %1101 : vector<8x128xf32>
    %1103 = vector.extract_strided_slice %1086 {offsets = [0, 256], sizes = [8, 128], strides = [1, 1]} : vector<8x512xf32> to vector<8x128xf32>
    %1104 = math.tanh %1103 : vector<8x128xf32>
    %1105 = vector.extract_strided_slice %1086 {offsets = [0, 384], sizes = [8, 128], strides = [1, 1]} : vector<8x512xf32> to vector<8x128xf32>
    %cst_313 = arith.constant 5.000000e-01 : f32
    %1106 = vector.broadcast %cst_313 : f32 to vector<8x128xf32>
    %1107 = arith.mulf %1106, %1105 : vector<8x128xf32>
    %1108 = math.tanh %1107 : vector<8x128xf32>
    %cst_314 = arith.constant 5.000000e-01 : f32
    %1109 = vector.broadcast %cst_314 : f32 to vector<8x128xf32>
    %1110 = arith.mulf %1109, %1108 : vector<8x128xf32>
    %cst_315 = arith.constant 5.000000e-01 : f32
    %1111 = vector.broadcast %cst_315 : f32 to vector<8x128xf32>
    %1112 = arith.addf %1110, %1111 : vector<8x128xf32>
    %1113 = arith.mulf %1102, %1059 : vector<8x128xf32>
    %1114 = arith.mulf %1094, %1104 : vector<8x128xf32>
    %1115 = arith.addf %1113, %1114 : vector<8x128xf32>
    %1116 = math.tanh %1115 : vector<8x128xf32>
    %1117 = arith.mulf %1112, %1116 : vector<8x128xf32>
    %1118 = vector.broadcast %9 : vector<1x128xf32> to vector<8x128xf32>
    %1119 = arith.mulf %1117, %1118 : vector<8x128xf32>
    %cst_316 = arith.constant dense<0.000000e+00> : vector<8xf32>
    %1120 = vector.multi_reduction <add>, %1119, %cst_316 [1] : vector<8x128xf32> to vector<8xf32>
    %1121 = vector.shape_cast %1120 : vector<8xf32> to vector<8x1xf32>
    %1122 = vector.broadcast %10 : vector<1x1xf32> to vector<8x1xf32>
    %1123 = arith.addf %1121, %1122 : vector<8x1xf32>
    %1124 = arith.maximumf %1068, %1123 : vector<8x1xf32>
    %1125 = arith.subf %1068, %1124 : vector<8x1xf32>
    %1126 = math.exp %1125 : vector<8x1xf32>
    %1127 = arith.subf %1123, %1124 : vector<8x1xf32>
    %1128 = math.exp %1127 : vector<8x1xf32>
    %1129 = arith.mulf %1126, %1074 : vector<8x1xf32>
    %1130 = arith.addf %1129, %1128 : vector<8x1xf32>
    %1131 = vector.broadcast %1126 : vector<8x1xf32> to vector<8x128xf32>
    %1132 = arith.mulf %1131, %1079 : vector<8x128xf32>
    %1133 = vector.broadcast %1128 : vector<8x1xf32> to vector<8x128xf32>
    %1134 = arith.mulf %1133, %1117 : vector<8x128xf32>
    %1135 = arith.addf %1132, %1134 : vector<8x128xf32>
    %c20_i32 = arith.constant 20 : i32
    %1136 = arith.index_cast %c20_i32 : i32 to index
    %c0_317 = arith.constant 0 : index
    %c0_318 = arith.constant 0 : index
    %1137 = vector.load %arg11[%1136, %c0_317, %c0_318] : memref<24x8x512xf32, #tpu.memory_space<vmem>>, vector<1x8x512xf32>
    %1138 = vector.shape_cast %1137 : vector<1x8x512xf32> to vector<8x512xf32>
    %1139 = arith.truncf %1117 : vector<8x128xf32> to vector<8x128xbf16>
    %c0_319 = arith.constant 0 : index
    %c0_320 = arith.constant 0 : index
    %1140 = vector.load %arg2[%c0_319, %c0_320] : memref<128x512xbf16, #tpu.memory_space<vmem>>, vector<128x512xbf16>
    %cst_321 = arith.constant dense<0.000000e+00> : vector<8x512xf32>
    %1141 = tpu.matmul %1139, %1140, %cst_321 {dimension_numbers = #tpu.dot_dimension_numbers<[1], [0], [0], [1], [0, 0, 1, 1], [], []>} : vector<8x128xbf16>, vector<128x512xbf16>, vector<8x512xf32> -> vector<8x512xf32>
    %1142 = arith.addf %1138, %1141 : vector<8x512xf32>
    %1143 = vector.extract_strided_slice %1142 {offsets = [0, 0], sizes = [8, 128], strides = [1, 1]} : vector<8x512xf32> to vector<8x128xf32>
    %cst_322 = arith.constant 5.000000e-01 : f32
    %1144 = vector.broadcast %cst_322 : f32 to vector<8x128xf32>
    %1145 = arith.mulf %1144, %1143 : vector<8x128xf32>
    %1146 = math.tanh %1145 : vector<8x128xf32>
    %cst_323 = arith.constant 5.000000e-01 : f32
    %1147 = vector.broadcast %cst_323 : f32 to vector<8x128xf32>
    %1148 = arith.mulf %1147, %1146 : vector<8x128xf32>
    %cst_324 = arith.constant 5.000000e-01 : f32
    %1149 = vector.broadcast %cst_324 : f32 to vector<8x128xf32>
    %1150 = arith.addf %1148, %1149 : vector<8x128xf32>
    %1151 = vector.extract_strided_slice %1142 {offsets = [0, 128], sizes = [8, 128], strides = [1, 1]} : vector<8x512xf32> to vector<8x128xf32>
    %cst_325 = arith.constant 5.000000e-01 : f32
    %1152 = vector.broadcast %cst_325 : f32 to vector<8x128xf32>
    %1153 = arith.mulf %1152, %1151 : vector<8x128xf32>
    %1154 = math.tanh %1153 : vector<8x128xf32>
    %cst_326 = arith.constant 5.000000e-01 : f32
    %1155 = vector.broadcast %cst_326 : f32 to vector<8x128xf32>
    %1156 = arith.mulf %1155, %1154 : vector<8x128xf32>
    %cst_327 = arith.constant 5.000000e-01 : f32
    %1157 = vector.broadcast %cst_327 : f32 to vector<8x128xf32>
    %1158 = arith.addf %1156, %1157 : vector<8x128xf32>
    %1159 = vector.extract_strided_slice %1142 {offsets = [0, 256], sizes = [8, 128], strides = [1, 1]} : vector<8x512xf32> to vector<8x128xf32>
    %1160 = math.tanh %1159 : vector<8x128xf32>
    %1161 = vector.extract_strided_slice %1142 {offsets = [0, 384], sizes = [8, 128], strides = [1, 1]} : vector<8x512xf32> to vector<8x128xf32>
    %cst_328 = arith.constant 5.000000e-01 : f32
    %1162 = vector.broadcast %cst_328 : f32 to vector<8x128xf32>
    %1163 = arith.mulf %1162, %1161 : vector<8x128xf32>
    %1164 = math.tanh %1163 : vector<8x128xf32>
    %cst_329 = arith.constant 5.000000e-01 : f32
    %1165 = vector.broadcast %cst_329 : f32 to vector<8x128xf32>
    %1166 = arith.mulf %1165, %1164 : vector<8x128xf32>
    %cst_330 = arith.constant 5.000000e-01 : f32
    %1167 = vector.broadcast %cst_330 : f32 to vector<8x128xf32>
    %1168 = arith.addf %1166, %1167 : vector<8x128xf32>
    %1169 = arith.mulf %1158, %1115 : vector<8x128xf32>
    %1170 = arith.mulf %1150, %1160 : vector<8x128xf32>
    %1171 = arith.addf %1169, %1170 : vector<8x128xf32>
    %1172 = math.tanh %1171 : vector<8x128xf32>
    %1173 = arith.mulf %1168, %1172 : vector<8x128xf32>
    %1174 = vector.broadcast %9 : vector<1x128xf32> to vector<8x128xf32>
    %1175 = arith.mulf %1173, %1174 : vector<8x128xf32>
    %cst_331 = arith.constant dense<0.000000e+00> : vector<8xf32>
    %1176 = vector.multi_reduction <add>, %1175, %cst_331 [1] : vector<8x128xf32> to vector<8xf32>
    %1177 = vector.shape_cast %1176 : vector<8xf32> to vector<8x1xf32>
    %1178 = vector.broadcast %10 : vector<1x1xf32> to vector<8x1xf32>
    %1179 = arith.addf %1177, %1178 : vector<8x1xf32>
    %1180 = arith.maximumf %1124, %1179 : vector<8x1xf32>
    %1181 = arith.subf %1124, %1180 : vector<8x1xf32>
    %1182 = math.exp %1181 : vector<8x1xf32>
    %1183 = arith.subf %1179, %1180 : vector<8x1xf32>
    %1184 = math.exp %1183 : vector<8x1xf32>
    %1185 = arith.mulf %1182, %1130 : vector<8x1xf32>
    %1186 = arith.addf %1185, %1184 : vector<8x1xf32>
    %1187 = vector.broadcast %1182 : vector<8x1xf32> to vector<8x128xf32>
    %1188 = arith.mulf %1187, %1135 : vector<8x128xf32>
    %1189 = vector.broadcast %1184 : vector<8x1xf32> to vector<8x128xf32>
    %1190 = arith.mulf %1189, %1173 : vector<8x128xf32>
    %1191 = arith.addf %1188, %1190 : vector<8x128xf32>
    %c21_i32 = arith.constant 21 : i32
    %1192 = arith.index_cast %c21_i32 : i32 to index
    %c0_332 = arith.constant 0 : index
    %c0_333 = arith.constant 0 : index
    %1193 = vector.load %arg11[%1192, %c0_332, %c0_333] : memref<24x8x512xf32, #tpu.memory_space<vmem>>, vector<1x8x512xf32>
    %1194 = vector.shape_cast %1193 : vector<1x8x512xf32> to vector<8x512xf32>
    %1195 = arith.truncf %1173 : vector<8x128xf32> to vector<8x128xbf16>
    %c0_334 = arith.constant 0 : index
    %c0_335 = arith.constant 0 : index
    %1196 = vector.load %arg2[%c0_334, %c0_335] : memref<128x512xbf16, #tpu.memory_space<vmem>>, vector<128x512xbf16>
    %cst_336 = arith.constant dense<0.000000e+00> : vector<8x512xf32>
    %1197 = tpu.matmul %1195, %1196, %cst_336 {dimension_numbers = #tpu.dot_dimension_numbers<[1], [0], [0], [1], [0, 0, 1, 1], [], []>} : vector<8x128xbf16>, vector<128x512xbf16>, vector<8x512xf32> -> vector<8x512xf32>
    %1198 = arith.addf %1194, %1197 : vector<8x512xf32>
    %1199 = vector.extract_strided_slice %1198 {offsets = [0, 0], sizes = [8, 128], strides = [1, 1]} : vector<8x512xf32> to vector<8x128xf32>
    %cst_337 = arith.constant 5.000000e-01 : f32
    %1200 = vector.broadcast %cst_337 : f32 to vector<8x128xf32>
    %1201 = arith.mulf %1200, %1199 : vector<8x128xf32>
    %1202 = math.tanh %1201 : vector<8x128xf32>
    %cst_338 = arith.constant 5.000000e-01 : f32
    %1203 = vector.broadcast %cst_338 : f32 to vector<8x128xf32>
    %1204 = arith.mulf %1203, %1202 : vector<8x128xf32>
    %cst_339 = arith.constant 5.000000e-01 : f32
    %1205 = vector.broadcast %cst_339 : f32 to vector<8x128xf32>
    %1206 = arith.addf %1204, %1205 : vector<8x128xf32>
    %1207 = vector.extract_strided_slice %1198 {offsets = [0, 128], sizes = [8, 128], strides = [1, 1]} : vector<8x512xf32> to vector<8x128xf32>
    %cst_340 = arith.constant 5.000000e-01 : f32
    %1208 = vector.broadcast %cst_340 : f32 to vector<8x128xf32>
    %1209 = arith.mulf %1208, %1207 : vector<8x128xf32>
    %1210 = math.tanh %1209 : vector<8x128xf32>
    %cst_341 = arith.constant 5.000000e-01 : f32
    %1211 = vector.broadcast %cst_341 : f32 to vector<8x128xf32>
    %1212 = arith.mulf %1211, %1210 : vector<8x128xf32>
    %cst_342 = arith.constant 5.000000e-01 : f32
    %1213 = vector.broadcast %cst_342 : f32 to vector<8x128xf32>
    %1214 = arith.addf %1212, %1213 : vector<8x128xf32>
    %1215 = vector.extract_strided_slice %1198 {offsets = [0, 256], sizes = [8, 128], strides = [1, 1]} : vector<8x512xf32> to vector<8x128xf32>
    %1216 = math.tanh %1215 : vector<8x128xf32>
    %1217 = vector.extract_strided_slice %1198 {offsets = [0, 384], sizes = [8, 128], strides = [1, 1]} : vector<8x512xf32> to vector<8x128xf32>
    %cst_343 = arith.constant 5.000000e-01 : f32
    %1218 = vector.broadcast %cst_343 : f32 to vector<8x128xf32>
    %1219 = arith.mulf %1218, %1217 : vector<8x128xf32>
    %1220 = math.tanh %1219 : vector<8x128xf32>
    %cst_344 = arith.constant 5.000000e-01 : f32
    %1221 = vector.broadcast %cst_344 : f32 to vector<8x128xf32>
    %1222 = arith.mulf %1221, %1220 : vector<8x128xf32>
    %cst_345 = arith.constant 5.000000e-01 : f32
    %1223 = vector.broadcast %cst_345 : f32 to vector<8x128xf32>
    %1224 = arith.addf %1222, %1223 : vector<8x128xf32>
    %1225 = arith.mulf %1214, %1171 : vector<8x128xf32>
    %1226 = arith.mulf %1206, %1216 : vector<8x128xf32>
    %1227 = arith.addf %1225, %1226 : vector<8x128xf32>
    %1228 = math.tanh %1227 : vector<8x128xf32>
    %1229 = arith.mulf %1224, %1228 : vector<8x128xf32>
    %1230 = vector.broadcast %9 : vector<1x128xf32> to vector<8x128xf32>
    %1231 = arith.mulf %1229, %1230 : vector<8x128xf32>
    %cst_346 = arith.constant dense<0.000000e+00> : vector<8xf32>
    %1232 = vector.multi_reduction <add>, %1231, %cst_346 [1] : vector<8x128xf32> to vector<8xf32>
    %1233 = vector.shape_cast %1232 : vector<8xf32> to vector<8x1xf32>
    %1234 = vector.broadcast %10 : vector<1x1xf32> to vector<8x1xf32>
    %1235 = arith.addf %1233, %1234 : vector<8x1xf32>
    %1236 = arith.maximumf %1180, %1235 : vector<8x1xf32>
    %1237 = arith.subf %1180, %1236 : vector<8x1xf32>
    %1238 = math.exp %1237 : vector<8x1xf32>
    %1239 = arith.subf %1235, %1236 : vector<8x1xf32>
    %1240 = math.exp %1239 : vector<8x1xf32>
    %1241 = arith.mulf %1238, %1186 : vector<8x1xf32>
    %1242 = arith.addf %1241, %1240 : vector<8x1xf32>
    %1243 = vector.broadcast %1238 : vector<8x1xf32> to vector<8x128xf32>
    %1244 = arith.mulf %1243, %1191 : vector<8x128xf32>
    %1245 = vector.broadcast %1240 : vector<8x1xf32> to vector<8x128xf32>
    %1246 = arith.mulf %1245, %1229 : vector<8x128xf32>
    %1247 = arith.addf %1244, %1246 : vector<8x128xf32>
    %c22_i32 = arith.constant 22 : i32
    %1248 = arith.index_cast %c22_i32 : i32 to index
    %c0_347 = arith.constant 0 : index
    %c0_348 = arith.constant 0 : index
    %1249 = vector.load %arg11[%1248, %c0_347, %c0_348] : memref<24x8x512xf32, #tpu.memory_space<vmem>>, vector<1x8x512xf32>
    %1250 = vector.shape_cast %1249 : vector<1x8x512xf32> to vector<8x512xf32>
    %1251 = arith.truncf %1229 : vector<8x128xf32> to vector<8x128xbf16>
    %c0_349 = arith.constant 0 : index
    %c0_350 = arith.constant 0 : index
    %1252 = vector.load %arg2[%c0_349, %c0_350] : memref<128x512xbf16, #tpu.memory_space<vmem>>, vector<128x512xbf16>
    %cst_351 = arith.constant dense<0.000000e+00> : vector<8x512xf32>
    %1253 = tpu.matmul %1251, %1252, %cst_351 {dimension_numbers = #tpu.dot_dimension_numbers<[1], [0], [0], [1], [0, 0, 1, 1], [], []>} : vector<8x128xbf16>, vector<128x512xbf16>, vector<8x512xf32> -> vector<8x512xf32>
    %1254 = arith.addf %1250, %1253 : vector<8x512xf32>
    %1255 = vector.extract_strided_slice %1254 {offsets = [0, 0], sizes = [8, 128], strides = [1, 1]} : vector<8x512xf32> to vector<8x128xf32>
    %cst_352 = arith.constant 5.000000e-01 : f32
    %1256 = vector.broadcast %cst_352 : f32 to vector<8x128xf32>
    %1257 = arith.mulf %1256, %1255 : vector<8x128xf32>
    %1258 = math.tanh %1257 : vector<8x128xf32>
    %cst_353 = arith.constant 5.000000e-01 : f32
    %1259 = vector.broadcast %cst_353 : f32 to vector<8x128xf32>
    %1260 = arith.mulf %1259, %1258 : vector<8x128xf32>
    %cst_354 = arith.constant 5.000000e-01 : f32
    %1261 = vector.broadcast %cst_354 : f32 to vector<8x128xf32>
    %1262 = arith.addf %1260, %1261 : vector<8x128xf32>
    %1263 = vector.extract_strided_slice %1254 {offsets = [0, 128], sizes = [8, 128], strides = [1, 1]} : vector<8x512xf32> to vector<8x128xf32>
    %cst_355 = arith.constant 5.000000e-01 : f32
    %1264 = vector.broadcast %cst_355 : f32 to vector<8x128xf32>
    %1265 = arith.mulf %1264, %1263 : vector<8x128xf32>
    %1266 = math.tanh %1265 : vector<8x128xf32>
    %cst_356 = arith.constant 5.000000e-01 : f32
    %1267 = vector.broadcast %cst_356 : f32 to vector<8x128xf32>
    %1268 = arith.mulf %1267, %1266 : vector<8x128xf32>
    %cst_357 = arith.constant 5.000000e-01 : f32
    %1269 = vector.broadcast %cst_357 : f32 to vector<8x128xf32>
    %1270 = arith.addf %1268, %1269 : vector<8x128xf32>
    %1271 = vector.extract_strided_slice %1254 {offsets = [0, 256], sizes = [8, 128], strides = [1, 1]} : vector<8x512xf32> to vector<8x128xf32>
    %1272 = math.tanh %1271 : vector<8x128xf32>
    %1273 = vector.extract_strided_slice %1254 {offsets = [0, 384], sizes = [8, 128], strides = [1, 1]} : vector<8x512xf32> to vector<8x128xf32>
    %cst_358 = arith.constant 5.000000e-01 : f32
    %1274 = vector.broadcast %cst_358 : f32 to vector<8x128xf32>
    %1275 = arith.mulf %1274, %1273 : vector<8x128xf32>
    %1276 = math.tanh %1275 : vector<8x128xf32>
    %cst_359 = arith.constant 5.000000e-01 : f32
    %1277 = vector.broadcast %cst_359 : f32 to vector<8x128xf32>
    %1278 = arith.mulf %1277, %1276 : vector<8x128xf32>
    %cst_360 = arith.constant 5.000000e-01 : f32
    %1279 = vector.broadcast %cst_360 : f32 to vector<8x128xf32>
    %1280 = arith.addf %1278, %1279 : vector<8x128xf32>
    %1281 = arith.mulf %1270, %1227 : vector<8x128xf32>
    %1282 = arith.mulf %1262, %1272 : vector<8x128xf32>
    %1283 = arith.addf %1281, %1282 : vector<8x128xf32>
    %1284 = math.tanh %1283 : vector<8x128xf32>
    %1285 = arith.mulf %1280, %1284 : vector<8x128xf32>
    %1286 = vector.broadcast %9 : vector<1x128xf32> to vector<8x128xf32>
    %1287 = arith.mulf %1285, %1286 : vector<8x128xf32>
    %cst_361 = arith.constant dense<0.000000e+00> : vector<8xf32>
    %1288 = vector.multi_reduction <add>, %1287, %cst_361 [1] : vector<8x128xf32> to vector<8xf32>
    %1289 = vector.shape_cast %1288 : vector<8xf32> to vector<8x1xf32>
    %1290 = vector.broadcast %10 : vector<1x1xf32> to vector<8x1xf32>
    %1291 = arith.addf %1289, %1290 : vector<8x1xf32>
    %1292 = arith.maximumf %1236, %1291 : vector<8x1xf32>
    %1293 = arith.subf %1236, %1292 : vector<8x1xf32>
    %1294 = math.exp %1293 : vector<8x1xf32>
    %1295 = arith.subf %1291, %1292 : vector<8x1xf32>
    %1296 = math.exp %1295 : vector<8x1xf32>
    %1297 = arith.mulf %1294, %1242 : vector<8x1xf32>
    %1298 = arith.addf %1297, %1296 : vector<8x1xf32>
    %1299 = vector.broadcast %1294 : vector<8x1xf32> to vector<8x128xf32>
    %1300 = arith.mulf %1299, %1247 : vector<8x128xf32>
    %1301 = vector.broadcast %1296 : vector<8x1xf32> to vector<8x128xf32>
    %1302 = arith.mulf %1301, %1285 : vector<8x128xf32>
    %1303 = arith.addf %1300, %1302 : vector<8x128xf32>
    %c23_i32 = arith.constant 23 : i32
    %1304 = arith.index_cast %c23_i32 : i32 to index
    %c0_362 = arith.constant 0 : index
    %c0_363 = arith.constant 0 : index
    %1305 = vector.load %arg11[%1304, %c0_362, %c0_363] : memref<24x8x512xf32, #tpu.memory_space<vmem>>, vector<1x8x512xf32>
    %1306 = vector.shape_cast %1305 : vector<1x8x512xf32> to vector<8x512xf32>
    %1307 = arith.truncf %1285 : vector<8x128xf32> to vector<8x128xbf16>
    %c0_364 = arith.constant 0 : index
    %c0_365 = arith.constant 0 : index
    %1308 = vector.load %arg2[%c0_364, %c0_365] : memref<128x512xbf16, #tpu.memory_space<vmem>>, vector<128x512xbf16>
    %cst_366 = arith.constant dense<0.000000e+00> : vector<8x512xf32>
    %1309 = tpu.matmul %1307, %1308, %cst_366 {dimension_numbers = #tpu.dot_dimension_numbers<[1], [0], [0], [1], [0, 0, 1, 1], [], []>} : vector<8x128xbf16>, vector<128x512xbf16>, vector<8x512xf32> -> vector<8x512xf32>
    %1310 = arith.addf %1306, %1309 : vector<8x512xf32>
    %1311 = vector.extract_strided_slice %1310 {offsets = [0, 0], sizes = [8, 128], strides = [1, 1]} : vector<8x512xf32> to vector<8x128xf32>
    %cst_367 = arith.constant 5.000000e-01 : f32
    %1312 = vector.broadcast %cst_367 : f32 to vector<8x128xf32>
    %1313 = arith.mulf %1312, %1311 : vector<8x128xf32>
    %1314 = math.tanh %1313 : vector<8x128xf32>
    %cst_368 = arith.constant 5.000000e-01 : f32
    %1315 = vector.broadcast %cst_368 : f32 to vector<8x128xf32>
    %1316 = arith.mulf %1315, %1314 : vector<8x128xf32>
    %cst_369 = arith.constant 5.000000e-01 : f32
    %1317 = vector.broadcast %cst_369 : f32 to vector<8x128xf32>
    %1318 = arith.addf %1316, %1317 : vector<8x128xf32>
    %1319 = vector.extract_strided_slice %1310 {offsets = [0, 128], sizes = [8, 128], strides = [1, 1]} : vector<8x512xf32> to vector<8x128xf32>
    %cst_370 = arith.constant 5.000000e-01 : f32
    %1320 = vector.broadcast %cst_370 : f32 to vector<8x128xf32>
    %1321 = arith.mulf %1320, %1319 : vector<8x128xf32>
    %1322 = math.tanh %1321 : vector<8x128xf32>
    %cst_371 = arith.constant 5.000000e-01 : f32
    %1323 = vector.broadcast %cst_371 : f32 to vector<8x128xf32>
    %1324 = arith.mulf %1323, %1322 : vector<8x128xf32>
    %cst_372 = arith.constant 5.000000e-01 : f32
    %1325 = vector.broadcast %cst_372 : f32 to vector<8x128xf32>
    %1326 = arith.addf %1324, %1325 : vector<8x128xf32>
    %1327 = vector.extract_strided_slice %1310 {offsets = [0, 256], sizes = [8, 128], strides = [1, 1]} : vector<8x512xf32> to vector<8x128xf32>
    %1328 = math.tanh %1327 : vector<8x128xf32>
    %1329 = vector.extract_strided_slice %1310 {offsets = [0, 384], sizes = [8, 128], strides = [1, 1]} : vector<8x512xf32> to vector<8x128xf32>
    %cst_373 = arith.constant 5.000000e-01 : f32
    %1330 = vector.broadcast %cst_373 : f32 to vector<8x128xf32>
    %1331 = arith.mulf %1330, %1329 : vector<8x128xf32>
    %1332 = math.tanh %1331 : vector<8x128xf32>
    %cst_374 = arith.constant 5.000000e-01 : f32
    %1333 = vector.broadcast %cst_374 : f32 to vector<8x128xf32>
    %1334 = arith.mulf %1333, %1332 : vector<8x128xf32>
    %cst_375 = arith.constant 5.000000e-01 : f32
    %1335 = vector.broadcast %cst_375 : f32 to vector<8x128xf32>
    %1336 = arith.addf %1334, %1335 : vector<8x128xf32>
    %1337 = arith.mulf %1326, %1283 : vector<8x128xf32>
    %1338 = arith.mulf %1318, %1328 : vector<8x128xf32>
    %1339 = arith.addf %1337, %1338 : vector<8x128xf32>
    %1340 = math.tanh %1339 : vector<8x128xf32>
    %1341 = arith.mulf %1336, %1340 : vector<8x128xf32>
    %1342 = vector.broadcast %9 : vector<1x128xf32> to vector<8x128xf32>
    %1343 = arith.mulf %1341, %1342 : vector<8x128xf32>
    %cst_376 = arith.constant dense<0.000000e+00> : vector<8xf32>
    %1344 = vector.multi_reduction <add>, %1343, %cst_376 [1] : vector<8x128xf32> to vector<8xf32>
    %1345 = vector.shape_cast %1344 : vector<8xf32> to vector<8x1xf32>
    %1346 = vector.broadcast %10 : vector<1x1xf32> to vector<8x1xf32>
    %1347 = arith.addf %1345, %1346 : vector<8x1xf32>
    %1348 = arith.maximumf %1292, %1347 : vector<8x1xf32>
    %1349 = arith.subf %1292, %1348 : vector<8x1xf32>
    %1350 = math.exp %1349 : vector<8x1xf32>
    %1351 = arith.subf %1347, %1348 : vector<8x1xf32>
    %1352 = math.exp %1351 : vector<8x1xf32>
    %1353 = arith.mulf %1350, %1298 : vector<8x1xf32>
    %1354 = arith.addf %1353, %1352 : vector<8x1xf32>
    %1355 = vector.broadcast %1350 : vector<8x1xf32> to vector<8x128xf32>
    %1356 = arith.mulf %1355, %1303 : vector<8x128xf32>
    %1357 = vector.broadcast %1352 : vector<8x1xf32> to vector<8x128xf32>
    %1358 = arith.mulf %1357, %1341 : vector<8x128xf32>
    %1359 = arith.addf %1356, %1358 : vector<8x128xf32>
    %c24_i32 = arith.constant 24 : i32
    %1360 = tpu.reciprocal %1354 {approx = true} : vector<8x1xf32> -> vector<8x1xf32>
    %1361 = vector.broadcast %1360 : vector<8x1xf32> to vector<8x128xf32>
    %1362 = arith.mulf %1359, %1361 : vector<8x128xf32>
    %c0_377 = arith.constant 0 : index
    %c0_378 = arith.constant 0 : index
    %1363 = vector.load %arg6[%c0_377, %c0_378] : memref<128x64xf32, #tpu.memory_space<vmem>>, vector<128x64xf32>
    %cst_379 = arith.constant dense<0.000000e+00> : vector<8x64xf32>
    %1364 = tpu.matmul %1362, %1363, %cst_379 {dimension_numbers = #tpu.dot_dimension_numbers<[1], [0], [0], [1], [0, 0, 1, 1], [], []>} : vector<8x128xf32>, vector<128x64xf32>, vector<8x64xf32> -> vector<8x64xf32>
    %c0_380 = arith.constant 0 : index
    %c0_381 = arith.constant 0 : index
    %1365 = vector.load %arg7[%c0_380, %c0_381] : memref<1x64xf32, #tpu.memory_space<vmem>>, vector<1x64xf32>
    %1366 = vector.broadcast %1365 : vector<1x64xf32> to vector<8x64xf32>
    %1367 = arith.addf %1364, %1366 : vector<8x64xf32>
    %cst_382 = arith.constant 0.000000e+00 : f32
    %1368 = vector.broadcast %cst_382 : f32 to vector<8x64xf32>
    %1369 = arith.maximumf %1367, %1368 : vector<8x64xf32>
    %c0_383 = arith.constant 0 : index
    %c0_384 = arith.constant 0 : index
    %1370 = vector.load %arg8[%c0_383, %c0_384] : memref<64x128xf32, #tpu.memory_space<vmem>>, vector<64x128xf32>
    %cst_385 = arith.constant dense<0.000000e+00> : vector<8x128xf32>
    %1371 = tpu.matmul %1369, %1370, %cst_385 {dimension_numbers = #tpu.dot_dimension_numbers<[1], [0], [0], [1], [0, 0, 1, 1], [], []>} : vector<8x64xf32>, vector<64x128xf32>, vector<8x128xf32> -> vector<8x128xf32>
    %c0_386 = arith.constant 0 : index
    %c0_387 = arith.constant 0 : index
    %1372 = vector.load %arg9[%c0_386, %c0_387] : memref<1x128xf32, #tpu.memory_space<vmem>>, vector<1x128xf32>
    %1373 = vector.broadcast %1372 : vector<1x128xf32> to vector<8x128xf32>
    %1374 = arith.addf %1371, %1373 : vector<8x128xf32>
    %c0_388 = arith.constant 0 : index
    %c0_389 = arith.constant 0 : index
    %1375 = vector.load %arg10[%c0_388, %c0_389] : memref<8x128xf32, #tpu.memory_space<vmem>>, vector<8x128xf32>
    tpu.vector_store %arg10[%c0_388, %c0_389], %1374 {strides = array<i32>} : memref<8x128xf32, #tpu.memory_space<vmem>>, vector<8x128xf32>,
    return
  }
}

</mosaic_0001>

<bundles_post_ra>
// kernel: lightning_lstm_attn_forward.1
= control target key start
LH: loop header
LB: loop body
LE: loop exit
PB: predicated region body
PF: predicated region fallthrough
CT: control target
= control target key end

     0   :  { %vm108_vm0 = vcmask 130048   ;;  %vm3318_vm1 = vcmask 523264   ;;  %s6192_s1 = inlined_call_operand.vmem [shape: bf16[16,512], index: 1, kind: input, shape index: {}]   ;;  %s6193_s0 = inlined_call_operand.vmem [shape: f32[192,16], index: 0, kind: input, shape index: {}]   ;;  %s6194_s2 = inlined_call_operand.vmem [shape: bf16[128,512], index: 2, kind: input, shape index: {}]   ;;  %s6195_s4 = inlined_call_operand.vmem [shape: f32[1,128], index: 4, kind: input, shape index: {}]   ;;  %s6196_s3 = inlined_call_operand.vmem [shape: f32[1,512], index: 3, kind: input, shape index: {}]   ;;  %s6197_s5 = inlined_call_operand.<no memory space> [shape: f32[1,1], index: 5, kind: input, shape index: {}]   ;;  %s6198_s7 = inlined_call_operand.vmem [shape: f32[1,64], index: 7, kind: input, shape index: {}]   ;;  %s6199_s6 = inlined_call_operand.vmem [shape: f32[128,64], index: 6, kind: input, shape index: {}]   ;;  %s6200_s8 = inlined_call_operand.vmem [shape: f32[64,128], index: 8, kind: input, shape index: {}]   ;;  %s6201_s9 = inlined_call_operand.vmem [shape: f32[1,128], index: 9, kind: input, shape index: {}]   ;;  %s6202_s10 = inlined_call_operand.vmem [shape: f32[8,128], index: 10, kind: output, shape index: {}]  }
   0x1   :  { %v3349_v0 = vld [vmem:[%s6192_s1] sm:$0xf]  ;;  %v3542_v1 = vld [vmem:[%s6192_s1 + $0xc] sm:$0xf0]  ;;  %v3540_v2 = vld [vmem:[%s6192_s1 + $0x4] sm:$0xf] }
   0x2   :  { %v3350_v3 = vor.u32 %v3542_v1, %v3349_v0  ;;  %v3351_v4 = vld [vmem:[%s6192_s1 + $0x10] sm:$0xf0]  ;;  %v3541_v5 = vld [vmem:[%s6192_s1 + $0xc] sm:$0xf]  ;;  %v3359_v6 = vld [vmem:[%s6192_s1 + $0x18] sm:$0xf0] }
   0x3   :  { %v3354_v7 = vor.u32 %v3540_v2, %v3351_v4  ;;  %v3362_v8 = vor.u32 %v3541_v5, %v3359_v6  ;;  %v38_v9 = vld [vmem:[%s6193_s0] sm:$0xff]  ;;  %v39_v10 = vld [vmem:[%s6193_s0 + $0x8] sm:$0xff]  ;;  %v60_v11 = vld [vmem:[%s6193_s0 + $0xb0] sm:$0xff] }
   0x4   :  { %152 = vmatpush.bf16.msra.mxu0 %v3350_v3  ;;  %3576 = vmatpush.bf16.msra.mxu2 %v3350_v3  ;;  %v62_v12 = vpack.c.bf16 %v39_v10, %v38_v9  ;;  %v61_v13 = vld [vmem:[%s6193_s0 + $0xb8] sm:$0xff]  ;;  %v3357_v14 = vld [vmem:[%s6192_s1 + $0x8] sm:$0xf]  ;;  %v3572_v18 = vld [vmem:[%s6194_s2 + $0xe4] sm:$0xf] }
   0x5   :  { %v3543_v15 = vld [vmem:[%s6192_s1 + $0x14] sm:$0xf0]  ;;  %221 = vmatpush.bf16.msra.mxu1 %v3354_v7  ;;  %359 = vmatpush.bf16.msra.mxu3 %v3362_v8  ;;  %v4021_v16 = vpack.c.bf16 %v61_v13, %v60_v11  ;;  %v3527_v19 = vld [vmem:[%s6194_s2 + $0xf0] sm:$0xf0]  ;;  %v3533_v20 = vld [vmem:[%s6194_s2 + $0xe8] sm:$0xf] }
   0x6   :  { %v3358_v17 = vor.u32 %v3543_v15, %v3357_v14  ;;  %v3575_v21 = vld [vmem:[%s6194_s2 + $0xf4] sm:$0xf0]  ;;  %v4038_v22 = vor.u32 %v3572_v18, %v3527_v19  ;;  %v3573_v24 = vld [vmem:[%s6194_s2 + $0xec] sm:$0xf]  ;;  %v3535_v25 = vld [vmem:[%s6194_s2 + $0xf8] sm:$0xf0] }
   0x7   :  { %3363 = vmatmul.msk.bf16.vlgmr.msra.gmra.mxu0 %vm108_vm0, %v62_v12  ;;  %3374 = vmatmul.msk.bf16.vlgmr.msra.gmra.mxu2 %vm108_vm0, %v4021_v16  ;;  %v4040_v23 = vor.u32 %v3575_v21, %v3533_v20  ;;  %v4049_v26 = vor.u32 %v3573_v24, %v3535_v25  ;;  %v3525_v27 = vld [vmem:[%s6194_s2 + $0xe0] sm:$0xf]  ;;  %v3574_v28 = vld [vmem:[%s6194_s2 + $0xec] sm:$0xf0]  ;;  %v3568_v29 = vld [vmem:[%s6194_s2 + $0xc4] sm:$0xf] }
   0x8   :  { %3375 = vmatmul.msk.bf16.vlgmr.msra.gmra.mxu1 %vm108_vm0, %v62_v12  ;;  %290 = vmatpush.bf16.msrb.mxu2 %v3358_v17  ;;  %v4064_v30 = vor.u32 %v3574_v28, %v3525_v27  ;;  %v3511_v31 = vld [vmem:[%s6194_s2 + $0xd0] sm:$0xf0]  ;;  %v3517_v32 = vld [vmem:[%s6194_s2 + $0xc8] sm:$0xf]  ;;  %v3571_v33 = vld [vmem:[%s6194_s2 + $0xd4] sm:$0xf0] }
   0x9   :  { %3399 = vmatmul.msk.bf16.vlgmr.msra.gmra.mxu3 %vm108_vm0, %v62_v12  ;;  %728 = vmatpush.bf16.msrb.mxu1 %v4038_v22  ;;  %v4075_v34 = vor.u32 %v3568_v29, %v3511_v31  ;;  %v4077_v35 = vor.u32 %v3571_v33, %v3517_v32  ;;  %v3569_v36 = vld [vmem:[%s6194_s2 + $0xcc] sm:$0xf]  ;;  %v3519_v37 = vld [vmem:[%s6194_s2 + $0xd8] sm:$0xf0]  ;;  %v40_v39 = vld [vmem:[%s6193_s0 + $0x10] sm:$0xff] }
   0xa   :  { %754 = vmatpush.bf16.msrb.mxu3 %v4049_v26  ;;  %715 = vmatpush.bf16.msrb.mxu0 %v4064_v30  ;;  %v4086_v38 = vor.u32 %v3569_v36, %v3519_v37  ;;  %v41_v40 = vld [vmem:[%s6193_s0 + $0x18] sm:$0xff]  ;;  %v3509_v42 = vld [vmem:[%s6194_s2 + $0xc0] sm:$0xf]  ;;  %v3570_v43 = vld [vmem:[%s6194_s2 + $0xcc] sm:$0xf0] }
   0xb   :  { %v63_v41 = vpack.c.bf16 %v41_v40, %v40_v39  ;;  %v4107_v44 = vor.u32 %v3570_v43, %v3509_v42  ;;  %v42_v45 = vld [vmem:[%s6193_s0 + $0x20] sm:$0xff]  ;;  %v43_v46 = vld [vmem:[%s6193_s0 + $0x28] sm:$0xff]  ;;  %v3495_v49 = vld [vmem:[%s6194_s2 + $0xb0] sm:$0xf0] }
   0xc   :  { %741 = vmatpush.bf16.msra.mxu2 %v4040_v23  ;;  %v64_v47 = vpack.c.bf16 %v43_v46, %v42_v45  ;;  %v3564_v48 = vld [vmem:[%s6194_s2 + $0xa4] sm:$0xf]  ;;  %v3501_v50 = vld [vmem:[%s6194_s2 + $0xa8] sm:$0xf]  ;;  %v3567_v52 = vld [vmem:[%s6194_s2 + $0xb4] sm:$0xf0] }
   0xd   :  { %729 = vmatpush.bf16.msrb.mxu1 %v4075_v34  ;;  %v4129_v51 = vor.u32 %v3564_v48, %v3495_v49  ;;  %v3565_v53 = vld [vmem:[%s6194_s2 + $0xac] sm:$0xf]  ;;  %v3503_v54 = vld [vmem:[%s6194_s2 + $0xb8] sm:$0xf0]  ;;  %v4140_v55 = vor.u32 %v3567_v52, %v3501_v50  ;;  %v3493_v57 = vld [vmem:[%s6194_s2 + $0xa0] sm:$0xf] }
   0xe   :  { %755 = vmatpush.bf16.msrb.mxu3 %v4086_v38  ;;  %716 = vmatpush.bf16.msrb.mxu0 %v4107_v44  ;;  %v4142_v56 = vor.u32 %v3565_v53, %v3503_v54  ;;  %v3566_v58 = vld [vmem:[%s6194_s2 + $0xac] sm:$0xf0]  ;;  %v45_v61 = vld [vmem:[%s6193_s0 + $0x38] sm:$0xff]  ;;  %v3560_v63 = vld [vmem:[%s6194_s2 + $0x84] sm:$0xf] }
   0xf   :  { %v4151_v59 = vor.u32 %v3566_v58, %v3493_v57  ;;  %v44_v60 = vld [vmem:[%s6193_s0 + $0x30] sm:$0xff]  ;;  %v3485_v1 = vld [vmem:[%s6194_s2 + $0x88] sm:$0xf]  ;;  %v3563_v3 = vld [vmem:[%s6194_s2 + $0x94] sm:$0xf0] }
  0x10   :  { %742 = vmatpush.bf16.msra.mxu2 %v4077_v35  ;;  %v65_v62 = vpack.c.bf16 %v45_v61, %v44_v60  ;;  %v3479_v0 = vld [vmem:[%s6194_s2 + $0x90] sm:$0xf0]  ;;  %v3561_v4 = vld [vmem:[%s6194_s2 + $0x8c] sm:$0xf]  ;;  %v3487_v5 = vld [vmem:[%s6194_s2 + $0x98] sm:$0xf0]  ;;  %v4186_v6 = vor.u32 %v3563_v3, %v3485_v1 }
  0x11   :  { %730 = vmatpush.bf16.msrb.mxu1 %v4129_v51  ;;  %v4175_v2 = vor.u32 %v3560_v63, %v3479_v0  ;;  %v4188_v7 = vor.u32 %v3561_v4, %v3487_v5  ;;  %v46_v8 = vld [vmem:[%s6193_s0 + $0x40] sm:$0xff]  ;;  %v47_v9 = vld [vmem:[%s6193_s0 + $0x48] sm:$0xff]  ;;  %v48_v14 = vld [vmem:[%s6193_s0 + $0x50] sm:$0xff] }
  0x12   :  { %756 = vmatpush.bf16.msrb.mxu3 %v4142_v56  ;;  %717 = vmatpush.bf16.msrb.mxu0 %v4151_v59  ;;  %v66_v10 = vpack.c.bf16 %v47_v9, %v46_v8  ;;  %v3477_v11 = vld [vmem:[%s6194_s2 + $0x80] sm:$0xf]  ;;  %v49_v15 = vld [vmem:[%s6193_s0 + $0x58] sm:$0xff]  ;;  %v3556_v18 = vld [vmem:[%s6194_s2 + $0x64] sm:$0xf] }
  0x13   :  { %v67_v17 = vpack.c.bf16 %v49_v15, %v48_v14  ;;  %v3463_v19 = vld [vmem:[%s6194_s2 + $0x70] sm:$0xf0]  ;;  %v3469_v20 = vld [vmem:[%s6194_s2 + $0x68] sm:$0xf]  ;;  %v3559_v24 = vld [vmem:[%s6194_s2 + $0x74] sm:$0xf0] }
  0x14   :  { %743 = vmatpush.bf16.msra.mxu2 %v4140_v55  ;;  %v4231_v21 = vor.u32 %v3556_v18, %v3463_v19  ;;  %v3557_v25 = vld [vmem:[%s6194_s2 + $0x6c] sm:$0xf]  ;;  %v3471_v27 = vld [vmem:[%s6194_s2 + $0x78] sm:$0xf0]  ;;  %v4242_v28 = vor.u32 %v3559_v24, %v3469_v20  ;;  %v3461_v31 = vld [vmem:[%s6194_s2 + $0x60] sm:$0xf] }
  0x15   :  { %731 = vmatpush.bf16.msrb.mxu1 %v4175_v2  ;;  %v4244_v29 = vor.u32 %v3557_v25, %v3471_v27  ;;  %v3558_v32 = vld [vmem:[%s6194_s2 + $0x6c] sm:$0xf0]  ;;  %v50_v36 = vld [vmem:[%s6193_s0 + $0x60] sm:$0xff]  ;;  %v51_v37 = vld [vmem:[%s6193_s0 + $0x68] sm:$0xff] }
  0x16   :  { %757 = vmatpush.bf16.msrb.mxu3 %v4188_v7  ;;  %v4253_v33 = vor.u32 %v3558_v32, %v3461_v31  ;;  %v68_v39 = vpack.c.bf16 %v51_v37, %v50_v36  ;;  %v3552_v40 = vld [vmem:[%s6194_s2 + $0x44] sm:$0xf]  ;;  %v3453_v42 = vld [vmem:[%s6194_s2 + $0x48] sm:$0xf]  ;;  %v3555_v45 = vld [vmem:[%s6194_s2 + $0x54] sm:$0xf0] }
  0x17   :  { %3364 = vmatmul.msk.bf16.gmra.mxu0 %vm108_vm0, %v63_v41  ;;  %3387 = vmatmul.msk.bf16.vlgmr.msrb.gmra.mxu2 %vm108_vm0, %v62_v12  ;;  %v3562_v12 = vld [vmem:[%s6194_s2 + $0x8c] sm:$0xf0]  ;;  %v4288_v48 = vor.u32 %v3555_v45, %v3453_v42  ;;  %v3553_v50 = vld [vmem:[%s6194_s2 + $0x4c] sm:$0xf]  ;;  %v3455_v52 = vld [vmem:[%s6194_s2 + $0x58] sm:$0xf0] }
  0x18   :  { %3376 = vmatmul.msk.bf16.gmra.mxu1 %vm108_vm0, %v63_v41  ;;  %744 = vmatpush.bf16.msra.mxu2 %v4186_v6  ;;  %v4209_v13 = vor.u32 %v3562_v12, %v3477_v11  ;;  %v52_v46 = vld [vmem:[%s6193_s0 + $0x70] sm:$0xff]  ;;  %v3445_v53 = vld [vmem:[%s6194_s2 + $0x40] sm:$0xf]  ;;  %v4303_v54 = vor.u32 %v3553_v50, %v3455_v52  ;;  %v55_v61 = vld [vmem:[%s6193_s0 + $0x88] sm:$0xff]  ;;  %v6203_v45 = vmov 0  }
  0x19   :  { %3400 = vmatmul.msk.bf16.gmra.mxu3 %vm108_vm0, %v63_v41  ;;  %732 = vmatpush.bf16.msrb.mxu1 %v4231_v21  ;;  %v3554_v57 = vld [vmem:[%s6194_s2 + $0x4c] sm:$0xf0]  ;;  %v54_v60 = vld [vmem:[%s6193_s0 + $0x80] sm:$0xff]  ;;  %v3431_v3 = vld [vmem:[%s6194_s2 + $0x30] sm:$0xf0] }
  0x1a   :  { %718 = vmatpush.bf16.msrb.mxu0 %v4209_v13  ;;  %758 = vmatpush.bf16.msrb.mxu3 %v4244_v29  ;;  %v4309_v58 = vor.u32 %v3554_v57, %v3445_v53  ;;  %v3548_v1 = vld [vmem:[%s6194_s2 + $0x24] sm:$0xf]  ;;  %v3437_v4 = vld [vmem:[%s6194_s2 + $0x28] sm:$0xf]  ;;  %v3551_v9 = vld [vmem:[%s6194_s2 + $0x34] sm:$0xf0] }
  0x1b   :  { %v4339_v8 = vor.u32 %v3548_v1, %v3431_v3  ;;  %v3429_v15 = vld [vmem:[%s6194_s2 + $0x20] sm:$0xf]  ;;  %v3549_v19 = vld [vmem:[%s6194_s2 + $0x2c] sm:$0xf]  ;;  %v3439_v20 = vld [vmem:[%s6194_s2 + $0x38] sm:$0xf0]  ;;  %3579 = vset.pattern.permute.xlu1 %v6203_v45  ;;  %3578 = vset.pattern.permute.xlu0 %v6203_v45 }
  0x1c   :  { %745 = vmatpush.bf16.msra.mxu2 %v4242_v28  ;;  %v4368_v24 = vor.u32 %v3549_v19, %v3439_v20  ;;  %v56_v25 = vld [vmem:[%s6193_s0 + $0x90] sm:$0xff]  ;;  %v57_v27 = vld [vmem:[%s6193_s0 + $0x98] sm:$0xff]  ;;  %v3413_v36 = vld [vmem:[%s6194_s2] sm:$0xf]  ;;  %3580 = vset.pattern.permute.xlu2 %v6203_v45 }
  0x1d   :  { %v71_v32 = vpack.c.bf16 %v57_v27, %v56_v25  ;;  %v3546_v37 = vld [vmem:[%s6194_s2 + $0xc] sm:$0xf0]  ;;  %v3544_v52 = vld [vmem:[%s6194_s2 + $0x4] sm:$0xf]  ;;  %v3415_v53 = vld [vmem:[%s6194_s2 + $0x10] sm:$0xf0] }
  0x1e   :  { %719 = vmatpush.bf16.msrb.mxu0 %v4253_v33  ;;  %759 = vmatpush.bf16.msrb.mxu3 %v4303_v54  ;;  %v3421_v57 = vld [vmem:[%s6194_s2 + $0x8] sm:$0xf] }
  0x1f   :  { %v59_v1 = vld [vmem:[%s6193_s0 + $0xa8] sm:$0xff] }
  0x20   :  { %746 = vmatpush.bf16.msra.mxu2 %v4288_v48 }
  0x22   :  { %720 = vmatpush.bf16.msrb.mxu0 %v4309_v58  ;;  %760 = vmatpush.bf16.msrb.mxu3 %v4368_v24 }
  0x27   :  { %3365 = vmatmul.msk.bf16.gmra.mxu0 %vm108_vm0, %v64_v47  ;;  %3388 = vmatmul.msk.bf16.gmra.mxu2 %vm108_vm0, %v63_v41  ;;  %v3447_v41 = vld [vmem:[%s6194_s2 + $0x50] sm:$0xf0] }
  0x28   :  { %3377 = vmatmul.msk.bf16.gmra.mxu1 %vm108_vm0, %v64_v47  ;;  %v4277_v43 = vor.u32 %v3552_v40, %v3447_v41  ;;  %v4390_v41 = vor.u32 %v3546_v37, %v3413_v36 }
  0x29   :  { %3401 = vmatmul.msk.bf16.gmra.mxu3 %vm108_vm0, %v64_v47 }
  0x2a   :  { %733 = vmatpush.bf16.msrb.mxu1 %v4277_v43 }
  0x2e   :  { %734 = vmatpush.bf16.msrb.mxu1 %v4339_v8 }
  0x37   :  { %3366 = vmatmul.msk.bf16.gmra.mxu0 %vm108_vm0, %v65_v62  ;;  %3389 = vmatmul.msk.bf16.gmra.mxu2 %vm108_vm0, %v64_v47  ;;  %v53_v47 = vld [vmem:[%s6193_s0 + $0x78] sm:$0xff] }
  0x38   :  { %3378 = vmatmul.msk.bf16.gmra.mxu1 %vm108_vm0, %v65_v62  ;;  %v69_v49 = vpack.c.bf16 %v53_v47, %v52_v46 }
  0x39   :  { %3402 = vmatmul.msk.bf16.gmra.mxu3 %vm108_vm0, %v65_v62 }
  0x47   :  { %3367 = vmatmul.msk.bf16.gmra.mxu0 %vm108_vm0, %v66_v10  ;;  %3390 = vmatmul.msk.bf16.gmra.mxu2 %vm108_vm0, %v65_v62  ;;  %v70_v62 = vpack.c.bf16 %v55_v61, %v54_v60  ;;  %v4421_v60 = vor.u32 %v3544_v52, %v3415_v53  ;;  %v3547_v61 = vld [vmem:[%s6194_s2 + $0x14] sm:$0xf0] }
  0x48   :  { %3379 = vmatmul.msk.bf16.gmra.mxu1 %vm108_vm0, %v66_v10  ;;  %v4432_v3 = vor.u32 %v3547_v61, %v3421_v57 }
  0x49   :  { %3403 = vmatmul.msk.bf16.gmra.mxu3 %vm108_vm0, %v66_v10  ;;  %735 = vmatpush.bf16.msrb.mxu1 %v4421_v60 }
  0x4d   :  { %839 = vmatpush.bf16.msra.mxu1 %v4038_v22 }
  0x51   :  { %840 = vmatpush.bf16.msra.mxu1 %v4075_v34 }
  0x55   :  { %841 = vmatpush.bf16.msra.mxu1 %v4129_v51 }
  0x57   :  { %3368 = vmatmul.msk.bf16.gmra.mxu0 %vm108_vm0, %v67_v17  ;;  %3391 = vmatmul.msk.bf16.gmra.mxu2 %vm108_vm0, %v66_v10  ;;  %v4344_v10 = vor.u32 %v3551_v9, %v3437_v4 }
  0x58   :  { %3380 = vmatmul.msk.bf16.gmra.mxu1 %vm108_vm0, %v67_v17 }
  0x59   :  { %3404 = vmatmul.msk.bf16.gmra.mxu3 %vm108_vm0, %v67_v17  ;;  %747 = vmatpush.bf16.msra.mxu2 %v4344_v10 }
  0x5a   :  { %842 = vmatpush.bf16.msra.mxu1 %v4175_v2 }
  0x5d   :  { %748 = vmatpush.bf16.msra.mxu2 %v4432_v3 }
  0x5e   :  { %843 = vmatpush.bf16.msra.mxu1 %v4231_v21 }
  0x61   :  { %852 = vmatpush.bf16.msrb.mxu2 %v4040_v23 }
  0x62   :  { %844 = vmatpush.bf16.msra.mxu1 %v4277_v43 }
  0x65   :  { %853 = vmatpush.bf16.msrb.mxu2 %v4077_v35 }
  0x66   :  { %845 = vmatpush.bf16.msra.mxu1 %v4339_v8 }
  0x67   :  { %3369 = vmatmul.msk.bf16.gmra.mxu0 %vm108_vm0, %v68_v39  ;;  %3392 = vmatmul.msk.bf16.gmra.mxu2 %vm108_vm0, %v67_v17  ;;  %v3550_v17 = vld [vmem:[%s6194_s2 + $0x2c] sm:$0xf0] }
  0x68   :  { %3381 = vmatmul.msk.bf16.gmra.mxu1 %vm108_vm0, %v68_v39  ;;  %v4360_v18 = vor.u32 %v3550_v17, %v3429_v15  ;;  %v3545_v15 = vld [vmem:[%s6194_s2 + $0xc] sm:$0xf]  ;;  %v3423_v17 = vld [vmem:[%s6194_s2 + $0x18] sm:$0xf0] }
  0x69   :  { %3405 = vmatmul.msk.bf16.gmra.mxu3 %vm108_vm0, %v68_v39  ;;  %v4451_v25 = vor.u32 %v3545_v15, %v3423_v17  ;;  %854 = vmatpush.bf16.msrb.mxu2 %v4140_v55 }
  0x6a   :  { %721 = vmatpush.bf16.msrb.mxu0 %v4360_v18  ;;  %846 = vmatpush.bf16.msra.mxu1 %v4421_v60 }
  0x6b   :  { %761 = vmatpush.bf16.msrb.mxu3 %v4451_v25 }
  0x6d   :  { %855 = vmatpush.bf16.msrb.mxu2 %v4186_v6 }
  0x6e   :  { %722 = vmatpush.bf16.msrb.mxu0 %v4390_v41 }
  0x6f   :  { %865 = vmatpush.bf16.msra.mxu3 %v4049_v26 }
  0x71   :  { %856 = vmatpush.bf16.msrb.mxu2 %v4242_v28 }
  0x72   :  { %826 = vmatpush.bf16.msra.mxu0 %v4064_v30 }
  0x73   :  { %866 = vmatpush.bf16.msra.mxu3 %v4086_v38 }
  0x75   :  { %857 = vmatpush.bf16.msrb.mxu2 %v4288_v48 }
  0x76   :  { %827 = vmatpush.bf16.msra.mxu0 %v4107_v44 }
  0x77   :  { %3370 = vmatmul.msk.bf16.gmra.mxu0 %vm108_vm0, %v69_v49  ;;  %3393 = vmatmul.msk.bf16.gmra.mxu2 %vm108_vm0, %v68_v39 }
  0x78   :  { %3382 = vmatmul.msk.bf16.gmra.mxu1 %vm108_vm0, %v69_v49  ;;  %867 = vmatpush.bf16.msra.mxu3 %v4142_v56 }
  0x79   :  { %3406 = vmatmul.msk.bf16.gmra.mxu3 %vm108_vm0, %v69_v49  ;;  %858 = vmatpush.bf16.msrb.mxu2 %v4344_v10 }
  0x7a   :  { %828 = vmatpush.bf16.msra.mxu0 %v4151_v59 }
  0x7c   :  { %868 = vmatpush.bf16.msra.mxu3 %v4188_v7 }
  0x7d   :  { %859 = vmatpush.bf16.msrb.mxu2 %v4432_v3 }
  0x7e   :  { %829 = vmatpush.bf16.msra.mxu0 %v4209_v13 }
  0x80   :  { %869 = vmatpush.bf16.msra.mxu3 %v4244_v29 }
  0x82   :  { %830 = vmatpush.bf16.msra.mxu0 %v4253_v33 }
  0x84   :  { %v4320_v63 = vpop.f32.mrf.mxu0  ;;  %870 = vmatpush.bf16.msra.mxu3 %v4303_v54 }
  0x85   :  { %v4322_v0 = vpop.f32.mrf.mxu1 }
  0x86   :  { %831 = vmatpush.bf16.msra.mxu0 %v4309_v58 }
  0x87   :  { %3371 = vmatmul.msk.bf16.gmra.mxu0 %vm108_vm0, %v70_v62  ;;  %3394 = vmatmul.msk.bf16.gmra.mxu2 %vm108_vm0, %v69_v49 }
  0x88   :  { %3383 = vmatmul.msk.bf16.gmra.mxu1 %vm108_vm0, %v70_v62  ;;  %871 = vmatpush.bf16.msra.mxu3 %v4368_v24 }
  0x89   :  { %3407 = vmatmul.msk.bf16.gmra.mxu3 %vm108_vm0, %v70_v62 }
  0x8a   :  { %v4337_v5 = vpop.f32.mrf.mxu2  ;;  %832 = vmatpush.bf16.msra.mxu0 %v4360_v18 }
  0x8b   :  { %6227 = vst [vmem:[#allocation4_spill] sm:$0xff] %v4337_v5 }
  0x8c   :  { %v4346_v11 = vpop.f32.mrf.mxu3  ;;  %v4348_v12 = vpop.f32.mrf.mxu0  ;;  %872 = vmatpush.bf16.msra.mxu3 %v4451_v25 }
  0x8d   :  { %v4351_v14 = vpop.f32.mrf.mxu1 }
  0x8e   :  { %833 = vmatpush.bf16.msra.mxu0 %v4390_v41 }
  0x92   :  { %v4378_v31 = vpop.f32.mrf.mxu2 }
  0x93   :  { %6228 = vst [vmem:[#allocation5_spill] sm:$0xff] %v4378_v31 }
  0x94   :  { %v4386_v39 = vpop.f32.mrf.mxu3  ;;  %v4388_v40 = vpop.f32.mrf.mxu0 }
  0x95   :  { %v4392_v42 = vpop.f32.mrf.mxu1 }
  0x97   :  { %3372 = vmatmul.msk.bf16.gmra.mxu0 %vm108_vm0, %v71_v32  ;;  %3395 = vmatmul.msk.bf16.gmra.mxu2 %vm108_vm0, %v70_v62  ;;  %v58_v62 = vld [vmem:[%s6193_s0 + $0xa0] sm:$0xff] }
  0x98   :  { %3384 = vmatmul.msk.bf16.gmra.mxu1 %vm108_vm0, %v71_v32  ;;  %v72_v9 = vpack.c.bf16 %v59_v1, %v58_v62 }
  0x99   :  { %3408 = vmatmul.msk.bf16.gmra.mxu3 %vm108_vm0, %v71_v32 }
  0x9a   :  { %v4401_v46 = vpop.f32.mrf.mxu2 }
  0x9c   :  { %v4405_v47 = vpop.f32.mrf.mxu3  ;;  %v4407_v49 = vpop.f32.mrf.mxu0 }
  0x9d   :  { %6229 = vst [vmem:[#allocation6_spill] sm:$0xff] %v4407_v49  ;;  %v4410_v50 = vpop.f32.mrf.mxu1 }
  0x9e   :  { %6230 = vst [vmem:[#allocation7_spill] sm:$0xff] %v4410_v50 }
  0xa2   :  { %v4436_v4 = vpop.f32.mrf.mxu2 }
  0xa4   :  { %v4447_v19 = vpop.f32.mrf.mxu3  ;;  %v4449_v20 = vpop.f32.mrf.mxu0 }
  0xa5   :  { %6231 = vst [vmem:[#allocation8_spill] sm:$0xff] %v4447_v19  ;;  %v4454_v27 = vpop.f32.mrf.mxu1 }
  0xa6   :  { %6232 = vst [vmem:[#allocation9_spill] sm:$0xff] %v4449_v20 }
  0xa7   :  { %6233 = vst [vmem:[#allocation10_spill] sm:$0xff] %v4454_v27  ;;  %3373 = vmatmul.msk.bf16.gmra.mxu0 %vm108_vm0, %v72_v9  ;;  %3396 = vmatmul.msk.bf16.gmra.mxu2 %vm108_vm0, %v71_v32 }
  0xa8   :  { %3385 = vmatmul.msk.bf16.gmra.mxu1 %vm108_vm0, %v72_v9 }
  0xa9   :  { %3409 = vmatmul.msk.bf16.gmra.mxu3 %vm108_vm0, %v72_v9 }
  0xaa   :  { %v4464_v36 = vpop.f32.mrf.mxu2 }
  0xac   :  { %v4468_v37 = vpop.f32.mrf.mxu3  ;;  %v4470_v52 = vpop.f32.mrf.mxu0 }
  0xad   :  { %6234 = vst [vmem:[#allocation11_spill] sm:$0xff] %v4468_v37  ;;  %v4473_v32 = vpop.f32.mrf.mxu1 }
  0xae   :  { %6235 = vst [vmem:[#allocation12_spill] sm:$0xff] %v4470_v52 }
  0xaf   :  { %6236 = vst [vmem:[#allocation13_spill] sm:$0xff] %v4473_v32 }
  0xb2   :  { %v4480_v53 = vpop.f32.mrf.mxu2 }
  0xb3   :  { %6237 = vst [vmem:[#allocation14_spill] sm:$0xff] %v4480_v53 }
  0xb4   :  { %v4484_v57 = vpop.f32.mrf.mxu3  ;;  %v4486_v61 = vpop.f32.mrf.mxu0 }
  0xb5   :  { %6238 = vst [vmem:[#allocation15_spill] sm:$0xff] %v4484_v57  ;;  %v4489_v62 = vpop.f32.mrf.mxu1 }
  0xb6   :  { %6239 = vst [vmem:[#allocation16_spill] sm:$0xff] %v4486_v61 }
  0xb7   :  { %6240 = vst [vmem:[#allocation17_spill] sm:$0xff] %v4489_v62  ;;  %3397 = vmatmul.msk.bf16.gmra.mxu2 %vm108_vm0, %v72_v9  ;;  %723 = vmatmul.bf16.vlgmr.msrb.gmra.mxu0 %v6203_v45 }
  0xb8   :  { %3386 = vmatmul.msk.bf16.gmra.mxu1 %vm108_vm0, %v4021_v16  ;;  %932 = vmatpush.bf16.msrb.mxu0 %v4064_v30 }
  0xb9   :  { %3410 = vmatmul.msk.bf16.gmra.mxu3 %vm108_vm0, %v4021_v16 }
  0xba   :  { %v4502_v1 = vpop.f32.mrf.mxu2 }
  0xbb   :  { %6241 = vst [vmem:[#allocation18_spill] sm:$0xff] %v4502_v1 }
  0xbc   :  { %v4506_v15 = vpop.f32.mrf.mxu3  ;;  %v4508_v9 = vpop.f32.mrf.mxu0  ;;  %933 = vmatpush.bf16.msrb.mxu0 %v4107_v44 }
  0xbd   :  { %6242 = vst [vmem:[#allocation19_spill] sm:$0xff] %v4506_v15  ;;  %v4511_v17 = vpop.f32.mrf.mxu1 }
  0xbe   :  { %6243 = vst [vmem:[#allocation20_spill] sm:$0xff] %v4508_v9  ;;  %v6249_v9 = vmov 0  }
  0xbf   :  { %6244 = vst [vmem:[#allocation21_spill] sm:$0xff] %v4511_v17 }
  0xc0   :  { %934 = vmatpush.bf16.msrb.mxu0 %v4151_v59 }
  0xc2   :  { %v4518_v45 = vpop.f32.mrf.mxu2 }
  0xc3   :  { %6245 = vst [vmem:[#allocation22_spill] sm:$0xff] %v4518_v45 }
  0xc4   :  { %v4521_v31 = vpop.f32.mrf.mxu3  ;;  %v4523_v5 = vpop.f32.mrf.mxu0  ;;  %935 = vmatpush.bf16.msrb.mxu0 %v4209_v13 }
  0xc5   :  { %6246 = vst [vmem:[#allocation23_spill] sm:$0xff] %v4521_v31  ;;  %v4526_v17 = vpop.f32.mrf.mxu1 }
  0xc6   :  { %6247 = vst [vmem:[#allocation24_spill] sm:$0xff] %v4523_v5 }
  0xc7   :  { %6248 = vst [vmem:[#allocation25_spill] sm:$0xff] %v4526_v17  ;;  %3398 = vmatmul.msk.bf16.gmra.mxu2 %vm108_vm0, %v4021_v16 }
  0xc8   :  { %736 = vmatmul.bf16.vlgmr.msrb.gmra.mxu1 %v6249_v9  ;;  %936 = vmatpush.bf16.msrb.mxu0 %v4253_v33 }
  0xc9   :  { %762 = vmatmul.bf16.vlgmr.msrb.gmra.mxu3 %v6249_v9  ;;  %945 = vmatpush.bf16.msrb.mxu1 %v4038_v22 }
  0xca   :  { %v4534_v15 = vpop.f32.mrf.mxu2  ;;  %971 = vmatpush.bf16.msrb.mxu3 %v4049_v26 }
  0xcb   :  { %6250 = vst [vmem:[#allocation26_spill] sm:$0xff] %v4534_v15 }
  0xcc   :  { %v4538_v5 = vpop.f32.mrf.mxu3  ;;  %v4540_v17 = vpop.f32.mrf.mxu0  ;;  %937 = vmatpush.bf16.msrb.mxu0 %v4309_v58 }
  0xcd   :  { %6251 = vst [vmem:[#allocation27_spill] sm:$0xff] %v4538_v5  ;;  %v4542_v31 = vpop.f32.mrf.mxu1  ;;  %946 = vmatpush.bf16.msrb.mxu1 %v4075_v34 }
  0xce   :  { %6252 = vst [vmem:[#allocation28_spill] sm:$0xff] %v4540_v17  ;;  %972 = vmatpush.bf16.msrb.mxu3 %v4086_v38 }
  0xcf   :  { %6253 = vst [vmem:[#allocation29_spill] sm:$0xff] %v4542_v31 }
  0xd0   :  { %938 = vmatpush.bf16.msrb.mxu0 %v4360_v18 }
  0xd1   :  { %947 = vmatpush.bf16.msrb.mxu1 %v4129_v51 }
  0xd2   :  { %v4548_v16 = vpop.f32.mrf.mxu2  ;;  %973 = vmatpush.bf16.msrb.mxu3 %v4142_v56 }
  0xd3   :  { %6254 = vst [vmem:[#allocation30_spill] sm:$0xff] %v4548_v16 }
  0xd4   :  { %v4552_v15 = vpop.f32.mrf.mxu3  ;;  %v4554_v5 = vpop.f32.mrf.mxu0  ;;  %939 = vmatpush.bf16.msrb.mxu0 %v4390_v41 }
  0xd5   :  { %6255 = vst [vmem:[#allocation31_spill] sm:$0xff] %v4552_v15  ;;  %v4556_v17 = vpop.f32.mrf.mxu1  ;;  %948 = vmatpush.bf16.msrb.mxu1 %v4175_v2 }
  0xd6   :  { %6256 = vst [vmem:[#allocation32_spill] sm:$0xff] %v4554_v5  ;;  %974 = vmatpush.bf16.msrb.mxu3 %v4188_v7 }
  0xd7   :  { %6257 = vst [vmem:[#allocation33_spill] sm:$0xff] %v4556_v17  ;;  %749 = vmatmul.bf16.vlgmr.msra.gmra.mxu2 %v6249_v9 }
  0xd8   :  { %958 = vmatpush.bf16.msra.mxu2 %v4040_v23 }
  0xd9   :  { %949 = vmatpush.bf16.msrb.mxu1 %v4231_v21 }
  0xda   :  { %v4564_v31 = vpop.f32.mrf.mxu2  ;;  %975 = vmatpush.bf16.msrb.mxu3 %v4244_v29 }
  0xdb   :  { %6258 = vst [vmem:[#allocation34_spill] sm:$0xff] %v4564_v31 }
  0xdc   :  { %v4567_v15 = vpop.f32.mrf.mxu3  ;;  %v4569_v5 = vpop.f32.mrf.mxu0  ;;  %959 = vmatpush.bf16.msra.mxu2 %v4077_v35 }
  0xdd   :  { %6259 = vst [vmem:[#allocation35_spill] sm:$0xff] %v4567_v15  ;;  %v4572_v17 = vpop.f32.mrf.mxu1  ;;  %950 = vmatpush.bf16.msrb.mxu1 %v4277_v43 }
  0xde   :  { %6260 = vst [vmem:[#allocation36_spill] sm:$0xff] %v4569_v5  ;;  %976 = vmatpush.bf16.msrb.mxu3 %v4303_v54 }
  0xdf   :  { %6261 = vst [vmem:[#allocation37_spill] sm:$0xff] %v4572_v17 }
  0xe0   :  { %960 = vmatpush.bf16.msra.mxu2 %v4140_v55 }
  0xe1   :  { %951 = vmatpush.bf16.msrb.mxu1 %v4339_v8 }
  0xe2   :  { %v4578_v9 = vpop.f32.mrf.mxu2  ;;  %977 = vmatpush.bf16.msrb.mxu3 %v4368_v24 }
  0xe3   :  { %6262 = vst [vmem:[#allocation38_spill] sm:$0xff] %v4578_v9 }
  0xe4   :  { %v4581_v31 = vpop.f32.mrf.mxu3  ;;  %v4583_v15 = vpop.f32.mrf.mxu0  ;;  %961 = vmatpush.bf16.msra.mxu2 %v4186_v6 }
  0xe5   :  { %6263 = vst [vmem:[#allocation39_spill] sm:$0xff] %v4581_v31  ;;  %v4586_v5 = vpop.f32.mrf.mxu1  ;;  %952 = vmatpush.bf16.msrb.mxu1 %v4421_v60 }
  0xe6   :  { %6264 = vst [vmem:[#allocation40_spill] sm:$0xff] %v4583_v15  ;;  %978 = vmatpush.bf16.msrb.mxu3 %v4451_v25 }
  0xe7   :  { %6265 = vst [vmem:[#allocation41_spill] sm:$0xff] %v4586_v5 }
  0xe8   :  { %962 = vmatpush.bf16.msra.mxu2 %v4242_v28 }
  0xea   :  { %v4591_v17 = vpop.f32.mrf.mxu2 }
  0xeb   :  { %6266 = vst [vmem:[#allocation42_spill] sm:$0xff] %v4591_v17 }
  0xec   :  { %v4593_v16 = vpop.f32.mrf.mxu3  ;;  %v4595_v9 = vpop.f32.mrf.mxu0  ;;  %963 = vmatpush.bf16.msra.mxu2 %v4288_v48 }
  0xed   :  { %6267 = vst [vmem:[#allocation43_spill] sm:$0xff] %v4593_v16  ;;  %v4598_v31 = vpop.f32.mrf.mxu1 }
  0xee   :  { %6268 = vst [vmem:[#allocation44_spill] sm:$0xff] %v4595_v9 }
  0xef   :  { %6269 = vst [vmem:[#allocation45_spill] sm:$0xff] %v4598_v31 }
  0xf0   :  { %964 = vmatpush.bf16.msra.mxu2 %v4344_v10 }
  0xf2   :  { %v4601_v15 = vpop.f32.mrf.mxu2 }
  0xf3   :  { %6270 = vst [vmem:[#allocation46_spill] sm:$0xff] %v4601_v15 }
  0xf4   :  { %v4603_v5 = vpop.f32.mrf.mxu3  ;;  %v4605_v62 = vpop.f32.mrf.mxu0  ;;  %965 = vmatpush.bf16.msra.mxu2 %v4432_v3 }
  0xf5   :  { %6271 = vst [vmem:[#allocation47_spill] sm:$0xff] %v4603_v5  ;;  %v4608_v61 = vpop.f32.mrf.mxu1 }
  0xf6   :  { %6272 = vst [vmem:[#allocation48_spill] sm:$0xff] %v4605_v62 }
  0xf7   :  { %6273 = vst [vmem:[#allocation49_spill] sm:$0xff] %v4608_v61 }
  0xfa   :  { %v4610_v17 = vpop.f32.mrf.mxu2 }
  0xfb   :  { %6274 = vst [vmem:[#allocation50_spill] sm:$0xff] %v4610_v17 }
  0xfc   :  { %v4612_v16 = vpop.f32.mrf.mxu3  ;;  %v4614_v9 = vpop.f32.mrf.mxu0 }
  0xfd   :  { %6275 = vst [vmem:[#allocation51_spill] sm:$0xff] %v4612_v16  ;;  %v4616_v45 = vpop.f32.mrf.mxu1 }
  0xfe   :  { %6276 = vst [vmem:[#allocation52_spill] sm:$0xff] %v4614_v9 }
  0xff   :  { %6277 = vst [vmem:[#allocation53_spill] sm:$0xff] %v4616_v45 }
 0x102   :  { %v4618_v31 = vpop.f32.mrf.mxu2 }
 0x103   :  { %6278 = vst [vmem:[#allocation54_spill] sm:$0xff] %v4618_v31 }
 0x104   :  { %v4620_v57 = vpop.f32.mrf.mxu3  ;;  %v4622_v15 = vpop.f32.mrf.mxu0 }
 0x105   :  { %6279 = vst [vmem:[#allocation55_spill] sm:$0xff] %v4620_v57  ;;  %v4624_v5 = vpop.f32.mrf.mxu1 }
 0x106   :  { %6280 = vst [vmem:[#allocation56_spill] sm:$0xff] %v4622_v15 }
 0x107   :  { %6281 = vst [vmem:[#allocation57_spill] sm:$0xff] %v4624_v5 }
 0x10a   :  { %v4626_v62 = vpop.f32.mrf.mxu2 }
 0x10b   :  { %6282 = vst [vmem:[#allocation58_spill] sm:$0xff] %v4626_v62 }
 0x10c   :  { %v4628_v32 = vpop.f32.mrf.mxu3  ;;  %v4630_v61 = vpop.f32.mrf.mxu0 }
 0x10d   :  { %6283 = vst [vmem:[#allocation59_spill] sm:$0xff] %v4628_v32  ;;  %v4632_v17 = vpop.f32.mrf.mxu1 }
 0x10e   :  { %6284 = vst [vmem:[#allocation60_spill] sm:$0xff] %v4630_v61 }
 0x10f   :  { %6285 = vst [vmem:[#allocation61_spill] sm:$0xff] %v4632_v17 }
 0x112   :  { %v4634_v16 = vpop.f32.mrf.mxu2 }
 0x113   :  { %6286 = vst [vmem:[#allocation62_spill] sm:$0xff] %v4634_v16 }
 0x114   :  { %v4636_v9 = vpop.f32.mrf.mxu3  ;;  %v4638_v45 = vpop.f32.mrf.mxu0 }
 0x115   :  { %6287 = vst [vmem:[#allocation63_spill] sm:$0xff] %v4636_v9  ;;  %v4640_v31 = vpop.f32.mrf.mxu1 }
 0x116   :  { %6288 = vst [vmem:[#allocation64_spill] sm:$0xff] %v4638_v45 }
 0x117   :  { %6289 = vst [vmem:[#allocation65_spill] sm:$0xff] %v4640_v31 }
 0x11a   :  { %v4642_v57 = vpop.f32.mrf.mxu2 }
 0x11b   :  { %6290 = vst [vmem:[#allocation66_spill] sm:$0xff] %v4642_v57 }
 0x11c   :  { %v4644_v15 = vpop.f32.mrf.mxu3  ;;  %v4646_v5 = vpop.f32.mrf.mxu0 }
 0x11d   :  { %6291 = vst [vmem:[#allocation67_spill] sm:$0xff] %v4644_v15  ;;  %v4648_v62 = vpop.f32.mrf.mxu1 }
 0x11e   :  { %6292 = vst [vmem:[#allocation68_spill] sm:$0xff] %v4646_v5 }
 0x11f   :  { %6293 = vst [vmem:[#allocation69_spill] sm:$0xff] %v4648_v62 }
 0x122   :  { %v4650_v32 = vpop.f32.mrf.mxu2 }
 0x123   :  { %6294 = vst [vmem:[#allocation70_spill] sm:$0xff] %v4650_v32 }
 0x124   :  { %v4652_v61 = vpop.f32.mrf.mxu3  ;;  %v4654_v17 = vpop.f32.mrf.mxu0 }
 0x125   :  { %6295 = vst [vmem:[#allocation71_spill] sm:$0xff] %v4652_v61  ;;  %v4656_v16 = vpop.f32.mrf.mxu1 }
 0x126   :  { %6296 = vst [vmem:[#allocation72_spill] sm:$0xff] %v4654_v17 }
 0x127   :  { %6297 = vst [vmem:[#allocation73_spill] sm:$0xff] %v4656_v16 }
 0x12a   :  { %v4658_v9 = vpop.f32.mrf.mxu2 }
 0x12b   :  { %6298 = vst [vmem:[#allocation74_spill] sm:$0xff] %v4658_v9 }
 0x12c   :  { %v4660_v45 = vpop.f32.mrf.mxu3  ;;  %v4662_v31 = vpop.f32.mrf.mxu0 }
 0x12d   :  { %6299 = vst [vmem:[#allocation75_spill] sm:$0xff] %v4660_v45  ;;  %v4664_v57 = vpop.f32.mrf.mxu1 }
 0x12e   :  { %6300 = vst [vmem:[#allocation76_spill] sm:$0xff] %v4662_v31 }
 0x12f   :  { %6301 = vst [vmem:[#allocation77_spill] sm:$0xff] %v4664_v57  ;;  %v78_v57 = vld [vmem:[%s6196_s3] sm:$0xf] }
 0x130   :  { %v4685_v45 = vperm.slane %v78_v57, 1  ;;  %v4699_v53 = vperm.slane %v78_v57, 2 }
 0x132   :  { %v4666_v15 = vpop.f32.mrf.mxu2  ;;  %6313 = vst [vmem:[#allocation89_spill] sm:$0xff] %v4699_v53 }
 0x133   :  { %6302 = vst [vmem:[#allocation78_spill] sm:$0xff] %v4666_v15  ;;  %v4687_v15 = vperm.slane %v78_v57, 0 }
 0x134   :  { %v4668_v5 = vpop.f32.mrf.mxu3  ;;  %v724_v62 = vpop.f32.mrf.mxu0 }
 0x135   :  { %6303 = vst [vmem:[#allocation79_spill] sm:$0xff] %v4668_v5  ;;  %v4670_v32 = vpop.f32.mrf.mxu1 }
 0x136   :  { %6304 = vst [vmem:[#allocation80_spill] sm:$0xff] %v4670_v32  ;;  %v224_v32 = vadd.f32 %v4322_v0, %v4685_v45  ;;  %v15_v0 = vstv %s6197_s5 }
 0x137   :  { %16 = vst [vmem:[#allocation3] sm:$0x1] %v15_v0 }
 0x13a   :  { %v4672_v61 = vpop.f32.mrf.mxu2 }
 0x13b   :  { %6305 = vst [vmem:[#allocation81_spill] sm:$0xff] %v4672_v61 }
 0x13c   :  { %v4674_v17 = vpop.f32.mrf.mxu3  ;;  %v726_v16 = vpop.f32.mrf.mxu0 }
 0x13d   :  { %6306 = vst [vmem:[#allocation82_spill] sm:$0xff] %v4674_v17  ;;  %v4676_v52 = vpop.f32.mrf.mxu1  ;;  %v155_v16 = vadd.f32 %v4320_v63, %v4687_v15 }
 0x13e   :  { %6307 = vst [vmem:[#allocation83_spill] sm:$0xff] %v4676_v52 }
 0x13f   :  { %v767_v61 = vadd.f32 %v724_v62, %v155_v16 }
 0x141   :  { %v771_v27 = vmul.f32 0.5, %v767_v61 }
 0x142   :  { %v4678_v9 = vpop.f32.mrf.mxu2 }
 0x143   :  { %6308 = vst [vmem:[#allocation84_spill] sm:$0xff] %v4678_v9 }
 0x144   :  { %v4683_v31 = vpop.f32.mrf.mxu3 }
 0x145   :  { %6309 = vst [vmem:[#allocation85_spill] sm:$0xff] %v4683_v31  ;;  %v737_v5 = vpop.f32.mrf.mxu1  ;;  %v4695_v31 = vperm.slane %v78_v57, 3 }
 0x146   :  { %v768_v52 = vadd.f32 %v737_v5, %v224_v32  ;;  %v293_v32 = vadd.f32 %v4401_v46, %v4699_v53 }
 0x147   :  { %6311 = vst [vmem:[#allocation87_spill] sm:$0xff] %v4695_v31  ;;  %v362_v63 = vadd.f32 %v4346_v11, %v4695_v31 }
 0x148   :  { %v775_v37 = vmul.f32 0.5, %v768_v52 }
 0x14a   :  { %v4691_v17 = vpop.f32.mrf.mxu2  ;;  %3585 = vtanh.f32 %v775_v37 }
 0x14b   :  { %6310 = vst [vmem:[#allocation86_spill] sm:$0xff] %v4691_v17  ;;  %3587 = vtanh.f32 %v771_v27 }
 0x14c   :  { %v763_v9 = vpop.f32.mrf.mxu3 }
 0x14d   :  { %v739_v1 = vpop.f32.mrf.mxu1  ;;  %v770_v5 = vadd.f32 %v763_v9, %v362_v63 }
 0x14f   :  { %v780_v57 = vmul.f32 0.5, %v770_v5  ;;  %v4714_v5 = vld [vmem:[%s6195_s4] ss:$0 sm:$0xff] }
 0x150   :  { %v3586_v52 = vpop.eup %3585 }
 0x151   :  { %v3588_v62 = vpop.eup %3587 }
 0x152   :  { %v4697_v20 = vpop.f32.mrf.mxu2  ;;  %v773_v27 = vmul.f32 0.5, %v3588_v62 }
 0x153   :  { %6312 = vst [vmem:[#allocation88_spill] sm:$0xff] %v4697_v20 }
 0x154   :  { %v765_v19 = vpop.f32.mrf.mxu3  ;;  %v774_v16 = vadd.f32 0.5, %v773_v27 }
 0x155   :  { %v777_v19 = vmul.f32 0.5, %v3586_v52 }
 0x157   :  { %v778_v1 = vadd.f32 0.5, %v777_v19 }
 0x159   :  { %v784_v50 = vmul.f32 0.0, %v778_v1  ;;  %v157_v1 = vadd.f32 %v4348_v12, %v4687_v15  ;;  %v295_v12 = vadd.f32 %v4436_v4, %v4699_v53 }
 0x15a   :  { %v750_v61 = vpop.f32.mrf.mxu2 }
 0x15b   :  { %v769_v37 = vadd.f32 %v750_v61, %v293_v32 }
 0x15d   :  { %3589 = vtanh.f32 %v769_v37 }
 0x15e   :  { %3591 = vtanh.f32 %v780_v57 }
 0x162   :  { %v752_v20 = vpop.f32.mrf.mxu2 }
 0x163   :  { %v3590_v17 = vpop.eup %3589 }
 0x164   :  { %v785_v11 = vmul.f32 %v3590_v17, %v774_v16  ;;  %v3592_v0 = vpop.eup %3591  ;;  %v226_v16 = vadd.f32 %v4351_v14, %v4685_v45 }
 0x165   :  { %v782_v46 = vmul.f32 0.5, %v3592_v0 }
 0x166   :  { %v4708_v9 = vadd.f32 %v785_v11, %v784_v50  ;;  %v4754_v50 = vld [vmem:[#allocation3] ss:$0 sm:$0xff] }
 0x167   :  { %v783_v63 = vadd.f32 0.5, %v782_v46  ;;  %6315 = vst [vmem:[#allocation91_spill] sm:$0xff] %v4754_v50 }
 0x168   :  { %3593 = vtanh.f32 %v4708_v9 }
 0x16e   :  { %v3594_v52 = vpop.eup %3593 }
 0x16f   :  { %v4716_v32 = vmul.f32 %v3594_v52, %v783_v63 }
 0x171   :  { %6314 = vst [vmem:[#allocation90_spill] sm:$0xff] %v4716_v32  ;;  %v825_v20 = vpack.c.bf16 %v4716_v32, %v4716_v32  ;;  %v792_v17 = vmul.f32 %v4714_v5, %v4716_v32 }
 0x173   :  { %834 = vmatmul.bf16.vlgmr.msra.gmra.mxu0 %v825_v20  ;;  %847 = vmatmul.bf16.vlgmr.msra.gmra.mxu1 %v825_v20 }
 0x174   :  { %860 = vmatmul.bf16.vlgmr.msrb.gmra.mxu2 %v825_v20  ;;  %873 = vmatmul.bf16.vlgmr.msra.gmra.mxu3 %v825_v20 }
 0x175   :  { %793 = vadd.xlane.f32.xlu0 %v792_v17  ;;  %1038 = vmatpush.bf16.msra.mxu0 %v4064_v30 }
 0x176   :  { %1051 = vmatpush.bf16.msra.mxu1 %v4038_v22  ;;  %1064 = vmatpush.bf16.msrb.mxu2 %v4040_v23 }
 0x177   :  { %1077 = vmatpush.bf16.msra.mxu3 %v4049_v26 }
 0x179   :  { %1039 = vmatpush.bf16.msra.mxu0 %v4107_v44 }
 0x17a   :  { %1052 = vmatpush.bf16.msra.mxu1 %v4075_v34  ;;  %1065 = vmatpush.bf16.msrb.mxu2 %v4077_v35 }
 0x17b   :  { %1078 = vmatpush.bf16.msra.mxu3 %v4086_v38 }
 0x17d   :  { %1040 = vmatpush.bf16.msra.mxu0 %v4151_v59 }
 0x17e   :  { %1053 = vmatpush.bf16.msra.mxu1 %v4129_v51  ;;  %1066 = vmatpush.bf16.msrb.mxu2 %v4140_v55 }
 0x17f   :  { %1079 = vmatpush.bf16.msra.mxu3 %v4142_v56 }
 0x181   :  { %1041 = vmatpush.bf16.msra.mxu0 %v4209_v13 }
 0x182   :  { %1054 = vmatpush.bf16.msra.mxu1 %v4175_v2  ;;  %1067 = vmatpush.bf16.msrb.mxu2 %v4186_v6 }
 0x183   :  { %1080 = vmatpush.bf16.msra.mxu3 %v4188_v7 }
 0x185   :  { %1042 = vmatpush.bf16.msra.mxu0 %v4253_v33 }
 0x186   :  { %1055 = vmatpush.bf16.msra.mxu1 %v4231_v21  ;;  %1068 = vmatpush.bf16.msrb.mxu2 %v4242_v28 }
 0x187   :  { %1081 = vmatpush.bf16.msra.mxu3 %v4244_v29 }
 0x189   :  { %1043 = vmatpush.bf16.msra.mxu0 %v4309_v58 }
 0x18a   :  { %1056 = vmatpush.bf16.msra.mxu1 %v4277_v43  ;;  %1069 = vmatpush.bf16.msrb.mxu2 %v4288_v48 }
 0x18b   :  { %1082 = vmatpush.bf16.msra.mxu3 %v4303_v54 }
 0x18d   :  { %1044 = vmatpush.bf16.msra.mxu0 %v4360_v18 }
 0x18e   :  { %1057 = vmatpush.bf16.msra.mxu1 %v4339_v8  ;;  %1070 = vmatpush.bf16.msrb.mxu2 %v4344_v10 }
 0x18f   :  { %1083 = vmatpush.bf16.msra.mxu3 %v4368_v24 }
 0x191   :  { %1045 = vmatpush.bf16.msra.mxu0 %v4390_v41 }
 0x192   :  { %1058 = vmatpush.bf16.msra.mxu1 %v4421_v60  ;;  %1071 = vmatpush.bf16.msrb.mxu2 %v4432_v3 }
 0x193   :  { %1084 = vmatpush.bf16.msra.mxu3 %v4451_v25 }
 0x1e8   :  { %v794_v61 = vpop.xlane.xlu0 %793 }
 0x1e9   :  { %v4757_v62 = vadd.f32 %v4754_v50, %v794_v61 }
 0x1eb   :  { %6316 = vst [vmem:[#allocation92_spill] sm:$0xff] %v4757_v62  ;;  %v799_v37 = vsub.f32 -inf, %v4757_v62  ;;  %v802_v19 = vsub.f32 %v4757_v62, %v4757_v62 }
 0x1ed   :  { %v800_v57 = vmul.f32 1.442695, %v799_v37  ;;  %v803_v27 = vmul.f32 1.442695, %v802_v19  ;;  %v364_v37 = vadd.f32 %v4386_v39, %v4695_v31 }
 0x1ef   :  { %3595 = vpow2.f32 %v800_v57 }
 0x1f0   :  { %v835_v11 = vpop.f32.mrf.mxu0  ;;  %v848_v0 = vpop.f32.mrf.mxu1  ;;  %3597 = vpow2.f32 %v803_v27 }
 0x1f1   :  { %v878_v46 = vadd.f32 %v835_v11, %v157_v1  ;;  %v879_v63 = vadd.f32 %v848_v0, %v226_v16 }
 0x1f3   :  { %v882_v52 = vmul.f32 0.5, %v878_v46  ;;  %v886_v20 = vmul.f32 0.5, %v879_v63 }
 0x1f5   :  { %v3596_v17 = vpop.eup %3595  ;;  %3599 = vtanh.f32 %v882_v52 }
 0x1f6   :  { %v3598_v61 = vpop.eup %3597  ;;  %3601 = vtanh.f32 %v886_v20  ;;  %v805_v19 = vmul.f32 0.0, %v3596_v17  ;;  %809 = vperm.xlu0 %3578, %v3596_v17  }
 0x1f7   :  { %815 = vperm.xlu1 %3579, %v3598_v61   ;;  %v861_v14 = vpop.f32.mrf.mxu2  ;;  %v874_v57 = vpop.f32.mrf.mxu3 }
 0x1f8   :  { %v4770_v27 = vadd.f32 %v3598_v61, %v805_v19  ;;  %v880_v1 = vadd.f32 %v861_v14, %v295_v12  ;;  %v881_v16 = vadd.f32 %v874_v57, %v364_v37  ;;  %v837_v11 = vpop.f32.mrf.mxu0  ;;  %v850_v0 = vpop.f32.mrf.mxu1 }
 0x1fa   :  { %3603 = vtanh.f32 %v880_v1  ;;  %v891_v46 = vmul.f32 0.5, %v881_v16 }
 0x1fb   :  { %v3600_v63 = vpop.eup %3599 }
 0x1fc   :  { %v3602_v52 = vpop.eup %3601  ;;  %v884_v39 = vmul.f32 0.5, %v3600_v63  ;;  %3605 = vtanh.f32 %v891_v46 }
 0x1fd   :  { %v888_v49 = vmul.f32 0.5, %v3602_v52 }
 0x1fe   :  { %v885_v4 = vadd.f32 0.5, %v884_v39  ;;  %v298_v39 = vadd.f32 %v4464_v36, %v4699_v53 }
 0x1ff   :  { %v889_v20 = vadd.f32 0.5, %v888_v49  ;;  %v863_v32 = vpop.f32.mrf.mxu2  ;;  %v876_v17 = vpop.f32.mrf.mxu3 }
 0x200   :  { %v3604_v62 = vpop.eup %3603  ;;  %v229_v32 = vadd.f32 %v4392_v42, %v4685_v45  ;;  %v6317_v17 = vld [vmem:[#allocation91_spill] sm:$0xff] }
 0x201   :  { %v895_v50 = vmul.f32 %v889_v20, %v4708_v9  ;;  %v896_v61 = vmul.f32 %v3604_v62, %v885_v4  ;;  %v160_v9 = vadd.f32 %v4388_v40, %v4687_v15  ;;  %v367_v4 = vadd.f32 %v4405_v47, %v4695_v31 }
 0x202   :  { %v3606_v19 = vpop.eup %3605 }
 0x203   :  { %v4773_v12 = vadd.f32 %v896_v61, %v895_v50  ;;  %v893_v37 = vmul.f32 0.5, %v3606_v19 }
 0x205   :  { %3607 = vtanh.f32 %v4773_v12  ;;  %v894_v14 = vadd.f32 0.5, %v893_v37 }
 0x20b   :  { %v3608_v57 = vpop.eup %3607 }
 0x20c   :  { %v4776_v1 = vmul.f32 %v3608_v57, %v894_v14 }
 0x20e   :  { %v931_v16 = vpack.c.bf16 %v4776_v1, %v4776_v1  ;;  %v900_v49 = vmul.f32 %v4714_v5, %v4776_v1 }
 0x210   :  { %940 = vmatmul.bf16.vlgmr.msrb.gmra.mxu0 %v931_v16  ;;  %953 = vmatmul.bf16.vlgmr.msrb.gmra.mxu1 %v931_v16 }
 0x211   :  { %966 = vmatmul.bf16.vlgmr.msra.gmra.mxu2 %v931_v16  ;;  %979 = vmatmul.bf16.vlgmr.msrb.gmra.mxu3 %v931_v16  ;;  %v6318_v16 = vld [vmem:[#allocation92_spill] sm:$0xff] }
 0x212   :  { %1144 = vmatpush.bf16.msrb.mxu0 %v4064_v30  ;;  %1157 = vmatpush.bf16.msrb.mxu1 %v4038_v22 }
 0x213   :  { %1170 = vmatpush.bf16.msra.mxu2 %v4040_v23  ;;  %1183 = vmatpush.bf16.msrb.mxu3 %v4049_v26 }
 0x216   :  { %1145 = vmatpush.bf16.msrb.mxu0 %v4107_v44  ;;  %1158 = vmatpush.bf16.msrb.mxu1 %v4075_v34 }
 0x217   :  { %1171 = vmatpush.bf16.msra.mxu2 %v4077_v35  ;;  %1184 = vmatpush.bf16.msrb.mxu3 %v4086_v38 }
 0x21a   :  { %1146 = vmatpush.bf16.msrb.mxu0 %v4151_v59  ;;  %1159 = vmatpush.bf16.msrb.mxu1 %v4129_v51 }
 0x21b   :  { %1172 = vmatpush.bf16.msra.mxu2 %v4140_v55  ;;  %1185 = vmatpush.bf16.msrb.mxu3 %v4142_v56 }
 0x21e   :  { %1147 = vmatpush.bf16.msrb.mxu0 %v4209_v13  ;;  %1160 = vmatpush.bf16.msrb.mxu1 %v4175_v2 }
 0x21f   :  { %1173 = vmatpush.bf16.msra.mxu2 %v4186_v6  ;;  %1186 = vmatpush.bf16.msrb.mxu3 %v4188_v7 }
 0x221   :  { %901 = vadd.xlane.f32.xlu1 %v900_v49 }
 0x222   :  { %1148 = vmatpush.bf16.msrb.mxu0 %v4253_v33  ;;  %1161 = vmatpush.bf16.msrb.mxu1 %v4231_v21 }
 0x223   :  { %1174 = vmatpush.bf16.msra.mxu2 %v4242_v28  ;;  %1187 = vmatpush.bf16.msrb.mxu3 %v4244_v29 }
 0x226   :  { %1149 = vmatpush.bf16.msrb.mxu0 %v4309_v58  ;;  %1162 = vmatpush.bf16.msrb.mxu1 %v4277_v43 }
 0x227   :  { %1175 = vmatpush.bf16.msra.mxu2 %v4288_v48  ;;  %1188 = vmatpush.bf16.msrb.mxu3 %v4303_v54 }
 0x22a   :  { %1150 = vmatpush.bf16.msrb.mxu0 %v4360_v18  ;;  %1163 = vmatpush.bf16.msrb.mxu1 %v4339_v8 }
 0x22b   :  { %1176 = vmatpush.bf16.msra.mxu2 %v4344_v10  ;;  %1189 = vmatpush.bf16.msrb.mxu3 %v4368_v24 }
 0x22e   :  { %1151 = vmatpush.bf16.msrb.mxu0 %v4390_v41  ;;  %1164 = vmatpush.bf16.msrb.mxu1 %v4421_v60 }
 0x22f   :  { %1177 = vmatpush.bf16.msra.mxu2 %v4432_v3  ;;  %1190 = vmatpush.bf16.msrb.mxu3 %v4451_v25 }
 0x269   :  { %v4818_v50 = vpop.permute.xlu1 %815 }
 0x28d   :  { %v941_v62 = vpop.f32.mrf.mxu0  ;;  %v954_v11 = vpop.f32.mrf.mxu1 }
 0x28e   :  { %v984_v0 = vadd.f32 %v941_v62, %v160_v9  ;;  %v985_v46 = vadd.f32 %v954_v11, %v229_v32 }
 0x290   :  { %v988_v63 = vmul.f32 0.5, %v984_v0  ;;  %v992_v52 = vmul.f32 0.5, %v985_v46 }
 0x292   :  { %3609 = vtanh.f32 %v988_v63 }
 0x293   :  { %3611 = vtanh.f32 %v992_v52 }
 0x294   :  { %v902_v40 = vpop.xlane.xlu1 %901  ;;  %v967_v20 = vpop.f32.mrf.mxu2 }
 0x295   :  { %v903_v42 = vadd.f32 %v6317_v17, %v902_v40  ;;  %v986_v61 = vadd.f32 %v967_v20, %v298_v39  ;;  %v980_v19 = vpop.f32.mrf.mxu3  ;;  %v943_v37 = vpop.f32.mrf.mxu0 }
 0x296   :  { %v987_v14 = vadd.f32 %v980_v19, %v367_v4  ;;  %v956_v57 = vpop.f32.mrf.mxu1 }
 0x297   :  { %v4826_v49 = vmax.f32 %v6318_v16, %v903_v42  ;;  %3613 = vtanh.f32 %v986_v61 }
 0x298   :  { %v3610_v9 = vpop.eup %3609  ;;  %v997_v32 = vmul.f32 0.5, %v987_v14 }
 0x299   :  { %v3612_v36 = vpop.eup %3611  ;;  %v990_v62 = vmul.f32 0.5, %v3610_v9  ;;  %v908_v11 = vsub.f32 %v903_v42, %v4826_v49  ;;  %v905_v47 = vsub.f32 %v6318_v16, %v4826_v49 }
 0x29a   :  { %v994_v0 = vmul.f32 0.5, %v3612_v36  ;;  %3615 = vtanh.f32 %v997_v32 }
 0x29b   :  { %v991_v46 = vadd.f32 0.5, %v990_v62  ;;  %v906_v63 = vmul.f32 1.442695, %v905_v47  ;;  %v909_v39 = vmul.f32 1.442695, %v908_v11  ;;  %v810_v47 = vpop.permute.xlu0 %809 }
 0x29c   :  { %v995_v52 = vadd.f32 0.5, %v994_v0  ;;  %v969_v4 = vpop.f32.mrf.mxu2  ;;  %v6319_v0 = vld [vmem:[#allocation90_spill] sm:$0xff] }
 0x29d   :  { %v3614_v40 = vpop.eup %3613  ;;  %v982_v20 = vpop.f32.mrf.mxu3  ;;  %3617 = vpow2.f32 %v906_v63  ;;  %v812_v63 = vmul.f32 0.0, %v810_v47 }
 0x29e   :  { %v1001_v61 = vmul.f32 %v995_v52, %v4773_v12  ;;  %v1002_v19 = vmul.f32 %v3614_v40, %v991_v46  ;;  %3619 = vpow2.f32 %v909_v39  ;;  %v818_v46 = vmul.f32 %v4818_v50, %v6319_v0  ;;  %v6320_v40 = vld [vmem:[#allocation6_spill] sm:$0xff] }
 0x29f   :  { %v162_v20 = vadd.f32 %v6320_v40, %v4687_v15  ;;  %v6322_v50 = vld [vmem:[#allocation14_spill] sm:$0xff] }
 0x2a0   :  { %v3616_v37 = vpop.eup %3615  ;;  %v4832_v14 = vadd.f32 %v1002_v19, %v1001_v61  ;;  %v819_v52 = vadd.f32 %v818_v46, %v812_v63  ;;  %v6321_v61 = vld [vmem:[#allocation7_spill] sm:$0xff] }
 0x2a1   :  { %v999_v42 = vmul.f32 0.5, %v3616_v37  ;;  %v231_v19 = vadd.f32 %v6321_v61, %v4685_v45 }
 0x2a2   :  { %3621 = vtanh.f32 %v4832_v14 }
 0x2a3   :  { %v3618_v57 = vpop.eup %3617  ;;  %v1000_v32 = vadd.f32 0.5, %v999_v42 }
 0x2a4   :  { %915 = vperm.xlu2 %3580, %v3618_v57   ;;  %v911_v16 = vmul.f32 %v3618_v57, %v4770_v27  ;;  %v3620_v9 = vpop.eup %3619 }
 0x2a6   :  { %v4836_v36 = vadd.f32 %v3620_v9, %v911_v16 }
 0x2a8   :  { %v3622_v62 = vpop.eup %3621 }
 0x2a9   :  { %v4838_v11 = vmul.f32 %v3622_v62, %v1000_v32  ;;  %v300_v62 = vadd.f32 %v6322_v50, %v4699_v53 }
 0x2ab   :  { %v1037_v12 = vpack.c.bf16 %v4838_v11, %v4838_v11  ;;  %v1006_v27 = vmul.f32 %v4714_v5, %v4838_v11 }
 0x2ac   :  { %921 = vperm.xlu2 %3580, %v3620_v9  }
 0x2ad   :  { %1046 = vmatmul.bf16.vlgmr.msra.gmra.mxu0 %v1037_v12  ;;  %1059 = vmatmul.bf16.vlgmr.msra.gmra.mxu1 %v1037_v12 }
 0x2ae   :  { %1072 = vmatmul.bf16.vlgmr.msrb.gmra.mxu2 %v1037_v12  ;;  %1085 = vmatmul.bf16.vlgmr.msra.gmra.mxu3 %v1037_v12  ;;  %v6323_v12 = vld [vmem:[#allocation8_spill] sm:$0xff] }
 0x2af   :  { %1250 = vmatpush.bf16.msra.mxu0 %v4064_v30  ;;  %1263 = vmatpush.bf16.msra.mxu1 %v4038_v22 }
 0x2b0   :  { %1276 = vmatpush.bf16.msrb.mxu2 %v4040_v23  ;;  %1289 = vmatpush.bf16.msra.mxu3 %v4049_v26 }
 0x2b3   :  { %1251 = vmatpush.bf16.msra.mxu0 %v4107_v44  ;;  %1264 = vmatpush.bf16.msra.mxu1 %v4075_v34 }
 0x2b4   :  { %1277 = vmatpush.bf16.msrb.mxu2 %v4077_v35  ;;  %1290 = vmatpush.bf16.msra.mxu3 %v4086_v38 }
 0x2b7   :  { %1252 = vmatpush.bf16.msra.mxu0 %v4151_v59  ;;  %1265 = vmatpush.bf16.msra.mxu1 %v4129_v51 }
 0x2b8   :  { %1278 = vmatpush.bf16.msrb.mxu2 %v4140_v55  ;;  %1291 = vmatpush.bf16.msra.mxu3 %v4142_v56 }
 0x2bb   :  { %1253 = vmatpush.bf16.msra.mxu0 %v4209_v13  ;;  %1266 = vmatpush.bf16.msra.mxu1 %v4175_v2 }
 0x2bc   :  { %1279 = vmatpush.bf16.msrb.mxu2 %v4186_v6  ;;  %1292 = vmatpush.bf16.msra.mxu3 %v4188_v7 }
 0x2bf   :  { %1254 = vmatpush.bf16.msra.mxu0 %v4253_v33  ;;  %1267 = vmatpush.bf16.msra.mxu1 %v4231_v21 }
 0x2c0   :  { %1280 = vmatpush.bf16.msrb.mxu2 %v4242_v28  ;;  %1293 = vmatpush.bf16.msra.mxu3 %v4244_v29 }
 0x2c3   :  { %1255 = vmatpush.bf16.msra.mxu0 %v4309_v58  ;;  %1268 = vmatpush.bf16.msra.mxu1 %v4277_v43 }
 0x2c4   :  { %1281 = vmatpush.bf16.msrb.mxu2 %v4288_v48  ;;  %1294 = vmatpush.bf16.msra.mxu3 %v4303_v54 }
 0x2c7   :  { %1256 = vmatpush.bf16.msra.mxu0 %v4360_v18  ;;  %1269 = vmatpush.bf16.msra.mxu1 %v4339_v8 }
 0x2c8   :  { %1282 = vmatpush.bf16.msrb.mxu2 %v4344_v10  ;;  %1295 = vmatpush.bf16.msra.mxu3 %v4368_v24 }
 0x2cb   :  { %1257 = vmatpush.bf16.msra.mxu0 %v4390_v41  ;;  %1270 = vmatpush.bf16.msra.mxu1 %v4421_v60 }
 0x2cc   :  { %1283 = vmatpush.bf16.msrb.mxu2 %v4432_v3  ;;  %1296 = vmatpush.bf16.msra.mxu3 %v4451_v25 }
 0x2d5   :  { %1007 = vadd.xlane.f32.xlu2 %v1006_v27  ;;  %v369_v27 = vadd.f32 %v6323_v12, %v4695_v31 }
 0x2fe   :  { %v916_v39 = vpop.permute.xlu2 %915 }
 0x2ff   :  { %v4878_v4 = vmul.f32 %v916_v39, %v819_v52 }
 0x32a   :  { %v1047_v37 = vpop.f32.mrf.mxu0  ;;  %v1060_v57 = vpop.f32.mrf.mxu1 }
 0x32b   :  { %v1090_v42 = vadd.f32 %v1047_v37, %v162_v20  ;;  %v1091_v16 = vadd.f32 %v1060_v57, %v231_v19 }
 0x32d   :  { %v1094_v9 = vmul.f32 0.5, %v1090_v42  ;;  %v1098_v32 = vmul.f32 0.5, %v1091_v16 }
 0x32f   :  { %3623 = vtanh.f32 %v1094_v9 }
 0x330   :  { %3625 = vtanh.f32 %v1098_v32 }
 0x331   :  { %v1073_v47 = vpop.f32.mrf.mxu2  ;;  %v1086_v46 = vpop.f32.mrf.mxu3 }
 0x332   :  { %v1092_v0 = vadd.f32 %v1073_v47, %v300_v62  ;;  %v1049_v63 = vpop.f32.mrf.mxu0  ;;  %v1093_v52 = vadd.f32 %v1086_v46, %v369_v27  ;;  %v1062_v39 = vpop.f32.mrf.mxu1 }
 0x334   :  { %3627 = vtanh.f32 %v1092_v0  ;;  %v1103_v20 = vmul.f32 0.5, %v1093_v52  ;;  %v922_v0 = vpop.permute.xlu2 %921 }
 0x335   :  { %v3624_v40 = vpop.eup %3623 }
 0x336   :  { %v3626_v61 = vpop.eup %3625  ;;  %v1096_v19 = vmul.f32 0.5, %v3624_v40  ;;  %3629 = vtanh.f32 %v1103_v20 }
 0x337   :  { %v1100_v37 = vmul.f32 0.5, %v3626_v61 }
 0x338   :  { %v1097_v42 = vadd.f32 0.5, %v1096_v19 }
 0x339   :  { %v1101_v57 = vadd.f32 0.5, %v1100_v37  ;;  %v1075_v16 = vpop.f32.mrf.mxu2  ;;  %v1088_v32 = vpop.f32.mrf.mxu3 }
 0x33a   :  { %v3628_v9 = vpop.eup %3627  ;;  %v6325_v32 = vld [vmem:[#allocation9_spill] sm:$0xff] }
 0x33b   :  { %v1107_v50 = vmul.f32 %v1101_v57, %v4832_v14  ;;  %v1108_v12 = vmul.f32 %v3628_v9, %v1097_v42 }
 0x33c   :  { %v3630_v62 = vpop.eup %3629 }
 0x33d   :  { %v4889_v47 = vadd.f32 %v1108_v12, %v1107_v50  ;;  %v1105_v27 = vmul.f32 0.5, %v3630_v62  ;;  %v165_v50 = vadd.f32 %v6325_v32, %v4687_v15  ;;  %v6326_v12 = vld [vmem:[#allocation10_spill] sm:$0xff] }
 0x33e   :  { %v234_v62 = vadd.f32 %v6326_v12, %v4685_v45 }
 0x33f   :  { %3631 = vtanh.f32 %v4889_v47  ;;  %v1106_v46 = vadd.f32 0.5, %v1105_v27  ;;  %v924_v27 = vmul.f32 %v922_v0, %v4776_v1 }
 0x345   :  { %v3632_v63 = vpop.eup %3631 }
 0x346   :  { %v4892_v52 = vmul.f32 %v3632_v63, %v1106_v46 }
 0x348   :  { %6324 = vst [vmem:[#allocation91_spill] sm:$0xff] %v4892_v52  ;;  %v1143_v39 = vpack.c.bf16 %v4892_v52, %v4892_v52  ;;  %v1008_v40 = vpop.xlane.xlu2 %1007 }
 0x349   :  { %v1009_v20 = vadd.f32 %v6317_v17, %v1008_v40 }
 0x34a   :  { %1152 = vmatmul.bf16.vlgmr.msrb.gmra.mxu0 %v1143_v39  ;;  %1165 = vmatmul.bf16.vlgmr.msrb.gmra.mxu1 %v1143_v39 }
 0x34b   :  { %1178 = vmatmul.bf16.vlgmr.msra.gmra.mxu2 %v1143_v39  ;;  %1191 = vmatmul.bf16.vlgmr.msrb.gmra.mxu3 %v1143_v39  ;;  %v4898_v14 = vmax.f32 %v4826_v49, %v1009_v20 }
 0x34c   :  { %1356 = vmatpush.bf16.msrb.mxu0 %v4064_v30  ;;  %1369 = vmatpush.bf16.msrb.mxu1 %v4038_v22 }
 0x34d   :  { %1382 = vmatpush.bf16.msra.mxu2 %v4040_v23  ;;  %1395 = vmatpush.bf16.msrb.mxu3 %v4049_v26  ;;  %v1011_v61 = vsub.f32 %v4826_v49, %v4898_v14  ;;  %v1014_v19 = vsub.f32 %v1009_v20, %v4898_v14 }
 0x34f   :  { %v1012_v37 = vmul.f32 1.442695, %v1011_v61  ;;  %v1015_v42 = vmul.f32 1.442695, %v1014_v19  ;;  %v925_v19 = vadd.f32 %v924_v27, %v4878_v4 }
 0x350   :  { %1357 = vmatpush.bf16.msrb.mxu0 %v4107_v44  ;;  %1370 = vmatpush.bf16.msrb.mxu1 %v4075_v34 }
 0x351   :  { %1383 = vmatpush.bf16.msra.mxu2 %v4077_v35  ;;  %1396 = vmatpush.bf16.msrb.mxu3 %v4086_v38  ;;  %3633 = vpow2.f32 %v1012_v37 }
 0x352   :  { %3635 = vpow2.f32 %v1015_v42 }
 0x354   :  { %1358 = vmatpush.bf16.msrb.mxu0 %v4151_v59  ;;  %1371 = vmatpush.bf16.msrb.mxu1 %v4129_v51 }
 0x355   :  { %1384 = vmatpush.bf16.msra.mxu2 %v4140_v55  ;;  %1397 = vmatpush.bf16.msrb.mxu3 %v4142_v56 }
 0x357   :  { %v3634_v49 = vpop.eup %3633 }
 0x358   :  { %1359 = vmatpush.bf16.msrb.mxu0 %v4209_v13  ;;  %1372 = vmatpush.bf16.msrb.mxu1 %v4175_v2  ;;  %v3636_v57 = vpop.eup %3635  ;;  %v1017_v16 = vmul.f32 %v3634_v49, %v4836_v36  ;;  %v1112_v36 = vmul.f32 %v4714_v5, %v4892_v52 }
 0x359   :  { %1021 = vperm.xlu0 %3578, %v3634_v49   ;;  %1385 = vmatpush.bf16.msra.mxu2 %v4186_v6  ;;  %v6327_v49 = vld [vmem:[#allocation11_spill] sm:$0xff] }
 0x35a   :  { %1027 = vperm.xlu1 %3579, %v3636_v57   ;;  %1398 = vmatpush.bf16.msrb.mxu3 %v4188_v7  ;;  %v4920_v9 = vadd.f32 %v3636_v57, %v1017_v16  ;;  %v372_v57 = vadd.f32 %v6327_v49, %v4695_v31  ;;  %v6328_v16 = vld [vmem:[#allocation18_spill] sm:$0xff] }
 0x35c   :  { %1360 = vmatpush.bf16.msrb.mxu0 %v4253_v33  ;;  %1373 = vmatpush.bf16.msrb.mxu1 %v4231_v21 }
 0x35d   :  { %1386 = vmatpush.bf16.msra.mxu2 %v4242_v28 }
 0x35e   :  { %1399 = vmatpush.bf16.msrb.mxu3 %v4244_v29 }
 0x360   :  { %1361 = vmatpush.bf16.msrb.mxu0 %v4309_v58  ;;  %1374 = vmatpush.bf16.msrb.mxu1 %v4277_v43 }
 0x361   :  { %1387 = vmatpush.bf16.msra.mxu2 %v4288_v48 }
 0x362   :  { %1400 = vmatpush.bf16.msrb.mxu3 %v4303_v54 }
 0x364   :  { %1362 = vmatpush.bf16.msrb.mxu0 %v4360_v18  ;;  %1375 = vmatpush.bf16.msrb.mxu1 %v4339_v8 }
 0x365   :  { %1388 = vmatpush.bf16.msra.mxu2 %v4344_v10 }
 0x366   :  { %1401 = vmatpush.bf16.msrb.mxu3 %v4368_v24 }
 0x368   :  { %1363 = vmatpush.bf16.msrb.mxu0 %v4390_v41  ;;  %1376 = vmatpush.bf16.msrb.mxu1 %v4421_v60 }
 0x369   :  { %1389 = vmatpush.bf16.msra.mxu2 %v4432_v3 }
 0x36a   :  { %1402 = vmatpush.bf16.msrb.mxu3 %v4451_v25 }
 0x383   :  { %1113 = vadd.xlane.f32.xlu0 %v1112_v36  ;;  %v303_v36 = vadd.f32 %v6328_v16, %v4699_v53 }
 0x3c7   :  { %v1153_v46 = vpop.f32.mrf.mxu0  ;;  %v1166_v63 = vpop.f32.mrf.mxu1 }
 0x3c8   :  { %v1196_v39 = vadd.f32 %v1153_v46, %v165_v50  ;;  %v1197_v40 = vadd.f32 %v1166_v63, %v234_v62 }
 0x3ca   :  { %v1200_v20 = vmul.f32 0.5, %v1196_v39  ;;  %v1204_v61 = vmul.f32 0.5, %v1197_v40 }
 0x3cb   :  { %v1022_v37 = vpop.permute.xlu0 %1021 }
 0x3cc   :  { %3637 = vtanh.f32 %v1200_v20  ;;  %v4946_v42 = vmul.f32 %v1022_v37, %v925_v19 }
 0x3cd   :  { %3639 = vtanh.f32 %v1204_v61 }
 0x3ce   :  { %v1179_v1 = vpop.f32.mrf.mxu2  ;;  %v1192_v0 = vpop.f32.mrf.mxu3 }
 0x3cf   :  { %v1198_v32 = vadd.f32 %v1179_v1, %v303_v36  ;;  %v1199_v50 = vadd.f32 %v1192_v0, %v372_v57  ;;  %v1155_v12 = vpop.f32.mrf.mxu0  ;;  %v1168_v62 = vpop.f32.mrf.mxu1 }
 0x3d1   :  { %3641 = vtanh.f32 %v1198_v32  ;;  %v1209_v46 = vmul.f32 0.5, %v1199_v50 }
 0x3d2   :  { %v3638_v4 = vpop.eup %3637 }
 0x3d3   :  { %v3640_v27 = vpop.eup %3639  ;;  %v1202_v63 = vmul.f32 0.5, %v3638_v4  ;;  %3643 = vtanh.f32 %v1209_v46 }
 0x3d4   :  { %v1206_v39 = vmul.f32 0.5, %v3640_v27 }
 0x3d5   :  { %v1203_v40 = vadd.f32 0.5, %v1202_v63 }
 0x3d6   :  { %v1207_v20 = vadd.f32 0.5, %v1206_v39  ;;  %v1181_v19 = vpop.f32.mrf.mxu2  ;;  %v1194_v37 = vpop.f32.mrf.mxu3 }
 0x3d7   :  { %v3642_v49 = vpop.eup %3641  ;;  %v6330_v19 = vld [vmem:[#allocation12_spill] sm:$0xff] }
 0x3d8   :  { %v1213_v61 = vmul.f32 %v1207_v20, %v4889_v47  ;;  %v1214_v16 = vmul.f32 %v3642_v49, %v1203_v40  ;;  %v167_v37 = vadd.f32 %v6330_v19, %v4687_v15  ;;  %v6331_v49 = vld [vmem:[#allocation13_spill] sm:$0xff] }
 0x3d9   :  { %v3644_v52 = vpop.eup %3643 }
 0x3da   :  { %v4953_v36 = vadd.f32 %v1214_v16, %v1213_v61  ;;  %v1211_v57 = vmul.f32 0.5, %v3644_v52  ;;  %v236_v61 = vadd.f32 %v6331_v49, %v4685_v45 }
 0x3dc   :  { %3645 = vtanh.f32 %v4953_v36  ;;  %v1212_v1 = vadd.f32 0.5, %v1211_v57 }
 0x3e2   :  { %v3646_v0 = vpop.eup %3645 }
 0x3e3   :  { %v4956_v32 = vmul.f32 %v3646_v0, %v1212_v1 }
 0x3e5   :  { %6329 = vst [vmem:[#allocation92_spill] sm:$0xff] %v4956_v32  ;;  %v1249_v50 = vpack.c.bf16 %v4956_v32, %v4956_v32  ;;  %v1218_v20 = vmul.f32 %v4714_v5, %v4956_v32 }
 0x3e7   :  { %1258 = vmatmul.bf16.vlgmr.msra.gmra.mxu0 %v1249_v50  ;;  %1271 = vmatmul.bf16.vlgmr.msra.gmra.mxu1 %v1249_v50 }
 0x3e8   :  { %1284 = vmatmul.bf16.vlgmr.msrb.gmra.mxu2 %v1249_v50  ;;  %1297 = vmatmul.bf16.vlgmr.msra.gmra.mxu3 %v1249_v50 }
 0x3e9   :  { %1462 = vmatpush.bf16.msra.mxu0 %v4064_v30  ;;  %1475 = vmatpush.bf16.msra.mxu1 %v4038_v22 }
 0x3ea   :  { %1488 = vmatpush.bf16.msrb.mxu2 %v4040_v23  ;;  %1501 = vmatpush.bf16.msra.mxu3 %v4049_v26 }
 0x3ed   :  { %1463 = vmatpush.bf16.msra.mxu0 %v4107_v44  ;;  %1476 = vmatpush.bf16.msra.mxu1 %v4075_v34 }
 0x3ee   :  { %1489 = vmatpush.bf16.msrb.mxu2 %v4077_v35  ;;  %1502 = vmatpush.bf16.msra.mxu3 %v4086_v38 }
 0x3f1   :  { %1464 = vmatpush.bf16.msra.mxu0 %v4151_v59  ;;  %1477 = vmatpush.bf16.msra.mxu1 %v4129_v51 }
 0x3f2   :  { %1490 = vmatpush.bf16.msrb.mxu2 %v4140_v55  ;;  %1503 = vmatpush.bf16.msra.mxu3 %v4142_v56 }
 0x3f5   :  { %1465 = vmatpush.bf16.msra.mxu0 %v4209_v13  ;;  %1478 = vmatpush.bf16.msra.mxu1 %v4175_v2 }
 0x3f6   :  { %v1114_v47 = vpop.xlane.xlu0 %1113  ;;  %1491 = vmatpush.bf16.msrb.mxu2 %v4186_v6  ;;  %1504 = vmatpush.bf16.msra.mxu3 %v4188_v7 }
 0x3f7   :  { %v1115_v52 = vadd.f32 %v6317_v17, %v1114_v47  ;;  %v6332_v47 = vld [vmem:[#allocation15_spill] sm:$0xff] }
 0x3f9   :  { %v4978_v12 = vmax.f32 %v4898_v14, %v1115_v52  ;;  %1466 = vmatpush.bf16.msra.mxu0 %v4253_v33  ;;  %1479 = vmatpush.bf16.msra.mxu1 %v4231_v21 }
 0x3fa   :  { %1492 = vmatpush.bf16.msrb.mxu2 %v4242_v28  ;;  %1505 = vmatpush.bf16.msra.mxu3 %v4244_v29 }
 0x3fb   :  { %v1117_v62 = vsub.f32 %v4898_v14, %v4978_v12  ;;  %v1120_v46 = vsub.f32 %v1115_v52, %v4978_v12  ;;  %v374_v52 = vadd.f32 %v6332_v47, %v4695_v31 }
 0x3fd   :  { %v1118_v4 = vmul.f32 1.442695, %v1117_v62  ;;  %v1121_v27 = vmul.f32 1.442695, %v1120_v46  ;;  %1467 = vmatpush.bf16.msra.mxu0 %v4309_v58  ;;  %1480 = vmatpush.bf16.msra.mxu1 %v4277_v43  ;;  %v6333_v62 = vld [vmem:[#allocation22_spill] sm:$0xff] }
 0x3fe   :  { %1493 = vmatpush.bf16.msrb.mxu2 %v4288_v48  ;;  %1506 = vmatpush.bf16.msra.mxu3 %v4303_v54  ;;  %v305_v46 = vadd.f32 %v6333_v62, %v4699_v53 }
 0x3ff   :  { %3647 = vpow2.f32 %v1118_v4 }
 0x400   :  { %3649 = vpow2.f32 %v1121_v27 }
 0x401   :  { %1468 = vmatpush.bf16.msra.mxu0 %v4360_v18  ;;  %1481 = vmatpush.bf16.msra.mxu1 %v4339_v8 }
 0x402   :  { %1494 = vmatpush.bf16.msrb.mxu2 %v4344_v10  ;;  %1507 = vmatpush.bf16.msra.mxu3 %v4368_v24 }
 0x405   :  { %v3648_v14 = vpop.eup %3647  ;;  %1469 = vmatpush.bf16.msra.mxu0 %v4390_v41  ;;  %1482 = vmatpush.bf16.msra.mxu1 %v4421_v60 }
 0x406   :  { %v3650_v63 = vpop.eup %3649  ;;  %v1123_v39 = vmul.f32 %v3648_v14, %v4920_v9  ;;  %1127 = vperm.xlu2 %3580, %v3648_v14   ;;  %1495 = vmatpush.bf16.msrb.mxu2 %v4432_v3 }
 0x407   :  { %1133 = vperm.xlu1 %3579, %v3650_v63   ;;  %1508 = vmatpush.bf16.msra.mxu3 %v4451_v25 }
 0x408   :  { %v5000_v40 = vadd.f32 %v3650_v63, %v1123_v39 }
 0x42f   :  { %1219 = vadd.xlane.f32.xlu2 %v1218_v20 }
 0x464   :  { %v1259_v16 = vpop.f32.mrf.mxu0  ;;  %v1272_v9 = vpop.f32.mrf.mxu1 }
 0x465   :  { %v1302_v57 = vadd.f32 %v1259_v16, %v167_v37  ;;  %v1303_v1 = vadd.f32 %v1272_v9, %v236_v61 }
 0x467   :  { %v1306_v0 = vmul.f32 0.5, %v1302_v57  ;;  %v1310_v50 = vmul.f32 0.5, %v1303_v1 }
 0x469   :  { %3651 = vtanh.f32 %v1306_v0 }
 0x46a   :  { %3653 = vtanh.f32 %v1310_v50 }
 0x46b   :  { %v1285_v4 = vpop.f32.mrf.mxu2  ;;  %v1298_v27 = vpop.f32.mrf.mxu3 }
 0x46c   :  { %v1304_v14 = vadd.f32 %v1285_v4, %v305_v46  ;;  %v1305_v63 = vadd.f32 %v1298_v27, %v374_v52  ;;  %v1261_v39 = vpop.f32.mrf.mxu0  ;;  %v1274_v20 = vpop.f32.mrf.mxu1 }
 0x46e   :  { %3655 = vtanh.f32 %v1304_v14  ;;  %v1315_v19 = vmul.f32 0.5, %v1305_v63 }
 0x46f   :  { %v3652_v37 = vpop.eup %3651 }
 0x470   :  { %v3654_v49 = vpop.eup %3653  ;;  %v1308_v61 = vmul.f32 0.5, %v3652_v37  ;;  %3657 = vtanh.f32 %v1315_v19 }
 0x471   :  { %v1312_v16 = vmul.f32 0.5, %v3654_v49 }
 0x472   :  { %v1309_v9 = vadd.f32 0.5, %v1308_v61 }
 0x473   :  { %v1313_v57 = vadd.f32 0.5, %v1312_v16  ;;  %v1287_v1 = vpop.f32.mrf.mxu2  ;;  %v1300_v0 = vpop.f32.mrf.mxu3 }
 0x474   :  { %v3656_v47 = vpop.eup %3655 }
 0x475   :  { %v1319_v50 = vmul.f32 %v1313_v57, %v4953_v36  ;;  %v1320_v62 = vmul.f32 %v3656_v47, %v1309_v9 }
 0x476   :  { %v3658_v32 = vpop.eup %3657 }
 0x477   :  { %v5013_v46 = vadd.f32 %v1320_v62, %v1319_v50  ;;  %v1317_v52 = vmul.f32 0.5, %v3658_v32 }
 0x479   :  { %3659 = vtanh.f32 %v5013_v46  ;;  %v1318_v4 = vadd.f32 0.5, %v1317_v52  ;;  %v6334_v52 = vld [vmem:[#allocation16_spill] sm:$0xff] }
 0x47f   :  { %v3660_v27 = vpop.eup %3659 }
 0x480   :  { %v5016_v14 = vmul.f32 %v3660_v27, %v1318_v4  ;;  %v170_v4 = vadd.f32 %v6334_v52, %v4687_v15  ;;  %v6335_v27 = vld [vmem:[#allocation17_spill] sm:$0xff] }
 0x482   :  { %v1355_v63 = vpack.c.bf16 %v5016_v14, %v5016_v14  ;;  %v1324_v39 = vmul.f32 %v4714_v5, %v5016_v14  ;;  %v5042_v5 = vpop.permute.xlu2 %1127 }
 0x484   :  { %1364 = vmatmul.bf16.vlgmr.msrb.gmra.mxu0 %v1355_v63  ;;  %1377 = vmatmul.bf16.vlgmr.msrb.gmra.mxu1 %v1355_v63 }
 0x485   :  { %1390 = vmatmul.bf16.vlgmr.msra.gmra.mxu2 %v1355_v63  ;;  %1403 = vmatmul.bf16.vlgmr.msrb.gmra.mxu3 %v1355_v63  ;;  %v239_v63 = vadd.f32 %v6335_v27, %v4685_v45 }
 0x486   :  { %1325 = vadd.xlane.f32.xlu0 %v1324_v39  ;;  %1568 = vmatpush.bf16.msrb.mxu0 %v4064_v30 }
 0x487   :  { %1581 = vmatpush.bf16.msrb.mxu1 %v4038_v22  ;;  %1594 = vmatpush.bf16.msra.mxu2 %v4040_v23 }
 0x488   :  { %1607 = vmatpush.bf16.msrb.mxu3 %v4049_v26 }
 0x48a   :  { %1569 = vmatpush.bf16.msrb.mxu0 %v4107_v44 }
 0x48b   :  { %1582 = vmatpush.bf16.msrb.mxu1 %v4075_v34  ;;  %1595 = vmatpush.bf16.msra.mxu2 %v4077_v35 }
 0x48c   :  { %1608 = vmatpush.bf16.msrb.mxu3 %v4086_v38 }
 0x48e   :  { %1570 = vmatpush.bf16.msrb.mxu0 %v4151_v59 }
 0x48f   :  { %1583 = vmatpush.bf16.msrb.mxu1 %v4129_v51  ;;  %1596 = vmatpush.bf16.msra.mxu2 %v4140_v55 }
 0x490   :  { %1609 = vmatpush.bf16.msrb.mxu3 %v4142_v56 }
 0x492   :  { %1571 = vmatpush.bf16.msrb.mxu0 %v4209_v13 }
 0x493   :  { %1584 = vmatpush.bf16.msrb.mxu1 %v4175_v2  ;;  %1597 = vmatpush.bf16.msra.mxu2 %v4186_v6 }
 0x494   :  { %1610 = vmatpush.bf16.msrb.mxu3 %v4188_v7 }
 0x496   :  { %1572 = vmatpush.bf16.msrb.mxu0 %v4253_v33 }
 0x497   :  { %1585 = vmatpush.bf16.msrb.mxu1 %v4231_v21  ;;  %1598 = vmatpush.bf16.msra.mxu2 %v4242_v28 }
 0x498   :  { %1611 = vmatpush.bf16.msrb.mxu3 %v4244_v29 }
 0x49a   :  { %1573 = vmatpush.bf16.msrb.mxu0 %v4309_v58 }
 0x49b   :  { %1586 = vmatpush.bf16.msrb.mxu1 %v4277_v43  ;;  %1599 = vmatpush.bf16.msra.mxu2 %v4288_v48 }
 0x49c   :  { %1612 = vmatpush.bf16.msrb.mxu3 %v4303_v54 }
 0x49e   :  { %1574 = vmatpush.bf16.msrb.mxu0 %v4360_v18 }
 0x49f   :  { %1587 = vmatpush.bf16.msrb.mxu1 %v4339_v8  ;;  %1600 = vmatpush.bf16.msra.mxu2 %v4344_v10 }
 0x4a0   :  { %1613 = vmatpush.bf16.msrb.mxu3 %v4368_v24 }
 0x4a2   :  { %v1220_v36 = vpop.xlane.xlu2 %1219  ;;  %1575 = vmatpush.bf16.msrb.mxu0 %v4390_v41 }
 0x4a3   :  { %v1221_v32 = vadd.f32 %v6317_v17, %v1220_v36  ;;  %1588 = vmatpush.bf16.msrb.mxu1 %v4421_v60  ;;  %1601 = vmatpush.bf16.msra.mxu2 %v4432_v3 }
 0x4a4   :  { %1614 = vmatpush.bf16.msrb.mxu3 %v4451_v25 }
 0x4a5   :  { %v1222_v20 = vmax.f32 %v4978_v12, %v1221_v32 }
 0x4a7   :  { %v1223_v19 = vsub.f32 %v4978_v12, %v1222_v20  ;;  %v1226_v37 = vsub.f32 %v1221_v32, %v1222_v20 }
 0x4a9   :  { %v1224_v49 = vmul.f32 1.442695, %v1223_v19  ;;  %v1227_v61 = vmul.f32 1.442695, %v1226_v37 }
 0x4ab   :  { %3661 = vpow2.f32 %v1224_v49 }
 0x4ac   :  { %3663 = vpow2.f32 %v1227_v61 }
 0x4b1   :  { %v3662_v16 = vpop.eup %3661 }
 0x4b2   :  { %v1229_v9 = vmul.f32 %v3662_v16, %v5000_v40  ;;  %1233 = vperm.xlu1 %3579, %v3662_v16   ;;  %v3664_v57 = vpop.eup %3663  ;;  %v6337_v16 = vld [vmem:[#allocation26_spill] sm:$0xff] }
 0x4b4   :  { %v1230_v1 = vadd.f32 %v3664_v57, %v1229_v9  ;;  %v308_v9 = vadd.f32 %v6337_v16, %v4699_v53 }
 0x4ba   :  { %1239 = vperm.xlu1 %3579, %v3664_v57  }
 0x4f9   :  { %v1326_v0 = vpop.xlane.xlu0 %1325 }
 0x4fa   :  { %v1327_v47 = vadd.f32 %v6317_v17, %v1326_v0 }
 0x4fc   :  { %v5061_v50 = vmax.f32 %v1222_v20, %v1327_v47 }
 0x4fe   :  { %v1329_v62 = vsub.f32 %v1222_v20, %v5061_v50  ;;  %v1332_v12 = vsub.f32 %v1327_v47, %v5061_v50  ;;  %v6336_v20 = vld [vmem:[#allocation19_spill] sm:$0xff] }
 0x4ff   :  { %v377_v61 = vadd.f32 %v6336_v20, %v4695_v31 }
 0x500   :  { %v1330_v40 = vmul.f32 1.442695, %v1329_v62  ;;  %v1333_v39 = vmul.f32 1.442695, %v1332_v12 }
 0x501   :  { %v1365_v36 = vpop.f32.mrf.mxu0  ;;  %v1378_v32 = vpop.f32.mrf.mxu1 }
 0x502   :  { %3665 = vpow2.f32 %v1330_v40  ;;  %v1408_v19 = vadd.f32 %v1365_v36, %v170_v4  ;;  %v1409_v37 = vadd.f32 %v1378_v32, %v239_v63 }
 0x503   :  { %3667 = vpow2.f32 %v1333_v39 }
 0x504   :  { %v1412_v17 = vmul.f32 0.5, %v1408_v19  ;;  %v1416_v49 = vmul.f32 0.5, %v1409_v37 }
 0x506   :  { %3669 = vtanh.f32 %v1412_v17 }
 0x507   :  { %3671 = vtanh.f32 %v1416_v49 }
 0x508   :  { %v3666_v57 = vpop.eup %3665  ;;  %v1391_v0 = vpop.f32.mrf.mxu2 }
 0x509   :  { %v1404_v47 = vpop.f32.mrf.mxu3  ;;  %v3668_v62 = vpop.eup %3667  ;;  %v1335_v12 = vmul.f32 %v3666_v57, %v1230_v1  ;;  %v1410_v52 = vadd.f32 %v1391_v0, %v308_v9  ;;  %1339 = vperm.xlu1 %3579, %v3666_v57  }
 0x50a   :  { %v1411_v27 = vadd.f32 %v1404_v47, %v377_v61  ;;  %v1367_v4 = vpop.f32.mrf.mxu0  ;;  %v1380_v63 = vpop.f32.mrf.mxu1  ;;  %1345 = vperm.xlu0 %3578, %v3668_v62  }
 0x50b   :  { %v5073_v40 = vadd.f32 %v3668_v62, %v1335_v12  ;;  %3673 = vtanh.f32 %v1410_v52  ;;  %v1028_v0 = vpop.permute.xlu1 %1027 }
 0x50c   :  { %v1421_v39 = vmul.f32 0.5, %v1411_v27  ;;  %v3670_v36 = vpop.eup %3669  ;;  %v1030_v12 = vmul.f32 %v1028_v0, %v4838_v11 }
 0x50d   :  { %v3672_v32 = vpop.eup %3671  ;;  %v1414_v19 = vmul.f32 0.5, %v3670_v36  ;;  %v6338_v36 = vld [vmem:[#allocation91_spill] sm:$0xff] }
 0x50e   :  { %v1418_v37 = vmul.f32 0.5, %v3672_v32  ;;  %3675 = vtanh.f32 %v1421_v39  ;;  %v1031_v39 = vadd.f32 %v1030_v12, %v4946_v42 }
 0x50f   :  { %v1415_v17 = vadd.f32 0.5, %v1414_v19 }
 0x510   :  { %v1419_v49 = vadd.f32 0.5, %v1418_v37  ;;  %v1393_v20 = vpop.f32.mrf.mxu2  ;;  %v1130_v19 = vmul.f32 %v5042_v5, %v1031_v39  ;;  %v5106_v5 = vld [vmem:[%s6195_s4] ss:$0 sm:$0xff] }
 0x511   :  { %v1406_v16 = vpop.f32.mrf.mxu3  ;;  %v3674_v1 = vpop.eup %3673  ;;  %v6339_v20 = vld [vmem:[#allocation92_spill] sm:$0xff] }
 0x512   :  { %v1425_v61 = vmul.f32 %v1419_v49, %v5013_v46  ;;  %v1426_v9 = vmul.f32 %v3674_v1, %v1415_v17 }
 0x513   :  { %v1134_v4 = vpop.permute.xlu1 %1133 }
 0x514   :  { %v3676_v57 = vpop.eup %3675  ;;  %v5076_v47 = vadd.f32 %v1426_v9, %v1425_v61  ;;  %v1136_v32 = vmul.f32 %v1134_v4, %v6338_v36 }
 0x515   :  { %v1423_v62 = vmul.f32 0.5, %v3676_v57  ;;  %v6340_v57 = vld [vmem:[#allocation20_spill] sm:$0xff] }
 0x516   :  { %3677 = vtanh.f32 %v5076_v47  ;;  %v1137_v37 = vadd.f32 %v1136_v32, %v1130_v19  ;;  %v172_v0 = vadd.f32 %v6340_v57, %v4687_v15 }
 0x517   :  { %v1424_v52 = vadd.f32 0.5, %v1423_v62  ;;  %v6341_v62 = vld [vmem:[#allocation21_spill] sm:$0xff] }
 0x518   :  { %v241_v12 = vadd.f32 %v6341_v62, %v4685_v45 }
 0x51c   :  { %v3678_v27 = vpop.eup %3677 }
 0x51d   :  { %v5080_v63 = vmul.f32 %v3678_v27, %v1424_v52 }
 0x51f   :  { %v1461_v46 = vpack.c.bf16 %v5080_v63, %v5080_v63  ;;  %v1430_v17 = vmul.f32 %v5106_v5, %v5080_v63 }
 0x521   :  { %1470 = vmatmul.bf16.vlgmr.msra.gmra.mxu0 %v1461_v46  ;;  %1483 = vmatmul.bf16.vlgmr.msra.gmra.mxu1 %v1461_v46 }
 0x522   :  { %1496 = vmatmul.bf16.vlgmr.msrb.gmra.mxu2 %v1461_v46  ;;  %1509 = vmatmul.bf16.vlgmr.msra.gmra.mxu3 %v1461_v46  ;;  %v6342_v46 = vld [vmem:[#allocation23_spill] sm:$0xff] }
 0x523   :  { %1674 = vmatpush.bf16.msra.mxu0 %v4064_v30  ;;  %1687 = vmatpush.bf16.msra.mxu1 %v4038_v22  ;;  %v379_v19 = vadd.f32 %v6342_v46, %v4695_v31 }
 0x524   :  { %v1234_v11 = vpop.permute.xlu1 %1233  ;;  %1700 = vmatpush.bf16.msrb.mxu2 %v4040_v23  ;;  %1713 = vmatpush.bf16.msra.mxu3 %v4049_v26 }
 0x525   :  { %v1236_v42 = vmul.f32 %v1234_v11, %v1137_v37  ;;  %v6343_v37 = vld [vmem:[#allocation30_spill] sm:$0xff] }
 0x526   :  { %v310_v11 = vadd.f32 %v6343_v37, %v4699_v53 }
 0x527   :  { %1675 = vmatpush.bf16.msra.mxu0 %v4107_v44  ;;  %1688 = vmatpush.bf16.msra.mxu1 %v4075_v34 }
 0x528   :  { %1701 = vmatpush.bf16.msrb.mxu2 %v4077_v35  ;;  %1714 = vmatpush.bf16.msra.mxu3 %v4086_v38 }
 0x52b   :  { %1676 = vmatpush.bf16.msra.mxu0 %v4151_v59  ;;  %1689 = vmatpush.bf16.msra.mxu1 %v4129_v51 }
 0x52c   :  { %1702 = vmatpush.bf16.msrb.mxu2 %v4140_v55  ;;  %1715 = vmatpush.bf16.msra.mxu3 %v4142_v56  ;;  %v1240_v49 = vpop.permute.xlu1 %1239 }
 0x52d   :  { %v1242_v16 = vmul.f32 %v1240_v49, %v6339_v20 }
 0x52f   :  { %1677 = vmatpush.bf16.msra.mxu0 %v4209_v13  ;;  %1690 = vmatpush.bf16.msra.mxu1 %v4175_v2  ;;  %v1243_v1 = vadd.f32 %v1242_v16, %v1236_v42 }
 0x530   :  { %1703 = vmatpush.bf16.msrb.mxu2 %v4186_v6  ;;  %1716 = vmatpush.bf16.msra.mxu3 %v4188_v7 }
 0x533   :  { %1431 = vadd.xlane.f32.xlu1 %v1430_v17  ;;  %1678 = vmatpush.bf16.msra.mxu0 %v4253_v33 }
 0x534   :  { %1691 = vmatpush.bf16.msra.mxu1 %v4231_v21  ;;  %1704 = vmatpush.bf16.msrb.mxu2 %v4242_v28 }
 0x535   :  { %1717 = vmatpush.bf16.msra.mxu3 %v4244_v29 }
 0x537   :  { %1679 = vmatpush.bf16.msra.mxu0 %v4309_v58 }
 0x538   :  { %1692 = vmatpush.bf16.msra.mxu1 %v4277_v43  ;;  %1705 = vmatpush.bf16.msrb.mxu2 %v4288_v48 }
 0x539   :  { %1718 = vmatpush.bf16.msra.mxu3 %v4303_v54 }
 0x53b   :  { %1680 = vmatpush.bf16.msra.mxu0 %v4360_v18 }
 0x53c   :  { %1693 = vmatpush.bf16.msra.mxu1 %v4339_v8  ;;  %1706 = vmatpush.bf16.msrb.mxu2 %v4344_v10 }
 0x53d   :  { %1719 = vmatpush.bf16.msra.mxu3 %v4368_v24 }
 0x53f   :  { %1681 = vmatpush.bf16.msra.mxu0 %v4390_v41 }
 0x540   :  { %1694 = vmatpush.bf16.msra.mxu1 %v4421_v60  ;;  %1707 = vmatpush.bf16.msrb.mxu2 %v4432_v3 }
 0x541   :  { %1720 = vmatpush.bf16.msra.mxu3 %v4451_v25 }
 0x57b   :  { %v1340_v61 = vpop.permute.xlu1 %1339 }
 0x57c   :  { %v5127_v9 = vmul.f32 %v1340_v61, %v1243_v1  ;;  %v5137_v61 = vld [vmem:[#allocation3] ss:$0 sm:$0xff] }
 0x59e   :  { %v1471_v52 = vpop.f32.mrf.mxu0  ;;  %v1484_v27 = vpop.f32.mrf.mxu1 }
 0x59f   :  { %v1514_v4 = vadd.f32 %v1471_v52, %v172_v0  ;;  %v1515_v39 = vadd.f32 %v1484_v27, %v241_v12 }
 0x5a1   :  { %v1518_v36 = vmul.f32 0.5, %v1514_v4  ;;  %v1522_v32 = vmul.f32 0.5, %v1515_v39 }
 0x5a3   :  { %3679 = vtanh.f32 %v1518_v36 }
 0x5a4   :  { %3681 = vtanh.f32 %v1522_v32 }
 0x5a5   :  { %v1497_v42 = vpop.f32.mrf.mxu2  ;;  %v1510_v17 = vpop.f32.mrf.mxu3 }
 0x5a6   :  { %v1516_v49 = vadd.f32 %v1497_v42, %v310_v11  ;;  %v1517_v20 = vadd.f32 %v1510_v17, %v379_v19  ;;  %v1432_v16 = vpop.xlane.xlu1 %1431  ;;  %v1473_v1 = vpop.f32.mrf.mxu0 }
 0x5a7   :  { %v1433_v57 = vadd.f32 %v5137_v61, %v1432_v16  ;;  %v1486_v0 = vpop.f32.mrf.mxu1 }
 0x5a8   :  { %3683 = vtanh.f32 %v1516_v49  ;;  %v1527_v62 = vmul.f32 0.5, %v1517_v20 }
 0x5a9   :  { %v3680_v12 = vpop.eup %3679  ;;  %v5141_v52 = vmax.f32 %v5061_v50, %v1433_v57 }
 0x5aa   :  { %v3682_v27 = vpop.eup %3681  ;;  %v1520_v4 = vmul.f32 0.5, %v3680_v12  ;;  %3685 = vtanh.f32 %v1527_v62 }
 0x5ab   :  { %v1524_v39 = vmul.f32 0.5, %v3682_v27  ;;  %v1435_v36 = vsub.f32 %v5061_v50, %v5141_v52  ;;  %v1438_v32 = vsub.f32 %v1433_v57, %v5141_v52 }
 0x5ac   :  { %v1521_v46 = vadd.f32 0.5, %v1520_v4 }
 0x5ad   :  { %v1525_v19 = vadd.f32 0.5, %v1524_v39  ;;  %v1436_v37 = vmul.f32 1.442695, %v1435_v36  ;;  %v1439_v11 = vmul.f32 1.442695, %v1438_v32  ;;  %v1499_v42 = vpop.f32.mrf.mxu2  ;;  %v1512_v17 = vpop.f32.mrf.mxu3 }
 0x5ae   :  { %v3684_v49 = vpop.eup %3683  ;;  %v1346_v32 = vpop.permute.xlu0 %1345 }
 0x5af   :  { %v1531_v20 = vmul.f32 %v1525_v19, %v5076_v47  ;;  %v1532_v16 = vmul.f32 %v3684_v49, %v1521_v46  ;;  %3687 = vpow2.f32 %v1436_v37  ;;  %v1348_v46 = vmul.f32 %v1346_v32, %v5016_v14 }
 0x5b0   :  { %3689 = vpow2.f32 %v1439_v11  ;;  %v3686_v1 = vpop.eup %3685 }
 0x5b1   :  { %v5147_v0 = vadd.f32 %v1532_v16, %v1531_v20  ;;  %v1529_v50 = vmul.f32 0.5, %v3686_v1  ;;  %v1349_v37 = vadd.f32 %v1348_v46, %v5127_v9  ;;  %v6344_v20 = vld [vmem:[#allocation24_spill] sm:$0xff]  ;;  %v6345_v1 = vld [vmem:[#allocation25_spill] sm:$0xff]  ;;  %v6346_v9 = vld [vmem:[#allocation27_spill] sm:$0xff] }
 0x5b2   :  { %v175_v16 = vadd.f32 %v6344_v20, %v4687_v15 }
 0x5b3   :  { %3691 = vtanh.f32 %v5147_v0  ;;  %v1530_v27 = vadd.f32 0.5, %v1529_v50  ;;  %v244_v50 = vadd.f32 %v6345_v1, %v4685_v45 }
 0x5b5   :  { %v3688_v62 = vpop.eup %3687 }
 0x5b6   :  { %v3690_v57 = vpop.eup %3689  ;;  %v1441_v12 = vmul.f32 %v3688_v62, %v5073_v40  ;;  %1445 = vperm.xlu2 %3580, %v3688_v62  }
 0x5b7   :  { %1451 = vperm.xlu0 %3578, %v3690_v57  }
 0x5b8   :  { %v5151_v4 = vadd.f32 %v3690_v57, %v1441_v12 }
 0x5b9   :  { %v3692_v39 = vpop.eup %3691 }
 0x5ba   :  { %v5153_v47 = vmul.f32 %v3692_v39, %v1530_v27 }
 0x5bc   :  { %v1567_v36 = vpack.c.bf16 %v5153_v47, %v5153_v47  ;;  %v1536_v40 = vmul.f32 %v5106_v5, %v5153_v47 }
 0x5be   :  { %1576 = vmatmul.bf16.vlgmr.msrb.gmra.mxu0 %v1567_v36  ;;  %1589 = vmatmul.bf16.vlgmr.msrb.gmra.mxu1 %v1567_v36 }
 0x5bf   :  { %1602 = vmatmul.bf16.vlgmr.msra.gmra.mxu2 %v1567_v36  ;;  %1615 = vmatmul.bf16.vlgmr.msrb.gmra.mxu3 %v1567_v36  ;;  %v382_v36 = vadd.f32 %v6346_v9, %v4695_v31 }
 0x5c0   :  { %1780 = vmatpush.bf16.msrb.mxu0 %v4064_v30  ;;  %1793 = vmatpush.bf16.msrb.mxu1 %v4038_v22 }
 0x5c1   :  { %1806 = vmatpush.bf16.msra.mxu2 %v4040_v23  ;;  %1819 = vmatpush.bf16.msrb.mxu3 %v4049_v26 }
 0x5c4   :  { %1781 = vmatpush.bf16.msrb.mxu0 %v4107_v44  ;;  %1794 = vmatpush.bf16.msrb.mxu1 %v4075_v34 }
 0x5c5   :  { %1807 = vmatpush.bf16.msra.mxu2 %v4077_v35  ;;  %1820 = vmatpush.bf16.msrb.mxu3 %v4086_v38 }
 0x5c8   :  { %1782 = vmatpush.bf16.msrb.mxu0 %v4151_v59  ;;  %1795 = vmatpush.bf16.msrb.mxu1 %v4129_v51 }
 0x5c9   :  { %1808 = vmatpush.bf16.msra.mxu2 %v4140_v55  ;;  %1821 = vmatpush.bf16.msrb.mxu3 %v4142_v56 }
 0x5cc   :  { %1783 = vmatpush.bf16.msrb.mxu0 %v4209_v13  ;;  %1796 = vmatpush.bf16.msrb.mxu1 %v4175_v2 }
 0x5cd   :  { %1809 = vmatpush.bf16.msra.mxu2 %v4186_v6  ;;  %1822 = vmatpush.bf16.msrb.mxu3 %v4188_v7 }
 0x5d0   :  { %1784 = vmatpush.bf16.msrb.mxu0 %v4253_v33  ;;  %1797 = vmatpush.bf16.msrb.mxu1 %v4231_v21 }
 0x5d1   :  { %1810 = vmatpush.bf16.msra.mxu2 %v4242_v28  ;;  %1823 = vmatpush.bf16.msrb.mxu3 %v4244_v29 }
 0x5d4   :  { %1785 = vmatpush.bf16.msrb.mxu0 %v4309_v58  ;;  %1798 = vmatpush.bf16.msrb.mxu1 %v4277_v43 }
 0x5d5   :  { %1811 = vmatpush.bf16.msra.mxu2 %v4288_v48  ;;  %1824 = vmatpush.bf16.msrb.mxu3 %v4303_v54 }
 0x5d8   :  { %1786 = vmatpush.bf16.msrb.mxu0 %v4360_v18  ;;  %1799 = vmatpush.bf16.msrb.mxu1 %v4339_v8 }
 0x5d9   :  { %1812 = vmatpush.bf16.msra.mxu2 %v4344_v10  ;;  %1825 = vmatpush.bf16.msrb.mxu3 %v4368_v24 }
 0x5dc   :  { %1787 = vmatpush.bf16.msrb.mxu0 %v4390_v41  ;;  %1800 = vmatpush.bf16.msrb.mxu1 %v4421_v60 }
 0x5dd   :  { %1813 = vmatpush.bf16.msra.mxu2 %v4432_v3  ;;  %1826 = vmatpush.bf16.msrb.mxu3 %v4451_v25 }
 0x5e1   :  { %1537 = vadd.xlane.f32.xlu0 %v1536_v40 }
 0x610   :  { %v1446_v19 = vpop.permute.xlu2 %1445 }
 0x611   :  { %v1448_v42 = vmul.f32 %v1446_v19, %v1349_v37 }
 0x629   :  { %v1452_v11 = vpop.permute.xlu0 %1451 }
 0x62a   :  { %v1454_v17 = vmul.f32 %v1452_v11, %v5080_v63  ;;  %v6347_v63 = vld [vmem:[#allocation34_spill] sm:$0xff] }
 0x62b   :  { %v313_v40 = vadd.f32 %v6347_v63, %v4699_v53 }
 0x62c   :  { %v5194_v49 = vadd.f32 %v1454_v17, %v1448_v42 }
 0x63b   :  { %v1577_v62 = vpop.f32.mrf.mxu0  ;;  %v1590_v57 = vpop.f32.mrf.mxu1 }
 0x63c   :  { %v1620_v12 = vadd.f32 %v1577_v62, %v175_v16  ;;  %v1621_v27 = vadd.f32 %v1590_v57, %v244_v50 }
 0x63e   :  { %v1624_v14 = vmul.f32 0.5, %v1620_v12  ;;  %v1628_v39 = vmul.f32 0.5, %v1621_v27 }
 0x640   :  { %3693 = vtanh.f32 %v1624_v14 }
 0x641   :  { %3695 = vtanh.f32 %v1628_v39 }
 0x642   :  { %v1603_v32 = vpop.f32.mrf.mxu2  ;;  %v1616_v46 = vpop.f32.mrf.mxu3 }
 0x643   :  { %v1622_v19 = vadd.f32 %v1603_v32, %v313_v40  ;;  %v1623_v37 = vadd.f32 %v1616_v46, %v382_v36  ;;  %v1579_v11 = vpop.f32.mrf.mxu0  ;;  %v1592_v42 = vpop.f32.mrf.mxu1 }
 0x645   :  { %3697 = vtanh.f32 %v1622_v19  ;;  %v1633_v17 = vmul.f32 0.5, %v1623_v37 }
 0x646   :  { %v3694_v20 = vpop.eup %3693 }
 0x647   :  { %v3696_v16 = vpop.eup %3695  ;;  %v1626_v1 = vmul.f32 0.5, %v3694_v20  ;;  %3699 = vtanh.f32 %v1633_v17 }
 0x648   :  { %v1630_v50 = vmul.f32 0.5, %v3696_v16 }
 0x649   :  { %v1627_v62 = vadd.f32 0.5, %v1626_v1 }
 0x64a   :  { %v1631_v57 = vadd.f32 0.5, %v1630_v50  ;;  %v1605_v12 = vpop.f32.mrf.mxu2  ;;  %v1618_v27 = vpop.f32.mrf.mxu3 }
 0x64b   :  { %v3698_v14 = vpop.eup %3697  ;;  %v6349_v12 = vld [vmem:[#allocation28_spill] sm:$0xff] }
 0x64c   :  { %v1637_v39 = vmul.f32 %v1631_v57, %v5147_v0  ;;  %v1638_v9 = vmul.f32 %v3698_v14, %v1627_v62  ;;  %v177_v27 = vadd.f32 %v6349_v12, %v4687_v15  ;;  %v6350_v14 = vld [vmem:[#allocation29_spill] sm:$0xff] }
 0x64d   :  { %v3700_v63 = vpop.eup %3699 }
 0x64e   :  { %v5205_v40 = vadd.f32 %v1638_v9, %v1637_v39  ;;  %v1635_v36 = vmul.f32 0.5, %v3700_v63  ;;  %v246_v39 = vadd.f32 %v6350_v14, %v4685_v45 }
 0x650   :  { %3701 = vtanh.f32 %v5205_v40  ;;  %v1636_v46 = vadd.f32 0.5, %v1635_v36 }
 0x654   :  { %v1538_v32 = vpop.xlane.xlu0 %1537 }
 0x655   :  { %v1539_v19 = vadd.f32 %v5137_v61, %v1538_v32 }
 0x656   :  { %v3702_v37 = vpop.eup %3701 }
 0x657   :  { %v5209_v11 = vmul.f32 %v3702_v37, %v1636_v46  ;;  %v5212_v42 = vmax.f32 %v5141_v52, %v1539_v19  ;;  %v6351_v37 = vld [vmem:[#allocation31_spill] sm:$0xff] }
 0x659   :  { %6348 = vst [vmem:[#allocation90_spill] sm:$0xff] %v5209_v11  ;;  %v1673_v0 = vpack.c.bf16 %v5209_v11, %v5209_v11  ;;  %v1541_v17 = vsub.f32 %v5141_v52, %v5212_v42  ;;  %v1544_v20 = vsub.f32 %v1539_v19, %v5212_v42 }
 0x65b   :  { %v1542_v16 = vmul.f32 1.442695, %v1541_v17  ;;  %v1545_v1 = vmul.f32 1.442695, %v1544_v20  ;;  %1682 = vmatmul.bf16.vlgmr.msra.gmra.mxu0 %v1673_v0  ;;  %1695 = vmatmul.bf16.vlgmr.msra.gmra.mxu1 %v1673_v0  ;;  %v6352_v17 = vld [vmem:[#allocation38_spill] sm:$0xff] }
 0x65c   :  { %1708 = vmatmul.bf16.vlgmr.msrb.gmra.mxu2 %v1673_v0  ;;  %1721 = vmatmul.bf16.vlgmr.msra.gmra.mxu3 %v1673_v0  ;;  %v384_v0 = vadd.f32 %v6351_v37, %v4695_v31  ;;  %v315_v20 = vadd.f32 %v6352_v17, %v4699_v53 }
 0x65d   :  { %3703 = vpow2.f32 %v1542_v16  ;;  %1886 = vmatpush.bf16.msra.mxu0 %v4064_v30  ;;  %1899 = vmatpush.bf16.msra.mxu1 %v4038_v22 }
 0x65e   :  { %3705 = vpow2.f32 %v1545_v1  ;;  %1912 = vmatpush.bf16.msrb.mxu2 %v4040_v23  ;;  %1925 = vmatpush.bf16.msra.mxu3 %v4049_v26 }
 0x661   :  { %1887 = vmatpush.bf16.msra.mxu0 %v4107_v44  ;;  %1900 = vmatpush.bf16.msra.mxu1 %v4075_v34 }
 0x662   :  { %1913 = vmatpush.bf16.msrb.mxu2 %v4077_v35  ;;  %1926 = vmatpush.bf16.msra.mxu3 %v4086_v38 }
 0x663   :  { %v3704_v52 = vpop.eup %3703 }
 0x664   :  { %v3706_v50 = vpop.eup %3705  ;;  %v1547_v62 = vmul.f32 %v3704_v52, %v5151_v4  ;;  %1551 = vperm.xlu2 %3580, %v3704_v52   ;;  %v1642_v4 = vmul.f32 %v5106_v5, %v5209_v11 }
 0x665   :  { %1557 = vperm.xlu1 %3579, %v3706_v50   ;;  %1888 = vmatpush.bf16.msra.mxu0 %v4151_v59 }
 0x666   :  { %v5229_v57 = vadd.f32 %v3706_v50, %v1547_v62  ;;  %1901 = vmatpush.bf16.msra.mxu1 %v4129_v51  ;;  %1914 = vmatpush.bf16.msrb.mxu2 %v4140_v55 }
 0x667   :  { %1927 = vmatpush.bf16.msra.mxu3 %v4142_v56 }
 0x669   :  { %1889 = vmatpush.bf16.msra.mxu0 %v4209_v13 }
 0x66a   :  { %1902 = vmatpush.bf16.msra.mxu1 %v4175_v2  ;;  %1915 = vmatpush.bf16.msrb.mxu2 %v4186_v6 }
 0x66b   :  { %1928 = vmatpush.bf16.msra.mxu3 %v4188_v7 }
 0x66d   :  { %1890 = vmatpush.bf16.msra.mxu0 %v4253_v33 }
 0x66e   :  { %1903 = vmatpush.bf16.msra.mxu1 %v4231_v21  ;;  %1916 = vmatpush.bf16.msrb.mxu2 %v4242_v28 }
 0x66f   :  { %1929 = vmatpush.bf16.msra.mxu3 %v4244_v29 }
 0x671   :  { %1891 = vmatpush.bf16.msra.mxu0 %v4309_v58 }
 0x672   :  { %1904 = vmatpush.bf16.msra.mxu1 %v4277_v43  ;;  %1917 = vmatpush.bf16.msrb.mxu2 %v4288_v48 }
 0x673   :  { %1930 = vmatpush.bf16.msra.mxu3 %v4303_v54 }
 0x675   :  { %1892 = vmatpush.bf16.msra.mxu0 %v4360_v18 }
 0x676   :  { %1905 = vmatpush.bf16.msra.mxu1 %v4339_v8  ;;  %1918 = vmatpush.bf16.msrb.mxu2 %v4344_v10 }
 0x677   :  { %1931 = vmatpush.bf16.msra.mxu3 %v4368_v24 }
 0x679   :  { %1893 = vmatpush.bf16.msra.mxu0 %v4390_v41 }
 0x67a   :  { %1906 = vmatpush.bf16.msra.mxu1 %v4421_v60  ;;  %1919 = vmatpush.bf16.msrb.mxu2 %v4432_v3 }
 0x67b   :  { %1932 = vmatpush.bf16.msra.mxu3 %v4451_v25 }
 0x68d   :  { %1643 = vadd.xlane.f32.xlu2 %v1642_v4 }
 0x6d8   :  { %v1683_v9 = vpop.f32.mrf.mxu0  ;;  %v1696_v63 = vpop.f32.mrf.mxu1 }
 0x6d9   :  { %v1726_v36 = vadd.f32 %v1683_v9, %v177_v27  ;;  %v1727_v32 = vadd.f32 %v1696_v63, %v246_v39 }
 0x6db   :  { %v1730_v46 = vmul.f32 0.5, %v1726_v36  ;;  %v1734_v19 = vmul.f32 0.5, %v1727_v32 }
 0x6dd   :  { %3707 = vtanh.f32 %v1730_v46 }
 0x6de   :  { %3709 = vtanh.f32 %v1734_v19 }
 0x6df   :  { %v1709_v16 = vpop.f32.mrf.mxu2  ;;  %v1722_v1 = vpop.f32.mrf.mxu3 }
 0x6e0   :  { %v1728_v52 = vadd.f32 %v1709_v16, %v315_v20  ;;  %v1729_v50 = vadd.f32 %v1722_v1, %v384_v0  ;;  %v1685_v62 = vpop.f32.mrf.mxu0  ;;  %v1698_v4 = vpop.f32.mrf.mxu1 }
 0x6e1   :  { %v5272_v62 = vpop.permute.xlu2 %1551 }
 0x6e2   :  { %3711 = vtanh.f32 %v1728_v52  ;;  %v1739_v12 = vmul.f32 0.5, %v1729_v50 }
 0x6e3   :  { %v3708_v27 = vpop.eup %3707 }
 0x6e4   :  { %v3710_v14 = vpop.eup %3709  ;;  %v1732_v39 = vmul.f32 0.5, %v3708_v27  ;;  %3713 = vtanh.f32 %v1739_v12 }
 0x6e5   :  { %v1736_v9 = vmul.f32 0.5, %v3710_v14 }
 0x6e6   :  { %v1733_v63 = vadd.f32 0.5, %v1732_v39 }
 0x6e7   :  { %v1737_v36 = vadd.f32 0.5, %v1736_v9  ;;  %v1711_v32 = vpop.f32.mrf.mxu2  ;;  %v1724_v46 = vpop.f32.mrf.mxu3 }
 0x6e8   :  { %v3712_v37 = vpop.eup %3711  ;;  %v6354_v32 = vld [vmem:[#allocation32_spill] sm:$0xff] }
 0x6e9   :  { %v1743_v19 = vmul.f32 %v1737_v36, %v5205_v40  ;;  %v1744_v17 = vmul.f32 %v3712_v37, %v1733_v63  ;;  %v180_v46 = vadd.f32 %v6354_v32, %v4687_v15  ;;  %v6355_v37 = vld [vmem:[#allocation33_spill] sm:$0xff] }
 0x6ea   :  { %v3714_v11 = vpop.eup %3713 }
 0x6eb   :  { %v5265_v20 = vadd.f32 %v1744_v17, %v1743_v19  ;;  %v1741_v0 = vmul.f32 0.5, %v3714_v11  ;;  %v249_v19 = vadd.f32 %v6355_v37, %v4685_v45 }
 0x6ed   :  { %3715 = vtanh.f32 %v5265_v20  ;;  %v1742_v16 = vadd.f32 0.5, %v1741_v0 }
 0x6f3   :  { %v3716_v1 = vpop.eup %3715 }
 0x6f4   :  { %v5268_v52 = vmul.f32 %v3716_v1, %v1742_v16 }
 0x6f6   :  { %6353 = vst [vmem:[#allocation6_spill] sm:$0xff] %v5268_v52  ;;  %v1779_v50 = vpack.c.bf16 %v5268_v52, %v5268_v52 }
 0x6f8   :  { %1788 = vmatmul.bf16.vlgmr.msrb.gmra.mxu0 %v1779_v50  ;;  %1801 = vmatmul.bf16.vlgmr.msrb.gmra.mxu1 %v1779_v50 }
 0x6f9   :  { %1814 = vmatmul.bf16.vlgmr.msra.gmra.mxu2 %v1779_v50  ;;  %1827 = vmatmul.bf16.vlgmr.msrb.gmra.mxu3 %v1779_v50 }
 0x6fa   :  { %1992 = vmatpush.bf16.msrb.mxu0 %v4064_v30  ;;  %2005 = vmatpush.bf16.msrb.mxu1 %v4038_v22 }
 0x6fb   :  { %2018 = vmatpush.bf16.msra.mxu2 %v4040_v23  ;;  %2031 = vmatpush.bf16.msrb.mxu3 %v4049_v26 }
 0x6fe   :  { %1993 = vmatpush.bf16.msrb.mxu0 %v4107_v44  ;;  %2006 = vmatpush.bf16.msrb.mxu1 %v4075_v34 }
 0x6ff   :  { %2019 = vmatpush.bf16.msra.mxu2 %v4077_v35  ;;  %2032 = vmatpush.bf16.msrb.mxu3 %v4086_v38 }
 0x700   :  { %v1644_v40 = vpop.xlane.xlu2 %1643 }
 0x701   :  { %v1645_v11 = vadd.f32 %v5137_v61, %v1644_v40 }
 0x702   :  { %1994 = vmatpush.bf16.msrb.mxu0 %v4151_v59  ;;  %2007 = vmatpush.bf16.msrb.mxu1 %v4129_v51 }
 0x703   :  { %v5286_v4 = vmax.f32 %v5212_v42, %v1645_v11  ;;  %2020 = vmatpush.bf16.msra.mxu2 %v4140_v55  ;;  %2033 = vmatpush.bf16.msrb.mxu3 %v4142_v56 }
 0x705   :  { %v1647_v12 = vsub.f32 %v5212_v42, %v5286_v4  ;;  %v1650_v27 = vsub.f32 %v1645_v11, %v5286_v4  ;;  %v1558_v11 = vpop.permute.xlu1 %1557 }
 0x706   :  { %1995 = vmatpush.bf16.msrb.mxu0 %v4209_v13  ;;  %2008 = vmatpush.bf16.msrb.mxu1 %v4175_v2 }
 0x707   :  { %v1648_v14 = vmul.f32 1.442695, %v1647_v12  ;;  %v1651_v39 = vmul.f32 1.442695, %v1650_v27  ;;  %2021 = vmatpush.bf16.msra.mxu2 %v4186_v6  ;;  %2034 = vmatpush.bf16.msrb.mxu3 %v4188_v7  ;;  %v6356_v12 = vld [vmem:[#allocation35_spill] sm:$0xff] }
 0x708   :  { %v387_v27 = vadd.f32 %v6356_v12, %v4695_v31 }
 0x709   :  { %3717 = vpow2.f32 %v1648_v14  ;;  %v6357_v14 = vld [vmem:[#allocation42_spill] sm:$0xff] }
 0x70a   :  { %3719 = vpow2.f32 %v1651_v39  ;;  %1996 = vmatpush.bf16.msrb.mxu0 %v4253_v33  ;;  %2009 = vmatpush.bf16.msrb.mxu1 %v4231_v21  ;;  %v318_v39 = vadd.f32 %v6357_v14, %v4699_v53 }
 0x70b   :  { %2022 = vmatpush.bf16.msra.mxu2 %v4242_v28  ;;  %2035 = vmatpush.bf16.msrb.mxu3 %v4244_v29 }
 0x70e   :  { %1997 = vmatpush.bf16.msrb.mxu0 %v4309_v58  ;;  %2010 = vmatpush.bf16.msrb.mxu1 %v4277_v43 }
 0x70f   :  { %v3718_v42 = vpop.eup %3717  ;;  %2023 = vmatpush.bf16.msra.mxu2 %v4288_v48  ;;  %2036 = vmatpush.bf16.msrb.mxu3 %v4303_v54 }
 0x710   :  { %v3720_v9 = vpop.eup %3719  ;;  %v1653_v63 = vmul.f32 %v3718_v42, %v5229_v57  ;;  %1657 = vperm.xlu1 %3579, %v3718_v42   ;;  %v1748_v57 = vmul.f32 %v5106_v5, %v5268_v52 }
 0x711   :  { %1663 = vperm.xlu0 %3578, %v3720_v9  }
 0x712   :  { %v5306_v36 = vadd.f32 %v3720_v9, %v1653_v63  ;;  %1998 = vmatpush.bf16.msrb.mxu0 %v4360_v18  ;;  %2011 = vmatpush.bf16.msrb.mxu1 %v4339_v8  ;;  %v1560_v63 = vmul.f32 %v1558_v11, %v5153_v47 }
 0x713   :  { %2024 = vmatpush.bf16.msra.mxu2 %v4344_v10  ;;  %2037 = vmatpush.bf16.msrb.mxu3 %v4368_v24 }
 0x716   :  { %1999 = vmatpush.bf16.msrb.mxu0 %v4390_v41  ;;  %2012 = vmatpush.bf16.msrb.mxu1 %v4421_v60 }
 0x717   :  { %2025 = vmatpush.bf16.msra.mxu2 %v4432_v3  ;;  %2038 = vmatpush.bf16.msrb.mxu3 %v4451_v25 }
 0x73a   :  { %1749 = vadd.xlane.f32.xlu1 %v1748_v57 }
 0x775   :  { %v1789_v17 = vpop.f32.mrf.mxu0  ;;  %v1802_v0 = vpop.f32.mrf.mxu1 }
 0x776   :  { %v1832_v16 = vadd.f32 %v1789_v17, %v180_v46  ;;  %v1833_v1 = vadd.f32 %v1802_v0, %v249_v19  ;;  %v1554_v19 = vmul.f32 %v5272_v62, %v5194_v49 }
 0x778   :  { %v1836_v50 = vmul.f32 0.5, %v1832_v16  ;;  %v1840_v40 = vmul.f32 0.5, %v1833_v1 }
 0x77a   :  { %3721 = vtanh.f32 %v1836_v50  ;;  %v1561_v50 = vadd.f32 %v1560_v63, %v1554_v19 }
 0x77b   :  { %3723 = vtanh.f32 %v1840_v40 }
 0x77c   :  { %v1815_v42 = vpop.f32.mrf.mxu2  ;;  %v1828_v9 = vpop.f32.mrf.mxu3 }
 0x77d   :  { %v1834_v57 = vadd.f32 %v1815_v42, %v318_v39  ;;  %v1835_v32 = vadd.f32 %v1828_v9, %v387_v27  ;;  %v1791_v37 = vpop.f32.mrf.mxu0  ;;  %v1804_v46 = vpop.f32.mrf.mxu1 }
 0x77f   :  { %3725 = vtanh.f32 %v1834_v57  ;;  %v1845_v17 = vmul.f32 0.5, %v1835_v32 }
 0x780   :  { %v3722_v0 = vpop.eup %3721 }
 0x781   :  { %v3724_v16 = vpop.eup %3723  ;;  %v1838_v1 = vmul.f32 0.5, %v3722_v0  ;;  %3727 = vtanh.f32 %v1845_v17 }
 0x782   :  { %v1842_v12 = vmul.f32 0.5, %v3724_v16  ;;  %v1658_v40 = vpop.permute.xlu1 %1657 }
 0x783   :  { %v1839_v14 = vadd.f32 0.5, %v1838_v1  ;;  %v5329_v52 = vmul.f32 %v1658_v40, %v1561_v50 }
 0x784   :  { %v1843_v47 = vadd.f32 0.5, %v1842_v12  ;;  %v1817_v11 = vpop.f32.mrf.mxu2  ;;  %v1830_v27 = vpop.f32.mrf.mxu3 }
 0x785   :  { %v3726_v39 = vpop.eup %3725  ;;  %v6358_v11 = vld [vmem:[#allocation36_spill] sm:$0xff] }
 0x786   :  { %v1849_v42 = vmul.f32 %v1843_v47, %v5265_v20  ;;  %v1850_v9 = vmul.f32 %v3726_v39, %v1839_v14  ;;  %v182_v27 = vadd.f32 %v6358_v11, %v4687_v15  ;;  %v6359_v39 = vld [vmem:[#allocation37_spill] sm:$0xff] }
 0x787   :  { %v3728_v49 = vpop.eup %3727 }
 0x788   :  { %v5332_v62 = vadd.f32 %v1850_v9, %v1849_v42  ;;  %v1847_v57 = vmul.f32 0.5, %v3728_v49  ;;  %v251_v42 = vadd.f32 %v6359_v39, %v4685_v45 }
 0x78a   :  { %3729 = vtanh.f32 %v5332_v62  ;;  %v1848_v63 = vadd.f32 0.5, %v1847_v57 }
 0x790   :  { %v3730_v32 = vpop.eup %3729 }
 0x791   :  { %v5335_v37 = vmul.f32 %v3730_v32, %v1848_v63 }
 0x793   :  { %v1885_v46 = vpack.c.bf16 %v5335_v37, %v5335_v37  ;;  %v1854_v47 = vmul.f32 %v5106_v5, %v5335_v37 }
 0x795   :  { %1894 = vmatmul.bf16.vlgmr.msra.gmra.mxu0 %v1885_v46  ;;  %1907 = vmatmul.bf16.vlgmr.msra.gmra.mxu1 %v1885_v46 }
 0x796   :  { %1920 = vmatmul.bf16.vlgmr.msrb.gmra.mxu2 %v1885_v46  ;;  %1933 = vmatmul.bf16.vlgmr.msra.gmra.mxu3 %v1885_v46  ;;  %v6360_v46 = vld [vmem:[#allocation39_spill] sm:$0xff] }
 0x797   :  { %2098 = vmatpush.bf16.msra.mxu0 %v4064_v30  ;;  %2111 = vmatpush.bf16.msra.mxu1 %v4038_v22 }
 0x798   :  { %2124 = vmatpush.bf16.msrb.mxu2 %v4040_v23  ;;  %2137 = vmatpush.bf16.msra.mxu3 %v4049_v26 }
 0x79b   :  { %2099 = vmatpush.bf16.msra.mxu0 %v4107_v44  ;;  %2112 = vmatpush.bf16.msra.mxu1 %v4075_v34 }
 0x79c   :  { %2125 = vmatpush.bf16.msrb.mxu2 %v4077_v35  ;;  %2138 = vmatpush.bf16.msra.mxu3 %v4086_v38 }
 0x79f   :  { %2100 = vmatpush.bf16.msra.mxu0 %v4151_v59  ;;  %2113 = vmatpush.bf16.msra.mxu1 %v4129_v51 }
 0x7a0   :  { %2126 = vmatpush.bf16.msrb.mxu2 %v4140_v55  ;;  %2139 = vmatpush.bf16.msra.mxu3 %v4142_v56 }
 0x7a3   :  { %2101 = vmatpush.bf16.msra.mxu0 %v4209_v13  ;;  %2114 = vmatpush.bf16.msra.mxu1 %v4175_v2 }
 0x7a4   :  { %2127 = vmatpush.bf16.msrb.mxu2 %v4186_v6  ;;  %2140 = vmatpush.bf16.msra.mxu3 %v4188_v7 }
 0x7a7   :  { %2102 = vmatpush.bf16.msra.mxu0 %v4253_v33  ;;  %2115 = vmatpush.bf16.msra.mxu1 %v4231_v21 }
 0x7a8   :  { %2128 = vmatpush.bf16.msrb.mxu2 %v4242_v28  ;;  %2141 = vmatpush.bf16.msra.mxu3 %v4244_v29 }
 0x7ab   :  { %2103 = vmatpush.bf16.msra.mxu0 %v4309_v58  ;;  %2116 = vmatpush.bf16.msra.mxu1 %v4277_v43 }
 0x7ac   :  { %2129 = vmatpush.bf16.msrb.mxu2 %v4288_v48  ;;  %2142 = vmatpush.bf16.msra.mxu3 %v4303_v54 }
 0x7ad   :  { %v1750_v20 = vpop.xlane.xlu1 %1749 }
 0x7ae   :  { %v1751_v19 = vadd.f32 %v5137_v61, %v1750_v20  ;;  %v389_v20 = vadd.f32 %v6360_v46, %v4695_v31 }
 0x7af   :  { %2104 = vmatpush.bf16.msra.mxu0 %v4360_v18  ;;  %2117 = vmatpush.bf16.msra.mxu1 %v4339_v8 }
 0x7b0   :  { %v5367_v17 = vmax.f32 %v5286_v4, %v1751_v19  ;;  %2130 = vmatpush.bf16.msrb.mxu2 %v4344_v10  ;;  %2143 = vmatpush.bf16.msra.mxu3 %v4368_v24 }
 0x7b2   :  { %v1753_v0 = vsub.f32 %v5286_v4, %v5367_v17  ;;  %v1756_v16 = vsub.f32 %v1751_v19, %v5367_v17  ;;  %v6361_v19 = vld [vmem:[#allocation46_spill] sm:$0xff] }
 0x7b3   :  { %2105 = vmatpush.bf16.msra.mxu0 %v4390_v41  ;;  %2118 = vmatpush.bf16.msra.mxu1 %v4421_v60 }
 0x7b4   :  { %v1754_v1 = vmul.f32 1.442695, %v1753_v0  ;;  %v1757_v50 = vmul.f32 1.442695, %v1756_v16  ;;  %2131 = vmatpush.bf16.msrb.mxu2 %v4432_v3  ;;  %2144 = vmatpush.bf16.msra.mxu3 %v4451_v25  ;;  %v320_v0 = vadd.f32 %v6361_v19, %v4699_v53 }
 0x7b6   :  { %3731 = vpow2.f32 %v1754_v1 }
 0x7b7   :  { %3733 = vpow2.f32 %v1757_v50 }
 0x7bc   :  { %v3732_v12 = vpop.eup %3731 }
 0x7bd   :  { %v3734_v40 = vpop.eup %3733  ;;  %v1759_v14 = vmul.f32 %v3732_v12, %v5306_v36  ;;  %1763 = vperm.xlu2 %3580, %v3732_v12  }
 0x7be   :  { %1769 = vperm.xlu0 %3578, %v3734_v40  }
 0x7bf   :  { %v5379_v4 = vadd.f32 %v3734_v40, %v1759_v14 }
 0x7e8   :  { %1855 = vadd.xlane.f32.xlu0 %v1854_v47 }
 0x812   :  { %v1895_v9 = vpop.f32.mrf.mxu0  ;;  %v1908_v49 = vpop.f32.mrf.mxu1 }
 0x813   :  { %v1938_v57 = vadd.f32 %v1895_v9, %v182_v27  ;;  %v1939_v63 = vadd.f32 %v1908_v49, %v251_v42 }
 0x815   :  { %v1942_v32 = vmul.f32 0.5, %v1938_v57  ;;  %v1946_v36 = vmul.f32 0.5, %v1939_v63 }
 0x817   :  { %3735 = vtanh.f32 %v1942_v32 }
 0x818   :  { %3737 = vtanh.f32 %v1946_v36 }
 0x819   :  { %v1921_v16 = vpop.f32.mrf.mxu2  ;;  %v1934_v1 = vpop.f32.mrf.mxu3 }
 0x81a   :  { %v1940_v50 = vadd.f32 %v1921_v16, %v320_v0  ;;  %v1941_v12 = vadd.f32 %v1934_v1, %v389_v20  ;;  %v1897_v40 = vpop.f32.mrf.mxu0  ;;  %v1910_v14 = vpop.f32.mrf.mxu1  ;;  %v6362_v1 = vld [vmem:[#allocation90_spill] sm:$0xff] }
 0x81b   :  { %v1664_v20 = vpop.permute.xlu0 %1663 }
 0x81c   :  { %3739 = vtanh.f32 %v1940_v50  ;;  %v1951_v47 = vmul.f32 0.5, %v1941_v12  ;;  %v1666_v50 = vmul.f32 %v1664_v20, %v6362_v1 }
 0x81d   :  { %v3736_v11 = vpop.eup %3735 }
 0x81e   :  { %v3738_v27 = vpop.eup %3737  ;;  %v1944_v39 = vmul.f32 0.5, %v3736_v11  ;;  %3741 = vtanh.f32 %v1951_v47  ;;  %v1764_v47 = vpop.permute.xlu2 %1763  ;;  %v1667_v11 = vadd.f32 %v1666_v50, %v5329_v52 }
 0x81f   :  { %v1948_v42 = vmul.f32 0.5, %v3738_v27 }
 0x820   :  { %v1945_v9 = vadd.f32 0.5, %v1944_v39  ;;  %v1766_v39 = vmul.f32 %v1764_v47, %v1667_v11 }
 0x821   :  { %v1949_v49 = vadd.f32 0.5, %v1948_v42  ;;  %v1923_v57 = vpop.f32.mrf.mxu2  ;;  %v1936_v63 = vpop.f32.mrf.mxu3  ;;  %v6363_v42 = vld [vmem:[#allocation6_spill] sm:$0xff] }
 0x822   :  { %v3740_v32 = vpop.eup %3739 }
 0x823   :  { %v1955_v36 = vmul.f32 %v1949_v49, %v5332_v62  ;;  %v1956_v46 = vmul.f32 %v3740_v32, %v1945_v9 }
 0x824   :  { %v3742_v19 = vpop.eup %3741 }
 0x825   :  { %v5392_v0 = vadd.f32 %v1956_v46, %v1955_v36  ;;  %v1953_v16 = vmul.f32 0.5, %v3742_v19 }
 0x827   :  { %3743 = vtanh.f32 %v5392_v0  ;;  %v1954_v12 = vadd.f32 0.5, %v1953_v16 }
 0x82d   :  { %v3744_v40 = vpop.eup %3743 }
 0x82e   :  { %v5396_v14 = vmul.f32 %v3744_v40, %v1954_v12  ;;  %v6365_v40 = vld [vmem:[#allocation41_spill] sm:$0xff] }
 0x82f   :  { %v254_v47 = vadd.f32 %v6365_v40, %v4685_v45 }
 0x830   :  { %v1991_v62 = vpack.c.bf16 %v5396_v14, %v5396_v14  ;;  %v1770_v27 = vpop.permute.xlu0 %1769 }
 0x831   :  { %v1772_v9 = vmul.f32 %v1770_v27, %v6363_v42 }
 0x832   :  { %2000 = vmatmul.bf16.vlgmr.msrb.gmra.mxu0 %v1991_v62  ;;  %2013 = vmatmul.bf16.vlgmr.msrb.gmra.mxu1 %v1991_v62 }
 0x833   :  { %2026 = vmatmul.bf16.vlgmr.msra.gmra.mxu2 %v1991_v62  ;;  %2039 = vmatmul.bf16.vlgmr.msrb.gmra.mxu3 %v1991_v62  ;;  %v5402_v49 = vadd.f32 %v1772_v9, %v1766_v39  ;;  %v6366_v9 = vld [vmem:[#allocation43_spill] sm:$0xff] }
 0x834   :  { %2204 = vmatpush.bf16.msrb.mxu0 %v4064_v30  ;;  %2217 = vmatpush.bf16.msrb.mxu1 %v4038_v22 }
 0x835   :  { %2230 = vmatpush.bf16.msra.mxu2 %v4040_v23  ;;  %2243 = vmatpush.bf16.msrb.mxu3 %v4049_v26 }
 0x838   :  { %2205 = vmatpush.bf16.msrb.mxu0 %v4107_v44  ;;  %2218 = vmatpush.bf16.msrb.mxu1 %v4075_v34 }
 0x839   :  { %2231 = vmatpush.bf16.msra.mxu2 %v4077_v35  ;;  %2244 = vmatpush.bf16.msrb.mxu3 %v4086_v38 }
 0x83c   :  { %2206 = vmatpush.bf16.msrb.mxu0 %v4151_v59  ;;  %2219 = vmatpush.bf16.msrb.mxu1 %v4129_v51 }
 0x83d   :  { %2232 = vmatpush.bf16.msra.mxu2 %v4140_v55  ;;  %2245 = vmatpush.bf16.msrb.mxu3 %v4142_v56 }
 0x840   :  { %2207 = vmatpush.bf16.msrb.mxu0 %v4209_v13  ;;  %2220 = vmatpush.bf16.msrb.mxu1 %v4175_v2 }
 0x841   :  { %2233 = vmatpush.bf16.msra.mxu2 %v4186_v6  ;;  %2246 = vmatpush.bf16.msrb.mxu3 %v4188_v7 }
 0x844   :  { %2208 = vmatpush.bf16.msrb.mxu0 %v4253_v33  ;;  %2221 = vmatpush.bf16.msrb.mxu1 %v4231_v21 }
 0x845   :  { %2234 = vmatpush.bf16.msra.mxu2 %v4242_v28  ;;  %2247 = vmatpush.bf16.msrb.mxu3 %v4244_v29 }
 0x848   :  { %2209 = vmatpush.bf16.msrb.mxu0 %v4309_v58  ;;  %2222 = vmatpush.bf16.msrb.mxu1 %v4277_v43 }
 0x849   :  { %2235 = vmatpush.bf16.msra.mxu2 %v4288_v48  ;;  %2248 = vmatpush.bf16.msrb.mxu3 %v4303_v54 }
 0x84c   :  { %2210 = vmatpush.bf16.msrb.mxu0 %v4360_v18  ;;  %2223 = vmatpush.bf16.msrb.mxu1 %v4339_v8 }
 0x84d   :  { %2236 = vmatpush.bf16.msra.mxu2 %v4344_v10  ;;  %2249 = vmatpush.bf16.msrb.mxu3 %v4368_v24 }
 0x850   :  { %2211 = vmatpush.bf16.msrb.mxu0 %v4390_v41  ;;  %2224 = vmatpush.bf16.msrb.mxu1 %v4421_v60 }
 0x851   :  { %2237 = vmatpush.bf16.msra.mxu2 %v4432_v3  ;;  %2250 = vmatpush.bf16.msrb.mxu3 %v4451_v25 }
 0x85b   :  { %v1856_v52 = vpop.xlane.xlu0 %1855 }
 0x85c   :  { %v1857_v57 = vadd.f32 %v5137_v61, %v1856_v52  ;;  %v1960_v61 = vmul.f32 %v5106_v5, %v5396_v14  ;;  %v392_v52 = vadd.f32 %v6366_v9, %v4695_v31 }
 0x85e   :  { %v5438_v63 = vmax.f32 %v5367_v17, %v1857_v57 }
 0x860   :  { %v1859_v32 = vsub.f32 %v5367_v17, %v5438_v63  ;;  %v1862_v36 = vsub.f32 %v1857_v57, %v5438_v63  ;;  %v6364_v17 = vld [vmem:[#allocation40_spill] sm:$0xff]  ;;  %v6367_v57 = vld [vmem:[#allocation50_spill] sm:$0xff] }
 0x861   :  { %v185_v12 = vadd.f32 %v6364_v17, %v4687_v15  ;;  %v323_v5 = vadd.f32 %v6367_v57, %v4699_v53 }
 0x862   :  { %v1860_v46 = vmul.f32 1.442695, %v1859_v32  ;;  %v1863_v19 = vmul.f32 1.442695, %v1862_v36 }
 0x864   :  { %3745 = vpow2.f32 %v1860_v46 }
 0x865   :  { %3747 = vpow2.f32 %v1863_v19 }
 0x86a   :  { %v3746_v20 = vpop.eup %3745 }
 0x86b   :  { %v3748_v16 = vpop.eup %3747  ;;  %v1865_v1 = vmul.f32 %v3746_v20, %v5379_v4  ;;  %1869 = vperm.xlu2 %3580, %v3746_v20  }
 0x86c   :  { %1875 = vperm.xlu1 %3579, %v3748_v16  }
 0x86d   :  { %v5444_v50 = vadd.f32 %v3748_v16, %v1865_v1 }
 0x894   :  { %1961 = vadd.xlane.f32.xlu2 %v1960_v61 }
 0x8af   :  { %v2001_v11 = vpop.f32.mrf.mxu0  ;;  %v2014_v62 = vpop.f32.mrf.mxu1 }
 0x8b0   :  { %v2044_v27 = vadd.f32 %v2001_v11, %v185_v12  ;;  %v2045_v39 = vadd.f32 %v2014_v62, %v254_v47 }
 0x8b2   :  { %v2048_v42 = vmul.f32 0.5, %v2044_v27  ;;  %v2052_v4 = vmul.f32 0.5, %v2045_v39 }
 0x8b4   :  { %3749 = vtanh.f32 %v2048_v42 }
 0x8b5   :  { %3751 = vtanh.f32 %v2052_v4 }
 0x8b6   :  { %v2027_v32 = vpop.f32.mrf.mxu2  ;;  %v2040_v36 = vpop.f32.mrf.mxu3 }
 0x8b7   :  { %v2046_v46 = vadd.f32 %v2027_v32, %v323_v5  ;;  %v2047_v19 = vadd.f32 %v2040_v36, %v392_v52  ;;  %v2003_v20 = vpop.f32.mrf.mxu0  ;;  %v2016_v16 = vpop.f32.mrf.mxu1 }
 0x8b8   :  { %v5498_v20 = vld [vmem:[#allocation3] ss:$0 sm:$0xff] }
 0x8b9   :  { %3753 = vtanh.f32 %v2046_v46  ;;  %v2057_v1 = vmul.f32 0.5, %v2047_v19 }
 0x8ba   :  { %v3750_v61 = vpop.eup %3749 }
 0x8bb   :  { %v3752_v17 = vpop.eup %3751  ;;  %v2050_v12 = vmul.f32 0.5, %v3750_v61  ;;  %3755 = vtanh.f32 %v2057_v1 }
 0x8bc   :  { %v2054_v40 = vmul.f32 0.5, %v3752_v17 }
 0x8bd   :  { %v2051_v47 = vadd.f32 0.5, %v2050_v12 }
 0x8be   :  { %v2055_v11 = vadd.f32 0.5, %v2054_v40  ;;  %v2029_v62 = vpop.f32.mrf.mxu2  ;;  %v2042_v27 = vpop.f32.mrf.mxu3 }
 0x8bf   :  { %v3754_v39 = vpop.eup %3753 }
 0x8c0   :  { %v2061_v42 = vmul.f32 %v2055_v11, %v5392_v0  ;;  %v2062_v4 = vmul.f32 %v3754_v39, %v2051_v47  ;;  %v5513_v39 = vld [vmem:[%s6195_s4] ss:$0 sm:$0xff] }
 0x8c1   :  { %v3756_v9 = vpop.eup %3755 }
 0x8c2   :  { %v5457_v57 = vadd.f32 %v2062_v4, %v2061_v42  ;;  %v2059_v52 = vmul.f32 0.5, %v3756_v9  ;;  %v6369_v42 = vld [vmem:[#allocation44_spill] sm:$0xff]  ;;  %v6370_v9 = vld [vmem:[#allocation45_spill] sm:$0xff] }
 0x8c3   :  { %v187_v4 = vadd.f32 %v6369_v42, %v4687_v15 }
 0x8c4   :  { %3757 = vtanh.f32 %v5457_v57  ;;  %v2060_v5 = vadd.f32 0.5, %v2059_v52  ;;  %v256_v52 = vadd.f32 %v6370_v9, %v4685_v45 }
 0x8c5   :  { %v5496_v0 = vpop.permute.xlu2 %1869 }
 0x8ca   :  { %v3758_v32 = vpop.eup %3757 }
 0x8cb   :  { %v5460_v36 = vmul.f32 %v3758_v32, %v2060_v5 }
 0x8cd   :  { %6368 = vst [vmem:[#allocation7_spill] sm:$0xff] %v5460_v36  ;;  %v2097_v46 = vpack.c.bf16 %v5460_v36, %v5460_v36 }
 0x8cf   :  { %2106 = vmatmul.bf16.vlgmr.msra.gmra.mxu0 %v2097_v46  ;;  %2119 = vmatmul.bf16.vlgmr.msra.gmra.mxu1 %v2097_v46 }
 0x8d0   :  { %2132 = vmatmul.bf16.vlgmr.msrb.gmra.mxu2 %v2097_v46  ;;  %2145 = vmatmul.bf16.vlgmr.msra.gmra.mxu3 %v2097_v46 }
 0x8d1   :  { %2310 = vmatpush.bf16.msra.mxu0 %v4064_v30  ;;  %2323 = vmatpush.bf16.msra.mxu1 %v4038_v22 }
 0x8d2   :  { %2336 = vmatpush.bf16.msrb.mxu2 %v4040_v23  ;;  %2349 = vmatpush.bf16.msra.mxu3 %v4049_v26 }
 0x8d5   :  { %2311 = vmatpush.bf16.msra.mxu0 %v4107_v44  ;;  %2324 = vmatpush.bf16.msra.mxu1 %v4075_v34 }
 0x8d6   :  { %2337 = vmatpush.bf16.msrb.mxu2 %v4077_v35  ;;  %2350 = vmatpush.bf16.msra.mxu3 %v4086_v38 }
 0x8d9   :  { %2312 = vmatpush.bf16.msra.mxu0 %v4151_v59  ;;  %2325 = vmatpush.bf16.msra.mxu1 %v4129_v51 }
 0x8da   :  { %2338 = vmatpush.bf16.msrb.mxu2 %v4140_v55  ;;  %2351 = vmatpush.bf16.msra.mxu3 %v4142_v56 }
 0x8dd   :  { %2313 = vmatpush.bf16.msra.mxu0 %v4209_v13  ;;  %2326 = vmatpush.bf16.msra.mxu1 %v4175_v2 }
 0x8de   :  { %2339 = vmatpush.bf16.msrb.mxu2 %v4186_v6  ;;  %2352 = vmatpush.bf16.msra.mxu3 %v4188_v7 }
 0x8e1   :  { %2314 = vmatpush.bf16.msra.mxu0 %v4253_v33  ;;  %2327 = vmatpush.bf16.msra.mxu1 %v4231_v21 }
 0x8e2   :  { %2340 = vmatpush.bf16.msrb.mxu2 %v4242_v28  ;;  %2353 = vmatpush.bf16.msra.mxu3 %v4244_v29 }
 0x8e5   :  { %2315 = vmatpush.bf16.msra.mxu0 %v4309_v58  ;;  %2328 = vmatpush.bf16.msra.mxu1 %v4277_v43 }
 0x8e6   :  { %2341 = vmatpush.bf16.msrb.mxu2 %v4288_v48  ;;  %2354 = vmatpush.bf16.msra.mxu3 %v4303_v54 }
 0x8e9   :  { %2316 = vmatpush.bf16.msra.mxu0 %v4360_v18  ;;  %2329 = vmatpush.bf16.msra.mxu1 %v4339_v8 }
 0x8ea   :  { %2342 = vmatpush.bf16.msrb.mxu2 %v4344_v10  ;;  %2355 = vmatpush.bf16.msra.mxu3 %v4368_v24 }
 0x8ed   :  { %2317 = vmatpush.bf16.msra.mxu0 %v4390_v41  ;;  %2330 = vmatpush.bf16.msra.mxu1 %v4421_v60 }
 0x8ee   :  { %2343 = vmatpush.bf16.msrb.mxu2 %v4432_v3  ;;  %2356 = vmatpush.bf16.msra.mxu3 %v4451_v25 }
 0x907   :  { %v1962_v19 = vpop.xlane.xlu2 %1961 }
 0x908   :  { %v1963_v16 = vadd.f32 %v5498_v20, %v1962_v19 }
 0x90a   :  { %v5502_v1 = vmax.f32 %v5438_v63, %v1963_v16 }
 0x90c   :  { %v1965_v61 = vsub.f32 %v5438_v63, %v5502_v1  ;;  %v1968_v17 = vsub.f32 %v1963_v16, %v5502_v1  ;;  %v2066_v63 = vmul.f32 %v5513_v39, %v5460_v36 }
 0x90e   :  { %v1966_v12 = vmul.f32 1.442695, %v1965_v61  ;;  %v1969_v40 = vmul.f32 1.442695, %v1968_v17  ;;  %v6371_v61 = vld [vmem:[#allocation47_spill] sm:$0xff] }
 0x90f   :  { %v394_v17 = vadd.f32 %v6371_v61, %v4695_v31 }
 0x910   :  { %3759 = vpow2.f32 %v1966_v12  ;;  %v6372_v12 = vld [vmem:[#allocation54_spill] sm:$0xff] }
 0x911   :  { %3761 = vpow2.f32 %v1969_v40  ;;  %v325_v40 = vadd.f32 %v6372_v12, %v4699_v53 }
 0x916   :  { %v3760_v47 = vpop.eup %3759 }
 0x917   :  { %v3762_v11 = vpop.eup %3761  ;;  %v1971_v62 = vmul.f32 %v3760_v47, %v5444_v50  ;;  %1975 = vperm.xlu0 %3578, %v3760_v47  }
 0x918   :  { %1981 = vperm.xlu1 %3579, %v3762_v11  }
 0x919   :  { %v5508_v27 = vadd.f32 %v3762_v11, %v1971_v62 }
 0x942   :  { %2067 = vadd.xlane.f32.xlu1 %v2066_v63 }
 0x94c   :  { %v2107_v50 = vpop.f32.mrf.mxu0  ;;  %v2120_v5 = vpop.f32.mrf.mxu1 }
 0x94d   :  { %v2150_v32 = vadd.f32 %v2107_v50, %v187_v4  ;;  %v2151_v46 = vadd.f32 %v2120_v5, %v256_v52 }
 0x94f   :  { %v2154_v19 = vmul.f32 0.5, %v2150_v32  ;;  %v2158_v16 = vmul.f32 0.5, %v2151_v46 }
 0x951   :  { %3763 = vtanh.f32 %v2154_v19 }
 0x952   :  { %3765 = vtanh.f32 %v2158_v16 }
 0x953   :  { %v2133_v47 = vpop.f32.mrf.mxu2  ;;  %v2146_v11 = vpop.f32.mrf.mxu3 }
 0x954   :  { %v2152_v62 = vadd.f32 %v2133_v47, %v325_v40  ;;  %v2153_v63 = vadd.f32 %v2146_v11, %v394_v17  ;;  %v2109_v42 = vpop.f32.mrf.mxu0  ;;  %v2122_v9 = vpop.f32.mrf.mxu1 }
 0x956   :  { %3767 = vtanh.f32 %v2152_v62  ;;  %v2163_v36 = vmul.f32 0.5, %v2153_v63 }
 0x957   :  { %v3764_v4 = vpop.eup %3763 }
 0x958   :  { %v3766_v52 = vpop.eup %3765  ;;  %v2156_v50 = vmul.f32 0.5, %v3764_v4  ;;  %3769 = vtanh.f32 %v2163_v36 }
 0x959   :  { %v2160_v5 = vmul.f32 0.5, %v3766_v52 }
 0x95a   :  { %v2157_v32 = vadd.f32 0.5, %v2156_v50 }
 0x95b   :  { %v2161_v46 = vadd.f32 0.5, %v2160_v5  ;;  %v2135_v19 = vpop.f32.mrf.mxu2  ;;  %v2148_v61 = vpop.f32.mrf.mxu3 }
 0x95c   :  { %v3768_v31 = vpop.eup %3767 }
 0x95d   :  { %v2167_v16 = vmul.f32 %v2161_v46, %v5457_v57  ;;  %v2168_v12 = vmul.f32 %v3768_v31, %v2157_v32  ;;  %v1876_v31 = vpop.permute.xlu1 %1875  ;;  %v1872_v57 = vmul.f32 %v5496_v0, %v5402_v49 }
 0x95e   :  { %v3770_v53 = vpop.eup %3769 }
 0x95f   :  { %v5526_v40 = vadd.f32 %v2168_v12, %v2167_v16  ;;  %v2165_v17 = vmul.f32 0.5, %v3770_v53  ;;  %v1878_v53 = vmul.f32 %v1876_v31, %v5335_v37 }
 0x961   :  { %3771 = vtanh.f32 %v5526_v40  ;;  %v2166_v47 = vadd.f32 0.5, %v2165_v17  ;;  %v1879_v63 = vadd.f32 %v1878_v53, %v1872_v57  ;;  %v6374_v17 = vld [vmem:[#allocation48_spill] sm:$0xff] }
 0x967   :  { %v3772_v11 = vpop.eup %3771 }
 0x968   :  { %v5529_v62 = vmul.f32 %v3772_v11, %v2166_v47  ;;  %v190_v47 = vadd.f32 %v6374_v17, %v4687_v15  ;;  %v6375_v11 = vld [vmem:[#allocation49_spill] sm:$0xff] }
 0x96a   :  { %6373 = vst [vmem:[#allocation14_spill] sm:$0xff] %v5529_v62  ;;  %v2203_v36 = vpack.c.bf16 %v5529_v62, %v5529_v62 }
 0x96c   :  { %2212 = vmatmul.bf16.vlgmr.msrb.gmra.mxu0 %v2203_v36  ;;  %2225 = vmatmul.bf16.vlgmr.msrb.gmra.mxu1 %v2203_v36 }
 0x96d   :  { %2238 = vmatmul.bf16.vlgmr.msra.gmra.mxu2 %v2203_v36  ;;  %2251 = vmatmul.bf16.vlgmr.msrb.gmra.mxu3 %v2203_v36 }
 0x96e   :  { %2416 = vmatpush.bf16.msrb.mxu0 %v4064_v30  ;;  %2429 = vmatpush.bf16.msrb.mxu1 %v4038_v22 }
 0x96f   :  { %2442 = vmatpush.bf16.msra.mxu2 %v4040_v23  ;;  %2455 = vmatpush.bf16.msrb.mxu3 %v4049_v26 }
 0x972   :  { %2417 = vmatpush.bf16.msrb.mxu0 %v4107_v44  ;;  %2430 = vmatpush.bf16.msrb.mxu1 %v4075_v34 }
 0x973   :  { %2443 = vmatpush.bf16.msra.mxu2 %v4077_v35  ;;  %2456 = vmatpush.bf16.msrb.mxu3 %v4086_v38 }
 0x976   :  { %2418 = vmatpush.bf16.msrb.mxu0 %v4151_v59  ;;  %2431 = vmatpush.bf16.msrb.mxu1 %v4129_v51 }
 0x977   :  { %2444 = vmatpush.bf16.msra.mxu2 %v4140_v55  ;;  %2457 = vmatpush.bf16.msrb.mxu3 %v4142_v56 }
 0x97a   :  { %2419 = vmatpush.bf16.msrb.mxu0 %v4209_v13  ;;  %2432 = vmatpush.bf16.msrb.mxu1 %v4175_v2 }
 0x97b   :  { %2445 = vmatpush.bf16.msra.mxu2 %v4186_v6  ;;  %2458 = vmatpush.bf16.msrb.mxu3 %v4188_v7 }
 0x97e   :  { %2420 = vmatpush.bf16.msrb.mxu0 %v4253_v33  ;;  %2433 = vmatpush.bf16.msrb.mxu1 %v4231_v21 }
 0x97f   :  { %2446 = vmatpush.bf16.msra.mxu2 %v4242_v28  ;;  %2459 = vmatpush.bf16.msrb.mxu3 %v4244_v29 }
 0x982   :  { %2421 = vmatpush.bf16.msrb.mxu0 %v4309_v58  ;;  %2434 = vmatpush.bf16.msrb.mxu1 %v4277_v43 }
 0x983   :  { %2447 = vmatpush.bf16.msra.mxu2 %v4288_v48  ;;  %2460 = vmatpush.bf16.msrb.mxu3 %v4303_v54 }
 0x986   :  { %2422 = vmatpush.bf16.msrb.mxu0 %v4360_v18  ;;  %2435 = vmatpush.bf16.msrb.mxu1 %v4339_v8 }
 0x987   :  { %2448 = vmatpush.bf16.msra.mxu2 %v4344_v10  ;;  %2461 = vmatpush.bf16.msrb.mxu3 %v4368_v24 }
 0x989   :  { %v1976_v42 = vpop.permute.xlu0 %1975 }
 0x98a   :  { %v1982_v9 = vpop.permute.xlu1 %1981  ;;  %v1978_v4 = vmul.f32 %v1976_v42, %v1879_v63  ;;  %2423 = vmatpush.bf16.msrb.mxu0 %v4390_v41  ;;  %2436 = vmatpush.bf16.msrb.mxu1 %v4421_v60 }
 0x98b   :  { %v1984_v37 = vmul.f32 %v1982_v9, %v5396_v14  ;;  %2449 = vmatpush.bf16.msra.mxu2 %v4432_v3  ;;  %2462 = vmatpush.bf16.msrb.mxu3 %v4451_v25  ;;  %v6376_v9 = vld [vmem:[#allocation87_spill] sm:$0xff] }
 0x98d   :  { %v5569_v49 = vadd.f32 %v1984_v37, %v1978_v4  ;;  %v6377_v4 = vld [vmem:[#allocation51_spill] sm:$0xff] }
 0x98e   :  { %v397_v37 = vadd.f32 %v6377_v4, %v6376_v9 }
 0x9b5   :  { %v2068_v0 = vpop.xlane.xlu1 %2067 }
 0x9b6   :  { %v2069_v52 = vadd.f32 %v5498_v20, %v2068_v0  ;;  %v6378_v0 = vld [vmem:[#allocation89_spill] sm:$0xff] }
 0x9b8   :  { %v5573_v50 = vmax.f32 %v5502_v1, %v2069_v52 }
 0x9ba   :  { %v2071_v5 = vsub.f32 %v5502_v1, %v5573_v50  ;;  %v2074_v32 = vsub.f32 %v2069_v52, %v5573_v50  ;;  %v259_v1 = vadd.f32 %v6375_v11, %v4685_v45  ;;  %v6379_v52 = vld [vmem:[#allocation58_spill] sm:$0xff] }
 0x9bc   :  { %v2072_v46 = vmul.f32 1.442695, %v2071_v5  ;;  %v2075_v19 = vmul.f32 1.442695, %v2074_v32  ;;  %v328_v5 = vadd.f32 %v6379_v52, %v6378_v0 }
 0x9be   :  { %3773 = vpow2.f32 %v2072_v46 }
 0x9bf   :  { %3775 = vpow2.f32 %v2075_v19 }
 0x9c4   :  { %v3774_v14 = vpop.eup %3773 }
 0x9c5   :  { %v3776_v61 = vpop.eup %3775  ;;  %v2077_v16 = vmul.f32 %v3774_v14, %v5508_v27  ;;  %2081 = vperm.xlu2 %3580, %v3774_v14   ;;  %v2172_v27 = vmul.f32 %v5513_v39, %v5529_v62 }
 0x9c6   :  { %2087 = vperm.xlu0 %3578, %v3776_v61  }
 0x9c7   :  { %v5579_v12 = vadd.f32 %v3776_v61, %v2077_v16 }
 0x9e9   :  { %v2213_v36 = vpop.f32.mrf.mxu0  ;;  %v2226_v31 = vpop.f32.mrf.mxu1 }
 0x9ea   :  { %v2256_v53 = vadd.f32 %v2213_v36, %v190_v47  ;;  %v2257_v57 = vadd.f32 %v2226_v31, %v259_v1 }
 0x9ec   :  { %v2260_v63 = vmul.f32 0.5, %v2256_v53  ;;  %v2264_v42 = vmul.f32 0.5, %v2257_v57 }
 0x9ee   :  { %3777 = vtanh.f32 %v2260_v63 }
 0x9ef   :  { %3779 = vtanh.f32 %v2264_v42 }
 0x9f0   :  { %v2239_v32 = vpop.f32.mrf.mxu2  ;;  %v2252_v46 = vpop.f32.mrf.mxu3  ;;  %2173 = vadd.xlane.f32.xlu0 %v2172_v27 }
 0x9f1   :  { %v2258_v19 = vadd.f32 %v2239_v32, %v328_v5  ;;  %v2259_v14 = vadd.f32 %v2252_v46, %v397_v37  ;;  %v2215_v61 = vpop.f32.mrf.mxu0  ;;  %v2228_v16 = vpop.f32.mrf.mxu1 }
 0x9f3   :  { %3781 = vtanh.f32 %v2258_v19  ;;  %v2269_v17 = vmul.f32 0.5, %v2259_v14 }
 0x9f4   :  { %v3778_v47 = vpop.eup %3777 }
 0x9f5   :  { %v3780_v11 = vpop.eup %3779  ;;  %v2262_v1 = vmul.f32 0.5, %v3778_v47  ;;  %3783 = vtanh.f32 %v2269_v17  ;;  %v6381_v17 = vld [vmem:[#allocation7_spill] sm:$0xff] }
 0x9f6   :  { %v2266_v36 = vmul.f32 0.5, %v3780_v11 }
 0x9f7   :  { %v2263_v31 = vadd.f32 0.5, %v2262_v1 }
 0x9f8   :  { %v2267_v53 = vadd.f32 0.5, %v2266_v36  ;;  %v2241_v57 = vpop.f32.mrf.mxu2  ;;  %v2254_v63 = vpop.f32.mrf.mxu3 }
 0x9f9   :  { %v3782_v4 = vpop.eup %3781 }
 0x9fa   :  { %v2273_v42 = vmul.f32 %v2267_v53, %v5526_v40  ;;  %v2274_v52 = vmul.f32 %v3782_v4, %v2263_v31 }
 0x9fb   :  { %v3784_v27 = vpop.eup %3783 }
 0x9fc   :  { %v5592_v5 = vadd.f32 %v2274_v52, %v2273_v42  ;;  %v2271_v37 = vmul.f32 0.5, %v3784_v27 }
 0x9fe   :  { %3785 = vtanh.f32 %v5592_v5  ;;  %v2272_v32 = vadd.f32 0.5, %v2271_v37  ;;  %v6383_v37 = vld [vmem:[#allocation52_spill] sm:$0xff] }
 0xa04   :  { %v3786_v46 = vpop.eup %3785 }
 0xa05   :  { %v5595_v19 = vmul.f32 %v3786_v46, %v2272_v32  ;;  %v192_v32 = vadd.f32 %v6383_v37, %v4687_v15  ;;  %v6384_v46 = vld [vmem:[#allocation53_spill] sm:$0xff] }
 0xa07   :  { %6380 = vst [vmem:[#allocation8_spill] sm:$0xff] %v5595_v19  ;;  %v2309_v14 = vpack.c.bf16 %v5595_v19, %v5595_v19 }
 0xa09   :  { %2318 = vmatmul.bf16.vlgmr.msra.gmra.mxu0 %v2309_v14  ;;  %2331 = vmatmul.bf16.vlgmr.msra.gmra.mxu1 %v2309_v14 }
 0xa0a   :  { %2344 = vmatmul.bf16.vlgmr.msrb.gmra.mxu2 %v2309_v14  ;;  %2357 = vmatmul.bf16.vlgmr.msra.gmra.mxu3 %v2309_v14 }
 0xa0b   :  { %2522 = vmatpush.bf16.msra.mxu0 %v4064_v30  ;;  %2535 = vmatpush.bf16.msra.mxu1 %v4038_v22 }
 0xa0c   :  { %2548 = vmatpush.bf16.msrb.mxu2 %v4040_v23  ;;  %2561 = vmatpush.bf16.msra.mxu3 %v4049_v26 }
 0xa0f   :  { %2523 = vmatpush.bf16.msra.mxu0 %v4107_v44  ;;  %2536 = vmatpush.bf16.msra.mxu1 %v4075_v34 }
 0xa10   :  { %2549 = vmatpush.bf16.msrb.mxu2 %v4077_v35  ;;  %2562 = vmatpush.bf16.msra.mxu3 %v4086_v38 }
 0xa13   :  { %2524 = vmatpush.bf16.msra.mxu0 %v4151_v59  ;;  %2537 = vmatpush.bf16.msra.mxu1 %v4129_v51 }
 0xa14   :  { %2550 = vmatpush.bf16.msrb.mxu2 %v4140_v55  ;;  %2563 = vmatpush.bf16.msra.mxu3 %v4142_v56 }
 0xa17   :  { %2525 = vmatpush.bf16.msra.mxu0 %v4209_v13  ;;  %2538 = vmatpush.bf16.msra.mxu1 %v4175_v2 }
 0xa18   :  { %2551 = vmatpush.bf16.msrb.mxu2 %v4186_v6  ;;  %2564 = vmatpush.bf16.msra.mxu3 %v4188_v7 }
 0xa1b   :  { %2526 = vmatpush.bf16.msra.mxu0 %v4253_v33  ;;  %2539 = vmatpush.bf16.msra.mxu1 %v4231_v21 }
 0xa1c   :  { %2552 = vmatpush.bf16.msrb.mxu2 %v4242_v28  ;;  %2565 = vmatpush.bf16.msra.mxu3 %v4244_v29 }
 0xa1f   :  { %2527 = vmatpush.bf16.msra.mxu0 %v4309_v58  ;;  %2540 = vmatpush.bf16.msra.mxu1 %v4277_v43  ;;  %v2082_v40 = vpop.permute.xlu2 %2081 }
 0xa20   :  { %2553 = vmatpush.bf16.msrb.mxu2 %v4288_v48  ;;  %2566 = vmatpush.bf16.msra.mxu3 %v4303_v54  ;;  %v2084_v16 = vmul.f32 %v2082_v40, %v5569_v49 }
 0xa23   :  { %2528 = vmatpush.bf16.msra.mxu0 %v4360_v18  ;;  %2541 = vmatpush.bf16.msra.mxu1 %v4339_v8 }
 0xa24   :  { %2554 = vmatpush.bf16.msrb.mxu2 %v4344_v10  ;;  %2567 = vmatpush.bf16.msra.mxu3 %v4368_v24 }
 0xa27   :  { %2529 = vmatpush.bf16.msra.mxu0 %v4390_v41  ;;  %2542 = vmatpush.bf16.msra.mxu1 %v4421_v60 }
 0xa28   :  { %2555 = vmatpush.bf16.msrb.mxu2 %v4432_v3  ;;  %2568 = vmatpush.bf16.msra.mxu3 %v4451_v25 }
 0xa38   :  { %v2088_v61 = vpop.permute.xlu0 %2087 }
 0xa39   :  { %v2090_v47 = vmul.f32 %v2088_v61, %v6381_v17 }
 0xa3b   :  { %v5633_v11 = vadd.f32 %v2090_v47, %v2084_v16 }
 0xa3d   :  { %6382 = vst [vmem:[#allocation9_spill] sm:$0xff] %v5633_v11 }
 0xa63   :  { %v2174_v1 = vpop.xlane.xlu0 %2173 }
 0xa64   :  { %v2175_v36 = vadd.f32 %v5498_v20, %v2174_v1  ;;  %v6385_v1 = vld [vmem:[#allocation55_spill] sm:$0xff] }
 0xa66   :  { %v5637_v31 = vmax.f32 %v5573_v50, %v2175_v36 }
 0xa68   :  { %v2177_v53 = vsub.f32 %v5573_v50, %v5637_v31  ;;  %v2180_v57 = vsub.f32 %v2175_v36, %v5637_v31  ;;  %v261_v50 = vadd.f32 %v6384_v46, %v4685_v45  ;;  %v6386_v36 = vld [vmem:[#allocation62_spill] sm:$0xff] }
 0xa6a   :  { %v2178_v63 = vmul.f32 1.442695, %v2177_v53  ;;  %v2181_v4 = vmul.f32 1.442695, %v2180_v57  ;;  %v330_v53 = vadd.f32 %v6386_v36, %v6378_v0 }
 0xa6c   :  { %3787 = vpow2.f32 %v2178_v63 }
 0xa6d   :  { %3789 = vpow2.f32 %v2181_v4 }
 0xa72   :  { %v3788_v49 = vpop.eup %3787 }
 0xa73   :  { %v3790_v42 = vpop.eup %3789  ;;  %v2183_v52 = vmul.f32 %v3788_v49, %v5579_v12  ;;  %2187 = vperm.xlu2 %3580, %v3788_v49   ;;  %v399_v12 = vadd.f32 %v6385_v1, %v6376_v9 }
 0xa74   :  { %2193 = vperm.xlu1 %3579, %v3790_v42  }
 0xa75   :  { %v5643_v27 = vadd.f32 %v3790_v42, %v2183_v52 }
 0xa86   :  { %v2319_v14 = vpop.f32.mrf.mxu0  ;;  %v2332_v40 = vpop.f32.mrf.mxu1 }
 0xa87   :  { %v2362_v61 = vadd.f32 %v2319_v14, %v192_v32  ;;  %v2363_v16 = vadd.f32 %v2332_v40, %v261_v50 }
 0xa89   :  { %v2366_v17 = vmul.f32 0.5, %v2362_v61  ;;  %v2370_v47 = vmul.f32 0.5, %v2363_v16 }
 0xa8b   :  { %3791 = vtanh.f32 %v2366_v17 }
 0xa8c   :  { %3793 = vtanh.f32 %v2370_v47 }
 0xa8d   :  { %v2345_v57 = vpop.f32.mrf.mxu2  ;;  %v2358_v63 = vpop.f32.mrf.mxu3 }
 0xa8e   :  { %v2364_v4 = vadd.f32 %v2345_v57, %v330_v53  ;;  %v2365_v49 = vadd.f32 %v2358_v63, %v399_v12  ;;  %v2321_v42 = vpop.f32.mrf.mxu0  ;;  %v2334_v52 = vpop.f32.mrf.mxu1  ;;  %v2278_v12 = vmul.f32 %v5513_v39, %v5595_v19 }
 0xa90   :  { %3795 = vtanh.f32 %v2364_v4  ;;  %v2375_v37 = vmul.f32 0.5, %v2365_v49 }
 0xa91   :  { %v3792_v32 = vpop.eup %3791 }
 0xa92   :  { %v3794_v46 = vpop.eup %3793  ;;  %v2368_v50 = vmul.f32 0.5, %v3792_v32  ;;  %3797 = vtanh.f32 %v2375_v37 }
 0xa93   :  { %v2372_v14 = vmul.f32 0.5, %v3794_v46 }
 0xa94   :  { %v2369_v40 = vadd.f32 0.5, %v2368_v50 }
 0xa95   :  { %v2373_v61 = vadd.f32 0.5, %v2372_v14  ;;  %v2347_v16 = vpop.f32.mrf.mxu2  ;;  %v2360_v17 = vpop.f32.mrf.mxu3 }
 0xa96   :  { %v3796_v1 = vpop.eup %3795  ;;  %v6389_v16 = vld [vmem:[#allocation57_spill] sm:$0xff] }
 0xa97   :  { %v2379_v47 = vmul.f32 %v2373_v61, %v5592_v5  ;;  %v2380_v36 = vmul.f32 %v3796_v1, %v2369_v40  ;;  %v6388_v40 = vld [vmem:[#allocation56_spill] sm:$0xff]  ;;  %v264_v17 = vadd.f32 %v6389_v16, %v4685_v45 }
 0xa98   :  { %v3798_v11 = vpop.eup %3797  ;;  %v195_v61 = vadd.f32 %v6388_v40, %v4687_v15 }
 0xa99   :  { %v5654_v53 = vadd.f32 %v2380_v36, %v2379_v47  ;;  %v2377_v57 = vmul.f32 0.5, %v3798_v11 }
 0xa9b   :  { %3799 = vtanh.f32 %v5654_v53  ;;  %v2378_v63 = vadd.f32 0.5, %v2377_v57 }
 0xa9c   :  { %2279 = vadd.xlane.f32.xlu2 %v2278_v12 }
 0xaa1   :  { %v3800_v4 = vpop.eup %3799 }
 0xaa2   :  { %v5659_v49 = vmul.f32 %v3800_v4, %v2378_v63 }
 0xaa4   :  { %v2415_v42 = vpack.c.bf16 %v5659_v49, %v5659_v49 }
 0xaa6   :  { %2424 = vmatmul.bf16.vlgmr.msrb.gmra.mxu0 %v2415_v42  ;;  %2437 = vmatmul.bf16.vlgmr.msrb.gmra.mxu1 %v2415_v42 }
 0xaa7   :  { %2450 = vmatmul.bf16.vlgmr.msra.gmra.mxu2 %v2415_v42  ;;  %2463 = vmatmul.bf16.vlgmr.msrb.gmra.mxu3 %v2415_v42 }
 0xaa8   :  { %2628 = vmatpush.bf16.msrb.mxu0 %v4064_v30  ;;  %2641 = vmatpush.bf16.msrb.mxu1 %v4038_v22 }
 0xaa9   :  { %2654 = vmatpush.bf16.msra.mxu2 %v4040_v23  ;;  %2667 = vmatpush.bf16.msrb.mxu3 %v4049_v26 }
 0xaac   :  { %2629 = vmatpush.bf16.msrb.mxu0 %v4107_v44  ;;  %2642 = vmatpush.bf16.msrb.mxu1 %v4075_v34 }
 0xaad   :  { %2655 = vmatpush.bf16.msra.mxu2 %v4077_v35  ;;  %2668 = vmatpush.bf16.msrb.mxu3 %v4086_v38 }
 0xab0   :  { %2630 = vmatpush.bf16.msrb.mxu0 %v4151_v59  ;;  %2643 = vmatpush.bf16.msrb.mxu1 %v4129_v51 }
 0xab1   :  { %2656 = vmatpush.bf16.msra.mxu2 %v4140_v55  ;;  %2669 = vmatpush.bf16.msrb.mxu3 %v4142_v56 }
 0xab4   :  { %2631 = vmatpush.bf16.msrb.mxu0 %v4209_v13  ;;  %2644 = vmatpush.bf16.msrb.mxu1 %v4175_v2 }
 0xab5   :  { %2657 = vmatpush.bf16.msra.mxu2 %v4186_v6  ;;  %2670 = vmatpush.bf16.msrb.mxu3 %v4188_v7 }
 0xab8   :  { %2632 = vmatpush.bf16.msrb.mxu0 %v4253_v33  ;;  %2645 = vmatpush.bf16.msrb.mxu1 %v4231_v21 }
 0xab9   :  { %2658 = vmatpush.bf16.msra.mxu2 %v4242_v28  ;;  %2671 = vmatpush.bf16.msrb.mxu3 %v4244_v29 }
 0xabc   :  { %2633 = vmatpush.bf16.msrb.mxu0 %v4309_v58  ;;  %2646 = vmatpush.bf16.msrb.mxu1 %v4277_v43 }
 0xabd   :  { %2659 = vmatpush.bf16.msra.mxu2 %v4288_v48  ;;  %2672 = vmatpush.bf16.msrb.mxu3 %v4303_v54 }
 0xac0   :  { %2634 = vmatpush.bf16.msrb.mxu0 %v4360_v18  ;;  %2647 = vmatpush.bf16.msrb.mxu1 %v4339_v8 }
 0xac1   :  { %2660 = vmatpush.bf16.msra.mxu2 %v4344_v10  ;;  %2673 = vmatpush.bf16.msrb.mxu3 %v4368_v24 }
 0xac4   :  { %2635 = vmatpush.bf16.msrb.mxu0 %v4390_v41  ;;  %2648 = vmatpush.bf16.msrb.mxu1 %v4421_v60 }
 0xac5   :  { %2661 = vmatpush.bf16.msra.mxu2 %v4432_v3  ;;  %2674 = vmatpush.bf16.msrb.mxu3 %v4451_v25 }
 0xacd   :  { %v5695_v5 = vpop.permute.xlu2 %2187 }
 0xace   :  { %6387 = vst [vmem:[#allocation10_spill] sm:$0xff] %v5695_v5 }
 0xb0f   :  { %v2280_v11 = vpop.xlane.xlu2 %2279 }
 0xb10   :  { %v5698_v52 = vadd.f32 %v5498_v20, %v2280_v11 }
 0xb12   :  { %v5702_v37 = vmax.f32 %v5637_v31, %v5698_v52 }
 0xb14   :  { %v2283_v32 = vsub.f32 %v5637_v31, %v5702_v37  ;;  %v6390_v31 = vld [vmem:[#allocation59_spill] sm:$0xff] }
 0xb15   :  { %v402_v4 = vadd.f32 %v6390_v31, %v6376_v9 }
 0xb16   :  { %v2284_v46 = vmul.f32 1.442695, %v2283_v32 }
 0xb18   :  { %3801 = vpow2.f32 %v2284_v46 }
 0xb1e   :  { %v3802_v50 = vpop.eup %3801 }
 0xb1f   :  { %v5707_v14 = vmul.f32 %v3802_v50, %v5643_v27  ;;  %2293 = vperm.xlu2 %3580, %v3802_v50   ;;  %v6391_v27 = vld [vmem:[#allocation66_spill] sm:$0xff] }
 0xb20   :  { %v333_v42 = vadd.f32 %v6391_v27, %v6378_v0 }
 0xb23   :  { %v2425_v1 = vpop.f32.mrf.mxu0  ;;  %v2438_v47 = vpop.f32.mrf.mxu1 }
 0xb24   :  { %v2468_v36 = vadd.f32 %v2425_v1, %v195_v61  ;;  %v2469_v12 = vadd.f32 %v2438_v47, %v264_v17 }
 0xb26   :  { %v2472_v57 = vmul.f32 0.5, %v2468_v36  ;;  %v2476_v63 = vmul.f32 0.5, %v2469_v12 }
 0xb28   :  { %3803 = vtanh.f32 %v2472_v57 }
 0xb29   :  { %3805 = vtanh.f32 %v2476_v63 }
 0xb2a   :  { %v2451_v11 = vpop.f32.mrf.mxu2  ;;  %v2464_v32 = vpop.f32.mrf.mxu3 }
 0xb2b   :  { %v2470_v46 = vadd.f32 %v2451_v11, %v333_v42  ;;  %v2471_v50 = vadd.f32 %v2464_v32, %v402_v4  ;;  %v2427_v40 = vpop.f32.mrf.mxu0  ;;  %v2440_v16 = vpop.f32.mrf.mxu1 }
 0xb2d   :  { %3807 = vtanh.f32 %v2470_v46  ;;  %v2481_v19 = vmul.f32 0.5, %v2471_v50  ;;  %v2286_v50 = vsub.f32 %v5698_v52, %v5702_v37 }
 0xb2e   :  { %v3804_v61 = vpop.eup %3803 }
 0xb2f   :  { %v3806_v17 = vpop.eup %3805  ;;  %v2474_v1 = vmul.f32 0.5, %v3804_v61  ;;  %3809 = vtanh.f32 %v2481_v19  ;;  %v2287_v61 = vmul.f32 1.442695, %v2286_v50 }
 0xb30   :  { %v2478_v47 = vmul.f32 0.5, %v3806_v17 }
 0xb31   :  { %v2475_v36 = vadd.f32 0.5, %v2474_v1  ;;  %v6393_v1 = vld [vmem:[#allocation60_spill] sm:$0xff] }
 0xb32   :  { %v2479_v12 = vadd.f32 0.5, %v2478_v47  ;;  %v2453_v57 = vpop.f32.mrf.mxu2  ;;  %v2466_v31 = vpop.f32.mrf.mxu3  ;;  %v197_v47 = vadd.f32 %v6393_v1, %v4687_v15 }
 0xb33   :  { %v3808_v5 = vpop.eup %3807 }
 0xb34   :  { %v2485_v63 = vmul.f32 %v2479_v12, %v5654_v53  ;;  %v2486_v27 = vmul.f32 %v3808_v5, %v2475_v36  ;;  %v2384_v53 = vmul.f32 %v5513_v39, %v5659_v49  ;;  %v6394_v36 = vld [vmem:[#allocation61_spill] sm:$0xff] }
 0xb35   :  { %v3810_v62 = vpop.eup %3809  ;;  %v266_v12 = vadd.f32 %v6394_v36, %v4685_v45  ;;  %v6396_v36 = vld [vmem:[#allocation70_spill] sm:$0xff] }
 0xb36   :  { %v5718_v42 = vadd.f32 %v2486_v27, %v2485_v63  ;;  %v2483_v4 = vmul.f32 0.5, %v3810_v62 }
 0xb38   :  { %3811 = vtanh.f32 %v5718_v42  ;;  %v2484_v11 = vadd.f32 0.5, %v2483_v4 }
 0xb39   :  { %3813 = vpow2.f32 %v2287_v61 }
 0xb3e   :  { %v3812_v32 = vpop.eup %3811 }
 0xb3f   :  { %v5721_v46 = vmul.f32 %v3812_v32, %v2484_v11 }
 0xb41   :  { %6392 = vst [vmem:[#allocation11_spill] sm:$0xff] %v5721_v46  ;;  %v2521_v19 = vpack.c.bf16 %v5721_v46, %v5721_v46  ;;  %v2490_v62 = vmul.f32 %v5513_v39, %v5721_v46  ;;  %v335_v46 = vadd.f32 %v6396_v36, %v6378_v0 }
 0xb43   :  { %2530 = vmatmul.bf16.vlgmr.msra.gmra.mxu0 %v2521_v19  ;;  %2543 = vmatmul.bf16.vlgmr.msra.gmra.mxu1 %v2521_v19 }
 0xb44   :  { %2556 = vmatmul.bf16.vlgmr.msrb.gmra.mxu2 %v2521_v19  ;;  %2569 = vmatmul.bf16.vlgmr.msra.gmra.mxu3 %v2521_v19 }
 0xb45   :  { %2734 = vmatpush.bf16.msra.mxu0 %v4064_v30  ;;  %2747 = vmatpush.bf16.msra.mxu1 %v4038_v22 }
 0xb46   :  { %2760 = vmatpush.bf16.msrb.mxu2 %v4040_v23  ;;  %2773 = vmatpush.bf16.msra.mxu3 %v4049_v26 }
 0xb48   :  { %2385 = vadd.xlane.f32.xlu2 %v2384_v53 }
 0xb49   :  { %2735 = vmatpush.bf16.msra.mxu0 %v4107_v44  ;;  %2748 = vmatpush.bf16.msra.mxu1 %v4075_v34 }
 0xb4a   :  { %2761 = vmatpush.bf16.msrb.mxu2 %v4077_v35  ;;  %2774 = vmatpush.bf16.msra.mxu3 %v4086_v38 }
 0xb4d   :  { %2736 = vmatpush.bf16.msra.mxu0 %v4151_v59  ;;  %2749 = vmatpush.bf16.msra.mxu1 %v4129_v51 }
 0xb4e   :  { %2762 = vmatpush.bf16.msrb.mxu2 %v4140_v55  ;;  %2775 = vmatpush.bf16.msra.mxu3 %v4142_v56 }
 0xb50   :  { %2491 = vadd.xlane.f32.xlu2 %v2490_v62 }
 0xb51   :  { %2737 = vmatpush.bf16.msra.mxu0 %v4209_v13  ;;  %2750 = vmatpush.bf16.msra.mxu1 %v4175_v2 }
 0xb52   :  { %2763 = vmatpush.bf16.msrb.mxu2 %v4186_v6  ;;  %2776 = vmatpush.bf16.msra.mxu3 %v4188_v7 }
 0xb55   :  { %2738 = vmatpush.bf16.msra.mxu0 %v4253_v33  ;;  %2751 = vmatpush.bf16.msra.mxu1 %v4231_v21 }
 0xb56   :  { %2764 = vmatpush.bf16.msrb.mxu2 %v4242_v28  ;;  %2777 = vmatpush.bf16.msra.mxu3 %v4244_v29 }
 0xb59   :  { %2739 = vmatpush.bf16.msra.mxu0 %v4309_v58  ;;  %2752 = vmatpush.bf16.msra.mxu1 %v4277_v43 }
 0xb5a   :  { %2765 = vmatpush.bf16.msrb.mxu2 %v4288_v48  ;;  %2778 = vmatpush.bf16.msra.mxu3 %v4303_v54 }
 0xb5d   :  { %2740 = vmatpush.bf16.msra.mxu0 %v4360_v18  ;;  %2753 = vmatpush.bf16.msra.mxu1 %v4339_v8 }
 0xb5e   :  { %2766 = vmatpush.bf16.msrb.mxu2 %v4344_v10  ;;  %2779 = vmatpush.bf16.msra.mxu3 %v4368_v24 }
 0xb61   :  { %2741 = vmatpush.bf16.msra.mxu0 %v4390_v41  ;;  %2754 = vmatpush.bf16.msra.mxu1 %v4421_v60 }
 0xb62   :  { %2767 = vmatpush.bf16.msrb.mxu2 %v4432_v3  ;;  %2780 = vmatpush.bf16.msra.mxu3 %v4451_v25 }
 0xb79   :  { %v5761_v5 = vpop.permute.xlu2 %2293 }
 0xbbb   :  { %v2386_v40 = vpop.xlane.xlu2 %2385 }
 0xbbc   :  { %v2387_v16 = vadd.f32 %v5498_v20, %v2386_v40  ;;  %v6395_v40 = vld [vmem:[#allocation63_spill] sm:$0xff] }
 0xbbd   :  { %v404_v1 = vadd.f32 %v6395_v40, %v6376_v9 }
 0xbbe   :  { %v2388_v17 = vmax.f32 %v5702_v37, %v2387_v16 }
 0xbc0   :  { %v2531_v57 = vpop.f32.mrf.mxu0  ;;  %v2544_v31 = vpop.f32.mrf.mxu1  ;;  %v2389_v63 = vsub.f32 %v5702_v37, %v2388_v17  ;;  %v2392_v27 = vsub.f32 %v2387_v16, %v2388_v17 }
 0xbc1   :  { %v2574_v4 = vadd.f32 %v2531_v57, %v197_v47  ;;  %v2575_v11 = vadd.f32 %v2544_v31, %v266_v12  ;;  %v5779_v47 = vpop.eup %3813 }
 0xbc2   :  { %v2390_v52 = vmul.f32 1.442695, %v2389_v63  ;;  %v2393_v53 = vmul.f32 1.442695, %v2392_v27 }
 0xbc3   :  { %v2578_v32 = vmul.f32 0.5, %v2574_v4  ;;  %v2582_v19 = vmul.f32 0.5, %v2575_v11  ;;  %v2492_v62 = vpop.xlane.xlu2 %2491  ;;  %v2290_v11 = vadd.f32 %v5779_v47, %v5707_v14 }
 0xbc4   :  { %3815 = vpow2.f32 %v2390_v52  ;;  %v2493_v50 = vadd.f32 %v5498_v20, %v2492_v62 }
 0xbc5   :  { %3817 = vtanh.f32 %v2578_v32 }
 0xbc6   :  { %3819 = vtanh.f32 %v2582_v19  ;;  %v5777_v37 = vmax.f32 %v2388_v17, %v2493_v50 }
 0xbc7   :  { %3821 = vpow2.f32 %v2393_v53  ;;  %v2557_v16 = vpop.f32.mrf.mxu2  ;;  %v2570_v61 = vpop.f32.mrf.mxu3 }
 0xbc8   :  { %v2576_v12 = vadd.f32 %v2557_v16, %v335_v46  ;;  %v2577_v57 = vadd.f32 %v2570_v61, %v404_v1  ;;  %v2533_v31 = vpop.f32.mrf.mxu0  ;;  %v2546_v63 = vpop.f32.mrf.mxu1  ;;  %v2495_v27 = vsub.f32 %v2388_v17, %v5777_v37  ;;  %v2498_v4 = vsub.f32 %v2493_v50, %v5777_v37 }
 0xbca   :  { %v3816_v52 = vpop.eup %3815  ;;  %3823 = vtanh.f32 %v2576_v12  ;;  %v2587_v32 = vmul.f32 0.5, %v2577_v57  ;;  %v2496_v19 = vmul.f32 1.442695, %v2495_v27  ;;  %v2499_v53 = vmul.f32 1.442695, %v2498_v4 }
 0xbcb   :  { %v3818_v62 = vpop.eup %3817  ;;  %v2395_v40 = vmul.f32 %v3816_v52, %v2290_v11  ;;  %2399 = vperm.xlu0 %3578, %v3816_v52  }
 0xbcc   :  { %v3820_v36 = vpop.eup %3819  ;;  %v2580_v46 = vmul.f32 0.5, %v3818_v62  ;;  %3825 = vtanh.f32 %v2587_v32 }
 0xbcd   :  { %v5785_v1 = vpop.eup %3821  ;;  %v2584_v16 = vmul.f32 0.5, %v3820_v36  ;;  %3827 = vpow2.f32 %v2496_v19 }
 0xbce   :  { %v2581_v17 = vadd.f32 0.5, %v2580_v46  ;;  %v2396_v50 = vadd.f32 %v5785_v1, %v2395_v40  ;;  %3829 = vpow2.f32 %v2499_v53 }
 0xbcf   :  { %v2585_v14 = vadd.f32 0.5, %v2584_v16  ;;  %v2559_v61 = vpop.f32.mrf.mxu2  ;;  %v2572_v12 = vpop.f32.mrf.mxu3 }
 0xbd0   :  { %v3824_v57 = vpop.eup %3823  ;;  %v6398_v61 = vld [vmem:[#allocation9_spill] sm:$0xff]  ;;  %v6399_v12 = vld [vmem:[#allocation10_spill] sm:$0xff] }
 0xbd1   :  { %v2591_v31 = vmul.f32 %v2585_v14, %v5718_v42  ;;  %v2592_v63 = vmul.f32 %v3824_v57, %v2581_v17  ;;  %v6397_v17 = vld [vmem:[#allocation14_spill] sm:$0xff]  ;;  %v2190_v57 = vmul.f32 %v6399_v12, %v6398_v61 }
 0xbd2   :  { %v3826_v27 = vpop.eup %3825 }
 0xbd3   :  { %v3828_v4 = vpop.eup %3827  ;;  %v5789_v11 = vadd.f32 %v2592_v63, %v2591_v31  ;;  %v2589_v19 = vmul.f32 0.5, %v3826_v27  ;;  %v6400_v27 = vld [vmem:[#allocation64_spill] sm:$0xff] }
 0xbd4   :  { %v3830_v52 = vpop.eup %3829  ;;  %v2501_v32 = vmul.f32 %v3828_v4, %v2396_v50  ;;  %2505 = vperm.xlu0 %3578, %v3828_v4  }
 0xbd5   :  { %3831 = vtanh.f32 %v5789_v11  ;;  %2511 = vperm.xlu1 %3579, %v3830_v52   ;;  %v2590_v53 = vadd.f32 0.5, %v2589_v19 }
 0xbd6   :  { %v5792_v62 = vadd.f32 %v3830_v52, %v2501_v32 }
 0xbdb   :  { %v3832_v40 = vpop.eup %3831 }
 0xbdc   :  { %v5794_v36 = vmul.f32 %v3832_v40, %v2590_v53 }
 0xbde   :  { %v2627_v42 = vpack.c.bf16 %v5794_v36, %v5794_v36  ;;  %v2596_v46 = vmul.f32 %v5513_v39, %v5794_v36  ;;  %v2194_v39 = vpop.permute.xlu1 %2193 }
 0xbdf   :  { %v2196_v50 = vmul.f32 %v2194_v39, %v6397_v17 }
 0xbe0   :  { %2636 = vmatmul.bf16.vlgmr.msrb.gmra.mxu0 %v2627_v42  ;;  %2649 = vmatmul.bf16.vlgmr.msrb.gmra.mxu1 %v2627_v42 }
 0xbe1   :  { %2662 = vmatmul.bf16.vlgmr.msra.gmra.mxu2 %v2627_v42  ;;  %2675 = vmatmul.bf16.vlgmr.msrb.gmra.mxu3 %v2627_v42  ;;  %v2197_v4 = vadd.f32 %v2196_v50, %v2190_v57 }
 0xbe2   :  { %2597 = vadd.xlane.f32.xlu2 %v2596_v46  ;;  %2840 = vmatpush.bf16.msrb.mxu0 %v4064_v30  ;;  %v6402_v46 = vld [vmem:[#allocation8_spill] sm:$0xff] }
 0xbe3   :  { %2853 = vmatpush.bf16.msrb.mxu1 %v4038_v22  ;;  %2866 = vmatpush.bf16.msra.mxu2 %v4040_v23  ;;  %v2296_v42 = vmul.f32 %v5761_v5, %v2197_v4 }
 0xbe4   :  { %2879 = vmatpush.bf16.msrb.mxu3 %v4049_v26 }
 0xbe6   :  { %2841 = vmatpush.bf16.msrb.mxu0 %v4107_v44 }
 0xbe7   :  { %2854 = vmatpush.bf16.msrb.mxu1 %v4075_v34  ;;  %2867 = vmatpush.bf16.msra.mxu2 %v4077_v35 }
 0xbe8   :  { %2880 = vmatpush.bf16.msrb.mxu3 %v4086_v38 }
 0xbea   :  { %2842 = vmatpush.bf16.msrb.mxu0 %v4151_v59 }
 0xbeb   :  { %2855 = vmatpush.bf16.msrb.mxu1 %v4129_v51  ;;  %2868 = vmatpush.bf16.msra.mxu2 %v4140_v55 }
 0xbec   :  { %2881 = vmatpush.bf16.msrb.mxu3 %v4142_v56 }
 0xbee   :  { %2843 = vmatpush.bf16.msrb.mxu0 %v4209_v13 }
 0xbef   :  { %2856 = vmatpush.bf16.msrb.mxu1 %v4175_v2  ;;  %2869 = vmatpush.bf16.msra.mxu2 %v4186_v6 }
 0xbf0   :  { %2882 = vmatpush.bf16.msrb.mxu3 %v4188_v7 }
 0xbf2   :  { %2844 = vmatpush.bf16.msrb.mxu0 %v4253_v33 }
 0xbf3   :  { %2857 = vmatpush.bf16.msrb.mxu1 %v4231_v21  ;;  %2870 = vmatpush.bf16.msra.mxu2 %v4242_v28 }
 0xbf4   :  { %2883 = vmatpush.bf16.msrb.mxu3 %v4244_v29 }
 0xbf6   :  { %2845 = vmatpush.bf16.msrb.mxu0 %v4309_v58 }
 0xbf7   :  { %2858 = vmatpush.bf16.msrb.mxu1 %v4277_v43  ;;  %2871 = vmatpush.bf16.msra.mxu2 %v4288_v48 }
 0xbf8   :  { %2884 = vmatpush.bf16.msrb.mxu3 %v4303_v54 }
 0xbfa   :  { %2299 = vperm.xlu2 %3580, %v5779_v47   ;;  %2846 = vmatpush.bf16.msrb.mxu0 %v4360_v18 }
 0xbfb   :  { %2859 = vmatpush.bf16.msrb.mxu1 %v4339_v8  ;;  %2872 = vmatpush.bf16.msra.mxu2 %v4344_v10 }
 0xbfc   :  { %2885 = vmatpush.bf16.msrb.mxu3 %v4368_v24 }
 0xbfe   :  { %2847 = vmatpush.bf16.msrb.mxu0 %v4390_v41 }
 0xbff   :  { %2860 = vmatpush.bf16.msrb.mxu1 %v4421_v60  ;;  %2873 = vmatpush.bf16.msra.mxu2 %v4432_v3 }
 0xc00   :  { %2886 = vmatpush.bf16.msrb.mxu3 %v4451_v25 }
 0xc02   :  { %2405 = vperm.xlu2 %3580, %v5785_v1   ;;  %v200_v1 = vadd.f32 %v6400_v27, %v4687_v15  ;;  %v6404_v27 = vld [vmem:[#allocation74_spill] sm:$0xff] }
 0xc03   :  { %v338_v5 = vadd.f32 %v6404_v27, %v6378_v0 }
 0xc3d   :  { %v2400_v12 = vpop.permute.xlu0 %2399 }
 0xc55   :  { %v2598_v47 = vpop.xlane.xlu2 %2597 }
 0xc56   :  { %v2599_v16 = vadd.f32 %v5498_v20, %v2598_v47  ;;  %v6401_v20 = vld [vmem:[#allocation65_spill] sm:$0xff] }
 0xc57   :  { %v269_v19 = vadd.f32 %v6401_v20, %v4685_v45 }
 0xc58   :  { %v5837_v14 = vmax.f32 %v5777_v37, %v2599_v16 }
 0xc5a   :  { %v2601_v31 = vsub.f32 %v5777_v37, %v5837_v14  ;;  %v2604_v63 = vsub.f32 %v2599_v16, %v5837_v14 }
 0xc5c   :  { %v2602_v52 = vmul.f32 1.442695, %v2601_v31  ;;  %v2605_v32 = vmul.f32 1.442695, %v2604_v63  ;;  %v6403_v31 = vld [vmem:[#allocation67_spill] sm:$0xff] }
 0xc5d   :  { %v2300_v53 = vpop.permute.xlu2 %2299  ;;  %v2637_v40 = vpop.f32.mrf.mxu0  ;;  %v407_v63 = vadd.f32 %v6403_v31, %v6376_v9 }
 0xc5e   :  { %3833 = vpow2.f32 %v2602_v52  ;;  %v2302_v39 = vmul.f32 %v2300_v53, %v6402_v46  ;;  %v2680_v47 = vadd.f32 %v2637_v40, %v200_v1  ;;  %v2650_v37 = vpop.f32.mrf.mxu1 }
 0xc5f   :  { %3835 = vpow2.f32 %v2605_v32  ;;  %v2681_v16 = vadd.f32 %v2650_v37, %v269_v19 }
 0xc60   :  { %v2303_v17 = vadd.f32 %v2302_v39, %v2296_v42  ;;  %v2684_v61 = vmul.f32 0.5, %v2680_v47 }
 0xc61   :  { %v2688_v50 = vmul.f32 0.5, %v2681_v16 }
 0xc62   :  { %3837 = vtanh.f32 %v2684_v61  ;;  %v5850_v57 = vmul.f32 %v2400_v12, %v2303_v17 }
 0xc63   :  { %3839 = vtanh.f32 %v2688_v50 }
 0xc64   :  { %v3834_v4 = vpop.eup %3833  ;;  %v2663_v52 = vpop.f32.mrf.mxu2 }
 0xc65   :  { %v2676_v1 = vpop.f32.mrf.mxu3  ;;  %v3836_v20 = vpop.eup %3835  ;;  %v2607_v32 = vmul.f32 %v3834_v4, %v5792_v62  ;;  %v2682_v19 = vadd.f32 %v2663_v52, %v338_v5  ;;  %2611 = vperm.xlu2 %3580, %v3834_v4  }
 0xc66   :  { %v2683_v53 = vadd.f32 %v2676_v1, %v407_v63  ;;  %v2639_v40 = vpop.f32.mrf.mxu0  ;;  %2617 = vperm.xlu0 %3578, %v3836_v20   ;;  %v2652_v42 = vpop.f32.mrf.mxu1 }
 0xc67   :  { %v5857_v46 = vadd.f32 %v3836_v20, %v2607_v32  ;;  %3841 = vtanh.f32 %v2682_v19  ;;  %v5906_v40 = vpop.permute.xlu1 %2511 }
 0xc68   :  { %v2693_v39 = vmul.f32 0.5, %v2683_v53  ;;  %v3838_v47 = vpop.eup %3837  ;;  %v5870_v53 = vld [vmem:[%s6195_s4] ss:$0 sm:$0xff] }
 0xc69   :  { %v3840_v37 = vpop.eup %3839  ;;  %v2686_v16 = vmul.f32 0.5, %v3838_v47 }
 0xc6a   :  { %v2690_v17 = vmul.f32 0.5, %v3840_v37  ;;  %3843 = vtanh.f32 %v2693_v39  ;;  %v5908_v39 = vld [vmem:[#allocation3] ss:$0 sm:$0xff] }
 0xc6b   :  { %v2687_v61 = vadd.f32 0.5, %v2686_v16  ;;  %6406 = vst [vmem:[#allocation12_spill] sm:$0xff] %v5908_v39 }
 0xc6c   :  { %v2691_v12 = vadd.f32 0.5, %v2690_v17  ;;  %v2665_v50 = vpop.f32.mrf.mxu2 }
 0xc6d   :  { %v2678_v31 = vpop.f32.mrf.mxu3  ;;  %v3842_v62 = vpop.eup %3841  ;;  %v6409_v50 = vld [vmem:[#allocation69_spill] sm:$0xff] }
 0xc6e   :  { %v2697_v63 = vmul.f32 %v2691_v12, %v5789_v11  ;;  %v2698_v27 = vmul.f32 %v3842_v62, %v2687_v61  ;;  %v6408_v61 = vld [vmem:[#allocation68_spill] sm:$0xff]  ;;  %v271_v31 = vadd.f32 %v6409_v50, %v4685_v45 }
 0xc6f   :  { %v202_v12 = vadd.f32 %v6408_v61, %v4687_v15 }
 0xc70   :  { %v3844_v5 = vpop.eup %3843  ;;  %v5860_v4 = vadd.f32 %v2698_v27, %v2697_v63 }
 0xc71   :  { %v2695_v52 = vmul.f32 0.5, %v3844_v5 }
 0xc72   :  { %3845 = vtanh.f32 %v5860_v4 }
 0xc73   :  { %v2696_v1 = vadd.f32 0.5, %v2695_v52 }
 0xc78   :  { %v3846_v20 = vpop.eup %3845 }
 0xc79   :  { %v5863_v32 = vmul.f32 %v3846_v20, %v2696_v1 }
 0xc7b   :  { %6405 = vst [vmem:[#allocation18_spill] sm:$0xff] %v5863_v32  ;;  %v2733_v19 = vpack.c.bf16 %v5863_v32, %v5863_v32  ;;  %v2702_v11 = vmul.f32 %v5870_v53, %v5863_v32 }
 0xc7d   :  { %2742 = vmatmul.bf16.vlgmr.msra.gmra.mxu0 %v2733_v19  ;;  %2755 = vmatmul.bf16.vlgmr.msra.gmra.mxu1 %v2733_v19 }
 0xc7e   :  { %2768 = vmatmul.bf16.vlgmr.msrb.gmra.mxu2 %v2733_v19  ;;  %2781 = vmatmul.bf16.vlgmr.msra.gmra.mxu3 %v2733_v19 }
 0xc7f   :  { %2703 = vadd.xlane.f32.xlu1 %v2702_v11  ;;  %2946 = vmatpush.bf16.msra.mxu0 %v4064_v30 }
 0xc80   :  { %2959 = vmatpush.bf16.msra.mxu1 %v4038_v22  ;;  %2972 = vmatpush.bf16.msrb.mxu2 %v4040_v23 }
 0xc81   :  { %2985 = vmatpush.bf16.msra.mxu3 %v4049_v26 }
 0xc83   :  { %2947 = vmatpush.bf16.msra.mxu0 %v4107_v44 }
 0xc84   :  { %2960 = vmatpush.bf16.msra.mxu1 %v4075_v34  ;;  %2973 = vmatpush.bf16.msrb.mxu2 %v4077_v35 }
 0xc85   :  { %2986 = vmatpush.bf16.msra.mxu3 %v4086_v38 }
 0xc87   :  { %2948 = vmatpush.bf16.msra.mxu0 %v4151_v59 }
 0xc88   :  { %2961 = vmatpush.bf16.msra.mxu1 %v4129_v51  ;;  %2974 = vmatpush.bf16.msrb.mxu2 %v4140_v55 }
 0xc89   :  { %2987 = vmatpush.bf16.msra.mxu3 %v4142_v56 }
 0xc8b   :  { %2949 = vmatpush.bf16.msra.mxu0 %v4209_v13 }
 0xc8c   :  { %2962 = vmatpush.bf16.msra.mxu1 %v4175_v2  ;;  %2975 = vmatpush.bf16.msrb.mxu2 %v4186_v6 }
 0xc8d   :  { %2988 = vmatpush.bf16.msra.mxu3 %v4188_v7 }
 0xc8f   :  { %2950 = vmatpush.bf16.msra.mxu0 %v4253_v33 }
 0xc90   :  { %2963 = vmatpush.bf16.msra.mxu1 %v4231_v21  ;;  %2976 = vmatpush.bf16.msrb.mxu2 %v4242_v28 }
 0xc91   :  { %2989 = vmatpush.bf16.msra.mxu3 %v4244_v29 }
 0xc93   :  { %2951 = vmatpush.bf16.msra.mxu0 %v4309_v58 }
 0xc94   :  { %2964 = vmatpush.bf16.msra.mxu1 %v4277_v43  ;;  %2977 = vmatpush.bf16.msrb.mxu2 %v4288_v48 }
 0xc95   :  { %2990 = vmatpush.bf16.msra.mxu3 %v4303_v54 }
 0xc97   :  { %2952 = vmatpush.bf16.msra.mxu0 %v4360_v18 }
 0xc98   :  { %2965 = vmatpush.bf16.msra.mxu1 %v4339_v8  ;;  %2978 = vmatpush.bf16.msrb.mxu2 %v4344_v10 }
 0xc99   :  { %2991 = vmatpush.bf16.msra.mxu3 %v4368_v24 }
 0xc9b   :  { %2953 = vmatpush.bf16.msra.mxu0 %v4390_v41 }
 0xc9c   :  { %2966 = vmatpush.bf16.msra.mxu1 %v4421_v60  ;;  %2979 = vmatpush.bf16.msrb.mxu2 %v4432_v3 }
 0xc9d   :  { %2992 = vmatpush.bf16.msra.mxu3 %v4451_v25 }
 0xcf2   :  { %v2704_v42 = vpop.xlane.xlu1 %2703 }
 0xcf3   :  { %v2705_v47 = vadd.f32 %v5908_v39, %v2704_v42  ;;  %v6411_v42 = vld [vmem:[#allocation78_spill] sm:$0xff] }
 0xcf5   :  { %v5912_v37 = vmax.f32 %v5837_v14, %v2705_v47 }
 0xcf7   :  { %6407 = vst [vmem:[#allocation13_spill] sm:$0xff] %v5912_v37  ;;  %v2707_v16 = vsub.f32 %v5837_v14, %v5912_v37  ;;  %v2710_v17 = vsub.f32 %v2705_v47, %v5912_v37  ;;  %v6410_v14 = vld [vmem:[#allocation71_spill] sm:$0xff]  ;;  %v340_v47 = vadd.f32 %v6411_v42, %v6378_v0 }
 0xcf8   :  { %v409_v11 = vadd.f32 %v6410_v14, %v6376_v9 }
 0xcf9   :  { %v2708_v62 = vmul.f32 1.442695, %v2707_v16  ;;  %v2711_v63 = vmul.f32 1.442695, %v2710_v17 }
 0xcfa   :  { %v2743_v27 = vpop.f32.mrf.mxu0  ;;  %v2756_v5 = vpop.f32.mrf.mxu1 }
 0xcfb   :  { %3847 = vpow2.f32 %v2708_v62  ;;  %v2786_v52 = vadd.f32 %v2743_v27, %v202_v12  ;;  %v2787_v1 = vadd.f32 %v2756_v5, %v271_v31 }
 0xcfc   :  { %3849 = vpow2.f32 %v2711_v63 }
 0xcfd   :  { %v2790_v20 = vmul.f32 0.5, %v2786_v52  ;;  %v2794_v19 = vmul.f32 0.5, %v2787_v1 }
 0xcff   :  { %3851 = vtanh.f32 %v2790_v20 }
 0xd00   :  { %3853 = vtanh.f32 %v2794_v19 }
 0xd01   :  { %v3848_v61 = vpop.eup %3847  ;;  %v2769_v50 = vpop.f32.mrf.mxu2 }
 0xd02   :  { %v2782_v16 = vpop.f32.mrf.mxu3  ;;  %v3850_v17 = vpop.eup %3849  ;;  %v2713_v32 = vmul.f32 %v3848_v61, %v5857_v46  ;;  %v2788_v62 = vadd.f32 %v2769_v50, %v340_v47  ;;  %2717 = vperm.xlu1 %3579, %v3848_v61  }
 0xd03   :  { %v2789_v12 = vadd.f32 %v2782_v16, %v409_v11  ;;  %v2745_v31 = vpop.f32.mrf.mxu0  ;;  %v2758_v63 = vpop.f32.mrf.mxu1  ;;  %2723 = vperm.xlu2 %3580, %v3850_v17  }
 0xd04   :  { %v5926_v27 = vadd.f32 %v3850_v17, %v2713_v32  ;;  %3855 = vtanh.f32 %v2788_v62  ;;  %v2506_v31 = vpop.permute.xlu0 %2505 }
 0xd05   :  { %v2799_v5 = vmul.f32 0.5, %v2789_v12  ;;  %v3852_v52 = vpop.eup %3851 }
 0xd06   :  { %v3854_v1 = vpop.eup %3853  ;;  %v2792_v20 = vmul.f32 0.5, %v3852_v52 }
 0xd07   :  { %v2796_v19 = vmul.f32 0.5, %v3854_v1  ;;  %3857 = vtanh.f32 %v2799_v5  ;;  %v6412_v1 = vld [vmem:[#allocation11_spill] sm:$0xff] }
 0xd08   :  { %v2793_v14 = vadd.f32 0.5, %v2792_v20  ;;  %v2514_v20 = vmul.f32 %v5906_v40, %v6412_v1 }
 0xd09   :  { %v2797_v42 = vadd.f32 0.5, %v2796_v19  ;;  %v2771_v37 = vpop.f32.mrf.mxu2 }
 0xd0a   :  { %v2784_v39 = vpop.f32.mrf.mxu3  ;;  %v3856_v46 = vpop.eup %3855 }
 0xd0b   :  { %v2803_v11 = vmul.f32 %v2797_v42, %v5860_v4  ;;  %v2804_v47 = vmul.f32 %v3856_v46, %v2793_v14  ;;  %v2406_v39 = vpop.permute.xlu2 %2405 }
 0xd0c   :  { %v2408_v37 = vmul.f32 %v2406_v39, %v5659_v49  ;;  %v2618_v52 = vpop.permute.xlu0 %2617 }
 0xd0d   :  { %v3858_v61 = vpop.eup %3857  ;;  %v5929_v50 = vadd.f32 %v2804_v47, %v2803_v11  ;;  %v2620_v42 = vmul.f32 %v2618_v52, %v5794_v36  ;;  %v6415_v36 = vld [vmem:[#allocation75_spill] sm:$0xff] }
 0xd0e   :  { %v2801_v32 = vmul.f32 0.5, %v3858_v61  ;;  %v2409_v63 = vadd.f32 %v2408_v37, %v5850_v57 }
 0xd0f   :  { %3859 = vtanh.f32 %v5929_v50 }
 0xd10   :  { %v2802_v16 = vadd.f32 0.5, %v2801_v32  ;;  %v2508_v5 = vmul.f32 %v2506_v31, %v2409_v63  ;;  %v6413_v32 = vld [vmem:[#allocation72_spill] sm:$0xff]  ;;  %v412_v31 = vadd.f32 %v6415_v36, %v6376_v9  ;;  %v6416_v63 = vld [vmem:[#allocation81_spill] sm:$0xff] }
 0xd11   :  { %v205_v49 = vadd.f32 %v6413_v32, %v4687_v15 }
 0xd12   :  { %v2515_v14 = vadd.f32 %v2514_v20, %v2508_v5  ;;  %v343_v5 = vadd.f32 %v6416_v63, %v6378_v0 }
 0xd13   :  { %v2612_v19 = vpop.permute.xlu2 %2611 }
 0xd14   :  { %v2614_v46 = vmul.f32 %v2612_v19, %v2515_v14 }
 0xd15   :  { %v3860_v17 = vpop.eup %3859 }
 0xd16   :  { %v5932_v62 = vmul.f32 %v3860_v17, %v2802_v16  ;;  %v2621_v11 = vadd.f32 %v2620_v42, %v2614_v46  ;;  %v6414_v16 = vld [vmem:[#allocation73_spill] sm:$0xff] }
 0xd17   :  { %v274_v57 = vadd.f32 %v6414_v16, %v4685_v45 }
 0xd18   :  { %v2839_v12 = vpack.c.bf16 %v5932_v62, %v5932_v62  ;;  %v2808_v4 = vmul.f32 %v5870_v53, %v5932_v62 }
 0xd1a   :  { %2848 = vmatmul.bf16.vlgmr.msrb.gmra.mxu0 %v2839_v12  ;;  %2861 = vmatmul.bf16.vlgmr.msrb.gmra.mxu1 %v2839_v12 }
 0xd1b   :  { %2874 = vmatmul.bf16.vlgmr.msra.gmra.mxu2 %v2839_v12  ;;  %2887 = vmatmul.bf16.vlgmr.msrb.gmra.mxu3 %v2839_v12 }
 0xd1c   :  { %3052 = vmatpush.bf16.msrb.mxu0 %v4064_v30  ;;  %3065 = vmatpush.bf16.msrb.mxu1 %v4038_v22 }
 0xd1d   :  { %3078 = vmatpush.bf16.msra.mxu2 %v4040_v23  ;;  %3091 = vmatpush.bf16.msrb.mxu3 %v4049_v26 }
 0xd20   :  { %3053 = vmatpush.bf16.msrb.mxu0 %v4107_v44  ;;  %3066 = vmatpush.bf16.msrb.mxu1 %v4075_v34 }
 0xd21   :  { %3079 = vmatpush.bf16.msra.mxu2 %v4077_v35  ;;  %3092 = vmatpush.bf16.msrb.mxu3 %v4086_v38 }
 0xd24   :  { %3054 = vmatpush.bf16.msrb.mxu0 %v4151_v59  ;;  %3067 = vmatpush.bf16.msrb.mxu1 %v4129_v51 }
 0xd25   :  { %3080 = vmatpush.bf16.msra.mxu2 %v4140_v55  ;;  %3093 = vmatpush.bf16.msrb.mxu3 %v4142_v56 }
 0xd28   :  { %3055 = vmatpush.bf16.msrb.mxu0 %v4209_v13  ;;  %3068 = vmatpush.bf16.msrb.mxu1 %v4175_v2 }
 0xd29   :  { %3081 = vmatpush.bf16.msra.mxu2 %v4186_v6  ;;  %3094 = vmatpush.bf16.msrb.mxu3 %v4188_v7 }
 0xd2c   :  { %2809 = vadd.xlane.f32.xlu1 %v2808_v4  ;;  %3056 = vmatpush.bf16.msrb.mxu0 %v4253_v33 }
 0xd2d   :  { %3069 = vmatpush.bf16.msrb.mxu1 %v4231_v21  ;;  %3082 = vmatpush.bf16.msra.mxu2 %v4242_v28 }
 0xd2e   :  { %3095 = vmatpush.bf16.msrb.mxu3 %v4244_v29 }
 0xd30   :  { %3057 = vmatpush.bf16.msrb.mxu0 %v4309_v58 }
 0xd31   :  { %3070 = vmatpush.bf16.msrb.mxu1 %v4277_v43  ;;  %3083 = vmatpush.bf16.msra.mxu2 %v4288_v48 }
 0xd32   :  { %3096 = vmatpush.bf16.msrb.mxu3 %v4303_v54 }
 0xd34   :  { %3058 = vmatpush.bf16.msrb.mxu0 %v4360_v18 }
 0xd35   :  { %3071 = vmatpush.bf16.msrb.mxu1 %v4339_v8  ;;  %3084 = vmatpush.bf16.msra.mxu2 %v4344_v10 }
 0xd36   :  { %3097 = vmatpush.bf16.msrb.mxu3 %v4368_v24 }
 0xd38   :  { %3059 = vmatpush.bf16.msrb.mxu0 %v4390_v41 }
 0xd39   :  { %3072 = vmatpush.bf16.msrb.mxu1 %v4421_v60  ;;  %3085 = vmatpush.bf16.msra.mxu2 %v4432_v3 }
 0xd3a   :  { %3098 = vmatpush.bf16.msrb.mxu3 %v4451_v25 }
 0xd74   :  { %v2718_v47 = vpop.permute.xlu1 %2717 }
 0xd75   :  { %v5975_v61 = vmul.f32 %v2718_v47, %v2621_v11 }
 0xd97   :  { %v2849_v17 = vpop.f32.mrf.mxu0  ;;  %v2862_v12 = vpop.f32.mrf.mxu1 }
 0xd98   :  { %v2892_v4 = vadd.f32 %v2849_v17, %v205_v49  ;;  %v2893_v39 = vadd.f32 %v2862_v12, %v274_v57 }
 0xd9a   :  { %v2896_v40 = vmul.f32 0.5, %v2892_v4  ;;  %v2900_v37 = vmul.f32 0.5, %v2893_v39 }
 0xd9c   :  { %3861 = vtanh.f32 %v2896_v40 }
 0xd9d   :  { %3863 = vtanh.f32 %v2900_v37 }
 0xd9e   :  { %v2875_v52 = vpop.f32.mrf.mxu2  ;;  %v2888_v1 = vpop.f32.mrf.mxu3 }
 0xd9f   :  { %v2894_v20 = vadd.f32 %v2875_v52, %v343_v5  ;;  %v2895_v19 = vadd.f32 %v2888_v1, %v412_v31  ;;  %v2851_v14 = vpop.f32.mrf.mxu0  ;;  %v2864_v42 = vpop.f32.mrf.mxu1 }
 0xda1   :  { %3865 = vtanh.f32 %v2894_v20  ;;  %v2905_v46 = vmul.f32 0.5, %v2895_v19 }
 0xda2   :  { %v3862_v11 = vpop.eup %3861 }
 0xda3   :  { %v3864_v47 = vpop.eup %3863  ;;  %v2898_v32 = vmul.f32 0.5, %v3862_v11  ;;  %3867 = vtanh.f32 %v2905_v46 }
 0xda4   :  { %v2902_v49 = vmul.f32 0.5, %v3864_v47 }
 0xda5   :  { %v2899_v16 = vadd.f32 0.5, %v2898_v32 }
 0xda6   :  { %v2903_v57 = vadd.f32 0.5, %v2902_v49  ;;  %v2877_v17 = vpop.f32.mrf.mxu2  ;;  %v2890_v12 = vpop.f32.mrf.mxu3 }
 0xda7   :  { %v3866_v4 = vpop.eup %3865 }
 0xda8   :  { %v2909_v39 = vmul.f32 %v2903_v57, %v5929_v50  ;;  %v2910_v40 = vmul.f32 %v3866_v4, %v2899_v16 }
 0xda9   :  { %v3868_v37 = vpop.eup %3867 }
 0xdaa   :  { %v5986_v36 = vadd.f32 %v2910_v40, %v2909_v39  ;;  %v2907_v31 = vmul.f32 0.5, %v3868_v37 }
 0xdac   :  { %3869 = vtanh.f32 %v5986_v36  ;;  %v2908_v63 = vadd.f32 0.5, %v2907_v31 }
 0xdb2   :  { %v3870_v5 = vpop.eup %3869 }
 0xdb3   :  { %v5989_v52 = vmul.f32 %v3870_v5, %v2908_v63 }
 0xdb5   :  { %v2945_v1 = vpack.c.bf16 %v5989_v52, %v5989_v52  ;;  %v2914_v20 = vmul.f32 %v5870_v53, %v5989_v52 }
 0xdb7   :  { %2954 = vmatmul.bf16.vlgmr.msra.gmra.mxu0 %v2945_v1  ;;  %2967 = vmatmul.bf16.vlgmr.msra.gmra.mxu1 %v2945_v1 }
 0xdb8   :  { %2980 = vmatmul.bf16.vlgmr.msrb.gmra.mxu2 %v2945_v1  ;;  %2993 = vmatmul.bf16.vlgmr.msra.gmra.mxu3 %v2945_v1 }
 0xdb9   :  { %2915 = vadd.xlane.f32.xlu0 %v2914_v20  ;;  %3158 = vmatpush.bf16.msra.mxu0 %v4064_v30  ;;  %v6418_v30 = vld [vmem:[#allocation13_spill] sm:$0xff] }
 0xdba   :  { %3171 = vmatpush.bf16.msra.mxu1 %v4038_v22  ;;  %3184 = vmatpush.bf16.msrb.mxu2 %v4040_v23  ;;  %v2810_v22 = vpop.xlane.xlu1 %2809  ;;  %v6417_v23 = vld [vmem:[#allocation12_spill] sm:$0xff] }
 0xdbb   :  { %3197 = vmatpush.bf16.msra.mxu3 %v4049_v26  ;;  %v2811_v26 = vadd.f32 %v6417_v23, %v2810_v22 }
 0xdbd   :  { %3159 = vmatpush.bf16.msra.mxu0 %v4107_v44 }
 0xdbe   :  { %3172 = vmatpush.bf16.msra.mxu1 %v4075_v34  ;;  %3185 = vmatpush.bf16.msrb.mxu2 %v4077_v35  ;;  %v2812_v34 = vmax.f32 %v6418_v30, %v2811_v26 }
 0xdbf   :  { %3198 = vmatpush.bf16.msra.mxu3 %v4086_v38 }
 0xdc0   :  { %v2813_v35 = vsub.f32 %v6418_v30, %v2812_v34  ;;  %v2816_v44 = vsub.f32 %v2811_v26, %v2812_v34 }
 0xdc1   :  { %3160 = vmatpush.bf16.msra.mxu0 %v4151_v59 }
 0xdc2   :  { %3173 = vmatpush.bf16.msra.mxu1 %v4129_v51  ;;  %3186 = vmatpush.bf16.msrb.mxu2 %v4140_v55  ;;  %v2814_v38 = vmul.f32 1.442695, %v2813_v35 }
 0xdc3   :  { %3199 = vmatpush.bf16.msra.mxu3 %v4142_v56  ;;  %v2817_v56 = vmul.f32 1.442695, %v2816_v44 }
 0xdc4   :  { %3871 = vpow2.f32 %v2814_v38 }
 0xdc5   :  { %3161 = vmatpush.bf16.msra.mxu0 %v4209_v13  ;;  %3873 = vpow2.f32 %v2817_v56 }
 0xdc6   :  { %3174 = vmatpush.bf16.msra.mxu1 %v4175_v2  ;;  %3187 = vmatpush.bf16.msrb.mxu2 %v4186_v6 }
 0xdc7   :  { %3200 = vmatpush.bf16.msra.mxu3 %v4188_v7  ;;  %v6419_v7 = vld [vmem:[#allocation76_spill] sm:$0xff] }
 0xdc8   :  { %v207_v13 = vadd.f32 %v6419_v7, %v4687_v15 }
 0xdc9   :  { %3162 = vmatpush.bf16.msra.mxu0 %v4253_v33 }
 0xdca   :  { %3175 = vmatpush.bf16.msra.mxu1 %v4231_v21  ;;  %3188 = vmatpush.bf16.msrb.mxu2 %v4242_v28  ;;  %v6037_v6 = vpop.eup %3871  ;;  %v6420_v21 = vld [vmem:[#allocation77_spill] sm:$0xff] }
 0xdcb   :  { %3201 = vmatpush.bf16.msra.mxu3 %v4244_v29  ;;  %v276_v28 = vadd.f32 %v6420_v21, %v4685_v45 }
 0xdcd   :  { %3163 = vmatpush.bf16.msra.mxu0 %v4309_v58  ;;  %v2819_v58 = vmul.f32 %v6037_v6, %v5926_v27 }
 0xdce   :  { %3176 = vmatpush.bf16.msra.mxu1 %v4277_v43  ;;  %3189 = vmatpush.bf16.msrb.mxu2 %v4288_v48 }
 0xdcf   :  { %3202 = vmatpush.bf16.msra.mxu3 %v4303_v54 }
 0xdd1   :  { %3164 = vmatpush.bf16.msra.mxu0 %v4360_v18  ;;  %v6045_v18 = vpop.eup %3873 }
 0xdd2   :  { %3177 = vmatpush.bf16.msra.mxu1 %v4339_v8  ;;  %3190 = vmatpush.bf16.msrb.mxu2 %v4344_v10 }
 0xdd3   :  { %3203 = vmatpush.bf16.msra.mxu3 %v4368_v24  ;;  %v6421_v24 = vld [vmem:[#allocation79_spill] sm:$0xff] }
 0xdd5   :  { %3165 = vmatpush.bf16.msra.mxu0 %v4390_v41  ;;  %v414_v41 = vadd.f32 %v6421_v24, %v6376_v9  ;;  %v6425_v24 = vld [vmem:[#allocation82_spill] sm:$0xff] }
 0xdd6   :  { %3178 = vmatpush.bf16.msra.mxu1 %v4421_v60  ;;  %3191 = vmatpush.bf16.msrb.mxu2 %v4432_v3  ;;  %v6422_v60 = vld [vmem:[#allocation84_spill] sm:$0xff] }
 0xdd7   :  { %3204 = vmatpush.bf16.msra.mxu3 %v4451_v25  ;;  %v345_v3 = vadd.f32 %v6422_v60, %v6378_v0  ;;  %v2820_v25 = vadd.f32 %v6045_v18, %v2819_v58  ;;  %v6426_v60 = vld [vmem:[#allocation86_spill] sm:$0xff] }
 0xe2c   :  { %v2916_v51 = vpop.xlane.xlu0 %2915 }
 0xe2d   :  { %v6031_v55 = vadd.f32 %v6417_v23, %v2916_v51 }
 0xe2f   :  { %v6034_v59 = vmax.f32 %v2812_v34, %v6031_v55 }
 0xe31   :  { %v2919_v2 = vsub.f32 %v2812_v34, %v6034_v59 }
 0xe33   :  { %v2920_v29 = vmul.f32 1.442695, %v2919_v2 }
 0xe34   :  { %v2955_v33 = vpop.f32.mrf.mxu0  ;;  %v2968_v43 = vpop.f32.mrf.mxu1 }
 0xe35   :  { %3875 = vpow2.f32 %v2920_v29  ;;  %v2998_v48 = vadd.f32 %v2955_v33, %v207_v13  ;;  %v2999_v54 = vadd.f32 %v2968_v43, %v276_v28  ;;  %v6423_v13 = vld [vmem:[#allocation4_spill] sm:$0xff] }
 0xe36   :  { %v210_v21 = vadd.f32 %v6423_v13, %v4687_v15  ;;  %v6424_v28 = vld [vmem:[#allocation80_spill] sm:$0xff] }
 0xe37   :  { %v3002_v8 = vmul.f32 0.5, %v2998_v48  ;;  %v3006_v10 = vmul.f32 0.5, %v2999_v54  ;;  %v279_v29 = vadd.f32 %v6424_v28, %v4685_v45  ;;  %v6427_v28 = vld [vmem:[#allocation5_spill] sm:$0xff] }
 0xe39   :  { %3877 = vtanh.f32 %v3002_v8 }
 0xe3a   :  { %3879 = vtanh.f32 %v3006_v10 }
 0xe3b   :  { %v3876_v50 = vpop.eup %3875  ;;  %v2981_v19 = vpop.f32.mrf.mxu2 }
 0xe3c   :  { %v2994_v14 = vpop.f32.mrf.mxu3  ;;  %v2925_v42 = vmul.f32 %v3876_v50, %v2820_v25  ;;  %v3000_v46 = vadd.f32 %v2981_v19, %v345_v3  ;;  %2929 = vperm.xlu2 %3580, %v3876_v50   ;;  %v2957_v11 = vpop.f32.mrf.mxu0  ;;  %v348_v3 = vadd.f32 %v6426_v60, %v6378_v0 }
 0xe3d   :  { %v3001_v27 = vadd.f32 %v2994_v14, %v414_v41  ;;  %v2970_v47 = vpop.f32.mrf.mxu1  ;;  %v417_v41 = vadd.f32 %v6425_v24, %v6376_v9 }
 0xe3e   :  { %3881 = vtanh.f32 %v3000_v46 }
 0xe3f   :  { %v3011_v32 = vmul.f32 0.5, %v3001_v27  ;;  %v3878_v49 = vpop.eup %3877 }
 0xe40   :  { %v3880_v16 = vpop.eup %3879  ;;  %v3004_v57 = vmul.f32 0.5, %v3878_v49 }
 0xe41   :  { %v3008_v17 = vmul.f32 0.5, %v3880_v16  ;;  %3883 = vtanh.f32 %v3011_v32 }
 0xe42   :  { %v3005_v12 = vadd.f32 0.5, %v3004_v57 }
 0xe43   :  { %v3009_v4 = vadd.f32 0.5, %v3008_v17  ;;  %v2983_v39 = vpop.f32.mrf.mxu2 }
 0xe44   :  { %v2996_v40 = vpop.f32.mrf.mxu3  ;;  %v3882_v37 = vpop.eup %3881 }
 0xe45   :  { %v3015_v31 = vmul.f32 %v3009_v4, %v5986_v36  ;;  %v3016_v63 = vmul.f32 %v3882_v37, %v3005_v12  ;;  %v2922_v36 = vsub.f32 %v6031_v55, %v6034_v59 }
 0xe47   :  { %v3884_v5 = vpop.eup %3883  ;;  %v3017_v1 = vadd.f32 %v3016_v63, %v3015_v31  ;;  %v2923_v51 = vmul.f32 1.442695, %v2922_v36 }
 0xe48   :  { %v3013_v20 = vmul.f32 0.5, %v3884_v5 }
 0xe49   :  { %3885 = vtanh.f32 %v3017_v1 }
 0xe4a   :  { %v3014_v22 = vadd.f32 0.5, %v3013_v20  ;;  %3887 = vpow2.f32 %v2923_v51 }
 0xe4f   :  { %v3886_v26 = vpop.eup %3885 }
 0xe50   :  { %v6053_v30 = vmul.f32 %v3886_v26, %v3014_v22 }
 0xe52   :  { %v3051_v34 = vpack.c.bf16 %v6053_v30, %v6053_v30  ;;  %v3020_v35 = vmul.f32 %v5870_v53, %v6053_v30 }
 0xe54   :  { %3060 = vmatmul.bf16.vlgmr.msrb.gmra.mxu0 %v3051_v34  ;;  %3073 = vmatmul.bf16.vlgmr.msrb.gmra.mxu1 %v3051_v34 }
 0xe55   :  { %3086 = vmatmul.bf16.vlgmr.msra.gmra.mxu2 %v3051_v34  ;;  %3099 = vmatmul.bf16.vlgmr.msrb.gmra.mxu3 %v3051_v34 }
 0xe56   :  { %3021 = vadd.xlane.f32.xlu1 %v3020_v35 }
 0xec9   :  { %v3022_v38 = vpop.xlane.xlu1 %3021 }
 0xeca   :  { %v3023_v44 = vadd.f32 %v6417_v23, %v3022_v38 }
 0xecc   :  { %v6063_v56 = vmax.f32 %v6034_v59, %v3023_v44 }
 0xece   :  { %v3025_v2 = vsub.f32 %v6034_v59, %v6063_v56  ;;  %v3028_v7 = vsub.f32 %v3023_v44, %v6063_v56  ;;  %v3888_v59 = vpop.eup %3887 }
 0xecf   :  { %v2926_v25 = vadd.f32 %v3888_v59, %v2925_v42 }
 0xed0   :  { %v3026_v55 = vmul.f32 1.442695, %v3025_v2  ;;  %v3029_v33 = vmul.f32 1.442695, %v3028_v7 }
 0xed1   :  { %v3061_v43 = vpop.f32.mrf.mxu0  ;;  %v3074_v48 = vpop.f32.mrf.mxu1 }
 0xed2   :  { %3889 = vpow2.f32 %v3026_v55  ;;  %v3104_v54 = vadd.f32 %v3061_v43, %v210_v21  ;;  %v3105_v58 = vadd.f32 %v3074_v48, %v279_v29  ;;  %v212_v29 = vadd.f32 %v6427_v28, %v4687_v15  ;;  %v6428_v55 = vld [vmem:[#allocation83_spill] sm:$0xff] }
 0xed3   :  { %3891 = vpow2.f32 %v3029_v33  ;;  %v281_v33 = vadd.f32 %v6428_v55, %v4685_v45  ;;  %v3276_v55 = vld [vmem:[%s6199_s6 + $0x58] sm:$0xff] }
 0xed4   :  { %v3108_v8 = vmul.f32 0.5, %v3104_v54  ;;  %v3112_v10 = vmul.f32 0.5, %v3105_v58 }
 0xed6   :  { %3893 = vtanh.f32 %v3108_v8 }
 0xed7   :  { %3895 = vtanh.f32 %v3112_v10 }
 0xed8   :  { %v6076_v50 = vpop.eup %3889  ;;  %v3087_v19 = vpop.f32.mrf.mxu2 }
 0xed9   :  { %v3100_v14 = vpop.f32.mrf.mxu3  ;;  %v3892_v46 = vpop.eup %3891  ;;  %v3031_v27 = vmul.f32 %v6076_v50, %v2926_v25  ;;  %v3106_v11 = vadd.f32 %v3087_v19, %v348_v3 }
 0xeda   :  { %v3107_v47 = vadd.f32 %v3100_v14, %v417_v41  ;;  %v3063_v32 = vpop.f32.mrf.mxu0  ;;  %v3076_v49 = vpop.f32.mrf.mxu1  ;;  %3041 = vperm.xlu2 %3580, %v3892_v46   ;;  %v6430_v41 = vld [vmem:[#allocation88_spill] sm:$0xff] }
 0xedb   :  { %v3032_v16 = vadd.f32 %v3892_v46, %v3031_v27  ;;  %3897 = vtanh.f32 %v3106_v11  ;;  %v350_v15 = vadd.f32 %v6430_v41, %v6378_v0 }
 0xedc   :  { %v3117_v57 = vmul.f32 0.5, %v3107_v47  ;;  %v3894_v17 = vpop.eup %3893 }
 0xedd   :  { %v3896_v12 = vpop.eup %3895  ;;  %v3110_v4 = vmul.f32 0.5, %v3894_v17 }
 0xede   :  { %v3114_v42 = vmul.f32 0.5, %v3896_v12  ;;  %3899 = vtanh.f32 %v3117_v57 }
 0xedf   :  { %v3111_v39 = vadd.f32 0.5, %v3110_v4 }
 0xee0   :  { %v3115_v40 = vadd.f32 0.5, %v3114_v42  ;;  %v3089_v37 = vpop.f32.mrf.mxu2 }
 0xee1   :  { %v3102_v31 = vpop.f32.mrf.mxu3  ;;  %v3898_v63 = vpop.eup %3897 }
 0xee2   :  { %v3121_v5 = vmul.f32 %v3115_v40, %v3017_v1  ;;  %v3122_v20 = vmul.f32 %v3898_v63, %v3111_v39 }
 0xee4   :  { %v3900_v22 = vpop.eup %3899  ;;  %v3123_v26 = vadd.f32 %v3122_v20, %v3121_v5 }
 0xee5   :  { %v3119_v34 = vmul.f32 0.5, %v3900_v22 }
 0xee6   :  { %3901 = vtanh.f32 %v3123_v26 }
 0xee7   :  { %v3120_v35 = vadd.f32 0.5, %v3119_v34 }
 0xeec   :  { %v3902_v36 = vpop.eup %3901 }
 0xeed   :  { %v6079_v38 = vmul.f32 %v3902_v36, %v3120_v35 }
 0xeef   :  { %v3157_v44 = vpack.c.bf16 %v6079_v38, %v6079_v38  ;;  %v3126_v51 = vmul.f32 %v5870_v53, %v6079_v38 }
 0xef1   :  { %3166 = vmatmul.bf16.vlgmr.msra.gmra.mxu0 %v3157_v44  ;;  %3179 = vmatmul.bf16.vlgmr.msra.gmra.mxu1 %v3157_v44 }
 0xef2   :  { %3192 = vmatmul.bf16.vlgmr.msrb.gmra.mxu2 %v3157_v44  ;;  %3205 = vmatmul.bf16.vlgmr.msra.gmra.mxu3 %v3157_v44 }
 0xef3   :  { %3127 = vadd.xlane.f32.xlu0 %v3126_v51 }
 0xf07   :  { %2823 = vperm.xlu0 %3578, %v6037_v6  }
 0xf0f   :  { %2935 = vperm.xlu0 %3578, %v3888_v59  }
 0xf66   :  { %v3128_v1 = vpop.xlane.xlu0 %3127 }
 0xf67   :  { %v3129_v2 = vadd.f32 %v6417_v23, %v3128_v1 }
 0xf69   :  { %v3130_v7 = vmax.f32 %v6063_v56, %v3129_v2 }
 0xf6b   :  { %v3131_v13 = vsub.f32 %v6063_v56, %v3130_v7  ;;  %v3134_v21 = vsub.f32 %v3129_v2, %v3130_v7  ;;  %v6429_v56 = vld [vmem:[#allocation85_spill] sm:$0xff] }
 0xf6c   :  { %v419_v24 = vadd.f32 %v6429_v56, %v6376_v9  ;;  %v3267_v56 = vld [vmem:[%s6199_s6 + $0x10] sm:$0xff] }
 0xf6d   :  { %v3132_v43 = vmul.f32 1.442695, %v3131_v13  ;;  %v3135_v48 = vmul.f32 1.442695, %v3134_v21 }
 0xf6e   :  { %v3167_v54 = vpop.f32.mrf.mxu0  ;;  %v3180_v58 = vpop.f32.mrf.mxu1 }
 0xf6f   :  { %3903 = vpow2.f32 %v3132_v43  ;;  %v3210_v6 = vadd.f32 %v3167_v54, %v212_v29  ;;  %v3211_v8 = vadd.f32 %v3180_v58, %v281_v33  ;;  %v3277_v29 = vld [vmem:[%s6199_s6 + $0x60] sm:$0xff]  ;;  %v3275_v33 = vld [vmem:[%s6199_s6 + $0x50] sm:$0xff]  ;;  %v3274_v43 = vld [vmem:[%s6199_s6 + $0x48] sm:$0xff] }
 0xf70   :  { %3905 = vpow2.f32 %v3135_v48  ;;  %v3273_v48 = vld [vmem:[%s6199_s6 + $0x40] sm:$0xff]  ;;  %v3272_v54 = vld [vmem:[%s6199_s6 + $0x38] sm:$0xff]  ;;  %v3271_v58 = vld [vmem:[%s6199_s6 + $0x30] sm:$0xff] }
 0xf71   :  { %v3214_v10 = vmul.f32 0.5, %v3210_v6  ;;  %v3218_v59 = vmul.f32 0.5, %v3211_v8  ;;  %v3270_v6 = vld [vmem:[%s6199_s6 + $0x28] sm:$0xff]  ;;  %v3269_v8 = vld [vmem:[%s6199_s6 + $0x20] sm:$0xff] }
 0xf73   :  { %3907 = vtanh.f32 %v3214_v10  ;;  %v3268_v10 = vld [vmem:[%s6199_s6 + $0x18] sm:$0xff] }
 0xf74   :  { %3909 = vtanh.f32 %v3218_v59  ;;  %v2724_v59 = vpop.permute.xlu2 %2723 }
 0xf75   :  { %v3904_v60 = vpop.eup %3903  ;;  %v3193_v45 = vpop.f32.mrf.mxu2 }
 0xf76   :  { %v3206_v3 = vpop.f32.mrf.mxu3  ;;  %v3137_v25 = vmul.f32 %v3904_v60, %v3032_v16  ;;  %v3212_v19 = vadd.f32 %v3193_v45, %v350_v15  ;;  %3141 = vperm.xlu0 %3578, %v3904_v60   ;;  %v3169_v46 = vpop.f32.mrf.mxu0  ;;  %v6431_v15 = vld [vmem:[#allocation18_spill] sm:$0xff]  ;;  %v3266_v45 = vld [vmem:[%s6199_s6 + $0x8] sm:$0xff] }
 0xf77   :  { %v3213_v14 = vadd.f32 %v3206_v3, %v419_v24  ;;  %v3182_v27 = vpop.f32.mrf.mxu1  ;;  %v3906_v11 = vpop.eup %3905  ;;  %v2726_v60 = vmul.f32 %v2724_v59, %v6431_v15  ;;  %v3313_v46 = vld [vmem:[%s6200_s8 + $0x38] sm:$0xff] }
 0xf78   :  { %v3138_v47 = vadd.f32 %v3906_v11, %v3137_v25  ;;  %3911 = vtanh.f32 %v3212_v19  ;;  %v3265_v19 = vld [vmem:[%s6199_s6] sm:$0xff]  ;;  %v3312_v27 = vld [vmem:[%s6200_s8 + $0x30] sm:$0xff]  ;;  %3330 = vmatpush.msrb.mxu1 %v3313_v46 }
 0xf79   :  { %v3223_v32 = vmul.f32 0.5, %v3213_v14  ;;  %v3908_v49 = vpop.eup %3907  ;;  %v2824_v24 = vpop.permute.xlu0 %2823  ;;  %v2727_v3 = vadd.f32 %v2726_v60, %v5975_v61  ;;  %v3310_v61 = vld [vmem:[%s6200_s8 + $0x20] sm:$0xff] }
 0xf7a   :  { %v3910_v57 = vpop.eup %3909  ;;  %v3216_v9 = vmul.f32 0.5, %v3908_v49  ;;  %3331 = vmatpush.msrb.mxu1 %v3312_v27 }
 0xf7b   :  { %v3220_v17 = vmul.f32 0.5, %v3910_v57  ;;  %3913 = vtanh.f32 %v3223_v32  ;;  %v2826_v14 = vmul.f32 %v2824_v24, %v2727_v3  ;;  %v3309_v57 = vld [vmem:[%s6200_s8 + $0x18] sm:$0xff] }
 0xf7c   :  { %v3217_v0 = vadd.f32 0.5, %v3216_v9 }
 0xf7d   :  { %v3221_v12 = vadd.f32 0.5, %v3220_v17  ;;  %v3195_v4 = vpop.f32.mrf.mxu2 }
 0xf7e   :  { %v3208_v42 = vpop.f32.mrf.mxu3  ;;  %v3912_v39 = vpop.eup %3911 }
 0xf7f   :  { %v3227_v16 = vmul.f32 %v3221_v12, %v3123_v26  ;;  %v3228_v40 = vmul.f32 %v3912_v39, %v3217_v0  ;;  %v3308_v0 = vld [vmem:[%s6200_s8 + $0x10] sm:$0xff] }
 0xf81   :  { %v3914_v37 = vpop.eup %3913  ;;  %v3229_v31 = vadd.f32 %v3228_v40, %v3227_v16  ;;  %v2936_v32 = vpop.permute.xlu0 %2935 }
 0xf82   :  { %v3225_v63 = vmul.f32 0.5, %v3914_v37  ;;  %v2938_v17 = vmul.f32 %v2936_v32, %v5989_v52 }
 0xf83   :  { %3915 = vtanh.f32 %v3229_v31 }
 0xf84   :  { %v3226_v5 = vadd.f32 0.5, %v3225_v63 }
 0xf89   :  { %v3916_v20 = vpop.eup %3915 }
 0xf8a   :  { %v6097_v22 = vmul.f32 %v3916_v20, %v3226_v5 }
 0xf8c   :  { %v3232_v34 = vmul.f32 %v5870_v53, %v6097_v22 }
 0xf8e   :  { %3233 = vadd.xlane.f32.xlu1 %v3232_v34 }
 0xfa7   :  { %2829 = vperm.xlu1 %3579, %v6045_v18  }
 0xfaf   :  { %3035 = vperm.xlu1 %3579, %v6076_v50   ;;  %v3279_v50 = vld [vmem:[%s6199_s6 + $0x70] sm:$0xff] }
 0xfb7   :  { %3147 = vperm.xlu1 %3579, %v3906_v11  }
 0xfe8   :  { %v3142_v42 = vpop.permute.xlu0 %3141 }
0x1001   :  { %v3234_v35 = vpop.xlane.xlu1 %3233 }
0x1002   :  { %v3235_v26 = vadd.f32 %v6417_v23, %v3234_v35  ;;  %v3280_v23 = vld [vmem:[%s6199_s6 + $0x78] sm:$0xff] }
0x1003   :  { %3285 = vmatpush.msrb.mxu0 %v3280_v23 }
0x1004   :  { %v3236_v36 = vmax.f32 %v3130_v7, %v3235_v26 }
0x1005   :  { %3286 = vmatpush.msrb.mxu0 %v3279_v50 }
0x1006   :  { %v3237_v44 = vsub.f32 %v3130_v7, %v3236_v36  ;;  %v3240_v51 = vsub.f32 %v3235_v26, %v3236_v36  ;;  %v3278_v7 = vld [vmem:[%s6199_s6 + $0x68] sm:$0xff] }
0x1007   :  { %3287 = vmatpush.msrb.mxu0 %v3278_v7 }
0x1008   :  { %v3238_v1 = vmul.f32 1.442695, %v3237_v44  ;;  %v3241_v2 = vmul.f32 1.442695, %v3240_v51  ;;  %v3307_v51 = vld [vmem:[%s6200_s8 + $0x8] sm:$0xff] }
0x1009   :  { %3288 = vmatpush.msrb.mxu0 %v3277_v29 }
0x100a   :  { %3917 = vpow2.f32 %v3238_v1 }
0x100b   :  { %3919 = vpow2.f32 %v3241_v2  ;;  %3289 = vmatpush.msrb.mxu0 %v3276_v55 }
0x100d   :  { %3290 = vmatpush.msrb.mxu0 %v3275_v33 }
0x100f   :  { %3291 = vmatpush.msrb.mxu0 %v3274_v43 }
0x1010   :  { %v3918_v13 = vpop.eup %3917 }
0x1011   :  { %v3920_v21 = vpop.eup %3919  ;;  %v3243_v28 = vmul.f32 %v3918_v13, %v3138_v47  ;;  %3247 = vperm.xlu2 %3580, %v3918_v13   ;;  %3292 = vmatpush.msrb.mxu0 %v3273_v48  ;;  %v2930_v47 = vpop.permute.xlu2 %2929  ;;  %v3584_v13 = vld [vmem:[%s6201_s9] ss:$0 sm:$0xff] }
0x1012   :  { %3253 = vperm.xlu0 %3578, %v3920_v21  }
0x1013   :  { %v3244_v53 = vadd.f32 %v3920_v21, %v3243_v28  ;;  %3293 = vmatpush.msrb.mxu0 %v3272_v54 }
0x1015   :  { %3921 = vrcp.f32 %v3244_v53  ;;  %3294 = vmatpush.msrb.mxu0 %v3271_v58 }
0x1017   :  { %3295 = vmatpush.msrb.mxu0 %v3270_v6 }
0x1019   :  { %3296 = vmatpush.msrb.mxu0 %v3269_v8  ;;  %v2830_v41 = vpop.permute.xlu1 %2829  ;;  %v3042_v4 = vpop.permute.xlu2 %3041 }
0x101a   :  { %v2832_v25 = vmul.f32 %v2830_v41, %v5932_v62  ;;  %v3311_v62 = vld [vmem:[%s6200_s8 + $0x28] sm:$0xff]  ;;  %v3044_v16 = vmul.f32 %v3042_v4, %v6053_v30  ;;  %v3306_v30 = vld [vmem:[%s6200_s8] sm:$0xff] }
0x101b   :  { %v3922_v18 = vpop.eup %3921  ;;  %3297 = vmatpush.msrb.mxu0 %v3268_v10  ;;  %3332 = vmatpush.msrb.mxu1 %v3311_v62 }
0x101c   :  { %3261 = vperm.xlu1 %3579, %v3922_v18   ;;  %v2833_v11 = vadd.f32 %v2832_v25, %v2826_v14 }
0x101d   :  { %3298 = vmatpush.msrb.mxu0 %v3267_v56  ;;  %3333 = vmatpush.msrb.mxu1 %v3310_v61 }
0x101e   :  { %v2932_v49 = vmul.f32 %v2930_v47, %v2833_v11 }
0x101f   :  { %3299 = vmatpush.msrb.mxu0 %v3266_v45  ;;  %3334 = vmatpush.msrb.mxu1 %v3309_v57 }
0x1020   :  { %v2939_v12 = vadd.f32 %v2938_v17, %v2932_v49 }
0x1021   :  { %3300 = vmatpush.msrb.mxu0 %v3265_v19  ;;  %v3036_v9 = vpop.permute.xlu1 %3035  ;;  %3335 = vmatpush.msrb.mxu1 %v3308_v0 }
0x1022   :  { %v3038_v39 = vmul.f32 %v3036_v9, %v2939_v12 }
0x1023   :  { %3336 = vmatpush.msrb.mxu1 %v3307_v51 }
0x1024   :  { %v3045_v37 = vadd.f32 %v3044_v16, %v3038_v39 }
0x1025   :  { %3337 = vmatpush.msrb.mxu1 %v3306_v30 }
0x1026   :  { %v3144_v5 = vmul.f32 %v3142_v42, %v3045_v37 }
0x1029   :  { %v3148_v40 = vpop.permute.xlu1 %3147 }
0x102a   :  { %v3150_v31 = vmul.f32 %v3148_v40, %v6079_v38  ;;  %v3583_v38 = vld [vmem:[%s6198_s7] ss:$0 sm:$0xff] }
0x102c   :  { %v3151_v52 = vadd.f32 %v3150_v31, %v3144_v5 }
0x106b   :  { %v3248_v20 = vpop.permute.xlu2 %3247 }
0x106c   :  { %v3250_v35 = vmul.f32 %v3248_v20, %v3151_v52 }
0x1084   :  { %v3254_v63 = vpop.permute.xlu0 %3253 }
0x1085   :  { %v3256_v34 = vmul.f32 %v3254_v63, %v6097_v22 }
0x1087   :  { %v3257_v26 = vadd.f32 %v3256_v34, %v3250_v35 }
0x108e   :  { %v3262_v36 = vpop.permute.xlu1 %3261 }
0x108f   :  { %v3264_v44 = vmul.f32 %v3262_v36, %v3257_v26 }
0x1091   :  { %3301 = vmatmul.f32.vlgmr.msrb.gmra.mxu0 %v3264_v44 }
0x110e   :  { %v3302_v22 = vpop.f32.mrf.mxu0 }
0x110f   :  { %v3303_v1 = vadd.f32 %v3583_v38, %v3302_v22 }
0x1111   :  { %v3305_v2 = vmax.f32 %v3303_v1, 0.0 }
0x1113   :  { %3539 = vmatmul.msk.f32.vlgmr.msrb.gmra.mxu1 %vm3318_vm1, %v3305_v2 }
0x1190   :  { %v3339_v21 = vpop.f32.mrf.mxu1 }
0x1191   :  { %v3340_v28 = vadd.f32 %v3584_v13, %v3339_v21 }
0x1193   :  { %3342 = vst [vmem:[%s6202_s10] sm:$0xff] %v3340_v28 }

</bundles_post_ra>
